<compile_context>
chip_gen: v6e
topology: v6e:2x2x1
jax: 0.10.0
libtpu: 0.0.40
codegen_flags: <defaults>
</compile_context>

<pallas_src>
import functools

import jax
import jax.numpy as jnp
from jax.experimental import pallas as pl
from jax.experimental.pallas import tpu as pltpu


def _dropout_linear_kernel(x_ref, m_ref, w_ref, b_ref, o_ref):
    """One (N-block j, K-block k) grid step of y = (x * mask) @ W_T + b."""
    k = pl.program_id(1)

    # Dropout: mask holds 0.0 (dropped) or 2.0 (kept, scaled by 1/(1-p)).
    x_drop = x_ref[...] * m_ref[...]

    # Partial matmul on the MXU for this K-chunk / N-block.
    part = jnp.dot(x_drop, w_ref[...], preferred_element_type=jnp.float32)

    # Output block is resident across the K (reduction) axis: accumulate
    # directly into o_ref. Bias is folded in at the first step.
    @pl.when(k == 0)
    def _():
        o_ref[...] = part + b_ref[...]

    @pl.when(k != 0)
    def _():
        o_ref[...] += part


@functools.partial(jax.jit, static_argnames=("block_k", "block_n"))
def dropout_linear(x, w_t, b, key, *, block_k=2048, block_n=512):
    """y = dropout(x, p=0.5) @ w_t + b  (training-mode dropout).

    x:   [B, K]  float32
    w_t: [K, N]  float32   (transposed torch Linear weight)
    b:   [N]     float32
    key: jax PRNG key for the dropout mask
    """
    B, K = x.shape
    K2, N = w_t.shape
    assert K == K2
    assert K % block_k == 0

    # Lane-dense output: pad N up to a multiple of block_n (and 128).
    n_pad = ((N + block_n - 1) // block_n) * block_n
    if n_pad != N:
        w_t = jnp.pad(w_t, ((0, 0), (0, n_pad - N)))
        b = jnp.pad(b, (0, n_pad - N))
    b2d = b.reshape(1, n_pad)

    # Dropout mask (0.0 or 2.0), generated outside the kernel so the kernel
    # lowers cleanly on both hardware and interpret mode.
    keep = jax.random.bernoulli(key, 0.5, (B, K))
    mask = keep.astype(x.dtype) * jnp.asarray(2.0, dtype=x.dtype)

    grid = (n_pad // block_n, K // block_k)  # (parallel N, reduction K)

    grid_spec = pltpu.PrefetchScalarGridSpec(
        num_scalar_prefetch=0,
        grid=grid,
        in_specs=[
            pl.BlockSpec((B, block_k), lambda j, k: (0, k)),        # x
            pl.BlockSpec((B, block_k), lambda j, k: (0, k)),        # mask
            pl.BlockSpec((block_k, block_n), lambda j, k: (k, j)),  # W_T
            pl.BlockSpec((1, block_n), lambda j, k: (0, j)),        # bias
        ],
        out_specs=pl.BlockSpec((B, block_n), lambda j, k: (0, j)),
    )

    bytes_accessed = (
        K * n_pad * 4          # W_T stream (dominant)
        + 2 * B * K * 4        # x + mask
        + n_pad * 4            # bias
        + B * n_pad * 4        # output
    )
    cost = pl.CostEstimate(
        flops=2 * B * K * n_pad,
        transcendentals=0,
        bytes_accessed=bytes_accessed,
    )

    y_pad = pl.pallas_call(
        _dropout_linear_kernel,
        out_shape=jax.ShapeDtypeStruct((B, n_pad), x.dtype),
        grid_spec=grid_spec,
        compiler_params=pltpu.CompilerParams(
            dimension_semantics=("parallel", "arbitrary"),
            vmem_limit_bytes=32 * 1024 * 1024,
        ),
        cost_estimate=cost,
    )(x, mask, w_t, b2d)

    return y_pad[:, :N]


if __name__ == "__main__":
    # Module-implied shapes: Linear(4096 -> 1000); torch input x38 is [1, 4096].
    # Use a small batch of 2 for the example run.
    B, K, N = 2, 4096, 1000

    key = jax.random.PRNGKey(0)
    kx, kw, kb, kd = jax.random.split(key, 4)

    x = jax.random.normal(kx, (B, K), dtype=jnp.float32)
    # Deterministic "Linear" parameters (torch stores weight as [N, K]).
    w = jax.random.normal(kw, (N, K), dtype=jnp.float32) * 0.02
    bias = jax.random.normal(kb, (N,), dtype=jnp.float32) * 0.02
    w_t = jnp.transpose(w)  # [K, N]

    y = dropout_linear(x, w_t, bias, kd)
    jax.block_until_ready(y)

    assert y.shape == (B, N)
    assert y.dtype == jnp.float32
    assert bool(jnp.all(jnp.isfinite(y)))

    # Reference check with the identical dropout mask.
    keep_ref = jax.random.bernoulli(kd, 0.5, (B, K))
    x_drop_ref = x * keep_ref.astype(x.dtype) * 2.0
    y_ref = x_drop_ref @ w_t + bias
    assert bool(jnp.allclose(y, y_ref, rtol=1e-2, atol=1e-2))

    print("KERNEL_OK")
</pallas_src>

<mosaic_0001>
module attributes {stable_mosaic.version = 11 : i64} {
  func.func @_dropout_linear_kernel(%arg0: i32, %arg1: i32, %arg2: memref<2x2048xf32, #tpu.memory_space<vmem>>, %arg3: memref<2x2048xf32, #tpu.memory_space<vmem>>, %arg4: memref<2048x512xf32, #tpu.memory_space<vmem>>, %arg5: memref<1x512xf32, #tpu.memory_space<vmem>>, %arg6: memref<2x512xf32, #tpu.memory_space<vmem>>) attributes {dimension_semantics = [#tpu.dimension_semantics<parallel>, #tpu.dimension_semantics<arbitrary>], iteration_bounds = array<i64: 2, 2>, scalar_prefetch = 0 : i64, scratch_operands = 0 : i64, tpu.core_type = #tpu.core_type<tc>, window_params = [{transform_indices = @transform_0, window_bounds = array<i64: 2, 2048>}, {transform_indices = @transform_1, window_bounds = array<i64: 2, 2048>}, {transform_indices = @transform_2, window_bounds = array<i64: 2048, 512>}, {transform_indices = @transform_3, window_bounds = array<i64: 1, 512>}, {transform_indices = @transform_4, window_bounds = array<i64: 2, 512>}]} {
    %c0 = arith.constant 0 : index
    %c0_0 = arith.constant 0 : index
    %0 = vector.load %arg2[%c0, %c0_0] : memref<2x2048xf32, #tpu.memory_space<vmem>>, vector<2x2048xf32>
    %c0_1 = arith.constant 0 : index
    %c0_2 = arith.constant 0 : index
    %1 = vector.load %arg3[%c0_1, %c0_2] : memref<2x2048xf32, #tpu.memory_space<vmem>>, vector<2x2048xf32>
    %2 = arith.mulf %0, %1 : vector<2x2048xf32>
    %c0_3 = arith.constant 0 : index
    %c0_4 = arith.constant 0 : index
    %3 = vector.load %arg4[%c0_3, %c0_4] : memref<2048x512xf32, #tpu.memory_space<vmem>>, vector<2048x512xf32>
    %cst = arith.constant dense<0.000000e+00> : vector<2x512xf32>
    %4 = tpu.matmul %2, %3, %cst {dimension_numbers = #tpu.dot_dimension_numbers<[1], [0], [0], [1], [0, 0, 1, 1], [], []>} : vector<2x2048xf32>, vector<2048x512xf32>, vector<2x512xf32> -> vector<2x512xf32>
    %c0_i32 = arith.constant 0 : i32
    %5 = arith.cmpi eq, %arg1, %c0_i32 : i32
    %6 = arith.extui %5 : i1 to i32
    %c0_i32_5 = arith.constant 0 : i32
    %7 = arith.cmpi ne, %6, %c0_i32_5 : i32
    scf.if %7 {
      %c0_8 = arith.constant 0 : index
      %c0_9 = arith.constant 0 : index
      %11 = vector.load %arg5[%c0_8, %c0_9] : memref<1x512xf32, #tpu.memory_space<vmem>>, vector<1x512xf32>
      %12 = vector.broadcast %11 : vector<1x512xf32> to vector<2x512xf32>
      %13 = arith.addf %4, %12 : vector<2x512xf32>
      %c0_10 = arith.constant 0 : index
      %c0_11 = arith.constant 0 : index
      %14 = vector.load %arg6[%c0_10, %c0_11] : memref<2x512xf32, #tpu.memory_space<vmem>>, vector<2x512xf32>
      tpu.vector_store %arg6[%c0_10, %c0_11], %13 {strides = array<i32>} : memref<2x512xf32, #tpu.memory_space<vmem>>, vector<2x512xf32>,
    } else {
    }
    %c0_i32_6 = arith.constant 0 : i32
    %8 = arith.cmpi ne, %arg1, %c0_i32_6 : i32
    %9 = arith.extui %8 : i1 to i32
    %c0_i32_7 = arith.constant 0 : i32
    %10 = arith.cmpi ne, %9, %c0_i32_7 : i32
    scf.if %10 {
      %c0_8 = arith.constant 0 : index
      %c0_9 = arith.constant 0 : index
      %11 = vector.load %arg6[%c0_8, %c0_9] : memref<2x512xf32, #tpu.memory_space<vmem>>, vector<2x512xf32>
      %12 = arith.addf %11, %4 : vector<2x512xf32>
      %c0_10 = arith.constant 0 : index
      %c0_11 = arith.constant 0 : index
      %13 = vector.load %arg6[%c0_10, %c0_11] : memref<2x512xf32, #tpu.memory_space<vmem>>, vector<2x512xf32>
      tpu.vector_store %arg6[%c0_10, %c0_11], %12 {strides = array<i32>} : memref<2x512xf32, #tpu.memory_space<vmem>>, vector<2x512xf32>,
    } else {
    }
    return
  }
  func.func @transform_0(%arg0: i32, %arg1: i32) -> (i32, i32) {
    %c0_i32 = arith.constant 0 : i32
    %c0_i32_0 = arith.constant 0 : i32
    return %c0_i32, %arg1 : i32, i32
  }
  func.func @transform_1(%arg0: i32, %arg1: i32) -> (i32, i32) {
    %c0_i32 = arith.constant 0 : i32
    %c0_i32_0 = arith.constant 0 : i32
    return %c0_i32, %arg1 : i32, i32
  }
  func.func @transform_2(%arg0: i32, %arg1: i32) -> (i32, i32) {
    %c0_i32 = arith.constant 0 : i32
    return %arg1, %arg0 : i32, i32
  }
  func.func @transform_3(%arg0: i32, %arg1: i32) -> (i32, i32) {
    %c0_i32 = arith.constant 0 : i32
    %c0_i32_0 = arith.constant 0 : i32
    return %c0_i32, %arg0 : i32, i32
  }
  func.func @transform_4(%arg0: i32, %arg1: i32) -> (i32, i32) {
    %c0_i32 = arith.constant 0 : i32
    %c0_i32_0 = arith.constant 0 : i32
    return %c0_i32, %arg0 : i32, i32
  }
}

</mosaic_0001>

<bundles_post_ra>
// kernel: dropout_linear.1
= control target key start
LH: loop header
LB: loop body
LE: loop exit
PB: predicated region body
PF: predicated region fallthrough
CT: control target
= control target key end

     0   :  { %9 = vsyncpa [#allocation4], 0  ;;  %s8464_s0 = inlined_call_operand.vmem [shape: f32[2,4096], index: 0, kind: input, shape index: {}]   ;;  %s8465_s1 = inlined_call_operand.vmem [shape: f32[2,4096], index: 1, kind: input, shape index: {}]   ;;  %s8466_s2 = inlined_call_operand.vmem [shape: f32[4096,1024], index: 2, kind: input, shape index: {}]   ;;  %s8467_s3 = inlined_call_operand.vmem [shape: f32[1,1024], index: 3, kind: input, shape index: {}]   ;;  %s8468_s4 = inlined_call_operand.hbm [shape: f32[2,1024], index: 4, kind: output, shape index: {}]  }
   0x1   :  { %11 = vsyncpa [#allocation4 + $0x1], 0  ;;  %s5065_s15 = smov 0   ;;  %s5067_s16 = smov 0  }
   0x2   :  { %s5069_s17 = smov 0   ;;  %s5071_s18 = smov 0  }
   0x3   :  { %s5073_s19 = smov 0   ;;  %s5075_s20 = smov 0  }
   0x4   :  { %s5077_s21 = smov 0   ;;  %s5079_s22 = smov 0  }
   0x5   :  { %s5081_s23 = smov 0   ;;  %s5083_s24 = smov 0  }
   0x6 LB: > { %s4814_s25 = sadd.s32 4294967295, %s5036_s24   ;;  %s4815_s26 = sadd.s32 4294967294, %s5036_s24   ;;  %s5036_s24 = sphi %s5083_s24, %s17_s24   ;;  %s5032_s23 = sphi %s5081_s23, %s8483_s23   ;;  %s5028_s22 = sphi %s5079_s22, %s8482_s22   ;;  %s5024_s21 = sphi %s5077_s21, %s8481_s21   ;;  %s5020_s20 = sphi %s5075_s20, %s8480_s20   ;;  %s5016_s19 = sphi %s5073_s19, %s8479_s19   ;;  %s5012_s18 = sphi %s5071_s18, %s8478_s18   ;;  %s5008_s17 = sphi %s5069_s17, %s8477_s17   ;;  %s5004_s16 = sphi %s5067_s16, %s8476_s16   ;;  %s5000_s15 = sphi %s5065_s15, %s8475_s15  }
   0x7   : > { %s26_s27 = sadd.s32 1, %s5028_s22  ;;  %s29_s28 = sadd.s32 1, %s5032_s23 }
   0x8   : > { %p27_p0 = scmp.ge.s32.totalorder %s26_s27, 2  ;;  %s90_s29 = sadd.s32 1, %s5016_s19 }
   0x9   : > { %p97_p1 = scmp.ne.s32.totalorder %s5016_s19, %s5012_s18  ;;  %p98_p2 = scmp.eq.s32.totalorder %s5036_s24, 0 }
   0xa   : > { %s8485_s27 = smov (%p27_p0, %s26_s27), 0  ;;  %s8487_s28 = smov (!%p27_p0, %s29_s28), %s5032_s23 }
   0xb   : > { %s85_s30 = ssub.s32 %s5028_s22, %s8485_s27  ;;  %p5128_p3 = por %p98_p2, %p97_p1 }
   0xc   : > { %p31_p4 = scmp.ge.s32.totalorder %s8487_s28, 2  ;;  %s142_s6 = sadd.s32 1, %s5008_s17 }
   0xd   : > { %p152_p5 = scmp.ne.s32.totalorder %s5008_s17, %s5004_s16  ;;  %p153_p6 = scmp.eq.s32.totalorder %s4814_s25, 3 }
   0xe   : > { %s8489_s28 = smov (%p31_p4, %s8487_s28), 0  ;;  %p158_p8 = scmp.ne.s32.totalorder %s5004_s16, %s5000_s15 }
   0xf   : > { %p5137_p7 = por %p153_p6, %p152_p5  ;;  %s86_s8 = ssub.s32 %s5032_s23, %s8489_s28 }
  0x10   : > { %p159_p9 = scmp.eq.s32.totalorder %s4815_s26, 3  ;;  %s87_s9 = sor.u32 %s86_s8, %s85_s30 }
  0x11   : > { %p140_p10 = scmp.eq.s32.totalorder %s86_s8, 0  ;;  %p88_p11 = scmp.eq.s32.totalorder %s87_s9, 0 }
  0x12   : > { %p5145_p12 = por %p159_p9, %p158_p8  ;;  %p4817_p13 = scmp.ge.s32.totalorder %s5036_s24, 4 }
  0x13   : > { %s5150_s11 = scalar_select %p140_p10, %s5008_s17, %s142_s6  }
  0x14   : > { %s5153_s12 = scalar_select %p88_p11, %s5016_s19, %s90_s29  }
  0x15   : > { %175 = sbr.rel (%p4817_p13) target bundleno = 545 (0x221), region = 16 }
  0x1a   : > { %196 = sbr.rel (!%p5128_p3) target bundleno = 545 (0x221), region = 28  ;;  %s198_s13 = sand.u32 (%p5128_p3), 1, %s5016_s19  }
  0x1b   : > { %s4820_s14 = sshll.u32 (%p5128_p3), %s5032_s23, 2  ;;  %s4818_s25 = sshll.u32 (%p5128_p3), %s198_s13, 13 }
  0x1c   : > { %s4838_s26 = sshll.u32 (%p5128_p3), %s5028_s22, 11  ;;  %s5169_s5 = scalar_lea.vmem (%p5128_p3), [#allocation2], %s4818_s25 }
  0x1d   : > { %s204_s30 = sadd.s32 (%p5128_p3), %s4838_s26, %s4820_s14 }
  0x1e   : > { %s4822_s8 = sshll.u32 (%p5128_p3), %s204_s30, 3 }
  0x1f   : > { %s5164_s29 = scalar_lea.vmem %s8466_s2, %s4822_s8 }
  0x20   : > { %v219_v0 = vld [vmem:[%s5164_s29] sm:$0xff]  ;;  %v221_v1 = vld [vmem:[%s5164_s29 + $0x8] sm:$0xff]  ;;  %v223_v2 = vld [vmem:[%s5164_s29 + $0x10] sm:$0xff] }
  0x21   : > { %220 = vst [vmem:[%s5169_s5] sm:$0xff] %v219_v0  ;;  %222 = vst [vmem:[%s5169_s5 + $0x8] sm:$0xff] %v221_v1  ;;  %v225_v3 = vld [vmem:[%s5164_s29 + $0x18] sm:$0xff]  ;;  %v227_v4 = vld [vmem:[%s5164_s29 + $0x40] sm:$0xff] }
  0x22   : > { %224 = vst [vmem:[%s5169_s5 + $0x10] sm:$0xff] %v223_v2  ;;  %v229_v5 = vld [vmem:[%s5164_s29 + $0x48] sm:$0xff]  ;;  %226 = vst [vmem:[%s5169_s5 + $0x18] sm:$0xff] %v225_v3  ;;  %v231_v6 = vld [vmem:[%s5164_s29 + $0x50] sm:$0xff] }
  0x23   : > { %228 = vst [vmem:[%s5169_s5 + $0x20] sm:$0xff] %v227_v4  ;;  %230 = vst [vmem:[%s5169_s5 + $0x28] sm:$0xff] %v229_v5  ;;  %v233_v7 = vld [vmem:[%s5164_s29 + $0x58] sm:$0xff]  ;;  %v235_v8 = vld [vmem:[%s5164_s29 + $0x80] sm:$0xff] }
  0x24   : > { %232 = vst [vmem:[%s5169_s5 + $0x30] sm:$0xff] %v231_v6  ;;  %234 = vst [vmem:[%s5169_s5 + $0x38] sm:$0xff] %v233_v7  ;;  %v237_v9 = vld [vmem:[%s5164_s29 + $0x88] sm:$0xff]  ;;  %v239_v10 = vld [vmem:[%s5164_s29 + $0x90] sm:$0xff] }
  0x25   : > { %236 = vst [vmem:[%s5169_s5 + $0x40] sm:$0xff] %v235_v8  ;;  %v241_v11 = vld [vmem:[%s5164_s29 + $0x98] sm:$0xff]  ;;  %238 = vst [vmem:[%s5169_s5 + $0x48] sm:$0xff] %v237_v9  ;;  %v243_v12 = vld [vmem:[%s5164_s29 + $0xc0] sm:$0xff] }
  0x26   : > { %240 = vst [vmem:[%s5169_s5 + $0x50] sm:$0xff] %v239_v10  ;;  %242 = vst [vmem:[%s5169_s5 + $0x58] sm:$0xff] %v241_v11  ;;  %v245_v13 = vld [vmem:[%s5164_s29 + $0xc8] sm:$0xff]  ;;  %v247_v14 = vld [vmem:[%s5164_s29 + $0xd0] sm:$0xff] }
  0x27   : > { %244 = vst [vmem:[%s5169_s5 + $0x60] sm:$0xff] %v243_v12  ;;  %246 = vst [vmem:[%s5169_s5 + $0x68] sm:$0xff] %v245_v13  ;;  %v249_v15 = vld [vmem:[%s5164_s29 + $0xd8] sm:$0xff]  ;;  %v251_v16 = vld [vmem:[%s5164_s29 + $0x100] sm:$0xff] }
  0x28   : > { %248 = vst [vmem:[%s5169_s5 + $0x70] sm:$0xff] %v247_v14  ;;  %v253_v17 = vld [vmem:[%s5164_s29 + $0x108] sm:$0xff]  ;;  %250 = vst [vmem:[%s5169_s5 + $0x78] sm:$0xff] %v249_v15  ;;  %v255_v18 = vld [vmem:[%s5164_s29 + $0x110] sm:$0xff] }
  0x29   : > { %252 = vst [vmem:[%s5169_s5 + $0x80] sm:$0xff] %v251_v16  ;;  %254 = vst [vmem:[%s5169_s5 + $0x88] sm:$0xff] %v253_v17  ;;  %v257_v19 = vld [vmem:[%s5164_s29 + $0x118] sm:$0xff]  ;;  %v259_v20 = vld [vmem:[%s5164_s29 + $0x140] sm:$0xff] }
  0x2a   : > { %256 = vst [vmem:[%s5169_s5 + $0x90] sm:$0xff] %v255_v18  ;;  %258 = vst [vmem:[%s5169_s5 + $0x98] sm:$0xff] %v257_v19  ;;  %v261_v21 = vld [vmem:[%s5164_s29 + $0x148] sm:$0xff]  ;;  %v263_v22 = vld [vmem:[%s5164_s29 + $0x150] sm:$0xff] }
  0x2b   : > { %260 = vst [vmem:[%s5169_s5 + $0xa0] sm:$0xff] %v259_v20  ;;  %v265_v23 = vld [vmem:[%s5164_s29 + $0x158] sm:$0xff]  ;;  %262 = vst [vmem:[%s5169_s5 + $0xa8] sm:$0xff] %v261_v21  ;;  %v267_v24 = vld [vmem:[%s5164_s29 + $0x180] sm:$0xff] }
  0x2c   : > { %264 = vst [vmem:[%s5169_s5 + $0xb0] sm:$0xff] %v263_v22  ;;  %266 = vst [vmem:[%s5169_s5 + $0xb8] sm:$0xff] %v265_v23  ;;  %v269_v25 = vld [vmem:[%s5164_s29 + $0x188] sm:$0xff]  ;;  %v271_v26 = vld [vmem:[%s5164_s29 + $0x190] sm:$0xff] }
  0x2d   : > { %268 = vst [vmem:[%s5169_s5 + $0xc0] sm:$0xff] %v267_v24  ;;  %270 = vst [vmem:[%s5169_s5 + $0xc8] sm:$0xff] %v269_v25  ;;  %v273_v27 = vld [vmem:[%s5164_s29 + $0x198] sm:$0xff]  ;;  %v275_v28 = vld [vmem:[%s5164_s29 + $0x1c0] sm:$0xff] }
  0x2e   : > { %272 = vst [vmem:[%s5169_s5 + $0xd0] sm:$0xff] %v271_v26  ;;  %v277_v29 = vld [vmem:[%s5164_s29 + $0x1c8] sm:$0xff]  ;;  %274 = vst [vmem:[%s5169_s5 + $0xd8] sm:$0xff] %v273_v27  ;;  %v279_v30 = vld [vmem:[%s5164_s29 + $0x1d0] sm:$0xff] }
  0x2f   : > { %276 = vst [vmem:[%s5169_s5 + $0xe0] sm:$0xff] %v275_v28  ;;  %278 = vst [vmem:[%s5169_s5 + $0xe8] sm:$0xff] %v277_v29  ;;  %v281_v31 = vld [vmem:[%s5164_s29 + $0x1d8] sm:$0xff]  ;;  %v283_v32 = vld [vmem:[%s5164_s29 + $0x200] sm:$0xff] }
  0x30   : > { %280 = vst [vmem:[%s5169_s5 + $0xf0] sm:$0xff] %v279_v30  ;;  %282 = vst [vmem:[%s5169_s5 + $0xf8] sm:$0xff] %v281_v31  ;;  %v285_v33 = vld [vmem:[%s5164_s29 + $0x208] sm:$0xff]  ;;  %v287_v34 = vld [vmem:[%s5164_s29 + $0x210] sm:$0xff] }
  0x31   : > { %284 = vst [vmem:[%s5169_s5 + $0x100] sm:$0xff] %v283_v32  ;;  %v289_v35 = vld [vmem:[%s5164_s29 + $0x218] sm:$0xff]  ;;  %286 = vst [vmem:[%s5169_s5 + $0x108] sm:$0xff] %v285_v33  ;;  %v291_v36 = vld [vmem:[%s5164_s29 + $0x240] sm:$0xff] }
  0x32   : > { %288 = vst [vmem:[%s5169_s5 + $0x110] sm:$0xff] %v287_v34  ;;  %290 = vst [vmem:[%s5169_s5 + $0x118] sm:$0xff] %v289_v35  ;;  %v293_v37 = vld [vmem:[%s5164_s29 + $0x248] sm:$0xff]  ;;  %v295_v38 = vld [vmem:[%s5164_s29 + $0x250] sm:$0xff] }
  0x33   : > { %292 = vst [vmem:[%s5169_s5 + $0x120] sm:$0xff] %v291_v36  ;;  %294 = vst [vmem:[%s5169_s5 + $0x128] sm:$0xff] %v293_v37  ;;  %v297_v39 = vld [vmem:[%s5164_s29 + $0x258] sm:$0xff]  ;;  %v299_v40 = vld [vmem:[%s5164_s29 + $0x280] sm:$0xff] }
  0x34   : > { %296 = vst [vmem:[%s5169_s5 + $0x130] sm:$0xff] %v295_v38  ;;  %v301_v41 = vld [vmem:[%s5164_s29 + $0x288] sm:$0xff]  ;;  %298 = vst [vmem:[%s5169_s5 + $0x138] sm:$0xff] %v297_v39  ;;  %v303_v42 = vld [vmem:[%s5164_s29 + $0x290] sm:$0xff] }
  0x35   : > { %300 = vst [vmem:[%s5169_s5 + $0x140] sm:$0xff] %v299_v40  ;;  %302 = vst [vmem:[%s5169_s5 + $0x148] sm:$0xff] %v301_v41  ;;  %v305_v43 = vld [vmem:[%s5164_s29 + $0x298] sm:$0xff]  ;;  %v307_v44 = vld [vmem:[%s5164_s29 + $0x2c0] sm:$0xff] }
  0x36   : > { %304 = vst [vmem:[%s5169_s5 + $0x150] sm:$0xff] %v303_v42  ;;  %306 = vst [vmem:[%s5169_s5 + $0x158] sm:$0xff] %v305_v43  ;;  %v309_v45 = vld [vmem:[%s5164_s29 + $0x2c8] sm:$0xff]  ;;  %v311_v46 = vld [vmem:[%s5164_s29 + $0x2d0] sm:$0xff] }
  0x37   : > { %308 = vst [vmem:[%s5169_s5 + $0x160] sm:$0xff] %v307_v44  ;;  %v313_v47 = vld [vmem:[%s5164_s29 + $0x2d8] sm:$0xff]  ;;  %310 = vst [vmem:[%s5169_s5 + $0x168] sm:$0xff] %v309_v45  ;;  %v315_v48 = vld [vmem:[%s5164_s29 + $0x300] sm:$0xff] }
  0x38   : > { %312 = vst [vmem:[%s5169_s5 + $0x170] sm:$0xff] %v311_v46  ;;  %314 = vst [vmem:[%s5169_s5 + $0x178] sm:$0xff] %v313_v47  ;;  %v317_v49 = vld [vmem:[%s5164_s29 + $0x308] sm:$0xff]  ;;  %v319_v50 = vld [vmem:[%s5164_s29 + $0x310] sm:$0xff] }
  0x39   : > { %316 = vst [vmem:[%s5169_s5 + $0x180] sm:$0xff] %v315_v48  ;;  %318 = vst [vmem:[%s5169_s5 + $0x188] sm:$0xff] %v317_v49  ;;  %v321_v51 = vld [vmem:[%s5164_s29 + $0x318] sm:$0xff]  ;;  %v323_v52 = vld [vmem:[%s5164_s29 + $0x340] sm:$0xff] }
  0x3a   : > { %320 = vst [vmem:[%s5169_s5 + $0x190] sm:$0xff] %v319_v50  ;;  %v325_v53 = vld [vmem:[%s5164_s29 + $0x348] sm:$0xff]  ;;  %322 = vst [vmem:[%s5169_s5 + $0x198] sm:$0xff] %v321_v51  ;;  %v327_v54 = vld [vmem:[%s5164_s29 + $0x350] sm:$0xff] }
  0x3b   : > { %324 = vst [vmem:[%s5169_s5 + $0x1a0] sm:$0xff] %v323_v52  ;;  %326 = vst [vmem:[%s5169_s5 + $0x1a8] sm:$0xff] %v325_v53  ;;  %v329_v55 = vld [vmem:[%s5164_s29 + $0x358] sm:$0xff]  ;;  %v331_v56 = vld [vmem:[%s5164_s29 + $0x380] sm:$0xff] }
  0x3c   : > { %328 = vst [vmem:[%s5169_s5 + $0x1b0] sm:$0xff] %v327_v54  ;;  %330 = vst [vmem:[%s5169_s5 + $0x1b8] sm:$0xff] %v329_v55  ;;  %v333_v57 = vld [vmem:[%s5164_s29 + $0x388] sm:$0xff]  ;;  %v335_v58 = vld [vmem:[%s5164_s29 + $0x390] sm:$0xff] }
  0x3d   : > { %332 = vst [vmem:[%s5169_s5 + $0x1c0] sm:$0xff] %v331_v56  ;;  %v337_v59 = vld [vmem:[%s5164_s29 + $0x398] sm:$0xff]  ;;  %334 = vst [vmem:[%s5169_s5 + $0x1c8] sm:$0xff] %v333_v57  ;;  %v339_v60 = vld [vmem:[%s5164_s29 + $0x3c0] sm:$0xff] }
  0x3e   : > { %336 = vst [vmem:[%s5169_s5 + $0x1d0] sm:$0xff] %v335_v58  ;;  %338 = vst [vmem:[%s5169_s5 + $0x1d8] sm:$0xff] %v337_v59  ;;  %v341_v61 = vld [vmem:[%s5164_s29 + $0x3c8] sm:$0xff]  ;;  %v343_v62 = vld [vmem:[%s5164_s29 + $0x3d0] sm:$0xff] }
  0x3f   : > { %340 = vst [vmem:[%s5169_s5 + $0x1e0] sm:$0xff] %v339_v60  ;;  %342 = vst [vmem:[%s5169_s5 + $0x1e8] sm:$0xff] %v341_v61  ;;  %v345_v63 = vld [vmem:[%s5164_s29 + $0x3d8] sm:$0xff]  ;;  %v347_v0 = vld [vmem:[%s5164_s29 + $0x400] sm:$0xff] }
  0x40   : > { %344 = vst [vmem:[%s5169_s5 + $0x1f0] sm:$0xff] %v343_v62  ;;  %v349_v1 = vld [vmem:[%s5164_s29 + $0x408] sm:$0xff]  ;;  %346 = vst [vmem:[%s5169_s5 + $0x1f8] sm:$0xff] %v345_v63  ;;  %v351_v2 = vld [vmem:[%s5164_s29 + $0x410] sm:$0xff] }
  0x41   : > { %348 = vst [vmem:[%s5169_s5 + $0x200] sm:$0xff] %v347_v0  ;;  %350 = vst [vmem:[%s5169_s5 + $0x208] sm:$0xff] %v349_v1  ;;  %v353_v3 = vld [vmem:[%s5164_s29 + $0x418] sm:$0xff]  ;;  %v355_v4 = vld [vmem:[%s5164_s29 + $0x440] sm:$0xff] }
  0x42   : > { %352 = vst [vmem:[%s5169_s5 + $0x210] sm:$0xff] %v351_v2  ;;  %354 = vst [vmem:[%s5169_s5 + $0x218] sm:$0xff] %v353_v3  ;;  %v357_v5 = vld [vmem:[%s5164_s29 + $0x448] sm:$0xff]  ;;  %v359_v6 = vld [vmem:[%s5164_s29 + $0x450] sm:$0xff] }
  0x43   : > { %356 = vst [vmem:[%s5169_s5 + $0x220] sm:$0xff] %v355_v4  ;;  %v361_v7 = vld [vmem:[%s5164_s29 + $0x458] sm:$0xff]  ;;  %358 = vst [vmem:[%s5169_s5 + $0x228] sm:$0xff] %v357_v5  ;;  %v363_v8 = vld [vmem:[%s5164_s29 + $0x480] sm:$0xff] }
  0x44   : > { %360 = vst [vmem:[%s5169_s5 + $0x230] sm:$0xff] %v359_v6  ;;  %362 = vst [vmem:[%s5169_s5 + $0x238] sm:$0xff] %v361_v7  ;;  %v365_v9 = vld [vmem:[%s5164_s29 + $0x488] sm:$0xff]  ;;  %v367_v10 = vld [vmem:[%s5164_s29 + $0x490] sm:$0xff] }
  0x45   : > { %364 = vst [vmem:[%s5169_s5 + $0x240] sm:$0xff] %v363_v8  ;;  %366 = vst [vmem:[%s5169_s5 + $0x248] sm:$0xff] %v365_v9  ;;  %v369_v11 = vld [vmem:[%s5164_s29 + $0x498] sm:$0xff]  ;;  %v371_v12 = vld [vmem:[%s5164_s29 + $0x4c0] sm:$0xff] }
  0x46   : > { %368 = vst [vmem:[%s5169_s5 + $0x250] sm:$0xff] %v367_v10  ;;  %v373_v13 = vld [vmem:[%s5164_s29 + $0x4c8] sm:$0xff]  ;;  %370 = vst [vmem:[%s5169_s5 + $0x258] sm:$0xff] %v369_v11  ;;  %v375_v14 = vld [vmem:[%s5164_s29 + $0x4d0] sm:$0xff] }
  0x47   : > { %372 = vst [vmem:[%s5169_s5 + $0x260] sm:$0xff] %v371_v12  ;;  %374 = vst [vmem:[%s5169_s5 + $0x268] sm:$0xff] %v373_v13  ;;  %v377_v15 = vld [vmem:[%s5164_s29 + $0x4d8] sm:$0xff]  ;;  %v379_v16 = vld [vmem:[%s5164_s29 + $0x500] sm:$0xff] }
  0x48   : > { %376 = vst [vmem:[%s5169_s5 + $0x270] sm:$0xff] %v375_v14  ;;  %378 = vst [vmem:[%s5169_s5 + $0x278] sm:$0xff] %v377_v15  ;;  %v381_v17 = vld [vmem:[%s5164_s29 + $0x508] sm:$0xff]  ;;  %v383_v18 = vld [vmem:[%s5164_s29 + $0x510] sm:$0xff] }
  0x49   : > { %380 = vst [vmem:[%s5169_s5 + $0x280] sm:$0xff] %v379_v16  ;;  %v385_v19 = vld [vmem:[%s5164_s29 + $0x518] sm:$0xff]  ;;  %382 = vst [vmem:[%s5169_s5 + $0x288] sm:$0xff] %v381_v17  ;;  %v387_v20 = vld [vmem:[%s5164_s29 + $0x540] sm:$0xff] }
  0x4a   : > { %384 = vst [vmem:[%s5169_s5 + $0x290] sm:$0xff] %v383_v18  ;;  %386 = vst [vmem:[%s5169_s5 + $0x298] sm:$0xff] %v385_v19  ;;  %v389_v21 = vld [vmem:[%s5164_s29 + $0x548] sm:$0xff]  ;;  %v391_v22 = vld [vmem:[%s5164_s29 + $0x550] sm:$0xff] }
  0x4b   : > { %388 = vst [vmem:[%s5169_s5 + $0x2a0] sm:$0xff] %v387_v20  ;;  %390 = vst [vmem:[%s5169_s5 + $0x2a8] sm:$0xff] %v389_v21  ;;  %v393_v23 = vld [vmem:[%s5164_s29 + $0x558] sm:$0xff]  ;;  %v395_v24 = vld [vmem:[%s5164_s29 + $0x580] sm:$0xff] }
  0x4c   : > { %392 = vst [vmem:[%s5169_s5 + $0x2b0] sm:$0xff] %v391_v22  ;;  %v397_v25 = vld [vmem:[%s5164_s29 + $0x588] sm:$0xff]  ;;  %394 = vst [vmem:[%s5169_s5 + $0x2b8] sm:$0xff] %v393_v23  ;;  %v399_v26 = vld [vmem:[%s5164_s29 + $0x590] sm:$0xff] }
  0x4d   : > { %396 = vst [vmem:[%s5169_s5 + $0x2c0] sm:$0xff] %v395_v24  ;;  %398 = vst [vmem:[%s5169_s5 + $0x2c8] sm:$0xff] %v397_v25  ;;  %v401_v27 = vld [vmem:[%s5164_s29 + $0x598] sm:$0xff]  ;;  %v403_v28 = vld [vmem:[%s5164_s29 + $0x5c0] sm:$0xff] }
  0x4e   : > { %400 = vst [vmem:[%s5169_s5 + $0x2d0] sm:$0xff] %v399_v26  ;;  %402 = vst [vmem:[%s5169_s5 + $0x2d8] sm:$0xff] %v401_v27  ;;  %v405_v29 = vld [vmem:[%s5164_s29 + $0x5c8] sm:$0xff]  ;;  %v407_v30 = vld [vmem:[%s5164_s29 + $0x5d0] sm:$0xff] }
  0x4f   : > { %404 = vst [vmem:[%s5169_s5 + $0x2e0] sm:$0xff] %v403_v28  ;;  %v409_v31 = vld [vmem:[%s5164_s29 + $0x5d8] sm:$0xff]  ;;  %406 = vst [vmem:[%s5169_s5 + $0x2e8] sm:$0xff] %v405_v29  ;;  %v411_v32 = vld [vmem:[%s5164_s29 + $0x600] sm:$0xff] }
  0x50   : > { %408 = vst [vmem:[%s5169_s5 + $0x2f0] sm:$0xff] %v407_v30  ;;  %410 = vst [vmem:[%s5169_s5 + $0x2f8] sm:$0xff] %v409_v31  ;;  %v413_v33 = vld [vmem:[%s5164_s29 + $0x608] sm:$0xff]  ;;  %v415_v34 = vld [vmem:[%s5164_s29 + $0x610] sm:$0xff] }
  0x51   : > { %412 = vst [vmem:[%s5169_s5 + $0x300] sm:$0xff] %v411_v32  ;;  %414 = vst [vmem:[%s5169_s5 + $0x308] sm:$0xff] %v413_v33  ;;  %v417_v35 = vld [vmem:[%s5164_s29 + $0x618] sm:$0xff]  ;;  %v419_v36 = vld [vmem:[%s5164_s29 + $0x640] sm:$0xff] }
  0x52   : > { %416 = vst [vmem:[%s5169_s5 + $0x310] sm:$0xff] %v415_v34  ;;  %v421_v37 = vld [vmem:[%s5164_s29 + $0x648] sm:$0xff]  ;;  %418 = vst [vmem:[%s5169_s5 + $0x318] sm:$0xff] %v417_v35  ;;  %v423_v38 = vld [vmem:[%s5164_s29 + $0x650] sm:$0xff] }
  0x53   : > { %420 = vst [vmem:[%s5169_s5 + $0x320] sm:$0xff] %v419_v36  ;;  %422 = vst [vmem:[%s5169_s5 + $0x328] sm:$0xff] %v421_v37  ;;  %v425_v39 = vld [vmem:[%s5164_s29 + $0x658] sm:$0xff]  ;;  %v427_v40 = vld [vmem:[%s5164_s29 + $0x680] sm:$0xff] }
  0x54   : > { %424 = vst [vmem:[%s5169_s5 + $0x330] sm:$0xff] %v423_v38  ;;  %426 = vst [vmem:[%s5169_s5 + $0x338] sm:$0xff] %v425_v39  ;;  %v429_v41 = vld [vmem:[%s5164_s29 + $0x688] sm:$0xff]  ;;  %v431_v42 = vld [vmem:[%s5164_s29 + $0x690] sm:$0xff] }
  0x55   : > { %428 = vst [vmem:[%s5169_s5 + $0x340] sm:$0xff] %v427_v40  ;;  %v433_v43 = vld [vmem:[%s5164_s29 + $0x698] sm:$0xff]  ;;  %430 = vst [vmem:[%s5169_s5 + $0x348] sm:$0xff] %v429_v41  ;;  %v435_v44 = vld [vmem:[%s5164_s29 + $0x6c0] sm:$0xff] }
  0x56   : > { %432 = vst [vmem:[%s5169_s5 + $0x350] sm:$0xff] %v431_v42  ;;  %434 = vst [vmem:[%s5169_s5 + $0x358] sm:$0xff] %v433_v43  ;;  %v437_v45 = vld [vmem:[%s5164_s29 + $0x6c8] sm:$0xff]  ;;  %v439_v46 = vld [vmem:[%s5164_s29 + $0x6d0] sm:$0xff] }
  0x57   : > { %436 = vst [vmem:[%s5169_s5 + $0x360] sm:$0xff] %v435_v44  ;;  %438 = vst [vmem:[%s5169_s5 + $0x368] sm:$0xff] %v437_v45  ;;  %v441_v47 = vld [vmem:[%s5164_s29 + $0x6d8] sm:$0xff]  ;;  %v443_v48 = vld [vmem:[%s5164_s29 + $0x700] sm:$0xff] }
  0x58   : > { %440 = vst [vmem:[%s5169_s5 + $0x370] sm:$0xff] %v439_v46  ;;  %v445_v49 = vld [vmem:[%s5164_s29 + $0x708] sm:$0xff]  ;;  %442 = vst [vmem:[%s5169_s5 + $0x378] sm:$0xff] %v441_v47  ;;  %v447_v50 = vld [vmem:[%s5164_s29 + $0x710] sm:$0xff] }
  0x59   : > { %444 = vst [vmem:[%s5169_s5 + $0x380] sm:$0xff] %v443_v48  ;;  %446 = vst [vmem:[%s5169_s5 + $0x388] sm:$0xff] %v445_v49  ;;  %v449_v51 = vld [vmem:[%s5164_s29 + $0x718] sm:$0xff]  ;;  %v451_v52 = vld [vmem:[%s5164_s29 + $0x740] sm:$0xff] }
  0x5a   : > { %448 = vst [vmem:[%s5169_s5 + $0x390] sm:$0xff] %v447_v50  ;;  %450 = vst [vmem:[%s5169_s5 + $0x398] sm:$0xff] %v449_v51  ;;  %v453_v53 = vld [vmem:[%s5164_s29 + $0x748] sm:$0xff]  ;;  %v455_v54 = vld [vmem:[%s5164_s29 + $0x750] sm:$0xff] }
  0x5b   : > { %452 = vst [vmem:[%s5169_s5 + $0x3a0] sm:$0xff] %v451_v52  ;;  %v457_v55 = vld [vmem:[%s5164_s29 + $0x758] sm:$0xff]  ;;  %454 = vst [vmem:[%s5169_s5 + $0x3a8] sm:$0xff] %v453_v53  ;;  %v459_v56 = vld [vmem:[%s5164_s29 + $0x780] sm:$0xff] }
  0x5c   : > { %456 = vst [vmem:[%s5169_s5 + $0x3b0] sm:$0xff] %v455_v54  ;;  %458 = vst [vmem:[%s5169_s5 + $0x3b8] sm:$0xff] %v457_v55  ;;  %v461_v57 = vld [vmem:[%s5164_s29 + $0x788] sm:$0xff]  ;;  %v463_v58 = vld [vmem:[%s5164_s29 + $0x790] sm:$0xff] }
  0x5d   : > { %460 = vst [vmem:[%s5169_s5 + $0x3c0] sm:$0xff] %v459_v56  ;;  %462 = vst [vmem:[%s5169_s5 + $0x3c8] sm:$0xff] %v461_v57  ;;  %v465_v59 = vld [vmem:[%s5164_s29 + $0x798] sm:$0xff]  ;;  %v467_v60 = vld [vmem:[%s5164_s29 + $0x7c0] sm:$0xff] }
  0x5e   : > { %464 = vst [vmem:[%s5169_s5 + $0x3d0] sm:$0xff] %v463_v58  ;;  %v469_v61 = vld [vmem:[%s5164_s29 + $0x7c8] sm:$0xff]  ;;  %466 = vst [vmem:[%s5169_s5 + $0x3d8] sm:$0xff] %v465_v59  ;;  %v471_v62 = vld [vmem:[%s5164_s29 + $0x7d0] sm:$0xff] }
  0x5f   : > { %468 = vst [vmem:[%s5169_s5 + $0x3e0] sm:$0xff] %v467_v60  ;;  %470 = vst [vmem:[%s5169_s5 + $0x3e8] sm:$0xff] %v469_v61  ;;  %v473_v63 = vld [vmem:[%s5164_s29 + $0x7d8] sm:$0xff]  ;;  %v475_v0 = vld [vmem:[%s5164_s29 + $0x800] sm:$0xff] }
  0x60   : > { %472 = vst [vmem:[%s5169_s5 + $0x3f0] sm:$0xff] %v471_v62  ;;  %474 = vst [vmem:[%s5169_s5 + $0x3f8] sm:$0xff] %v473_v63  ;;  %v477_v1 = vld [vmem:[%s5164_s29 + $0x808] sm:$0xff]  ;;  %v479_v2 = vld [vmem:[%s5164_s29 + $0x810] sm:$0xff] }
  0x61   : > { %476 = vst [vmem:[%s5169_s5 + $0x400] sm:$0xff] %v475_v0  ;;  %v481_v3 = vld [vmem:[%s5164_s29 + $0x818] sm:$0xff]  ;;  %478 = vst [vmem:[%s5169_s5 + $0x408] sm:$0xff] %v477_v1  ;;  %v483_v4 = vld [vmem:[%s5164_s29 + $0x840] sm:$0xff] }
  0x62   : > { %480 = vst [vmem:[%s5169_s5 + $0x410] sm:$0xff] %v479_v2  ;;  %482 = vst [vmem:[%s5169_s5 + $0x418] sm:$0xff] %v481_v3  ;;  %v485_v5 = vld [vmem:[%s5164_s29 + $0x848] sm:$0xff]  ;;  %v487_v6 = vld [vmem:[%s5164_s29 + $0x850] sm:$0xff] }
  0x63   : > { %484 = vst [vmem:[%s5169_s5 + $0x420] sm:$0xff] %v483_v4  ;;  %486 = vst [vmem:[%s5169_s5 + $0x428] sm:$0xff] %v485_v5  ;;  %v489_v7 = vld [vmem:[%s5164_s29 + $0x858] sm:$0xff]  ;;  %v491_v8 = vld [vmem:[%s5164_s29 + $0x880] sm:$0xff] }
  0x64   : > { %488 = vst [vmem:[%s5169_s5 + $0x430] sm:$0xff] %v487_v6  ;;  %v493_v9 = vld [vmem:[%s5164_s29 + $0x888] sm:$0xff]  ;;  %490 = vst [vmem:[%s5169_s5 + $0x438] sm:$0xff] %v489_v7  ;;  %v495_v10 = vld [vmem:[%s5164_s29 + $0x890] sm:$0xff] }
  0x65   : > { %492 = vst [vmem:[%s5169_s5 + $0x440] sm:$0xff] %v491_v8  ;;  %494 = vst [vmem:[%s5169_s5 + $0x448] sm:$0xff] %v493_v9  ;;  %v497_v11 = vld [vmem:[%s5164_s29 + $0x898] sm:$0xff]  ;;  %v499_v12 = vld [vmem:[%s5164_s29 + $0x8c0] sm:$0xff] }
  0x66   : > { %496 = vst [vmem:[%s5169_s5 + $0x450] sm:$0xff] %v495_v10  ;;  %498 = vst [vmem:[%s5169_s5 + $0x458] sm:$0xff] %v497_v11  ;;  %v501_v13 = vld [vmem:[%s5164_s29 + $0x8c8] sm:$0xff]  ;;  %v503_v14 = vld [vmem:[%s5164_s29 + $0x8d0] sm:$0xff] }
  0x67   : > { %500 = vst [vmem:[%s5169_s5 + $0x460] sm:$0xff] %v499_v12  ;;  %v505_v15 = vld [vmem:[%s5164_s29 + $0x8d8] sm:$0xff]  ;;  %502 = vst [vmem:[%s5169_s5 + $0x468] sm:$0xff] %v501_v13  ;;  %v507_v16 = vld [vmem:[%s5164_s29 + $0x900] sm:$0xff] }
  0x68   : > { %504 = vst [vmem:[%s5169_s5 + $0x470] sm:$0xff] %v503_v14  ;;  %506 = vst [vmem:[%s5169_s5 + $0x478] sm:$0xff] %v505_v15  ;;  %v509_v17 = vld [vmem:[%s5164_s29 + $0x908] sm:$0xff]  ;;  %v511_v18 = vld [vmem:[%s5164_s29 + $0x910] sm:$0xff] }
  0x69   : > { %508 = vst [vmem:[%s5169_s5 + $0x480] sm:$0xff] %v507_v16  ;;  %510 = vst [vmem:[%s5169_s5 + $0x488] sm:$0xff] %v509_v17  ;;  %v513_v19 = vld [vmem:[%s5164_s29 + $0x918] sm:$0xff]  ;;  %v515_v20 = vld [vmem:[%s5164_s29 + $0x940] sm:$0xff] }
  0x6a   : > { %512 = vst [vmem:[%s5169_s5 + $0x490] sm:$0xff] %v511_v18  ;;  %v517_v21 = vld [vmem:[%s5164_s29 + $0x948] sm:$0xff]  ;;  %514 = vst [vmem:[%s5169_s5 + $0x498] sm:$0xff] %v513_v19  ;;  %v519_v22 = vld [vmem:[%s5164_s29 + $0x950] sm:$0xff] }
  0x6b   : > { %516 = vst [vmem:[%s5169_s5 + $0x4a0] sm:$0xff] %v515_v20  ;;  %518 = vst [vmem:[%s5169_s5 + $0x4a8] sm:$0xff] %v517_v21  ;;  %v521_v23 = vld [vmem:[%s5164_s29 + $0x958] sm:$0xff]  ;;  %v523_v24 = vld [vmem:[%s5164_s29 + $0x980] sm:$0xff] }
  0x6c   : > { %520 = vst [vmem:[%s5169_s5 + $0x4b0] sm:$0xff] %v519_v22  ;;  %522 = vst [vmem:[%s5169_s5 + $0x4b8] sm:$0xff] %v521_v23  ;;  %v525_v25 = vld [vmem:[%s5164_s29 + $0x988] sm:$0xff]  ;;  %v527_v26 = vld [vmem:[%s5164_s29 + $0x990] sm:$0xff] }
  0x6d   : > { %524 = vst [vmem:[%s5169_s5 + $0x4c0] sm:$0xff] %v523_v24  ;;  %v529_v27 = vld [vmem:[%s5164_s29 + $0x998] sm:$0xff]  ;;  %526 = vst [vmem:[%s5169_s5 + $0x4c8] sm:$0xff] %v525_v25  ;;  %v531_v28 = vld [vmem:[%s5164_s29 + $0x9c0] sm:$0xff] }
  0x6e   : > { %528 = vst [vmem:[%s5169_s5 + $0x4d0] sm:$0xff] %v527_v26  ;;  %530 = vst [vmem:[%s5169_s5 + $0x4d8] sm:$0xff] %v529_v27  ;;  %v533_v29 = vld [vmem:[%s5164_s29 + $0x9c8] sm:$0xff]  ;;  %v535_v30 = vld [vmem:[%s5164_s29 + $0x9d0] sm:$0xff] }
  0x6f   : > { %532 = vst [vmem:[%s5169_s5 + $0x4e0] sm:$0xff] %v531_v28  ;;  %534 = vst [vmem:[%s5169_s5 + $0x4e8] sm:$0xff] %v533_v29  ;;  %v537_v31 = vld [vmem:[%s5164_s29 + $0x9d8] sm:$0xff]  ;;  %v539_v32 = vld [vmem:[%s5164_s29 + $0xa00] sm:$0xff] }
  0x70   : > { %536 = vst [vmem:[%s5169_s5 + $0x4f0] sm:$0xff] %v535_v30  ;;  %v541_v33 = vld [vmem:[%s5164_s29 + $0xa08] sm:$0xff]  ;;  %538 = vst [vmem:[%s5169_s5 + $0x4f8] sm:$0xff] %v537_v31  ;;  %v543_v34 = vld [vmem:[%s5164_s29 + $0xa10] sm:$0xff] }
  0x71   : > { %540 = vst [vmem:[%s5169_s5 + $0x500] sm:$0xff] %v539_v32  ;;  %542 = vst [vmem:[%s5169_s5 + $0x508] sm:$0xff] %v541_v33  ;;  %v545_v35 = vld [vmem:[%s5164_s29 + $0xa18] sm:$0xff]  ;;  %v547_v36 = vld [vmem:[%s5164_s29 + $0xa40] sm:$0xff] }
  0x72   : > { %544 = vst [vmem:[%s5169_s5 + $0x510] sm:$0xff] %v543_v34  ;;  %546 = vst [vmem:[%s5169_s5 + $0x518] sm:$0xff] %v545_v35  ;;  %v549_v37 = vld [vmem:[%s5164_s29 + $0xa48] sm:$0xff]  ;;  %v551_v38 = vld [vmem:[%s5164_s29 + $0xa50] sm:$0xff] }
  0x73   : > { %548 = vst [vmem:[%s5169_s5 + $0x520] sm:$0xff] %v547_v36  ;;  %v553_v39 = vld [vmem:[%s5164_s29 + $0xa58] sm:$0xff]  ;;  %550 = vst [vmem:[%s5169_s5 + $0x528] sm:$0xff] %v549_v37  ;;  %v555_v40 = vld [vmem:[%s5164_s29 + $0xa80] sm:$0xff] }
  0x74   : > { %552 = vst [vmem:[%s5169_s5 + $0x530] sm:$0xff] %v551_v38  ;;  %554 = vst [vmem:[%s5169_s5 + $0x538] sm:$0xff] %v553_v39  ;;  %v557_v41 = vld [vmem:[%s5164_s29 + $0xa88] sm:$0xff]  ;;  %v559_v42 = vld [vmem:[%s5164_s29 + $0xa90] sm:$0xff] }
  0x75   : > { %556 = vst [vmem:[%s5169_s5 + $0x540] sm:$0xff] %v555_v40  ;;  %558 = vst [vmem:[%s5169_s5 + $0x548] sm:$0xff] %v557_v41  ;;  %v561_v43 = vld [vmem:[%s5164_s29 + $0xa98] sm:$0xff]  ;;  %v563_v44 = vld [vmem:[%s5164_s29 + $0xac0] sm:$0xff] }
  0x76   : > { %560 = vst [vmem:[%s5169_s5 + $0x550] sm:$0xff] %v559_v42  ;;  %v565_v45 = vld [vmem:[%s5164_s29 + $0xac8] sm:$0xff]  ;;  %562 = vst [vmem:[%s5169_s5 + $0x558] sm:$0xff] %v561_v43  ;;  %v567_v46 = vld [vmem:[%s5164_s29 + $0xad0] sm:$0xff] }
  0x77   : > { %564 = vst [vmem:[%s5169_s5 + $0x560] sm:$0xff] %v563_v44  ;;  %566 = vst [vmem:[%s5169_s5 + $0x568] sm:$0xff] %v565_v45  ;;  %v569_v47 = vld [vmem:[%s5164_s29 + $0xad8] sm:$0xff]  ;;  %v571_v48 = vld [vmem:[%s5164_s29 + $0xb00] sm:$0xff] }
  0x78   : > { %568 = vst [vmem:[%s5169_s5 + $0x570] sm:$0xff] %v567_v46  ;;  %570 = vst [vmem:[%s5169_s5 + $0x578] sm:$0xff] %v569_v47  ;;  %v573_v49 = vld [vmem:[%s5164_s29 + $0xb08] sm:$0xff]  ;;  %v575_v50 = vld [vmem:[%s5164_s29 + $0xb10] sm:$0xff] }
  0x79   : > { %572 = vst [vmem:[%s5169_s5 + $0x580] sm:$0xff] %v571_v48  ;;  %v577_v51 = vld [vmem:[%s5164_s29 + $0xb18] sm:$0xff]  ;;  %574 = vst [vmem:[%s5169_s5 + $0x588] sm:$0xff] %v573_v49  ;;  %v579_v52 = vld [vmem:[%s5164_s29 + $0xb40] sm:$0xff] }
  0x7a   : > { %576 = vst [vmem:[%s5169_s5 + $0x590] sm:$0xff] %v575_v50  ;;  %578 = vst [vmem:[%s5169_s5 + $0x598] sm:$0xff] %v577_v51  ;;  %v581_v53 = vld [vmem:[%s5164_s29 + $0xb48] sm:$0xff]  ;;  %v583_v54 = vld [vmem:[%s5164_s29 + $0xb50] sm:$0xff] }
  0x7b   : > { %580 = vst [vmem:[%s5169_s5 + $0x5a0] sm:$0xff] %v579_v52  ;;  %582 = vst [vmem:[%s5169_s5 + $0x5a8] sm:$0xff] %v581_v53  ;;  %v585_v55 = vld [vmem:[%s5164_s29 + $0xb58] sm:$0xff]  ;;  %v587_v56 = vld [vmem:[%s5164_s29 + $0xb80] sm:$0xff] }
  0x7c   : > { %584 = vst [vmem:[%s5169_s5 + $0x5b0] sm:$0xff] %v583_v54  ;;  %v589_v57 = vld [vmem:[%s5164_s29 + $0xb88] sm:$0xff]  ;;  %586 = vst [vmem:[%s5169_s5 + $0x5b8] sm:$0xff] %v585_v55  ;;  %v591_v58 = vld [vmem:[%s5164_s29 + $0xb90] sm:$0xff] }
  0x7d   : > { %588 = vst [vmem:[%s5169_s5 + $0x5c0] sm:$0xff] %v587_v56  ;;  %590 = vst [vmem:[%s5169_s5 + $0x5c8] sm:$0xff] %v589_v57  ;;  %v593_v59 = vld [vmem:[%s5164_s29 + $0xb98] sm:$0xff]  ;;  %v595_v60 = vld [vmem:[%s5164_s29 + $0xbc0] sm:$0xff] }
  0x7e   : > { %592 = vst [vmem:[%s5169_s5 + $0x5d0] sm:$0xff] %v591_v58  ;;  %594 = vst [vmem:[%s5169_s5 + $0x5d8] sm:$0xff] %v593_v59  ;;  %v597_v61 = vld [vmem:[%s5164_s29 + $0xbc8] sm:$0xff]  ;;  %v599_v62 = vld [vmem:[%s5164_s29 + $0xbd0] sm:$0xff] }
  0x7f   : > { %596 = vst [vmem:[%s5169_s5 + $0x5e0] sm:$0xff] %v595_v60  ;;  %v601_v63 = vld [vmem:[%s5164_s29 + $0xbd8] sm:$0xff]  ;;  %598 = vst [vmem:[%s5169_s5 + $0x5e8] sm:$0xff] %v597_v61  ;;  %v603_v0 = vld [vmem:[%s5164_s29 + $0xc00] sm:$0xff] }
  0x80   : > { %600 = vst [vmem:[%s5169_s5 + $0x5f0] sm:$0xff] %v599_v62  ;;  %602 = vst [vmem:[%s5169_s5 + $0x5f8] sm:$0xff] %v601_v63  ;;  %v605_v1 = vld [vmem:[%s5164_s29 + $0xc08] sm:$0xff]  ;;  %v607_v2 = vld [vmem:[%s5164_s29 + $0xc10] sm:$0xff] }
  0x81   : > { %604 = vst [vmem:[%s5169_s5 + $0x600] sm:$0xff] %v603_v0  ;;  %606 = vst [vmem:[%s5169_s5 + $0x608] sm:$0xff] %v605_v1  ;;  %v609_v3 = vld [vmem:[%s5164_s29 + $0xc18] sm:$0xff]  ;;  %v611_v4 = vld [vmem:[%s5164_s29 + $0xc40] sm:$0xff] }
  0x82   : > { %608 = vst [vmem:[%s5169_s5 + $0x610] sm:$0xff] %v607_v2  ;;  %v613_v5 = vld [vmem:[%s5164_s29 + $0xc48] sm:$0xff]  ;;  %610 = vst [vmem:[%s5169_s5 + $0x618] sm:$0xff] %v609_v3  ;;  %v615_v6 = vld [vmem:[%s5164_s29 + $0xc50] sm:$0xff] }
  0x83   : > { %612 = vst [vmem:[%s5169_s5 + $0x620] sm:$0xff] %v611_v4  ;;  %614 = vst [vmem:[%s5169_s5 + $0x628] sm:$0xff] %v613_v5  ;;  %v617_v7 = vld [vmem:[%s5164_s29 + $0xc58] sm:$0xff]  ;;  %v619_v8 = vld [vmem:[%s5164_s29 + $0xc80] sm:$0xff] }
  0x84   : > { %616 = vst [vmem:[%s5169_s5 + $0x630] sm:$0xff] %v615_v6  ;;  %618 = vst [vmem:[%s5169_s5 + $0x638] sm:$0xff] %v617_v7  ;;  %v621_v9 = vld [vmem:[%s5164_s29 + $0xc88] sm:$0xff]  ;;  %v623_v10 = vld [vmem:[%s5164_s29 + $0xc90] sm:$0xff] }
  0x85   : > { %620 = vst [vmem:[%s5169_s5 + $0x640] sm:$0xff] %v619_v8  ;;  %v625_v11 = vld [vmem:[%s5164_s29 + $0xc98] sm:$0xff]  ;;  %622 = vst [vmem:[%s5169_s5 + $0x648] sm:$0xff] %v621_v9  ;;  %v627_v12 = vld [vmem:[%s5164_s29 + $0xcc0] sm:$0xff] }
  0x86   : > { %624 = vst [vmem:[%s5169_s5 + $0x650] sm:$0xff] %v623_v10  ;;  %626 = vst [vmem:[%s5169_s5 + $0x658] sm:$0xff] %v625_v11  ;;  %v629_v13 = vld [vmem:[%s5164_s29 + $0xcc8] sm:$0xff]  ;;  %v631_v14 = vld [vmem:[%s5164_s29 + $0xcd0] sm:$0xff] }
  0x87   : > { %628 = vst [vmem:[%s5169_s5 + $0x660] sm:$0xff] %v627_v12  ;;  %630 = vst [vmem:[%s5169_s5 + $0x668] sm:$0xff] %v629_v13  ;;  %v633_v15 = vld [vmem:[%s5164_s29 + $0xcd8] sm:$0xff]  ;;  %v635_v16 = vld [vmem:[%s5164_s29 + $0xd00] sm:$0xff] }
  0x88   : > { %632 = vst [vmem:[%s5169_s5 + $0x670] sm:$0xff] %v631_v14  ;;  %v637_v17 = vld [vmem:[%s5164_s29 + $0xd08] sm:$0xff]  ;;  %634 = vst [vmem:[%s5169_s5 + $0x678] sm:$0xff] %v633_v15  ;;  %v639_v18 = vld [vmem:[%s5164_s29 + $0xd10] sm:$0xff] }
  0x89   : > { %636 = vst [vmem:[%s5169_s5 + $0x680] sm:$0xff] %v635_v16  ;;  %638 = vst [vmem:[%s5169_s5 + $0x688] sm:$0xff] %v637_v17  ;;  %v641_v19 = vld [vmem:[%s5164_s29 + $0xd18] sm:$0xff]  ;;  %v643_v20 = vld [vmem:[%s5164_s29 + $0xd40] sm:$0xff] }
  0x8a   : > { %640 = vst [vmem:[%s5169_s5 + $0x690] sm:$0xff] %v639_v18  ;;  %642 = vst [vmem:[%s5169_s5 + $0x698] sm:$0xff] %v641_v19  ;;  %v645_v21 = vld [vmem:[%s5164_s29 + $0xd48] sm:$0xff]  ;;  %v647_v22 = vld [vmem:[%s5164_s29 + $0xd50] sm:$0xff] }
  0x8b   : > { %644 = vst [vmem:[%s5169_s5 + $0x6a0] sm:$0xff] %v643_v20  ;;  %v649_v23 = vld [vmem:[%s5164_s29 + $0xd58] sm:$0xff]  ;;  %646 = vst [vmem:[%s5169_s5 + $0x6a8] sm:$0xff] %v645_v21  ;;  %v651_v24 = vld [vmem:[%s5164_s29 + $0xd80] sm:$0xff] }
  0x8c   : > { %648 = vst [vmem:[%s5169_s5 + $0x6b0] sm:$0xff] %v647_v22  ;;  %650 = vst [vmem:[%s5169_s5 + $0x6b8] sm:$0xff] %v649_v23  ;;  %v653_v25 = vld [vmem:[%s5164_s29 + $0xd88] sm:$0xff]  ;;  %v655_v26 = vld [vmem:[%s5164_s29 + $0xd90] sm:$0xff] }
  0x8d   : > { %652 = vst [vmem:[%s5169_s5 + $0x6c0] sm:$0xff] %v651_v24  ;;  %654 = vst [vmem:[%s5169_s5 + $0x6c8] sm:$0xff] %v653_v25  ;;  %v657_v27 = vld [vmem:[%s5164_s29 + $0xd98] sm:$0xff]  ;;  %v659_v28 = vld [vmem:[%s5164_s29 + $0xdc0] sm:$0xff] }
  0x8e   : > { %656 = vst [vmem:[%s5169_s5 + $0x6d0] sm:$0xff] %v655_v26  ;;  %v661_v29 = vld [vmem:[%s5164_s29 + $0xdc8] sm:$0xff]  ;;  %658 = vst [vmem:[%s5169_s5 + $0x6d8] sm:$0xff] %v657_v27  ;;  %v663_v30 = vld [vmem:[%s5164_s29 + $0xdd0] sm:$0xff] }
  0x8f   : > { %660 = vst [vmem:[%s5169_s5 + $0x6e0] sm:$0xff] %v659_v28  ;;  %662 = vst [vmem:[%s5169_s5 + $0x6e8] sm:$0xff] %v661_v29  ;;  %v665_v31 = vld [vmem:[%s5164_s29 + $0xdd8] sm:$0xff]  ;;  %v667_v32 = vld [vmem:[%s5164_s29 + $0xe00] sm:$0xff] }
  0x90   : > { %664 = vst [vmem:[%s5169_s5 + $0x6f0] sm:$0xff] %v663_v30  ;;  %666 = vst [vmem:[%s5169_s5 + $0x6f8] sm:$0xff] %v665_v31  ;;  %v669_v33 = vld [vmem:[%s5164_s29 + $0xe08] sm:$0xff]  ;;  %v671_v34 = vld [vmem:[%s5164_s29 + $0xe10] sm:$0xff] }
  0x91   : > { %668 = vst [vmem:[%s5169_s5 + $0x700] sm:$0xff] %v667_v32  ;;  %v673_v35 = vld [vmem:[%s5164_s29 + $0xe18] sm:$0xff]  ;;  %670 = vst [vmem:[%s5169_s5 + $0x708] sm:$0xff] %v669_v33  ;;  %v675_v36 = vld [vmem:[%s5164_s29 + $0xe40] sm:$0xff] }
  0x92   : > { %672 = vst [vmem:[%s5169_s5 + $0x710] sm:$0xff] %v671_v34  ;;  %674 = vst [vmem:[%s5169_s5 + $0x718] sm:$0xff] %v673_v35  ;;  %v677_v37 = vld [vmem:[%s5164_s29 + $0xe48] sm:$0xff]  ;;  %v679_v38 = vld [vmem:[%s5164_s29 + $0xe50] sm:$0xff] }
  0x93   : > { %676 = vst [vmem:[%s5169_s5 + $0x720] sm:$0xff] %v675_v36  ;;  %678 = vst [vmem:[%s5169_s5 + $0x728] sm:$0xff] %v677_v37  ;;  %v681_v39 = vld [vmem:[%s5164_s29 + $0xe58] sm:$0xff]  ;;  %v683_v40 = vld [vmem:[%s5164_s29 + $0xe80] sm:$0xff] }
  0x94   : > { %680 = vst [vmem:[%s5169_s5 + $0x730] sm:$0xff] %v679_v38  ;;  %v685_v41 = vld [vmem:[%s5164_s29 + $0xe88] sm:$0xff]  ;;  %682 = vst [vmem:[%s5169_s5 + $0x738] sm:$0xff] %v681_v39  ;;  %v687_v42 = vld [vmem:[%s5164_s29 + $0xe90] sm:$0xff] }
  0x95   : > { %684 = vst [vmem:[%s5169_s5 + $0x740] sm:$0xff] %v683_v40  ;;  %686 = vst [vmem:[%s5169_s5 + $0x748] sm:$0xff] %v685_v41  ;;  %v689_v43 = vld [vmem:[%s5164_s29 + $0xe98] sm:$0xff]  ;;  %v691_v44 = vld [vmem:[%s5164_s29 + $0xec0] sm:$0xff] }
  0x96   : > { %688 = vst [vmem:[%s5169_s5 + $0x750] sm:$0xff] %v687_v42  ;;  %690 = vst [vmem:[%s5169_s5 + $0x758] sm:$0xff] %v689_v43  ;;  %v693_v45 = vld [vmem:[%s5164_s29 + $0xec8] sm:$0xff]  ;;  %v695_v46 = vld [vmem:[%s5164_s29 + $0xed0] sm:$0xff] }
  0x97   : > { %692 = vst [vmem:[%s5169_s5 + $0x760] sm:$0xff] %v691_v44  ;;  %v697_v47 = vld [vmem:[%s5164_s29 + $0xed8] sm:$0xff]  ;;  %694 = vst [vmem:[%s5169_s5 + $0x768] sm:$0xff] %v693_v45  ;;  %v699_v48 = vld [vmem:[%s5164_s29 + $0xf00] sm:$0xff] }
  0x98   : > { %696 = vst [vmem:[%s5169_s5 + $0x770] sm:$0xff] %v695_v46  ;;  %698 = vst [vmem:[%s5169_s5 + $0x778] sm:$0xff] %v697_v47  ;;  %v701_v49 = vld [vmem:[%s5164_s29 + $0xf08] sm:$0xff]  ;;  %v703_v50 = vld [vmem:[%s5164_s29 + $0xf10] sm:$0xff] }
  0x99   : > { %700 = vst [vmem:[%s5169_s5 + $0x780] sm:$0xff] %v699_v48  ;;  %702 = vst [vmem:[%s5169_s5 + $0x788] sm:$0xff] %v701_v49  ;;  %v705_v51 = vld [vmem:[%s5164_s29 + $0xf18] sm:$0xff]  ;;  %v707_v52 = vld [vmem:[%s5164_s29 + $0xf40] sm:$0xff] }
  0x9a   : > { %704 = vst [vmem:[%s5169_s5 + $0x790] sm:$0xff] %v703_v50  ;;  %v709_v53 = vld [vmem:[%s5164_s29 + $0xf48] sm:$0xff]  ;;  %706 = vst [vmem:[%s5169_s5 + $0x798] sm:$0xff] %v705_v51  ;;  %v711_v54 = vld [vmem:[%s5164_s29 + $0xf50] sm:$0xff] }
  0x9b   : > { %708 = vst [vmem:[%s5169_s5 + $0x7a0] sm:$0xff] %v707_v52  ;;  %710 = vst [vmem:[%s5169_s5 + $0x7a8] sm:$0xff] %v709_v53  ;;  %v713_v55 = vld [vmem:[%s5164_s29 + $0xf58] sm:$0xff]  ;;  %v715_v56 = vld [vmem:[%s5164_s29 + $0xf80] sm:$0xff] }
  0x9c   : > { %712 = vst [vmem:[%s5169_s5 + $0x7b0] sm:$0xff] %v711_v54  ;;  %714 = vst [vmem:[%s5169_s5 + $0x7b8] sm:$0xff] %v713_v55  ;;  %v717_v57 = vld [vmem:[%s5164_s29 + $0xf88] sm:$0xff]  ;;  %v719_v58 = vld [vmem:[%s5164_s29 + $0xf90] sm:$0xff] }
  0x9d   : > { %716 = vst [vmem:[%s5169_s5 + $0x7c0] sm:$0xff] %v715_v56  ;;  %v721_v59 = vld [vmem:[%s5164_s29 + $0xf98] sm:$0xff]  ;;  %718 = vst [vmem:[%s5169_s5 + $0x7c8] sm:$0xff] %v717_v57  ;;  %v723_v60 = vld [vmem:[%s5164_s29 + $0xfc0] sm:$0xff] }
  0x9e   : > { %720 = vst [vmem:[%s5169_s5 + $0x7d0] sm:$0xff] %v719_v58  ;;  %722 = vst [vmem:[%s5169_s5 + $0x7d8] sm:$0xff] %v721_v59  ;;  %v725_v61 = vld [vmem:[%s5164_s29 + $0xfc8] sm:$0xff]  ;;  %v727_v62 = vld [vmem:[%s5164_s29 + $0xfd0] sm:$0xff] }
  0x9f   : > { %724 = vst [vmem:[%s5169_s5 + $0x7e0] sm:$0xff] %v723_v60  ;;  %726 = vst [vmem:[%s5169_s5 + $0x7e8] sm:$0xff] %v725_v61  ;;  %v729_v63 = vld [vmem:[%s5164_s29 + $0xfd8] sm:$0xff]  ;;  %v731_v0 = vld [vmem:[%s5164_s29 + $0x1000] sm:$0xff] }
  0xa0   : > { %728 = vst [vmem:[%s5169_s5 + $0x7f0] sm:$0xff] %v727_v62  ;;  %v733_v1 = vld [vmem:[%s5164_s29 + $0x1008] sm:$0xff]  ;;  %730 = vst [vmem:[%s5169_s5 + $0x7f8] sm:$0xff] %v729_v63  ;;  %v735_v2 = vld [vmem:[%s5164_s29 + $0x1010] sm:$0xff] }
  0xa1   : > { %732 = vst [vmem:[%s5169_s5 + $0x800] sm:$0xff] %v731_v0  ;;  %734 = vst [vmem:[%s5169_s5 + $0x808] sm:$0xff] %v733_v1  ;;  %v737_v3 = vld [vmem:[%s5164_s29 + $0x1018] sm:$0xff]  ;;  %v739_v4 = vld [vmem:[%s5164_s29 + $0x1040] sm:$0xff] }
  0xa2   : > { %736 = vst [vmem:[%s5169_s5 + $0x810] sm:$0xff] %v735_v2  ;;  %738 = vst [vmem:[%s5169_s5 + $0x818] sm:$0xff] %v737_v3  ;;  %v741_v5 = vld [vmem:[%s5164_s29 + $0x1048] sm:$0xff]  ;;  %v743_v6 = vld [vmem:[%s5164_s29 + $0x1050] sm:$0xff] }
  0xa3   : > { %740 = vst [vmem:[%s5169_s5 + $0x820] sm:$0xff] %v739_v4  ;;  %v745_v7 = vld [vmem:[%s5164_s29 + $0x1058] sm:$0xff]  ;;  %742 = vst [vmem:[%s5169_s5 + $0x828] sm:$0xff] %v741_v5  ;;  %v747_v8 = vld [vmem:[%s5164_s29 + $0x1080] sm:$0xff] }
  0xa4   : > { %744 = vst [vmem:[%s5169_s5 + $0x830] sm:$0xff] %v743_v6  ;;  %746 = vst [vmem:[%s5169_s5 + $0x838] sm:$0xff] %v745_v7  ;;  %v749_v9 = vld [vmem:[%s5164_s29 + $0x1088] sm:$0xff]  ;;  %v751_v10 = vld [vmem:[%s5164_s29 + $0x1090] sm:$0xff] }
  0xa5   : > { %748 = vst [vmem:[%s5169_s5 + $0x840] sm:$0xff] %v747_v8  ;;  %750 = vst [vmem:[%s5169_s5 + $0x848] sm:$0xff] %v749_v9  ;;  %v753_v11 = vld [vmem:[%s5164_s29 + $0x1098] sm:$0xff]  ;;  %v755_v12 = vld [vmem:[%s5164_s29 + $0x10c0] sm:$0xff] }
  0xa6   : > { %752 = vst [vmem:[%s5169_s5 + $0x850] sm:$0xff] %v751_v10  ;;  %v757_v13 = vld [vmem:[%s5164_s29 + $0x10c8] sm:$0xff]  ;;  %754 = vst [vmem:[%s5169_s5 + $0x858] sm:$0xff] %v753_v11  ;;  %v759_v14 = vld [vmem:[%s5164_s29 + $0x10d0] sm:$0xff] }
  0xa7   : > { %756 = vst [vmem:[%s5169_s5 + $0x860] sm:$0xff] %v755_v12  ;;  %758 = vst [vmem:[%s5169_s5 + $0x868] sm:$0xff] %v757_v13  ;;  %v761_v15 = vld [vmem:[%s5164_s29 + $0x10d8] sm:$0xff]  ;;  %v763_v16 = vld [vmem:[%s5164_s29 + $0x1100] sm:$0xff] }
  0xa8   : > { %760 = vst [vmem:[%s5169_s5 + $0x870] sm:$0xff] %v759_v14  ;;  %762 = vst [vmem:[%s5169_s5 + $0x878] sm:$0xff] %v761_v15  ;;  %v765_v17 = vld [vmem:[%s5164_s29 + $0x1108] sm:$0xff]  ;;  %v767_v18 = vld [vmem:[%s5164_s29 + $0x1110] sm:$0xff] }
  0xa9   : > { %764 = vst [vmem:[%s5169_s5 + $0x880] sm:$0xff] %v763_v16  ;;  %v769_v19 = vld [vmem:[%s5164_s29 + $0x1118] sm:$0xff]  ;;  %766 = vst [vmem:[%s5169_s5 + $0x888] sm:$0xff] %v765_v17  ;;  %v771_v20 = vld [vmem:[%s5164_s29 + $0x1140] sm:$0xff] }
  0xaa   : > { %768 = vst [vmem:[%s5169_s5 + $0x890] sm:$0xff] %v767_v18  ;;  %770 = vst [vmem:[%s5169_s5 + $0x898] sm:$0xff] %v769_v19  ;;  %v773_v21 = vld [vmem:[%s5164_s29 + $0x1148] sm:$0xff]  ;;  %v775_v22 = vld [vmem:[%s5164_s29 + $0x1150] sm:$0xff] }
  0xab   : > { %772 = vst [vmem:[%s5169_s5 + $0x8a0] sm:$0xff] %v771_v20  ;;  %774 = vst [vmem:[%s5169_s5 + $0x8a8] sm:$0xff] %v773_v21  ;;  %v777_v23 = vld [vmem:[%s5164_s29 + $0x1158] sm:$0xff]  ;;  %v779_v24 = vld [vmem:[%s5164_s29 + $0x1180] sm:$0xff] }
  0xac   : > { %776 = vst [vmem:[%s5169_s5 + $0x8b0] sm:$0xff] %v775_v22  ;;  %v781_v25 = vld [vmem:[%s5164_s29 + $0x1188] sm:$0xff]  ;;  %778 = vst [vmem:[%s5169_s5 + $0x8b8] sm:$0xff] %v777_v23  ;;  %v783_v26 = vld [vmem:[%s5164_s29 + $0x1190] sm:$0xff] }
  0xad   : > { %780 = vst [vmem:[%s5169_s5 + $0x8c0] sm:$0xff] %v779_v24  ;;  %782 = vst [vmem:[%s5169_s5 + $0x8c8] sm:$0xff] %v781_v25  ;;  %v785_v27 = vld [vmem:[%s5164_s29 + $0x1198] sm:$0xff]  ;;  %v787_v28 = vld [vmem:[%s5164_s29 + $0x11c0] sm:$0xff] }
  0xae   : > { %784 = vst [vmem:[%s5169_s5 + $0x8d0] sm:$0xff] %v783_v26  ;;  %786 = vst [vmem:[%s5169_s5 + $0x8d8] sm:$0xff] %v785_v27  ;;  %v789_v29 = vld [vmem:[%s5164_s29 + $0x11c8] sm:$0xff]  ;;  %v791_v30 = vld [vmem:[%s5164_s29 + $0x11d0] sm:$0xff] }
  0xaf   : > { %788 = vst [vmem:[%s5169_s5 + $0x8e0] sm:$0xff] %v787_v28  ;;  %v793_v31 = vld [vmem:[%s5164_s29 + $0x11d8] sm:$0xff]  ;;  %790 = vst [vmem:[%s5169_s5 + $0x8e8] sm:$0xff] %v789_v29  ;;  %v795_v32 = vld [vmem:[%s5164_s29 + $0x1200] sm:$0xff] }
  0xb0   : > { %792 = vst [vmem:[%s5169_s5 + $0x8f0] sm:$0xff] %v791_v30  ;;  %794 = vst [vmem:[%s5169_s5 + $0x8f8] sm:$0xff] %v793_v31  ;;  %v797_v33 = vld [vmem:[%s5164_s29 + $0x1208] sm:$0xff]  ;;  %v799_v34 = vld [vmem:[%s5164_s29 + $0x1210] sm:$0xff] }
  0xb1   : > { %796 = vst [vmem:[%s5169_s5 + $0x900] sm:$0xff] %v795_v32  ;;  %798 = vst [vmem:[%s5169_s5 + $0x908] sm:$0xff] %v797_v33  ;;  %v801_v35 = vld [vmem:[%s5164_s29 + $0x1218] sm:$0xff]  ;;  %v803_v36 = vld [vmem:[%s5164_s29 + $0x1240] sm:$0xff] }
  0xb2   : > { %800 = vst [vmem:[%s5169_s5 + $0x910] sm:$0xff] %v799_v34  ;;  %v805_v37 = vld [vmem:[%s5164_s29 + $0x1248] sm:$0xff]  ;;  %802 = vst [vmem:[%s5169_s5 + $0x918] sm:$0xff] %v801_v35  ;;  %v807_v38 = vld [vmem:[%s5164_s29 + $0x1250] sm:$0xff] }
  0xb3   : > { %804 = vst [vmem:[%s5169_s5 + $0x920] sm:$0xff] %v803_v36  ;;  %806 = vst [vmem:[%s5169_s5 + $0x928] sm:$0xff] %v805_v37  ;;  %v809_v39 = vld [vmem:[%s5164_s29 + $0x1258] sm:$0xff]  ;;  %v811_v40 = vld [vmem:[%s5164_s29 + $0x1280] sm:$0xff] }
  0xb4   : > { %808 = vst [vmem:[%s5169_s5 + $0x930] sm:$0xff] %v807_v38  ;;  %810 = vst [vmem:[%s5169_s5 + $0x938] sm:$0xff] %v809_v39  ;;  %v813_v41 = vld [vmem:[%s5164_s29 + $0x1288] sm:$0xff]  ;;  %v815_v42 = vld [vmem:[%s5164_s29 + $0x1290] sm:$0xff] }
  0xb5   : > { %812 = vst [vmem:[%s5169_s5 + $0x940] sm:$0xff] %v811_v40  ;;  %v817_v43 = vld [vmem:[%s5164_s29 + $0x1298] sm:$0xff]  ;;  %814 = vst [vmem:[%s5169_s5 + $0x948] sm:$0xff] %v813_v41  ;;  %v819_v44 = vld [vmem:[%s5164_s29 + $0x12c0] sm:$0xff] }
  0xb6   : > { %816 = vst [vmem:[%s5169_s5 + $0x950] sm:$0xff] %v815_v42  ;;  %818 = vst [vmem:[%s5169_s5 + $0x958] sm:$0xff] %v817_v43  ;;  %v821_v45 = vld [vmem:[%s5164_s29 + $0x12c8] sm:$0xff]  ;;  %v823_v46 = vld [vmem:[%s5164_s29 + $0x12d0] sm:$0xff] }
  0xb7   : > { %820 = vst [vmem:[%s5169_s5 + $0x960] sm:$0xff] %v819_v44  ;;  %822 = vst [vmem:[%s5169_s5 + $0x968] sm:$0xff] %v821_v45  ;;  %v825_v47 = vld [vmem:[%s5164_s29 + $0x12d8] sm:$0xff]  ;;  %v827_v48 = vld [vmem:[%s5164_s29 + $0x1300] sm:$0xff] }
  0xb8   : > { %824 = vst [vmem:[%s5169_s5 + $0x970] sm:$0xff] %v823_v46  ;;  %v829_v49 = vld [vmem:[%s5164_s29 + $0x1308] sm:$0xff]  ;;  %826 = vst [vmem:[%s5169_s5 + $0x978] sm:$0xff] %v825_v47  ;;  %v831_v50 = vld [vmem:[%s5164_s29 + $0x1310] sm:$0xff] }
  0xb9   : > { %828 = vst [vmem:[%s5169_s5 + $0x980] sm:$0xff] %v827_v48  ;;  %830 = vst [vmem:[%s5169_s5 + $0x988] sm:$0xff] %v829_v49  ;;  %v833_v51 = vld [vmem:[%s5164_s29 + $0x1318] sm:$0xff]  ;;  %v835_v52 = vld [vmem:[%s5164_s29 + $0x1340] sm:$0xff] }
  0xba   : > { %832 = vst [vmem:[%s5169_s5 + $0x990] sm:$0xff] %v831_v50  ;;  %834 = vst [vmem:[%s5169_s5 + $0x998] sm:$0xff] %v833_v51  ;;  %v837_v53 = vld [vmem:[%s5164_s29 + $0x1348] sm:$0xff]  ;;  %v839_v54 = vld [vmem:[%s5164_s29 + $0x1350] sm:$0xff] }
  0xbb   : > { %836 = vst [vmem:[%s5169_s5 + $0x9a0] sm:$0xff] %v835_v52  ;;  %v841_v55 = vld [vmem:[%s5164_s29 + $0x1358] sm:$0xff]  ;;  %838 = vst [vmem:[%s5169_s5 + $0x9a8] sm:$0xff] %v837_v53  ;;  %v843_v56 = vld [vmem:[%s5164_s29 + $0x1380] sm:$0xff] }
  0xbc   : > { %840 = vst [vmem:[%s5169_s5 + $0x9b0] sm:$0xff] %v839_v54  ;;  %842 = vst [vmem:[%s5169_s5 + $0x9b8] sm:$0xff] %v841_v55  ;;  %v845_v57 = vld [vmem:[%s5164_s29 + $0x1388] sm:$0xff]  ;;  %v847_v58 = vld [vmem:[%s5164_s29 + $0x1390] sm:$0xff] }
  0xbd   : > { %844 = vst [vmem:[%s5169_s5 + $0x9c0] sm:$0xff] %v843_v56  ;;  %846 = vst [vmem:[%s5169_s5 + $0x9c8] sm:$0xff] %v845_v57  ;;  %v849_v59 = vld [vmem:[%s5164_s29 + $0x1398] sm:$0xff]  ;;  %v851_v60 = vld [vmem:[%s5164_s29 + $0x13c0] sm:$0xff] }
  0xbe   : > { %848 = vst [vmem:[%s5169_s5 + $0x9d0] sm:$0xff] %v847_v58  ;;  %v853_v61 = vld [vmem:[%s5164_s29 + $0x13c8] sm:$0xff]  ;;  %850 = vst [vmem:[%s5169_s5 + $0x9d8] sm:$0xff] %v849_v59  ;;  %v855_v62 = vld [vmem:[%s5164_s29 + $0x13d0] sm:$0xff] }
  0xbf   : > { %852 = vst [vmem:[%s5169_s5 + $0x9e0] sm:$0xff] %v851_v60  ;;  %854 = vst [vmem:[%s5169_s5 + $0x9e8] sm:$0xff] %v853_v61  ;;  %v857_v63 = vld [vmem:[%s5164_s29 + $0x13d8] sm:$0xff]  ;;  %v859_v0 = vld [vmem:[%s5164_s29 + $0x1400] sm:$0xff] }
  0xc0   : > { %856 = vst [vmem:[%s5169_s5 + $0x9f0] sm:$0xff] %v855_v62  ;;  %858 = vst [vmem:[%s5169_s5 + $0x9f8] sm:$0xff] %v857_v63  ;;  %v861_v1 = vld [vmem:[%s5164_s29 + $0x1408] sm:$0xff]  ;;  %v863_v2 = vld [vmem:[%s5164_s29 + $0x1410] sm:$0xff] }
  0xc1   : > { %860 = vst [vmem:[%s5169_s5 + $0xa00] sm:$0xff] %v859_v0  ;;  %v865_v3 = vld [vmem:[%s5164_s29 + $0x1418] sm:$0xff]  ;;  %862 = vst [vmem:[%s5169_s5 + $0xa08] sm:$0xff] %v861_v1  ;;  %v867_v4 = vld [vmem:[%s5164_s29 + $0x1440] sm:$0xff] }
  0xc2   : > { %864 = vst [vmem:[%s5169_s5 + $0xa10] sm:$0xff] %v863_v2  ;;  %866 = vst [vmem:[%s5169_s5 + $0xa18] sm:$0xff] %v865_v3  ;;  %v869_v5 = vld [vmem:[%s5164_s29 + $0x1448] sm:$0xff]  ;;  %v871_v6 = vld [vmem:[%s5164_s29 + $0x1450] sm:$0xff] }
  0xc3   : > { %868 = vst [vmem:[%s5169_s5 + $0xa20] sm:$0xff] %v867_v4  ;;  %870 = vst [vmem:[%s5169_s5 + $0xa28] sm:$0xff] %v869_v5  ;;  %v873_v7 = vld [vmem:[%s5164_s29 + $0x1458] sm:$0xff]  ;;  %v875_v8 = vld [vmem:[%s5164_s29 + $0x1480] sm:$0xff] }
  0xc4   : > { %872 = vst [vmem:[%s5169_s5 + $0xa30] sm:$0xff] %v871_v6  ;;  %v877_v9 = vld [vmem:[%s5164_s29 + $0x1488] sm:$0xff]  ;;  %874 = vst [vmem:[%s5169_s5 + $0xa38] sm:$0xff] %v873_v7  ;;  %v879_v10 = vld [vmem:[%s5164_s29 + $0x1490] sm:$0xff] }
  0xc5   : > { %876 = vst [vmem:[%s5169_s5 + $0xa40] sm:$0xff] %v875_v8  ;;  %878 = vst [vmem:[%s5169_s5 + $0xa48] sm:$0xff] %v877_v9  ;;  %v881_v11 = vld [vmem:[%s5164_s29 + $0x1498] sm:$0xff]  ;;  %v883_v12 = vld [vmem:[%s5164_s29 + $0x14c0] sm:$0xff] }
  0xc6   : > { %880 = vst [vmem:[%s5169_s5 + $0xa50] sm:$0xff] %v879_v10  ;;  %882 = vst [vmem:[%s5169_s5 + $0xa58] sm:$0xff] %v881_v11  ;;  %v885_v13 = vld [vmem:[%s5164_s29 + $0x14c8] sm:$0xff]  ;;  %v887_v14 = vld [vmem:[%s5164_s29 + $0x14d0] sm:$0xff] }
  0xc7   : > { %884 = vst [vmem:[%s5169_s5 + $0xa60] sm:$0xff] %v883_v12  ;;  %v889_v15 = vld [vmem:[%s5164_s29 + $0x14d8] sm:$0xff]  ;;  %886 = vst [vmem:[%s5169_s5 + $0xa68] sm:$0xff] %v885_v13  ;;  %v891_v16 = vld [vmem:[%s5164_s29 + $0x1500] sm:$0xff] }
  0xc8   : > { %888 = vst [vmem:[%s5169_s5 + $0xa70] sm:$0xff] %v887_v14  ;;  %890 = vst [vmem:[%s5169_s5 + $0xa78] sm:$0xff] %v889_v15  ;;  %v893_v17 = vld [vmem:[%s5164_s29 + $0x1508] sm:$0xff]  ;;  %v895_v18 = vld [vmem:[%s5164_s29 + $0x1510] sm:$0xff] }
  0xc9   : > { %892 = vst [vmem:[%s5169_s5 + $0xa80] sm:$0xff] %v891_v16  ;;  %894 = vst [vmem:[%s5169_s5 + $0xa88] sm:$0xff] %v893_v17  ;;  %v897_v19 = vld [vmem:[%s5164_s29 + $0x1518] sm:$0xff]  ;;  %v899_v20 = vld [vmem:[%s5164_s29 + $0x1540] sm:$0xff] }
  0xca   : > { %896 = vst [vmem:[%s5169_s5 + $0xa90] sm:$0xff] %v895_v18  ;;  %v901_v21 = vld [vmem:[%s5164_s29 + $0x1548] sm:$0xff]  ;;  %898 = vst [vmem:[%s5169_s5 + $0xa98] sm:$0xff] %v897_v19  ;;  %v903_v22 = vld [vmem:[%s5164_s29 + $0x1550] sm:$0xff] }
  0xcb   : > { %900 = vst [vmem:[%s5169_s5 + $0xaa0] sm:$0xff] %v899_v20  ;;  %902 = vst [vmem:[%s5169_s5 + $0xaa8] sm:$0xff] %v901_v21  ;;  %v905_v23 = vld [vmem:[%s5164_s29 + $0x1558] sm:$0xff]  ;;  %v907_v24 = vld [vmem:[%s5164_s29 + $0x1580] sm:$0xff] }
  0xcc   : > { %904 = vst [vmem:[%s5169_s5 + $0xab0] sm:$0xff] %v903_v22  ;;  %906 = vst [vmem:[%s5169_s5 + $0xab8] sm:$0xff] %v905_v23  ;;  %v909_v25 = vld [vmem:[%s5164_s29 + $0x1588] sm:$0xff]  ;;  %v911_v26 = vld [vmem:[%s5164_s29 + $0x1590] sm:$0xff] }
  0xcd   : > { %908 = vst [vmem:[%s5169_s5 + $0xac0] sm:$0xff] %v907_v24  ;;  %v913_v27 = vld [vmem:[%s5164_s29 + $0x1598] sm:$0xff]  ;;  %910 = vst [vmem:[%s5169_s5 + $0xac8] sm:$0xff] %v909_v25  ;;  %v915_v28 = vld [vmem:[%s5164_s29 + $0x15c0] sm:$0xff] }
  0xce   : > { %912 = vst [vmem:[%s5169_s5 + $0xad0] sm:$0xff] %v911_v26  ;;  %914 = vst [vmem:[%s5169_s5 + $0xad8] sm:$0xff] %v913_v27  ;;  %v917_v29 = vld [vmem:[%s5164_s29 + $0x15c8] sm:$0xff]  ;;  %v919_v30 = vld [vmem:[%s5164_s29 + $0x15d0] sm:$0xff] }
  0xcf   : > { %916 = vst [vmem:[%s5169_s5 + $0xae0] sm:$0xff] %v915_v28  ;;  %918 = vst [vmem:[%s5169_s5 + $0xae8] sm:$0xff] %v917_v29  ;;  %v921_v31 = vld [vmem:[%s5164_s29 + $0x15d8] sm:$0xff]  ;;  %v923_v32 = vld [vmem:[%s5164_s29 + $0x1600] sm:$0xff] }
  0xd0   : > { %920 = vst [vmem:[%s5169_s5 + $0xaf0] sm:$0xff] %v919_v30  ;;  %v925_v33 = vld [vmem:[%s5164_s29 + $0x1608] sm:$0xff]  ;;  %922 = vst [vmem:[%s5169_s5 + $0xaf8] sm:$0xff] %v921_v31  ;;  %v927_v34 = vld [vmem:[%s5164_s29 + $0x1610] sm:$0xff] }
  0xd1   : > { %924 = vst [vmem:[%s5169_s5 + $0xb00] sm:$0xff] %v923_v32  ;;  %926 = vst [vmem:[%s5169_s5 + $0xb08] sm:$0xff] %v925_v33  ;;  %v929_v35 = vld [vmem:[%s5164_s29 + $0x1618] sm:$0xff]  ;;  %v931_v36 = vld [vmem:[%s5164_s29 + $0x1640] sm:$0xff] }
  0xd2   : > { %928 = vst [vmem:[%s5169_s5 + $0xb10] sm:$0xff] %v927_v34  ;;  %930 = vst [vmem:[%s5169_s5 + $0xb18] sm:$0xff] %v929_v35  ;;  %v933_v37 = vld [vmem:[%s5164_s29 + $0x1648] sm:$0xff]  ;;  %v935_v38 = vld [vmem:[%s5164_s29 + $0x1650] sm:$0xff] }
  0xd3   : > { %932 = vst [vmem:[%s5169_s5 + $0xb20] sm:$0xff] %v931_v36  ;;  %v937_v39 = vld [vmem:[%s5164_s29 + $0x1658] sm:$0xff]  ;;  %934 = vst [vmem:[%s5169_s5 + $0xb28] sm:$0xff] %v933_v37  ;;  %v939_v40 = vld [vmem:[%s5164_s29 + $0x1680] sm:$0xff] }
  0xd4   : > { %936 = vst [vmem:[%s5169_s5 + $0xb30] sm:$0xff] %v935_v38  ;;  %938 = vst [vmem:[%s5169_s5 + $0xb38] sm:$0xff] %v937_v39  ;;  %v941_v41 = vld [vmem:[%s5164_s29 + $0x1688] sm:$0xff]  ;;  %v943_v42 = vld [vmem:[%s5164_s29 + $0x1690] sm:$0xff] }
  0xd5   : > { %940 = vst [vmem:[%s5169_s5 + $0xb40] sm:$0xff] %v939_v40  ;;  %942 = vst [vmem:[%s5169_s5 + $0xb48] sm:$0xff] %v941_v41  ;;  %v945_v43 = vld [vmem:[%s5164_s29 + $0x1698] sm:$0xff]  ;;  %v947_v44 = vld [vmem:[%s5164_s29 + $0x16c0] sm:$0xff] }
  0xd6   : > { %944 = vst [vmem:[%s5169_s5 + $0xb50] sm:$0xff] %v943_v42  ;;  %v949_v45 = vld [vmem:[%s5164_s29 + $0x16c8] sm:$0xff]  ;;  %946 = vst [vmem:[%s5169_s5 + $0xb58] sm:$0xff] %v945_v43  ;;  %v951_v46 = vld [vmem:[%s5164_s29 + $0x16d0] sm:$0xff] }
  0xd7   : > { %948 = vst [vmem:[%s5169_s5 + $0xb60] sm:$0xff] %v947_v44  ;;  %950 = vst [vmem:[%s5169_s5 + $0xb68] sm:$0xff] %v949_v45  ;;  %v953_v47 = vld [vmem:[%s5164_s29 + $0x16d8] sm:$0xff]  ;;  %v955_v48 = vld [vmem:[%s5164_s29 + $0x1700] sm:$0xff] }
  0xd8   : > { %952 = vst [vmem:[%s5169_s5 + $0xb70] sm:$0xff] %v951_v46  ;;  %954 = vst [vmem:[%s5169_s5 + $0xb78] sm:$0xff] %v953_v47  ;;  %v957_v49 = vld [vmem:[%s5164_s29 + $0x1708] sm:$0xff]  ;;  %v959_v50 = vld [vmem:[%s5164_s29 + $0x1710] sm:$0xff] }
  0xd9   : > { %956 = vst [vmem:[%s5169_s5 + $0xb80] sm:$0xff] %v955_v48  ;;  %v961_v51 = vld [vmem:[%s5164_s29 + $0x1718] sm:$0xff]  ;;  %958 = vst [vmem:[%s5169_s5 + $0xb88] sm:$0xff] %v957_v49  ;;  %v963_v52 = vld [vmem:[%s5164_s29 + $0x1740] sm:$0xff] }
  0xda   : > { %960 = vst [vmem:[%s5169_s5 + $0xb90] sm:$0xff] %v959_v50  ;;  %962 = vst [vmem:[%s5169_s5 + $0xb98] sm:$0xff] %v961_v51  ;;  %v965_v53 = vld [vmem:[%s5164_s29 + $0x1748] sm:$0xff]  ;;  %v967_v54 = vld [vmem:[%s5164_s29 + $0x1750] sm:$0xff] }
  0xdb   : > { %964 = vst [vmem:[%s5169_s5 + $0xba0] sm:$0xff] %v963_v52  ;;  %966 = vst [vmem:[%s5169_s5 + $0xba8] sm:$0xff] %v965_v53  ;;  %v969_v55 = vld [vmem:[%s5164_s29 + $0x1758] sm:$0xff]  ;;  %v971_v56 = vld [vmem:[%s5164_s29 + $0x1780] sm:$0xff] }
  0xdc   : > { %968 = vst [vmem:[%s5169_s5 + $0xbb0] sm:$0xff] %v967_v54  ;;  %v973_v57 = vld [vmem:[%s5164_s29 + $0x1788] sm:$0xff]  ;;  %970 = vst [vmem:[%s5169_s5 + $0xbb8] sm:$0xff] %v969_v55  ;;  %v975_v58 = vld [vmem:[%s5164_s29 + $0x1790] sm:$0xff] }
  0xdd   : > { %972 = vst [vmem:[%s5169_s5 + $0xbc0] sm:$0xff] %v971_v56  ;;  %974 = vst [vmem:[%s5169_s5 + $0xbc8] sm:$0xff] %v973_v57  ;;  %v977_v59 = vld [vmem:[%s5164_s29 + $0x1798] sm:$0xff]  ;;  %v979_v60 = vld [vmem:[%s5164_s29 + $0x17c0] sm:$0xff] }
  0xde   : > { %976 = vst [vmem:[%s5169_s5 + $0xbd0] sm:$0xff] %v975_v58  ;;  %978 = vst [vmem:[%s5169_s5 + $0xbd8] sm:$0xff] %v977_v59  ;;  %v981_v61 = vld [vmem:[%s5164_s29 + $0x17c8] sm:$0xff]  ;;  %v983_v62 = vld [vmem:[%s5164_s29 + $0x17d0] sm:$0xff] }
  0xdf   : > { %980 = vst [vmem:[%s5169_s5 + $0xbe0] sm:$0xff] %v979_v60  ;;  %v985_v63 = vld [vmem:[%s5164_s29 + $0x17d8] sm:$0xff]  ;;  %982 = vst [vmem:[%s5169_s5 + $0xbe8] sm:$0xff] %v981_v61  ;;  %v987_v0 = vld [vmem:[%s5164_s29 + $0x1800] sm:$0xff] }
  0xe0   : > { %984 = vst [vmem:[%s5169_s5 + $0xbf0] sm:$0xff] %v983_v62  ;;  %986 = vst [vmem:[%s5169_s5 + $0xbf8] sm:$0xff] %v985_v63  ;;  %v989_v1 = vld [vmem:[%s5164_s29 + $0x1808] sm:$0xff]  ;;  %v991_v2 = vld [vmem:[%s5164_s29 + $0x1810] sm:$0xff] }
  0xe1   : > { %988 = vst [vmem:[%s5169_s5 + $0xc00] sm:$0xff] %v987_v0  ;;  %990 = vst [vmem:[%s5169_s5 + $0xc08] sm:$0xff] %v989_v1  ;;  %v993_v3 = vld [vmem:[%s5164_s29 + $0x1818] sm:$0xff]  ;;  %v995_v4 = vld [vmem:[%s5164_s29 + $0x1840] sm:$0xff] }
  0xe2   : > { %992 = vst [vmem:[%s5169_s5 + $0xc10] sm:$0xff] %v991_v2  ;;  %v997_v5 = vld [vmem:[%s5164_s29 + $0x1848] sm:$0xff]  ;;  %994 = vst [vmem:[%s5169_s5 + $0xc18] sm:$0xff] %v993_v3  ;;  %v999_v6 = vld [vmem:[%s5164_s29 + $0x1850] sm:$0xff] }
  0xe3   : > { %996 = vst [vmem:[%s5169_s5 + $0xc20] sm:$0xff] %v995_v4  ;;  %998 = vst [vmem:[%s5169_s5 + $0xc28] sm:$0xff] %v997_v5  ;;  %v1001_v7 = vld [vmem:[%s5164_s29 + $0x1858] sm:$0xff]  ;;  %v1003_v8 = vld [vmem:[%s5164_s29 + $0x1880] sm:$0xff] }
  0xe4   : > { %1000 = vst [vmem:[%s5169_s5 + $0xc30] sm:$0xff] %v999_v6  ;;  %1002 = vst [vmem:[%s5169_s5 + $0xc38] sm:$0xff] %v1001_v7  ;;  %v1005_v9 = vld [vmem:[%s5164_s29 + $0x1888] sm:$0xff]  ;;  %v1007_v10 = vld [vmem:[%s5164_s29 + $0x1890] sm:$0xff] }
  0xe5   : > { %1004 = vst [vmem:[%s5169_s5 + $0xc40] sm:$0xff] %v1003_v8  ;;  %v1009_v11 = vld [vmem:[%s5164_s29 + $0x1898] sm:$0xff]  ;;  %1006 = vst [vmem:[%s5169_s5 + $0xc48] sm:$0xff] %v1005_v9  ;;  %v1011_v12 = vld [vmem:[%s5164_s29 + $0x18c0] sm:$0xff] }
  0xe6   : > { %1008 = vst [vmem:[%s5169_s5 + $0xc50] sm:$0xff] %v1007_v10  ;;  %1010 = vst [vmem:[%s5169_s5 + $0xc58] sm:$0xff] %v1009_v11  ;;  %v1013_v13 = vld [vmem:[%s5164_s29 + $0x18c8] sm:$0xff]  ;;  %v1015_v14 = vld [vmem:[%s5164_s29 + $0x18d0] sm:$0xff] }
  0xe7   : > { %1012 = vst [vmem:[%s5169_s5 + $0xc60] sm:$0xff] %v1011_v12  ;;  %1014 = vst [vmem:[%s5169_s5 + $0xc68] sm:$0xff] %v1013_v13  ;;  %v1017_v15 = vld [vmem:[%s5164_s29 + $0x18d8] sm:$0xff]  ;;  %v1019_v16 = vld [vmem:[%s5164_s29 + $0x1900] sm:$0xff] }
  0xe8   : > { %1016 = vst [vmem:[%s5169_s5 + $0xc70] sm:$0xff] %v1015_v14  ;;  %v1021_v17 = vld [vmem:[%s5164_s29 + $0x1908] sm:$0xff]  ;;  %1018 = vst [vmem:[%s5169_s5 + $0xc78] sm:$0xff] %v1017_v15  ;;  %v1023_v18 = vld [vmem:[%s5164_s29 + $0x1910] sm:$0xff] }
  0xe9   : > { %1020 = vst [vmem:[%s5169_s5 + $0xc80] sm:$0xff] %v1019_v16  ;;  %1022 = vst [vmem:[%s5169_s5 + $0xc88] sm:$0xff] %v1021_v17  ;;  %v1025_v19 = vld [vmem:[%s5164_s29 + $0x1918] sm:$0xff]  ;;  %v1027_v20 = vld [vmem:[%s5164_s29 + $0x1940] sm:$0xff] }
  0xea   : > { %1024 = vst [vmem:[%s5169_s5 + $0xc90] sm:$0xff] %v1023_v18  ;;  %1026 = vst [vmem:[%s5169_s5 + $0xc98] sm:$0xff] %v1025_v19  ;;  %v1029_v21 = vld [vmem:[%s5164_s29 + $0x1948] sm:$0xff]  ;;  %v1031_v22 = vld [vmem:[%s5164_s29 + $0x1950] sm:$0xff] }
  0xeb   : > { %1028 = vst [vmem:[%s5169_s5 + $0xca0] sm:$0xff] %v1027_v20  ;;  %v1033_v23 = vld [vmem:[%s5164_s29 + $0x1958] sm:$0xff]  ;;  %1030 = vst [vmem:[%s5169_s5 + $0xca8] sm:$0xff] %v1029_v21  ;;  %v1035_v24 = vld [vmem:[%s5164_s29 + $0x1980] sm:$0xff] }
  0xec   : > { %1032 = vst [vmem:[%s5169_s5 + $0xcb0] sm:$0xff] %v1031_v22  ;;  %1034 = vst [vmem:[%s5169_s5 + $0xcb8] sm:$0xff] %v1033_v23  ;;  %v1037_v25 = vld [vmem:[%s5164_s29 + $0x1988] sm:$0xff]  ;;  %v1039_v26 = vld [vmem:[%s5164_s29 + $0x1990] sm:$0xff] }
  0xed   : > { %1036 = vst [vmem:[%s5169_s5 + $0xcc0] sm:$0xff] %v1035_v24  ;;  %1038 = vst [vmem:[%s5169_s5 + $0xcc8] sm:$0xff] %v1037_v25  ;;  %v1041_v27 = vld [vmem:[%s5164_s29 + $0x1998] sm:$0xff]  ;;  %v1043_v28 = vld [vmem:[%s5164_s29 + $0x19c0] sm:$0xff] }
  0xee   : > { %1040 = vst [vmem:[%s5169_s5 + $0xcd0] sm:$0xff] %v1039_v26  ;;  %v1045_v29 = vld [vmem:[%s5164_s29 + $0x19c8] sm:$0xff]  ;;  %1042 = vst [vmem:[%s5169_s5 + $0xcd8] sm:$0xff] %v1041_v27  ;;  %v1047_v30 = vld [vmem:[%s5164_s29 + $0x19d0] sm:$0xff] }
  0xef   : > { %1044 = vst [vmem:[%s5169_s5 + $0xce0] sm:$0xff] %v1043_v28  ;;  %1046 = vst [vmem:[%s5169_s5 + $0xce8] sm:$0xff] %v1045_v29  ;;  %v1049_v31 = vld [vmem:[%s5164_s29 + $0x19d8] sm:$0xff]  ;;  %v1051_v32 = vld [vmem:[%s5164_s29 + $0x1a00] sm:$0xff] }
  0xf0   : > { %1048 = vst [vmem:[%s5169_s5 + $0xcf0] sm:$0xff] %v1047_v30  ;;  %1050 = vst [vmem:[%s5169_s5 + $0xcf8] sm:$0xff] %v1049_v31  ;;  %v1053_v33 = vld [vmem:[%s5164_s29 + $0x1a08] sm:$0xff]  ;;  %v1055_v34 = vld [vmem:[%s5164_s29 + $0x1a10] sm:$0xff] }
  0xf1   : > { %1052 = vst [vmem:[%s5169_s5 + $0xd00] sm:$0xff] %v1051_v32  ;;  %v1057_v35 = vld [vmem:[%s5164_s29 + $0x1a18] sm:$0xff]  ;;  %1054 = vst [vmem:[%s5169_s5 + $0xd08] sm:$0xff] %v1053_v33  ;;  %v1059_v36 = vld [vmem:[%s5164_s29 + $0x1a40] sm:$0xff] }
  0xf2   : > { %1056 = vst [vmem:[%s5169_s5 + $0xd10] sm:$0xff] %v1055_v34  ;;  %1058 = vst [vmem:[%s5169_s5 + $0xd18] sm:$0xff] %v1057_v35  ;;  %v1061_v37 = vld [vmem:[%s5164_s29 + $0x1a48] sm:$0xff]  ;;  %v1063_v38 = vld [vmem:[%s5164_s29 + $0x1a50] sm:$0xff] }
  0xf3   : > { %1060 = vst [vmem:[%s5169_s5 + $0xd20] sm:$0xff] %v1059_v36  ;;  %1062 = vst [vmem:[%s5169_s5 + $0xd28] sm:$0xff] %v1061_v37  ;;  %v1065_v39 = vld [vmem:[%s5164_s29 + $0x1a58] sm:$0xff]  ;;  %v1067_v40 = vld [vmem:[%s5164_s29 + $0x1a80] sm:$0xff] }
  0xf4   : > { %1064 = vst [vmem:[%s5169_s5 + $0xd30] sm:$0xff] %v1063_v38  ;;  %v1069_v41 = vld [vmem:[%s5164_s29 + $0x1a88] sm:$0xff]  ;;  %1066 = vst [vmem:[%s5169_s5 + $0xd38] sm:$0xff] %v1065_v39  ;;  %v1071_v42 = vld [vmem:[%s5164_s29 + $0x1a90] sm:$0xff] }
  0xf5   : > { %1068 = vst [vmem:[%s5169_s5 + $0xd40] sm:$0xff] %v1067_v40  ;;  %1070 = vst [vmem:[%s5169_s5 + $0xd48] sm:$0xff] %v1069_v41  ;;  %v1073_v43 = vld [vmem:[%s5164_s29 + $0x1a98] sm:$0xff]  ;;  %v1075_v44 = vld [vmem:[%s5164_s29 + $0x1ac0] sm:$0xff] }
  0xf6   : > { %1072 = vst [vmem:[%s5169_s5 + $0xd50] sm:$0xff] %v1071_v42  ;;  %1074 = vst [vmem:[%s5169_s5 + $0xd58] sm:$0xff] %v1073_v43  ;;  %v1077_v45 = vld [vmem:[%s5164_s29 + $0x1ac8] sm:$0xff]  ;;  %v1079_v46 = vld [vmem:[%s5164_s29 + $0x1ad0] sm:$0xff] }
  0xf7   : > { %1076 = vst [vmem:[%s5169_s5 + $0xd60] sm:$0xff] %v1075_v44  ;;  %v1081_v47 = vld [vmem:[%s5164_s29 + $0x1ad8] sm:$0xff]  ;;  %1078 = vst [vmem:[%s5169_s5 + $0xd68] sm:$0xff] %v1077_v45  ;;  %v1083_v48 = vld [vmem:[%s5164_s29 + $0x1b00] sm:$0xff] }
  0xf8   : > { %1080 = vst [vmem:[%s5169_s5 + $0xd70] sm:$0xff] %v1079_v46  ;;  %1082 = vst [vmem:[%s5169_s5 + $0xd78] sm:$0xff] %v1081_v47  ;;  %v1085_v49 = vld [vmem:[%s5164_s29 + $0x1b08] sm:$0xff]  ;;  %v1087_v50 = vld [vmem:[%s5164_s29 + $0x1b10] sm:$0xff] }
  0xf9   : > { %1084 = vst [vmem:[%s5169_s5 + $0xd80] sm:$0xff] %v1083_v48  ;;  %1086 = vst [vmem:[%s5169_s5 + $0xd88] sm:$0xff] %v1085_v49  ;;  %v1089_v51 = vld [vmem:[%s5164_s29 + $0x1b18] sm:$0xff]  ;;  %v1091_v52 = vld [vmem:[%s5164_s29 + $0x1b40] sm:$0xff] }
  0xfa   : > { %1088 = vst [vmem:[%s5169_s5 + $0xd90] sm:$0xff] %v1087_v50  ;;  %v1093_v53 = vld [vmem:[%s5164_s29 + $0x1b48] sm:$0xff]  ;;  %1090 = vst [vmem:[%s5169_s5 + $0xd98] sm:$0xff] %v1089_v51  ;;  %v1095_v54 = vld [vmem:[%s5164_s29 + $0x1b50] sm:$0xff] }
  0xfb   : > { %1092 = vst [vmem:[%s5169_s5 + $0xda0] sm:$0xff] %v1091_v52  ;;  %1094 = vst [vmem:[%s5169_s5 + $0xda8] sm:$0xff] %v1093_v53  ;;  %v1097_v55 = vld [vmem:[%s5164_s29 + $0x1b58] sm:$0xff]  ;;  %v1099_v56 = vld [vmem:[%s5164_s29 + $0x1b80] sm:$0xff] }
  0xfc   : > { %1096 = vst [vmem:[%s5169_s5 + $0xdb0] sm:$0xff] %v1095_v54  ;;  %1098 = vst [vmem:[%s5169_s5 + $0xdb8] sm:$0xff] %v1097_v55  ;;  %v1101_v57 = vld [vmem:[%s5164_s29 + $0x1b88] sm:$0xff]  ;;  %v1103_v58 = vld [vmem:[%s5164_s29 + $0x1b90] sm:$0xff] }
  0xfd   : > { %1100 = vst [vmem:[%s5169_s5 + $0xdc0] sm:$0xff] %v1099_v56  ;;  %v1105_v59 = vld [vmem:[%s5164_s29 + $0x1b98] sm:$0xff]  ;;  %1102 = vst [vmem:[%s5169_s5 + $0xdc8] sm:$0xff] %v1101_v57  ;;  %v1107_v60 = vld [vmem:[%s5164_s29 + $0x1bc0] sm:$0xff] }
  0xfe   : > { %1104 = vst [vmem:[%s5169_s5 + $0xdd0] sm:$0xff] %v1103_v58  ;;  %1106 = vst [vmem:[%s5169_s5 + $0xdd8] sm:$0xff] %v1105_v59  ;;  %v1109_v61 = vld [vmem:[%s5164_s29 + $0x1bc8] sm:$0xff]  ;;  %v1111_v62 = vld [vmem:[%s5164_s29 + $0x1bd0] sm:$0xff] }
  0xff   : > { %1108 = vst [vmem:[%s5169_s5 + $0xde0] sm:$0xff] %v1107_v60  ;;  %1110 = vst [vmem:[%s5169_s5 + $0xde8] sm:$0xff] %v1109_v61  ;;  %v1113_v63 = vld [vmem:[%s5164_s29 + $0x1bd8] sm:$0xff]  ;;  %v1115_v0 = vld [vmem:[%s5164_s29 + $0x1c00] sm:$0xff] }
 0x100   : > { %1112 = vst [vmem:[%s5169_s5 + $0xdf0] sm:$0xff] %v1111_v62  ;;  %v1117_v1 = vld [vmem:[%s5164_s29 + $0x1c08] sm:$0xff]  ;;  %1114 = vst [vmem:[%s5169_s5 + $0xdf8] sm:$0xff] %v1113_v63  ;;  %v1119_v2 = vld [vmem:[%s5164_s29 + $0x1c10] sm:$0xff] }
 0x101   : > { %1116 = vst [vmem:[%s5169_s5 + $0xe00] sm:$0xff] %v1115_v0  ;;  %1118 = vst [vmem:[%s5169_s5 + $0xe08] sm:$0xff] %v1117_v1  ;;  %v1121_v3 = vld [vmem:[%s5164_s29 + $0x1c18] sm:$0xff]  ;;  %v1123_v4 = vld [vmem:[%s5164_s29 + $0x1c40] sm:$0xff] }
 0x102   : > { %1120 = vst [vmem:[%s5169_s5 + $0xe10] sm:$0xff] %v1119_v2  ;;  %1122 = vst [vmem:[%s5169_s5 + $0xe18] sm:$0xff] %v1121_v3  ;;  %v1125_v5 = vld [vmem:[%s5164_s29 + $0x1c48] sm:$0xff]  ;;  %v1127_v6 = vld [vmem:[%s5164_s29 + $0x1c50] sm:$0xff] }
 0x103   : > { %1124 = vst [vmem:[%s5169_s5 + $0xe20] sm:$0xff] %v1123_v4  ;;  %v1129_v7 = vld [vmem:[%s5164_s29 + $0x1c58] sm:$0xff]  ;;  %1126 = vst [vmem:[%s5169_s5 + $0xe28] sm:$0xff] %v1125_v5  ;;  %v1131_v8 = vld [vmem:[%s5164_s29 + $0x1c80] sm:$0xff] }
 0x104   : > { %1128 = vst [vmem:[%s5169_s5 + $0xe30] sm:$0xff] %v1127_v6  ;;  %1130 = vst [vmem:[%s5169_s5 + $0xe38] sm:$0xff] %v1129_v7  ;;  %v1133_v9 = vld [vmem:[%s5164_s29 + $0x1c88] sm:$0xff]  ;;  %v1135_v10 = vld [vmem:[%s5164_s29 + $0x1c90] sm:$0xff] }
 0x105   : > { %1132 = vst [vmem:[%s5169_s5 + $0xe40] sm:$0xff] %v1131_v8  ;;  %1134 = vst [vmem:[%s5169_s5 + $0xe48] sm:$0xff] %v1133_v9  ;;  %v1137_v11 = vld [vmem:[%s5164_s29 + $0x1c98] sm:$0xff]  ;;  %v1139_v12 = vld [vmem:[%s5164_s29 + $0x1cc0] sm:$0xff] }
 0x106   : > { %1136 = vst [vmem:[%s5169_s5 + $0xe50] sm:$0xff] %v1135_v10  ;;  %v1141_v13 = vld [vmem:[%s5164_s29 + $0x1cc8] sm:$0xff]  ;;  %1138 = vst [vmem:[%s5169_s5 + $0xe58] sm:$0xff] %v1137_v11  ;;  %v1143_v14 = vld [vmem:[%s5164_s29 + $0x1cd0] sm:$0xff] }
 0x107   : > { %1140 = vst [vmem:[%s5169_s5 + $0xe60] sm:$0xff] %v1139_v12  ;;  %1142 = vst [vmem:[%s5169_s5 + $0xe68] sm:$0xff] %v1141_v13  ;;  %v1145_v15 = vld [vmem:[%s5164_s29 + $0x1cd8] sm:$0xff]  ;;  %v1147_v16 = vld [vmem:[%s5164_s29 + $0x1d00] sm:$0xff] }
 0x108   : > { %1144 = vst [vmem:[%s5169_s5 + $0xe70] sm:$0xff] %v1143_v14  ;;  %1146 = vst [vmem:[%s5169_s5 + $0xe78] sm:$0xff] %v1145_v15  ;;  %v1149_v17 = vld [vmem:[%s5164_s29 + $0x1d08] sm:$0xff]  ;;  %v1151_v18 = vld [vmem:[%s5164_s29 + $0x1d10] sm:$0xff] }
 0x109   : > { %1148 = vst [vmem:[%s5169_s5 + $0xe80] sm:$0xff] %v1147_v16  ;;  %v1153_v19 = vld [vmem:[%s5164_s29 + $0x1d18] sm:$0xff]  ;;  %1150 = vst [vmem:[%s5169_s5 + $0xe88] sm:$0xff] %v1149_v17  ;;  %v1155_v20 = vld [vmem:[%s5164_s29 + $0x1d40] sm:$0xff] }
 0x10a   : > { %1152 = vst [vmem:[%s5169_s5 + $0xe90] sm:$0xff] %v1151_v18  ;;  %1154 = vst [vmem:[%s5169_s5 + $0xe98] sm:$0xff] %v1153_v19  ;;  %v1157_v21 = vld [vmem:[%s5164_s29 + $0x1d48] sm:$0xff]  ;;  %v1159_v22 = vld [vmem:[%s5164_s29 + $0x1d50] sm:$0xff] }
 0x10b   : > { %1156 = vst [vmem:[%s5169_s5 + $0xea0] sm:$0xff] %v1155_v20  ;;  %1158 = vst [vmem:[%s5169_s5 + $0xea8] sm:$0xff] %v1157_v21  ;;  %v1161_v23 = vld [vmem:[%s5164_s29 + $0x1d58] sm:$0xff]  ;;  %v1163_v24 = vld [vmem:[%s5164_s29 + $0x1d80] sm:$0xff] }
 0x10c   : > { %1160 = vst [vmem:[%s5169_s5 + $0xeb0] sm:$0xff] %v1159_v22  ;;  %v1165_v25 = vld [vmem:[%s5164_s29 + $0x1d88] sm:$0xff]  ;;  %1162 = vst [vmem:[%s5169_s5 + $0xeb8] sm:$0xff] %v1161_v23  ;;  %v1167_v26 = vld [vmem:[%s5164_s29 + $0x1d90] sm:$0xff] }
 0x10d   : > { %1164 = vst [vmem:[%s5169_s5 + $0xec0] sm:$0xff] %v1163_v24  ;;  %1166 = vst [vmem:[%s5169_s5 + $0xec8] sm:$0xff] %v1165_v25  ;;  %v1169_v27 = vld [vmem:[%s5164_s29 + $0x1d98] sm:$0xff]  ;;  %v1171_v28 = vld [vmem:[%s5164_s29 + $0x1dc0] sm:$0xff] }
 0x10e   : > { %1168 = vst [vmem:[%s5169_s5 + $0xed0] sm:$0xff] %v1167_v26  ;;  %1170 = vst [vmem:[%s5169_s5 + $0xed8] sm:$0xff] %v1169_v27  ;;  %v1173_v29 = vld [vmem:[%s5164_s29 + $0x1dc8] sm:$0xff]  ;;  %v1175_v30 = vld [vmem:[%s5164_s29 + $0x1dd0] sm:$0xff] }
 0x10f   : > { %1172 = vst [vmem:[%s5169_s5 + $0xee0] sm:$0xff] %v1171_v28  ;;  %v1177_v31 = vld [vmem:[%s5164_s29 + $0x1dd8] sm:$0xff]  ;;  %1174 = vst [vmem:[%s5169_s5 + $0xee8] sm:$0xff] %v1173_v29  ;;  %v1179_v32 = vld [vmem:[%s5164_s29 + $0x1e00] sm:$0xff] }
 0x110   : > { %1176 = vst [vmem:[%s5169_s5 + $0xef0] sm:$0xff] %v1175_v30  ;;  %1178 = vst [vmem:[%s5169_s5 + $0xef8] sm:$0xff] %v1177_v31  ;;  %v1181_v33 = vld [vmem:[%s5164_s29 + $0x1e08] sm:$0xff]  ;;  %v1183_v34 = vld [vmem:[%s5164_s29 + $0x1e10] sm:$0xff] }
 0x111   : > { %1180 = vst [vmem:[%s5169_s5 + $0xf00] sm:$0xff] %v1179_v32  ;;  %1182 = vst [vmem:[%s5169_s5 + $0xf08] sm:$0xff] %v1181_v33  ;;  %v1185_v35 = vld [vmem:[%s5164_s29 + $0x1e18] sm:$0xff]  ;;  %v1187_v36 = vld [vmem:[%s5164_s29 + $0x1e40] sm:$0xff] }
 0x112   : > { %1184 = vst [vmem:[%s5169_s5 + $0xf10] sm:$0xff] %v1183_v34  ;;  %v1189_v37 = vld [vmem:[%s5164_s29 + $0x1e48] sm:$0xff]  ;;  %1186 = vst [vmem:[%s5169_s5 + $0xf18] sm:$0xff] %v1185_v35  ;;  %v1191_v38 = vld [vmem:[%s5164_s29 + $0x1e50] sm:$0xff] }
 0x113   : > { %1188 = vst [vmem:[%s5169_s5 + $0xf20] sm:$0xff] %v1187_v36  ;;  %1190 = vst [vmem:[%s5169_s5 + $0xf28] sm:$0xff] %v1189_v37  ;;  %v1193_v39 = vld [vmem:[%s5164_s29 + $0x1e58] sm:$0xff]  ;;  %v1195_v40 = vld [vmem:[%s5164_s29 + $0x1e80] sm:$0xff] }
 0x114   : > { %1192 = vst [vmem:[%s5169_s5 + $0xf30] sm:$0xff] %v1191_v38  ;;  %1194 = vst [vmem:[%s5169_s5 + $0xf38] sm:$0xff] %v1193_v39  ;;  %v1197_v41 = vld [vmem:[%s5164_s29 + $0x1e88] sm:$0xff]  ;;  %v1199_v42 = vld [vmem:[%s5164_s29 + $0x1e90] sm:$0xff] }
 0x115   : > { %1196 = vst [vmem:[%s5169_s5 + $0xf40] sm:$0xff] %v1195_v40  ;;  %v1201_v43 = vld [vmem:[%s5164_s29 + $0x1e98] sm:$0xff]  ;;  %1198 = vst [vmem:[%s5169_s5 + $0xf48] sm:$0xff] %v1197_v41  ;;  %v1203_v44 = vld [vmem:[%s5164_s29 + $0x1ec0] sm:$0xff] }
 0x116   : > { %1200 = vst [vmem:[%s5169_s5 + $0xf50] sm:$0xff] %v1199_v42  ;;  %1202 = vst [vmem:[%s5169_s5 + $0xf58] sm:$0xff] %v1201_v43  ;;  %v1205_v45 = vld [vmem:[%s5164_s29 + $0x1ec8] sm:$0xff]  ;;  %v1207_v46 = vld [vmem:[%s5164_s29 + $0x1ed0] sm:$0xff] }
 0x117   : > { %1204 = vst [vmem:[%s5169_s5 + $0xf60] sm:$0xff] %v1203_v44  ;;  %1206 = vst [vmem:[%s5169_s5 + $0xf68] sm:$0xff] %v1205_v45  ;;  %v1209_v47 = vld [vmem:[%s5164_s29 + $0x1ed8] sm:$0xff]  ;;  %v1211_v48 = vld [vmem:[%s5164_s29 + $0x1f00] sm:$0xff] }
 0x118   : > { %1208 = vst [vmem:[%s5169_s5 + $0xf70] sm:$0xff] %v1207_v46  ;;  %v1213_v49 = vld [vmem:[%s5164_s29 + $0x1f08] sm:$0xff]  ;;  %1210 = vst [vmem:[%s5169_s5 + $0xf78] sm:$0xff] %v1209_v47  ;;  %v1215_v50 = vld [vmem:[%s5164_s29 + $0x1f10] sm:$0xff] }
 0x119   : > { %1212 = vst [vmem:[%s5169_s5 + $0xf80] sm:$0xff] %v1211_v48  ;;  %1214 = vst [vmem:[%s5169_s5 + $0xf88] sm:$0xff] %v1213_v49  ;;  %v1217_v51 = vld [vmem:[%s5164_s29 + $0x1f18] sm:$0xff]  ;;  %v1219_v52 = vld [vmem:[%s5164_s29 + $0x1f40] sm:$0xff] }
 0x11a   : > { %1216 = vst [vmem:[%s5169_s5 + $0xf90] sm:$0xff] %v1215_v50  ;;  %1218 = vst [vmem:[%s5169_s5 + $0xf98] sm:$0xff] %v1217_v51  ;;  %v1221_v53 = vld [vmem:[%s5164_s29 + $0x1f48] sm:$0xff]  ;;  %v1223_v54 = vld [vmem:[%s5164_s29 + $0x1f50] sm:$0xff] }
 0x11b   : > { %1220 = vst [vmem:[%s5169_s5 + $0xfa0] sm:$0xff] %v1219_v52  ;;  %v1225_v55 = vld [vmem:[%s5164_s29 + $0x1f58] sm:$0xff]  ;;  %1222 = vst [vmem:[%s5169_s5 + $0xfa8] sm:$0xff] %v1221_v53  ;;  %v1227_v56 = vld [vmem:[%s5164_s29 + $0x1f80] sm:$0xff] }
 0x11c   : > { %1224 = vst [vmem:[%s5169_s5 + $0xfb0] sm:$0xff] %v1223_v54  ;;  %1226 = vst [vmem:[%s5169_s5 + $0xfb8] sm:$0xff] %v1225_v55  ;;  %v1229_v57 = vld [vmem:[%s5164_s29 + $0x1f88] sm:$0xff]  ;;  %v1231_v58 = vld [vmem:[%s5164_s29 + $0x1f90] sm:$0xff] }
 0x11d   : > { %1228 = vst [vmem:[%s5169_s5 + $0xfc0] sm:$0xff] %v1227_v56  ;;  %1230 = vst [vmem:[%s5169_s5 + $0xfc8] sm:$0xff] %v1229_v57  ;;  %v1233_v59 = vld [vmem:[%s5164_s29 + $0x1f98] sm:$0xff]  ;;  %v1235_v60 = vld [vmem:[%s5164_s29 + $0x1fc0] sm:$0xff] }
 0x11e   : > { %1232 = vst [vmem:[%s5169_s5 + $0xfd0] sm:$0xff] %v1231_v58  ;;  %v1237_v61 = vld [vmem:[%s5164_s29 + $0x1fc8] sm:$0xff]  ;;  %1234 = vst [vmem:[%s5169_s5 + $0xfd8] sm:$0xff] %v1233_v59  ;;  %v1239_v62 = vld [vmem:[%s5164_s29 + $0x1fd0] sm:$0xff] }
 0x11f   : > { %1236 = vst [vmem:[%s5169_s5 + $0xfe0] sm:$0xff] %v1235_v60  ;;  %1238 = vst [vmem:[%s5169_s5 + $0xfe8] sm:$0xff] %v1237_v61  ;;  %v1241_v63 = vld [vmem:[%s5164_s29 + $0x1fd8] sm:$0xff]  ;;  %v1243_v0 = vld [vmem:[%s5164_s29 + $0x2000] sm:$0xff] }
 0x120   : > { %1240 = vst [vmem:[%s5169_s5 + $0xff0] sm:$0xff] %v1239_v62  ;;  %1242 = vst [vmem:[%s5169_s5 + $0xff8] sm:$0xff] %v1241_v63  ;;  %v1245_v1 = vld [vmem:[%s5164_s29 + $0x2008] sm:$0xff]  ;;  %v1247_v2 = vld [vmem:[%s5164_s29 + $0x2010] sm:$0xff] }
 0x121   : > { %1244 = vst [vmem:[%s5169_s5 + $0x1000] sm:$0xff] %v1243_v0  ;;  %v1249_v3 = vld [vmem:[%s5164_s29 + $0x2018] sm:$0xff]  ;;  %1246 = vst [vmem:[%s5169_s5 + $0x1008] sm:$0xff] %v1245_v1  ;;  %v1251_v4 = vld [vmem:[%s5164_s29 + $0x2040] sm:$0xff] }
 0x122   : > { %1248 = vst [vmem:[%s5169_s5 + $0x1010] sm:$0xff] %v1247_v2  ;;  %1250 = vst [vmem:[%s5169_s5 + $0x1018] sm:$0xff] %v1249_v3  ;;  %v1253_v5 = vld [vmem:[%s5164_s29 + $0x2048] sm:$0xff]  ;;  %v1255_v6 = vld [vmem:[%s5164_s29 + $0x2050] sm:$0xff] }
 0x123   : > { %1252 = vst [vmem:[%s5169_s5 + $0x1020] sm:$0xff] %v1251_v4  ;;  %1254 = vst [vmem:[%s5169_s5 + $0x1028] sm:$0xff] %v1253_v5  ;;  %v1257_v7 = vld [vmem:[%s5164_s29 + $0x2058] sm:$0xff]  ;;  %v1259_v8 = vld [vmem:[%s5164_s29 + $0x2080] sm:$0xff] }
 0x124   : > { %1256 = vst [vmem:[%s5169_s5 + $0x1030] sm:$0xff] %v1255_v6  ;;  %v1261_v9 = vld [vmem:[%s5164_s29 + $0x2088] sm:$0xff]  ;;  %1258 = vst [vmem:[%s5169_s5 + $0x1038] sm:$0xff] %v1257_v7  ;;  %v1263_v10 = vld [vmem:[%s5164_s29 + $0x2090] sm:$0xff] }
 0x125   : > { %1260 = vst [vmem:[%s5169_s5 + $0x1040] sm:$0xff] %v1259_v8  ;;  %1262 = vst [vmem:[%s5169_s5 + $0x1048] sm:$0xff] %v1261_v9  ;;  %v1265_v11 = vld [vmem:[%s5164_s29 + $0x2098] sm:$0xff]  ;;  %v1267_v12 = vld [vmem:[%s5164_s29 + $0x20c0] sm:$0xff] }
 0x126   : > { %1264 = vst [vmem:[%s5169_s5 + $0x1050] sm:$0xff] %v1263_v10  ;;  %1266 = vst [vmem:[%s5169_s5 + $0x1058] sm:$0xff] %v1265_v11  ;;  %v1269_v13 = vld [vmem:[%s5164_s29 + $0x20c8] sm:$0xff]  ;;  %v1271_v14 = vld [vmem:[%s5164_s29 + $0x20d0] sm:$0xff] }
 0x127   : > { %1268 = vst [vmem:[%s5169_s5 + $0x1060] sm:$0xff] %v1267_v12  ;;  %v1273_v15 = vld [vmem:[%s5164_s29 + $0x20d8] sm:$0xff]  ;;  %1270 = vst [vmem:[%s5169_s5 + $0x1068] sm:$0xff] %v1269_v13  ;;  %v1275_v16 = vld [vmem:[%s5164_s29 + $0x2100] sm:$0xff] }
 0x128   : > { %1272 = vst [vmem:[%s5169_s5 + $0x1070] sm:$0xff] %v1271_v14  ;;  %1274 = vst [vmem:[%s5169_s5 + $0x1078] sm:$0xff] %v1273_v15  ;;  %v1277_v17 = vld [vmem:[%s5164_s29 + $0x2108] sm:$0xff]  ;;  %v1279_v18 = vld [vmem:[%s5164_s29 + $0x2110] sm:$0xff] }
 0x129   : > { %1276 = vst [vmem:[%s5169_s5 + $0x1080] sm:$0xff] %v1275_v16  ;;  %1278 = vst [vmem:[%s5169_s5 + $0x1088] sm:$0xff] %v1277_v17  ;;  %v1281_v19 = vld [vmem:[%s5164_s29 + $0x2118] sm:$0xff]  ;;  %v1283_v20 = vld [vmem:[%s5164_s29 + $0x2140] sm:$0xff] }
 0x12a   : > { %1280 = vst [vmem:[%s5169_s5 + $0x1090] sm:$0xff] %v1279_v18  ;;  %v1285_v21 = vld [vmem:[%s5164_s29 + $0x2148] sm:$0xff]  ;;  %1282 = vst [vmem:[%s5169_s5 + $0x1098] sm:$0xff] %v1281_v19  ;;  %v1287_v22 = vld [vmem:[%s5164_s29 + $0x2150] sm:$0xff] }
 0x12b   : > { %1284 = vst [vmem:[%s5169_s5 + $0x10a0] sm:$0xff] %v1283_v20  ;;  %1286 = vst [vmem:[%s5169_s5 + $0x10a8] sm:$0xff] %v1285_v21  ;;  %v1289_v23 = vld [vmem:[%s5164_s29 + $0x2158] sm:$0xff]  ;;  %v1291_v24 = vld [vmem:[%s5164_s29 + $0x2180] sm:$0xff] }
 0x12c   : > { %1288 = vst [vmem:[%s5169_s5 + $0x10b0] sm:$0xff] %v1287_v22  ;;  %1290 = vst [vmem:[%s5169_s5 + $0x10b8] sm:$0xff] %v1289_v23  ;;  %v1293_v25 = vld [vmem:[%s5164_s29 + $0x2188] sm:$0xff]  ;;  %v1295_v26 = vld [vmem:[%s5164_s29 + $0x2190] sm:$0xff] }
 0x12d   : > { %1292 = vst [vmem:[%s5169_s5 + $0x10c0] sm:$0xff] %v1291_v24  ;;  %v1297_v27 = vld [vmem:[%s5164_s29 + $0x2198] sm:$0xff]  ;;  %1294 = vst [vmem:[%s5169_s5 + $0x10c8] sm:$0xff] %v1293_v25  ;;  %v1299_v28 = vld [vmem:[%s5164_s29 + $0x21c0] sm:$0xff] }
 0x12e   : > { %1296 = vst [vmem:[%s5169_s5 + $0x10d0] sm:$0xff] %v1295_v26  ;;  %1298 = vst [vmem:[%s5169_s5 + $0x10d8] sm:$0xff] %v1297_v27  ;;  %v1301_v29 = vld [vmem:[%s5164_s29 + $0x21c8] sm:$0xff]  ;;  %v1303_v30 = vld [vmem:[%s5164_s29 + $0x21d0] sm:$0xff] }
 0x12f   : > { %1300 = vst [vmem:[%s5169_s5 + $0x10e0] sm:$0xff] %v1299_v28  ;;  %1302 = vst [vmem:[%s5169_s5 + $0x10e8] sm:$0xff] %v1301_v29  ;;  %v1305_v31 = vld [vmem:[%s5164_s29 + $0x21d8] sm:$0xff]  ;;  %v1307_v32 = vld [vmem:[%s5164_s29 + $0x2200] sm:$0xff] }
 0x130   : > { %1304 = vst [vmem:[%s5169_s5 + $0x10f0] sm:$0xff] %v1303_v30  ;;  %v1309_v33 = vld [vmem:[%s5164_s29 + $0x2208] sm:$0xff]  ;;  %1306 = vst [vmem:[%s5169_s5 + $0x10f8] sm:$0xff] %v1305_v31  ;;  %v1311_v34 = vld [vmem:[%s5164_s29 + $0x2210] sm:$0xff] }
 0x131   : > { %1308 = vst [vmem:[%s5169_s5 + $0x1100] sm:$0xff] %v1307_v32  ;;  %1310 = vst [vmem:[%s5169_s5 + $0x1108] sm:$0xff] %v1309_v33  ;;  %v1313_v35 = vld [vmem:[%s5164_s29 + $0x2218] sm:$0xff]  ;;  %v1315_v36 = vld [vmem:[%s5164_s29 + $0x2240] sm:$0xff] }
 0x132   : > { %1312 = vst [vmem:[%s5169_s5 + $0x1110] sm:$0xff] %v1311_v34  ;;  %1314 = vst [vmem:[%s5169_s5 + $0x1118] sm:$0xff] %v1313_v35  ;;  %v1317_v37 = vld [vmem:[%s5164_s29 + $0x2248] sm:$0xff]  ;;  %v1319_v38 = vld [vmem:[%s5164_s29 + $0x2250] sm:$0xff] }
 0x133   : > { %1316 = vst [vmem:[%s5169_s5 + $0x1120] sm:$0xff] %v1315_v36  ;;  %v1321_v39 = vld [vmem:[%s5164_s29 + $0x2258] sm:$0xff]  ;;  %1318 = vst [vmem:[%s5169_s5 + $0x1128] sm:$0xff] %v1317_v37  ;;  %v1323_v40 = vld [vmem:[%s5164_s29 + $0x2280] sm:$0xff] }
 0x134   : > { %1320 = vst [vmem:[%s5169_s5 + $0x1130] sm:$0xff] %v1319_v38  ;;  %1322 = vst [vmem:[%s5169_s5 + $0x1138] sm:$0xff] %v1321_v39  ;;  %v1325_v41 = vld [vmem:[%s5164_s29 + $0x2288] sm:$0xff]  ;;  %v1327_v42 = vld [vmem:[%s5164_s29 + $0x2290] sm:$0xff] }
 0x135   : > { %1324 = vst [vmem:[%s5169_s5 + $0x1140] sm:$0xff] %v1323_v40  ;;  %1326 = vst [vmem:[%s5169_s5 + $0x1148] sm:$0xff] %v1325_v41  ;;  %v1329_v43 = vld [vmem:[%s5164_s29 + $0x2298] sm:$0xff]  ;;  %v1331_v44 = vld [vmem:[%s5164_s29 + $0x22c0] sm:$0xff] }
 0x136   : > { %1328 = vst [vmem:[%s5169_s5 + $0x1150] sm:$0xff] %v1327_v42  ;;  %v1333_v45 = vld [vmem:[%s5164_s29 + $0x22c8] sm:$0xff]  ;;  %1330 = vst [vmem:[%s5169_s5 + $0x1158] sm:$0xff] %v1329_v43  ;;  %v1335_v46 = vld [vmem:[%s5164_s29 + $0x22d0] sm:$0xff] }
 0x137   : > { %1332 = vst [vmem:[%s5169_s5 + $0x1160] sm:$0xff] %v1331_v44  ;;  %1334 = vst [vmem:[%s5169_s5 + $0x1168] sm:$0xff] %v1333_v45  ;;  %v1337_v47 = vld [vmem:[%s5164_s29 + $0x22d8] sm:$0xff]  ;;  %v1339_v48 = vld [vmem:[%s5164_s29 + $0x2300] sm:$0xff] }
 0x138   : > { %1336 = vst [vmem:[%s5169_s5 + $0x1170] sm:$0xff] %v1335_v46  ;;  %1338 = vst [vmem:[%s5169_s5 + $0x1178] sm:$0xff] %v1337_v47  ;;  %v1341_v49 = vld [vmem:[%s5164_s29 + $0x2308] sm:$0xff]  ;;  %v1343_v50 = vld [vmem:[%s5164_s29 + $0x2310] sm:$0xff] }
 0x139   : > { %1340 = vst [vmem:[%s5169_s5 + $0x1180] sm:$0xff] %v1339_v48  ;;  %v1345_v51 = vld [vmem:[%s5164_s29 + $0x2318] sm:$0xff]  ;;  %1342 = vst [vmem:[%s5169_s5 + $0x1188] sm:$0xff] %v1341_v49  ;;  %v1347_v52 = vld [vmem:[%s5164_s29 + $0x2340] sm:$0xff] }
 0x13a   : > { %1344 = vst [vmem:[%s5169_s5 + $0x1190] sm:$0xff] %v1343_v50  ;;  %1346 = vst [vmem:[%s5169_s5 + $0x1198] sm:$0xff] %v1345_v51  ;;  %v1349_v53 = vld [vmem:[%s5164_s29 + $0x2348] sm:$0xff]  ;;  %v1351_v54 = vld [vmem:[%s5164_s29 + $0x2350] sm:$0xff] }
 0x13b   : > { %1348 = vst [vmem:[%s5169_s5 + $0x11a0] sm:$0xff] %v1347_v52  ;;  %1350 = vst [vmem:[%s5169_s5 + $0x11a8] sm:$0xff] %v1349_v53  ;;  %v1353_v55 = vld [vmem:[%s5164_s29 + $0x2358] sm:$0xff]  ;;  %v1355_v56 = vld [vmem:[%s5164_s29 + $0x2380] sm:$0xff] }
 0x13c   : > { %1352 = vst [vmem:[%s5169_s5 + $0x11b0] sm:$0xff] %v1351_v54  ;;  %v1357_v57 = vld [vmem:[%s5164_s29 + $0x2388] sm:$0xff]  ;;  %1354 = vst [vmem:[%s5169_s5 + $0x11b8] sm:$0xff] %v1353_v55  ;;  %v1359_v58 = vld [vmem:[%s5164_s29 + $0x2390] sm:$0xff] }
 0x13d   : > { %1356 = vst [vmem:[%s5169_s5 + $0x11c0] sm:$0xff] %v1355_v56  ;;  %1358 = vst [vmem:[%s5169_s5 + $0x11c8] sm:$0xff] %v1357_v57  ;;  %v1361_v59 = vld [vmem:[%s5164_s29 + $0x2398] sm:$0xff]  ;;  %v1363_v60 = vld [vmem:[%s5164_s29 + $0x23c0] sm:$0xff] }
 0x13e   : > { %1360 = vst [vmem:[%s5169_s5 + $0x11d0] sm:$0xff] %v1359_v58  ;;  %1362 = vst [vmem:[%s5169_s5 + $0x11d8] sm:$0xff] %v1361_v59  ;;  %v1365_v61 = vld [vmem:[%s5164_s29 + $0x23c8] sm:$0xff]  ;;  %v1367_v62 = vld [vmem:[%s5164_s29 + $0x23d0] sm:$0xff] }
 0x13f   : > { %1364 = vst [vmem:[%s5169_s5 + $0x11e0] sm:$0xff] %v1363_v60  ;;  %v1369_v63 = vld [vmem:[%s5164_s29 + $0x23d8] sm:$0xff]  ;;  %1366 = vst [vmem:[%s5169_s5 + $0x11e8] sm:$0xff] %v1365_v61  ;;  %v1371_v0 = vld [vmem:[%s5164_s29 + $0x2400] sm:$0xff] }
 0x140   : > { %1368 = vst [vmem:[%s5169_s5 + $0x11f0] sm:$0xff] %v1367_v62  ;;  %1370 = vst [vmem:[%s5169_s5 + $0x11f8] sm:$0xff] %v1369_v63  ;;  %v1373_v1 = vld [vmem:[%s5164_s29 + $0x2408] sm:$0xff]  ;;  %v1375_v2 = vld [vmem:[%s5164_s29 + $0x2410] sm:$0xff] }
 0x141   : > { %1372 = vst [vmem:[%s5169_s5 + $0x1200] sm:$0xff] %v1371_v0  ;;  %1374 = vst [vmem:[%s5169_s5 + $0x1208] sm:$0xff] %v1373_v1  ;;  %v1377_v3 = vld [vmem:[%s5164_s29 + $0x2418] sm:$0xff]  ;;  %v1379_v4 = vld [vmem:[%s5164_s29 + $0x2440] sm:$0xff] }
 0x142   : > { %1376 = vst [vmem:[%s5169_s5 + $0x1210] sm:$0xff] %v1375_v2  ;;  %v1381_v5 = vld [vmem:[%s5164_s29 + $0x2448] sm:$0xff]  ;;  %1378 = vst [vmem:[%s5169_s5 + $0x1218] sm:$0xff] %v1377_v3  ;;  %v1383_v6 = vld [vmem:[%s5164_s29 + $0x2450] sm:$0xff] }
 0x143   : > { %1380 = vst [vmem:[%s5169_s5 + $0x1220] sm:$0xff] %v1379_v4  ;;  %1382 = vst [vmem:[%s5169_s5 + $0x1228] sm:$0xff] %v1381_v5  ;;  %v1385_v7 = vld [vmem:[%s5164_s29 + $0x2458] sm:$0xff]  ;;  %v1387_v8 = vld [vmem:[%s5164_s29 + $0x2480] sm:$0xff] }
 0x144   : > { %1384 = vst [vmem:[%s5169_s5 + $0x1230] sm:$0xff] %v1383_v6  ;;  %1386 = vst [vmem:[%s5169_s5 + $0x1238] sm:$0xff] %v1385_v7  ;;  %v1389_v9 = vld [vmem:[%s5164_s29 + $0x2488] sm:$0xff]  ;;  %v1391_v10 = vld [vmem:[%s5164_s29 + $0x2490] sm:$0xff] }
 0x145   : > { %1388 = vst [vmem:[%s5169_s5 + $0x1240] sm:$0xff] %v1387_v8  ;;  %v1393_v11 = vld [vmem:[%s5164_s29 + $0x2498] sm:$0xff]  ;;  %1390 = vst [vmem:[%s5169_s5 + $0x1248] sm:$0xff] %v1389_v9  ;;  %v1395_v12 = vld [vmem:[%s5164_s29 + $0x24c0] sm:$0xff] }
 0x146   : > { %1392 = vst [vmem:[%s5169_s5 + $0x1250] sm:$0xff] %v1391_v10  ;;  %1394 = vst [vmem:[%s5169_s5 + $0x1258] sm:$0xff] %v1393_v11  ;;  %v1397_v13 = vld [vmem:[%s5164_s29 + $0x24c8] sm:$0xff]  ;;  %v1399_v14 = vld [vmem:[%s5164_s29 + $0x24d0] sm:$0xff] }
 0x147   : > { %1396 = vst [vmem:[%s5169_s5 + $0x1260] sm:$0xff] %v1395_v12  ;;  %1398 = vst [vmem:[%s5169_s5 + $0x1268] sm:$0xff] %v1397_v13  ;;  %v1401_v15 = vld [vmem:[%s5164_s29 + $0x24d8] sm:$0xff]  ;;  %v1403_v16 = vld [vmem:[%s5164_s29 + $0x2500] sm:$0xff] }
 0x148   : > { %1400 = vst [vmem:[%s5169_s5 + $0x1270] sm:$0xff] %v1399_v14  ;;  %v1405_v17 = vld [vmem:[%s5164_s29 + $0x2508] sm:$0xff]  ;;  %1402 = vst [vmem:[%s5169_s5 + $0x1278] sm:$0xff] %v1401_v15  ;;  %v1407_v18 = vld [vmem:[%s5164_s29 + $0x2510] sm:$0xff] }
 0x149   : > { %1404 = vst [vmem:[%s5169_s5 + $0x1280] sm:$0xff] %v1403_v16  ;;  %1406 = vst [vmem:[%s5169_s5 + $0x1288] sm:$0xff] %v1405_v17  ;;  %v1409_v19 = vld [vmem:[%s5164_s29 + $0x2518] sm:$0xff]  ;;  %v1411_v20 = vld [vmem:[%s5164_s29 + $0x2540] sm:$0xff] }
 0x14a   : > { %1408 = vst [vmem:[%s5169_s5 + $0x1290] sm:$0xff] %v1407_v18  ;;  %1410 = vst [vmem:[%s5169_s5 + $0x1298] sm:$0xff] %v1409_v19  ;;  %v1413_v21 = vld [vmem:[%s5164_s29 + $0x2548] sm:$0xff]  ;;  %v1415_v22 = vld [vmem:[%s5164_s29 + $0x2550] sm:$0xff] }
 0x14b   : > { %1412 = vst [vmem:[%s5169_s5 + $0x12a0] sm:$0xff] %v1411_v20  ;;  %v1417_v23 = vld [vmem:[%s5164_s29 + $0x2558] sm:$0xff]  ;;  %1414 = vst [vmem:[%s5169_s5 + $0x12a8] sm:$0xff] %v1413_v21  ;;  %v1419_v24 = vld [vmem:[%s5164_s29 + $0x2580] sm:$0xff] }
 0x14c   : > { %1416 = vst [vmem:[%s5169_s5 + $0x12b0] sm:$0xff] %v1415_v22  ;;  %1418 = vst [vmem:[%s5169_s5 + $0x12b8] sm:$0xff] %v1417_v23  ;;  %v1421_v25 = vld [vmem:[%s5164_s29 + $0x2588] sm:$0xff]  ;;  %v1423_v26 = vld [vmem:[%s5164_s29 + $0x2590] sm:$0xff] }
 0x14d   : > { %1420 = vst [vmem:[%s5169_s5 + $0x12c0] sm:$0xff] %v1419_v24  ;;  %1422 = vst [vmem:[%s5169_s5 + $0x12c8] sm:$0xff] %v1421_v25  ;;  %v1425_v27 = vld [vmem:[%s5164_s29 + $0x2598] sm:$0xff]  ;;  %v1427_v28 = vld [vmem:[%s5164_s29 + $0x25c0] sm:$0xff] }
 0x14e   : > { %1424 = vst [vmem:[%s5169_s5 + $0x12d0] sm:$0xff] %v1423_v26  ;;  %v1429_v29 = vld [vmem:[%s5164_s29 + $0x25c8] sm:$0xff]  ;;  %1426 = vst [vmem:[%s5169_s5 + $0x12d8] sm:$0xff] %v1425_v27  ;;  %v1431_v30 = vld [vmem:[%s5164_s29 + $0x25d0] sm:$0xff] }
 0x14f   : > { %1428 = vst [vmem:[%s5169_s5 + $0x12e0] sm:$0xff] %v1427_v28  ;;  %1430 = vst [vmem:[%s5169_s5 + $0x12e8] sm:$0xff] %v1429_v29  ;;  %v1433_v31 = vld [vmem:[%s5164_s29 + $0x25d8] sm:$0xff]  ;;  %v1435_v32 = vld [vmem:[%s5164_s29 + $0x2600] sm:$0xff] }
 0x150   : > { %1432 = vst [vmem:[%s5169_s5 + $0x12f0] sm:$0xff] %v1431_v30  ;;  %1434 = vst [vmem:[%s5169_s5 + $0x12f8] sm:$0xff] %v1433_v31  ;;  %v1437_v33 = vld [vmem:[%s5164_s29 + $0x2608] sm:$0xff]  ;;  %v1439_v34 = vld [vmem:[%s5164_s29 + $0x2610] sm:$0xff] }
 0x151   : > { %1436 = vst [vmem:[%s5169_s5 + $0x1300] sm:$0xff] %v1435_v32  ;;  %v1441_v35 = vld [vmem:[%s5164_s29 + $0x2618] sm:$0xff]  ;;  %1438 = vst [vmem:[%s5169_s5 + $0x1308] sm:$0xff] %v1437_v33  ;;  %v1443_v36 = vld [vmem:[%s5164_s29 + $0x2640] sm:$0xff] }
 0x152   : > { %1440 = vst [vmem:[%s5169_s5 + $0x1310] sm:$0xff] %v1439_v34  ;;  %1442 = vst [vmem:[%s5169_s5 + $0x1318] sm:$0xff] %v1441_v35  ;;  %v1445_v37 = vld [vmem:[%s5164_s29 + $0x2648] sm:$0xff]  ;;  %v1447_v38 = vld [vmem:[%s5164_s29 + $0x2650] sm:$0xff] }
 0x153   : > { %1444 = vst [vmem:[%s5169_s5 + $0x1320] sm:$0xff] %v1443_v36  ;;  %1446 = vst [vmem:[%s5169_s5 + $0x1328] sm:$0xff] %v1445_v37  ;;  %v1449_v39 = vld [vmem:[%s5164_s29 + $0x2658] sm:$0xff]  ;;  %v1451_v40 = vld [vmem:[%s5164_s29 + $0x2680] sm:$0xff] }
 0x154   : > { %1448 = vst [vmem:[%s5169_s5 + $0x1330] sm:$0xff] %v1447_v38  ;;  %v1453_v41 = vld [vmem:[%s5164_s29 + $0x2688] sm:$0xff]  ;;  %1450 = vst [vmem:[%s5169_s5 + $0x1338] sm:$0xff] %v1449_v39  ;;  %v1455_v42 = vld [vmem:[%s5164_s29 + $0x2690] sm:$0xff] }
 0x155   : > { %1452 = vst [vmem:[%s5169_s5 + $0x1340] sm:$0xff] %v1451_v40  ;;  %1454 = vst [vmem:[%s5169_s5 + $0x1348] sm:$0xff] %v1453_v41  ;;  %v1457_v43 = vld [vmem:[%s5164_s29 + $0x2698] sm:$0xff]  ;;  %v1459_v44 = vld [vmem:[%s5164_s29 + $0x26c0] sm:$0xff] }
 0x156   : > { %1456 = vst [vmem:[%s5169_s5 + $0x1350] sm:$0xff] %v1455_v42  ;;  %1458 = vst [vmem:[%s5169_s5 + $0x1358] sm:$0xff] %v1457_v43  ;;  %v1461_v45 = vld [vmem:[%s5164_s29 + $0x26c8] sm:$0xff]  ;;  %v1463_v46 = vld [vmem:[%s5164_s29 + $0x26d0] sm:$0xff] }
 0x157   : > { %1460 = vst [vmem:[%s5169_s5 + $0x1360] sm:$0xff] %v1459_v44  ;;  %v1465_v47 = vld [vmem:[%s5164_s29 + $0x26d8] sm:$0xff]  ;;  %1462 = vst [vmem:[%s5169_s5 + $0x1368] sm:$0xff] %v1461_v45  ;;  %v1467_v48 = vld [vmem:[%s5164_s29 + $0x2700] sm:$0xff] }
 0x158   : > { %1464 = vst [vmem:[%s5169_s5 + $0x1370] sm:$0xff] %v1463_v46  ;;  %1466 = vst [vmem:[%s5169_s5 + $0x1378] sm:$0xff] %v1465_v47  ;;  %v1469_v49 = vld [vmem:[%s5164_s29 + $0x2708] sm:$0xff]  ;;  %v1471_v50 = vld [vmem:[%s5164_s29 + $0x2710] sm:$0xff] }
 0x159   : > { %1468 = vst [vmem:[%s5169_s5 + $0x1380] sm:$0xff] %v1467_v48  ;;  %1470 = vst [vmem:[%s5169_s5 + $0x1388] sm:$0xff] %v1469_v49  ;;  %v1473_v51 = vld [vmem:[%s5164_s29 + $0x2718] sm:$0xff]  ;;  %v1475_v52 = vld [vmem:[%s5164_s29 + $0x2740] sm:$0xff] }
 0x15a   : > { %1472 = vst [vmem:[%s5169_s5 + $0x1390] sm:$0xff] %v1471_v50  ;;  %v1477_v53 = vld [vmem:[%s5164_s29 + $0x2748] sm:$0xff]  ;;  %1474 = vst [vmem:[%s5169_s5 + $0x1398] sm:$0xff] %v1473_v51  ;;  %v1479_v54 = vld [vmem:[%s5164_s29 + $0x2750] sm:$0xff] }
 0x15b   : > { %1476 = vst [vmem:[%s5169_s5 + $0x13a0] sm:$0xff] %v1475_v52  ;;  %1478 = vst [vmem:[%s5169_s5 + $0x13a8] sm:$0xff] %v1477_v53  ;;  %v1481_v55 = vld [vmem:[%s5164_s29 + $0x2758] sm:$0xff]  ;;  %v1483_v56 = vld [vmem:[%s5164_s29 + $0x2780] sm:$0xff] }
 0x15c   : > { %1480 = vst [vmem:[%s5169_s5 + $0x13b0] sm:$0xff] %v1479_v54  ;;  %1482 = vst [vmem:[%s5169_s5 + $0x13b8] sm:$0xff] %v1481_v55  ;;  %v1485_v57 = vld [vmem:[%s5164_s29 + $0x2788] sm:$0xff]  ;;  %v1487_v58 = vld [vmem:[%s5164_s29 + $0x2790] sm:$0xff] }
 0x15d   : > { %1484 = vst [vmem:[%s5169_s5 + $0x13c0] sm:$0xff] %v1483_v56  ;;  %v1489_v59 = vld [vmem:[%s5164_s29 + $0x2798] sm:$0xff]  ;;  %1486 = vst [vmem:[%s5169_s5 + $0x13c8] sm:$0xff] %v1485_v57  ;;  %v1491_v60 = vld [vmem:[%s5164_s29 + $0x27c0] sm:$0xff] }
 0x15e   : > { %1488 = vst [vmem:[%s5169_s5 + $0x13d0] sm:$0xff] %v1487_v58  ;;  %1490 = vst [vmem:[%s5169_s5 + $0x13d8] sm:$0xff] %v1489_v59  ;;  %v1493_v61 = vld [vmem:[%s5164_s29 + $0x27c8] sm:$0xff]  ;;  %v1495_v62 = vld [vmem:[%s5164_s29 + $0x27d0] sm:$0xff] }
 0x15f   : > { %1492 = vst [vmem:[%s5169_s5 + $0x13e0] sm:$0xff] %v1491_v60  ;;  %1494 = vst [vmem:[%s5169_s5 + $0x13e8] sm:$0xff] %v1493_v61  ;;  %v1497_v63 = vld [vmem:[%s5164_s29 + $0x27d8] sm:$0xff]  ;;  %v1499_v0 = vld [vmem:[%s5164_s29 + $0x2800] sm:$0xff] }
 0x160   : > { %1496 = vst [vmem:[%s5169_s5 + $0x13f0] sm:$0xff] %v1495_v62  ;;  %v1501_v1 = vld [vmem:[%s5164_s29 + $0x2808] sm:$0xff]  ;;  %1498 = vst [vmem:[%s5169_s5 + $0x13f8] sm:$0xff] %v1497_v63  ;;  %v1503_v2 = vld [vmem:[%s5164_s29 + $0x2810] sm:$0xff] }
 0x161   : > { %1500 = vst [vmem:[%s5169_s5 + $0x1400] sm:$0xff] %v1499_v0  ;;  %1502 = vst [vmem:[%s5169_s5 + $0x1408] sm:$0xff] %v1501_v1  ;;  %v1505_v3 = vld [vmem:[%s5164_s29 + $0x2818] sm:$0xff]  ;;  %v1507_v4 = vld [vmem:[%s5164_s29 + $0x2840] sm:$0xff] }
 0x162   : > { %1504 = vst [vmem:[%s5169_s5 + $0x1410] sm:$0xff] %v1503_v2  ;;  %1506 = vst [vmem:[%s5169_s5 + $0x1418] sm:$0xff] %v1505_v3  ;;  %v1509_v5 = vld [vmem:[%s5164_s29 + $0x2848] sm:$0xff]  ;;  %v1511_v6 = vld [vmem:[%s5164_s29 + $0x2850] sm:$0xff] }
 0x163   : > { %1508 = vst [vmem:[%s5169_s5 + $0x1420] sm:$0xff] %v1507_v4  ;;  %v1513_v7 = vld [vmem:[%s5164_s29 + $0x2858] sm:$0xff]  ;;  %1510 = vst [vmem:[%s5169_s5 + $0x1428] sm:$0xff] %v1509_v5  ;;  %v1515_v8 = vld [vmem:[%s5164_s29 + $0x2880] sm:$0xff] }
 0x164   : > { %1512 = vst [vmem:[%s5169_s5 + $0x1430] sm:$0xff] %v1511_v6  ;;  %1514 = vst [vmem:[%s5169_s5 + $0x1438] sm:$0xff] %v1513_v7  ;;  %v1517_v9 = vld [vmem:[%s5164_s29 + $0x2888] sm:$0xff]  ;;  %v1519_v10 = vld [vmem:[%s5164_s29 + $0x2890] sm:$0xff] }
 0x165   : > { %1516 = vst [vmem:[%s5169_s5 + $0x1440] sm:$0xff] %v1515_v8  ;;  %1518 = vst [vmem:[%s5169_s5 + $0x1448] sm:$0xff] %v1517_v9  ;;  %v1521_v11 = vld [vmem:[%s5164_s29 + $0x2898] sm:$0xff]  ;;  %v1523_v12 = vld [vmem:[%s5164_s29 + $0x28c0] sm:$0xff] }
 0x166   : > { %1520 = vst [vmem:[%s5169_s5 + $0x1450] sm:$0xff] %v1519_v10  ;;  %v1525_v13 = vld [vmem:[%s5164_s29 + $0x28c8] sm:$0xff]  ;;  %1522 = vst [vmem:[%s5169_s5 + $0x1458] sm:$0xff] %v1521_v11  ;;  %v1527_v14 = vld [vmem:[%s5164_s29 + $0x28d0] sm:$0xff] }
 0x167   : > { %1524 = vst [vmem:[%s5169_s5 + $0x1460] sm:$0xff] %v1523_v12  ;;  %1526 = vst [vmem:[%s5169_s5 + $0x1468] sm:$0xff] %v1525_v13  ;;  %v1529_v15 = vld [vmem:[%s5164_s29 + $0x28d8] sm:$0xff]  ;;  %v1531_v16 = vld [vmem:[%s5164_s29 + $0x2900] sm:$0xff] }
 0x168   : > { %1528 = vst [vmem:[%s5169_s5 + $0x1470] sm:$0xff] %v1527_v14  ;;  %1530 = vst [vmem:[%s5169_s5 + $0x1478] sm:$0xff] %v1529_v15  ;;  %v1533_v17 = vld [vmem:[%s5164_s29 + $0x2908] sm:$0xff]  ;;  %v1535_v18 = vld [vmem:[%s5164_s29 + $0x2910] sm:$0xff] }
 0x169   : > { %1532 = vst [vmem:[%s5169_s5 + $0x1480] sm:$0xff] %v1531_v16  ;;  %v1537_v19 = vld [vmem:[%s5164_s29 + $0x2918] sm:$0xff]  ;;  %1534 = vst [vmem:[%s5169_s5 + $0x1488] sm:$0xff] %v1533_v17  ;;  %v1539_v20 = vld [vmem:[%s5164_s29 + $0x2940] sm:$0xff] }
 0x16a   : > { %1536 = vst [vmem:[%s5169_s5 + $0x1490] sm:$0xff] %v1535_v18  ;;  %1538 = vst [vmem:[%s5169_s5 + $0x1498] sm:$0xff] %v1537_v19  ;;  %v1541_v21 = vld [vmem:[%s5164_s29 + $0x2948] sm:$0xff]  ;;  %v1543_v22 = vld [vmem:[%s5164_s29 + $0x2950] sm:$0xff] }
 0x16b   : > { %1540 = vst [vmem:[%s5169_s5 + $0x14a0] sm:$0xff] %v1539_v20  ;;  %1542 = vst [vmem:[%s5169_s5 + $0x14a8] sm:$0xff] %v1541_v21  ;;  %v1545_v23 = vld [vmem:[%s5164_s29 + $0x2958] sm:$0xff]  ;;  %v1547_v24 = vld [vmem:[%s5164_s29 + $0x2980] sm:$0xff] }
 0x16c   : > { %1544 = vst [vmem:[%s5169_s5 + $0x14b0] sm:$0xff] %v1543_v22  ;;  %v1549_v25 = vld [vmem:[%s5164_s29 + $0x2988] sm:$0xff]  ;;  %1546 = vst [vmem:[%s5169_s5 + $0x14b8] sm:$0xff] %v1545_v23  ;;  %v1551_v26 = vld [vmem:[%s5164_s29 + $0x2990] sm:$0xff] }
 0x16d   : > { %1548 = vst [vmem:[%s5169_s5 + $0x14c0] sm:$0xff] %v1547_v24  ;;  %1550 = vst [vmem:[%s5169_s5 + $0x14c8] sm:$0xff] %v1549_v25  ;;  %v1553_v27 = vld [vmem:[%s5164_s29 + $0x2998] sm:$0xff]  ;;  %v1555_v28 = vld [vmem:[%s5164_s29 + $0x29c0] sm:$0xff] }
 0x16e   : > { %1552 = vst [vmem:[%s5169_s5 + $0x14d0] sm:$0xff] %v1551_v26  ;;  %1554 = vst [vmem:[%s5169_s5 + $0x14d8] sm:$0xff] %v1553_v27  ;;  %v1557_v29 = vld [vmem:[%s5164_s29 + $0x29c8] sm:$0xff]  ;;  %v1559_v30 = vld [vmem:[%s5164_s29 + $0x29d0] sm:$0xff] }
 0x16f   : > { %1556 = vst [vmem:[%s5169_s5 + $0x14e0] sm:$0xff] %v1555_v28  ;;  %v1561_v31 = vld [vmem:[%s5164_s29 + $0x29d8] sm:$0xff]  ;;  %1558 = vst [vmem:[%s5169_s5 + $0x14e8] sm:$0xff] %v1557_v29  ;;  %v1563_v32 = vld [vmem:[%s5164_s29 + $0x2a00] sm:$0xff] }
 0x170   : > { %1560 = vst [vmem:[%s5169_s5 + $0x14f0] sm:$0xff] %v1559_v30  ;;  %1562 = vst [vmem:[%s5169_s5 + $0x14f8] sm:$0xff] %v1561_v31  ;;  %v1565_v33 = vld [vmem:[%s5164_s29 + $0x2a08] sm:$0xff]  ;;  %v1567_v34 = vld [vmem:[%s5164_s29 + $0x2a10] sm:$0xff] }
 0x171   : > { %1564 = vst [vmem:[%s5169_s5 + $0x1500] sm:$0xff] %v1563_v32  ;;  %1566 = vst [vmem:[%s5169_s5 + $0x1508] sm:$0xff] %v1565_v33  ;;  %v1569_v35 = vld [vmem:[%s5164_s29 + $0x2a18] sm:$0xff]  ;;  %v1571_v36 = vld [vmem:[%s5164_s29 + $0x2a40] sm:$0xff] }
 0x172   : > { %1568 = vst [vmem:[%s5169_s5 + $0x1510] sm:$0xff] %v1567_v34  ;;  %v1573_v37 = vld [vmem:[%s5164_s29 + $0x2a48] sm:$0xff]  ;;  %1570 = vst [vmem:[%s5169_s5 + $0x1518] sm:$0xff] %v1569_v35  ;;  %v1575_v38 = vld [vmem:[%s5164_s29 + $0x2a50] sm:$0xff] }
 0x173   : > { %1572 = vst [vmem:[%s5169_s5 + $0x1520] sm:$0xff] %v1571_v36  ;;  %1574 = vst [vmem:[%s5169_s5 + $0x1528] sm:$0xff] %v1573_v37  ;;  %v1577_v39 = vld [vmem:[%s5164_s29 + $0x2a58] sm:$0xff]  ;;  %v1579_v40 = vld [vmem:[%s5164_s29 + $0x2a80] sm:$0xff] }
 0x174   : > { %1576 = vst [vmem:[%s5169_s5 + $0x1530] sm:$0xff] %v1575_v38  ;;  %1578 = vst [vmem:[%s5169_s5 + $0x1538] sm:$0xff] %v1577_v39  ;;  %v1581_v41 = vld [vmem:[%s5164_s29 + $0x2a88] sm:$0xff]  ;;  %v1583_v42 = vld [vmem:[%s5164_s29 + $0x2a90] sm:$0xff] }
 0x175   : > { %1580 = vst [vmem:[%s5169_s5 + $0x1540] sm:$0xff] %v1579_v40  ;;  %v1585_v43 = vld [vmem:[%s5164_s29 + $0x2a98] sm:$0xff]  ;;  %1582 = vst [vmem:[%s5169_s5 + $0x1548] sm:$0xff] %v1581_v41  ;;  %v1587_v44 = vld [vmem:[%s5164_s29 + $0x2ac0] sm:$0xff] }
 0x176   : > { %1584 = vst [vmem:[%s5169_s5 + $0x1550] sm:$0xff] %v1583_v42  ;;  %1586 = vst [vmem:[%s5169_s5 + $0x1558] sm:$0xff] %v1585_v43  ;;  %v1589_v45 = vld [vmem:[%s5164_s29 + $0x2ac8] sm:$0xff]  ;;  %v1591_v46 = vld [vmem:[%s5164_s29 + $0x2ad0] sm:$0xff] }
 0x177   : > { %1588 = vst [vmem:[%s5169_s5 + $0x1560] sm:$0xff] %v1587_v44  ;;  %1590 = vst [vmem:[%s5169_s5 + $0x1568] sm:$0xff] %v1589_v45  ;;  %v1593_v47 = vld [vmem:[%s5164_s29 + $0x2ad8] sm:$0xff]  ;;  %v1595_v48 = vld [vmem:[%s5164_s29 + $0x2b00] sm:$0xff] }
 0x178   : > { %1592 = vst [vmem:[%s5169_s5 + $0x1570] sm:$0xff] %v1591_v46  ;;  %v1597_v49 = vld [vmem:[%s5164_s29 + $0x2b08] sm:$0xff]  ;;  %1594 = vst [vmem:[%s5169_s5 + $0x1578] sm:$0xff] %v1593_v47  ;;  %v1599_v50 = vld [vmem:[%s5164_s29 + $0x2b10] sm:$0xff] }
 0x179   : > { %1596 = vst [vmem:[%s5169_s5 + $0x1580] sm:$0xff] %v1595_v48  ;;  %1598 = vst [vmem:[%s5169_s5 + $0x1588] sm:$0xff] %v1597_v49  ;;  %v1601_v51 = vld [vmem:[%s5164_s29 + $0x2b18] sm:$0xff]  ;;  %v1603_v52 = vld [vmem:[%s5164_s29 + $0x2b40] sm:$0xff] }
 0x17a   : > { %1600 = vst [vmem:[%s5169_s5 + $0x1590] sm:$0xff] %v1599_v50  ;;  %1602 = vst [vmem:[%s5169_s5 + $0x1598] sm:$0xff] %v1601_v51  ;;  %v1605_v53 = vld [vmem:[%s5164_s29 + $0x2b48] sm:$0xff]  ;;  %v1607_v54 = vld [vmem:[%s5164_s29 + $0x2b50] sm:$0xff] }
 0x17b   : > { %1604 = vst [vmem:[%s5169_s5 + $0x15a0] sm:$0xff] %v1603_v52  ;;  %v1609_v55 = vld [vmem:[%s5164_s29 + $0x2b58] sm:$0xff]  ;;  %1606 = vst [vmem:[%s5169_s5 + $0x15a8] sm:$0xff] %v1605_v53  ;;  %v1611_v56 = vld [vmem:[%s5164_s29 + $0x2b80] sm:$0xff] }
 0x17c   : > { %1608 = vst [vmem:[%s5169_s5 + $0x15b0] sm:$0xff] %v1607_v54  ;;  %1610 = vst [vmem:[%s5169_s5 + $0x15b8] sm:$0xff] %v1609_v55  ;;  %v1613_v57 = vld [vmem:[%s5164_s29 + $0x2b88] sm:$0xff]  ;;  %v1615_v58 = vld [vmem:[%s5164_s29 + $0x2b90] sm:$0xff] }
 0x17d   : > { %1612 = vst [vmem:[%s5169_s5 + $0x15c0] sm:$0xff] %v1611_v56  ;;  %1614 = vst [vmem:[%s5169_s5 + $0x15c8] sm:$0xff] %v1613_v57  ;;  %v1617_v59 = vld [vmem:[%s5164_s29 + $0x2b98] sm:$0xff]  ;;  %v1619_v60 = vld [vmem:[%s5164_s29 + $0x2bc0] sm:$0xff] }
 0x17e   : > { %1616 = vst [vmem:[%s5169_s5 + $0x15d0] sm:$0xff] %v1615_v58  ;;  %v1621_v61 = vld [vmem:[%s5164_s29 + $0x2bc8] sm:$0xff]  ;;  %1618 = vst [vmem:[%s5169_s5 + $0x15d8] sm:$0xff] %v1617_v59  ;;  %v1623_v62 = vld [vmem:[%s5164_s29 + $0x2bd0] sm:$0xff] }
 0x17f   : > { %1620 = vst [vmem:[%s5169_s5 + $0x15e0] sm:$0xff] %v1619_v60  ;;  %1622 = vst [vmem:[%s5169_s5 + $0x15e8] sm:$0xff] %v1621_v61  ;;  %v1625_v63 = vld [vmem:[%s5164_s29 + $0x2bd8] sm:$0xff]  ;;  %v1627_v0 = vld [vmem:[%s5164_s29 + $0x2c00] sm:$0xff] }
 0x180   : > { %1624 = vst [vmem:[%s5169_s5 + $0x15f0] sm:$0xff] %v1623_v62  ;;  %1626 = vst [vmem:[%s5169_s5 + $0x15f8] sm:$0xff] %v1625_v63  ;;  %v1629_v1 = vld [vmem:[%s5164_s29 + $0x2c08] sm:$0xff]  ;;  %v1631_v2 = vld [vmem:[%s5164_s29 + $0x2c10] sm:$0xff] }
 0x181   : > { %1628 = vst [vmem:[%s5169_s5 + $0x1600] sm:$0xff] %v1627_v0  ;;  %v1633_v3 = vld [vmem:[%s5164_s29 + $0x2c18] sm:$0xff]  ;;  %1630 = vst [vmem:[%s5169_s5 + $0x1608] sm:$0xff] %v1629_v1  ;;  %v1635_v4 = vld [vmem:[%s5164_s29 + $0x2c40] sm:$0xff] }
 0x182   : > { %1632 = vst [vmem:[%s5169_s5 + $0x1610] sm:$0xff] %v1631_v2  ;;  %1634 = vst [vmem:[%s5169_s5 + $0x1618] sm:$0xff] %v1633_v3  ;;  %v1637_v5 = vld [vmem:[%s5164_s29 + $0x2c48] sm:$0xff]  ;;  %v1639_v6 = vld [vmem:[%s5164_s29 + $0x2c50] sm:$0xff] }
 0x183   : > { %1636 = vst [vmem:[%s5169_s5 + $0x1620] sm:$0xff] %v1635_v4  ;;  %1638 = vst [vmem:[%s5169_s5 + $0x1628] sm:$0xff] %v1637_v5  ;;  %v1641_v7 = vld [vmem:[%s5164_s29 + $0x2c58] sm:$0xff]  ;;  %v1643_v8 = vld [vmem:[%s5164_s29 + $0x2c80] sm:$0xff] }
 0x184   : > { %1640 = vst [vmem:[%s5169_s5 + $0x1630] sm:$0xff] %v1639_v6  ;;  %v1645_v9 = vld [vmem:[%s5164_s29 + $0x2c88] sm:$0xff]  ;;  %1642 = vst [vmem:[%s5169_s5 + $0x1638] sm:$0xff] %v1641_v7  ;;  %v1647_v10 = vld [vmem:[%s5164_s29 + $0x2c90] sm:$0xff] }
 0x185   : > { %1644 = vst [vmem:[%s5169_s5 + $0x1640] sm:$0xff] %v1643_v8  ;;  %1646 = vst [vmem:[%s5169_s5 + $0x1648] sm:$0xff] %v1645_v9  ;;  %v1649_v11 = vld [vmem:[%s5164_s29 + $0x2c98] sm:$0xff]  ;;  %v1651_v12 = vld [vmem:[%s5164_s29 + $0x2cc0] sm:$0xff] }
 0x186   : > { %1648 = vst [vmem:[%s5169_s5 + $0x1650] sm:$0xff] %v1647_v10  ;;  %1650 = vst [vmem:[%s5169_s5 + $0x1658] sm:$0xff] %v1649_v11  ;;  %v1653_v13 = vld [vmem:[%s5164_s29 + $0x2cc8] sm:$0xff]  ;;  %v1655_v14 = vld [vmem:[%s5164_s29 + $0x2cd0] sm:$0xff] }
 0x187   : > { %1652 = vst [vmem:[%s5169_s5 + $0x1660] sm:$0xff] %v1651_v12  ;;  %v1657_v15 = vld [vmem:[%s5164_s29 + $0x2cd8] sm:$0xff]  ;;  %1654 = vst [vmem:[%s5169_s5 + $0x1668] sm:$0xff] %v1653_v13  ;;  %v1659_v16 = vld [vmem:[%s5164_s29 + $0x2d00] sm:$0xff] }
 0x188   : > { %1656 = vst [vmem:[%s5169_s5 + $0x1670] sm:$0xff] %v1655_v14  ;;  %1658 = vst [vmem:[%s5169_s5 + $0x1678] sm:$0xff] %v1657_v15  ;;  %v1661_v17 = vld [vmem:[%s5164_s29 + $0x2d08] sm:$0xff]  ;;  %v1663_v18 = vld [vmem:[%s5164_s29 + $0x2d10] sm:$0xff] }
 0x189   : > { %1660 = vst [vmem:[%s5169_s5 + $0x1680] sm:$0xff] %v1659_v16  ;;  %1662 = vst [vmem:[%s5169_s5 + $0x1688] sm:$0xff] %v1661_v17  ;;  %v1665_v19 = vld [vmem:[%s5164_s29 + $0x2d18] sm:$0xff]  ;;  %v1667_v20 = vld [vmem:[%s5164_s29 + $0x2d40] sm:$0xff] }
 0x18a   : > { %1664 = vst [vmem:[%s5169_s5 + $0x1690] sm:$0xff] %v1663_v18  ;;  %v1669_v21 = vld [vmem:[%s5164_s29 + $0x2d48] sm:$0xff]  ;;  %1666 = vst [vmem:[%s5169_s5 + $0x1698] sm:$0xff] %v1665_v19  ;;  %v1671_v22 = vld [vmem:[%s5164_s29 + $0x2d50] sm:$0xff] }
 0x18b   : > { %1668 = vst [vmem:[%s5169_s5 + $0x16a0] sm:$0xff] %v1667_v20  ;;  %1670 = vst [vmem:[%s5169_s5 + $0x16a8] sm:$0xff] %v1669_v21  ;;  %v1673_v23 = vld [vmem:[%s5164_s29 + $0x2d58] sm:$0xff]  ;;  %v1675_v24 = vld [vmem:[%s5164_s29 + $0x2d80] sm:$0xff] }
 0x18c   : > { %1672 = vst [vmem:[%s5169_s5 + $0x16b0] sm:$0xff] %v1671_v22  ;;  %1674 = vst [vmem:[%s5169_s5 + $0x16b8] sm:$0xff] %v1673_v23  ;;  %v1677_v25 = vld [vmem:[%s5164_s29 + $0x2d88] sm:$0xff]  ;;  %v1679_v26 = vld [vmem:[%s5164_s29 + $0x2d90] sm:$0xff] }
 0x18d   : > { %1676 = vst [vmem:[%s5169_s5 + $0x16c0] sm:$0xff] %v1675_v24  ;;  %v1681_v27 = vld [vmem:[%s5164_s29 + $0x2d98] sm:$0xff]  ;;  %1678 = vst [vmem:[%s5169_s5 + $0x16c8] sm:$0xff] %v1677_v25  ;;  %v1683_v28 = vld [vmem:[%s5164_s29 + $0x2dc0] sm:$0xff] }
 0x18e   : > { %1680 = vst [vmem:[%s5169_s5 + $0x16d0] sm:$0xff] %v1679_v26  ;;  %1682 = vst [vmem:[%s5169_s5 + $0x16d8] sm:$0xff] %v1681_v27  ;;  %v1685_v29 = vld [vmem:[%s5164_s29 + $0x2dc8] sm:$0xff]  ;;  %v1687_v30 = vld [vmem:[%s5164_s29 + $0x2dd0] sm:$0xff] }
 0x18f   : > { %1684 = vst [vmem:[%s5169_s5 + $0x16e0] sm:$0xff] %v1683_v28  ;;  %1686 = vst [vmem:[%s5169_s5 + $0x16e8] sm:$0xff] %v1685_v29  ;;  %v1689_v31 = vld [vmem:[%s5164_s29 + $0x2dd8] sm:$0xff]  ;;  %v1691_v32 = vld [vmem:[%s5164_s29 + $0x2e00] sm:$0xff] }
 0x190   : > { %1688 = vst [vmem:[%s5169_s5 + $0x16f0] sm:$0xff] %v1687_v30  ;;  %v1693_v33 = vld [vmem:[%s5164_s29 + $0x2e08] sm:$0xff]  ;;  %1690 = vst [vmem:[%s5169_s5 + $0x16f8] sm:$0xff] %v1689_v31  ;;  %v1695_v34 = vld [vmem:[%s5164_s29 + $0x2e10] sm:$0xff] }
 0x191   : > { %1692 = vst [vmem:[%s5169_s5 + $0x1700] sm:$0xff] %v1691_v32  ;;  %1694 = vst [vmem:[%s5169_s5 + $0x1708] sm:$0xff] %v1693_v33  ;;  %v1697_v35 = vld [vmem:[%s5164_s29 + $0x2e18] sm:$0xff]  ;;  %v1699_v36 = vld [vmem:[%s5164_s29 + $0x2e40] sm:$0xff] }
 0x192   : > { %1696 = vst [vmem:[%s5169_s5 + $0x1710] sm:$0xff] %v1695_v34  ;;  %1698 = vst [vmem:[%s5169_s5 + $0x1718] sm:$0xff] %v1697_v35  ;;  %v1701_v37 = vld [vmem:[%s5164_s29 + $0x2e48] sm:$0xff]  ;;  %v1703_v38 = vld [vmem:[%s5164_s29 + $0x2e50] sm:$0xff] }
 0x193   : > { %1700 = vst [vmem:[%s5169_s5 + $0x1720] sm:$0xff] %v1699_v36  ;;  %v1705_v39 = vld [vmem:[%s5164_s29 + $0x2e58] sm:$0xff]  ;;  %1702 = vst [vmem:[%s5169_s5 + $0x1728] sm:$0xff] %v1701_v37  ;;  %v1707_v40 = vld [vmem:[%s5164_s29 + $0x2e80] sm:$0xff] }
 0x194   : > { %1704 = vst [vmem:[%s5169_s5 + $0x1730] sm:$0xff] %v1703_v38  ;;  %1706 = vst [vmem:[%s5169_s5 + $0x1738] sm:$0xff] %v1705_v39  ;;  %v1709_v41 = vld [vmem:[%s5164_s29 + $0x2e88] sm:$0xff]  ;;  %v1711_v42 = vld [vmem:[%s5164_s29 + $0x2e90] sm:$0xff] }
 0x195   : > { %1708 = vst [vmem:[%s5169_s5 + $0x1740] sm:$0xff] %v1707_v40  ;;  %1710 = vst [vmem:[%s5169_s5 + $0x1748] sm:$0xff] %v1709_v41  ;;  %v1713_v43 = vld [vmem:[%s5164_s29 + $0x2e98] sm:$0xff]  ;;  %v1715_v44 = vld [vmem:[%s5164_s29 + $0x2ec0] sm:$0xff] }
 0x196   : > { %1712 = vst [vmem:[%s5169_s5 + $0x1750] sm:$0xff] %v1711_v42  ;;  %v1717_v45 = vld [vmem:[%s5164_s29 + $0x2ec8] sm:$0xff]  ;;  %1714 = vst [vmem:[%s5169_s5 + $0x1758] sm:$0xff] %v1713_v43  ;;  %v1719_v46 = vld [vmem:[%s5164_s29 + $0x2ed0] sm:$0xff] }
 0x197   : > { %1716 = vst [vmem:[%s5169_s5 + $0x1760] sm:$0xff] %v1715_v44  ;;  %1718 = vst [vmem:[%s5169_s5 + $0x1768] sm:$0xff] %v1717_v45  ;;  %v1721_v47 = vld [vmem:[%s5164_s29 + $0x2ed8] sm:$0xff]  ;;  %v1723_v48 = vld [vmem:[%s5164_s29 + $0x2f00] sm:$0xff] }
 0x198   : > { %1720 = vst [vmem:[%s5169_s5 + $0x1770] sm:$0xff] %v1719_v46  ;;  %1722 = vst [vmem:[%s5169_s5 + $0x1778] sm:$0xff] %v1721_v47  ;;  %v1725_v49 = vld [vmem:[%s5164_s29 + $0x2f08] sm:$0xff]  ;;  %v1727_v50 = vld [vmem:[%s5164_s29 + $0x2f10] sm:$0xff] }
 0x199   : > { %1724 = vst [vmem:[%s5169_s5 + $0x1780] sm:$0xff] %v1723_v48  ;;  %v1729_v51 = vld [vmem:[%s5164_s29 + $0x2f18] sm:$0xff]  ;;  %1726 = vst [vmem:[%s5169_s5 + $0x1788] sm:$0xff] %v1725_v49  ;;  %v1731_v52 = vld [vmem:[%s5164_s29 + $0x2f40] sm:$0xff] }
 0x19a   : > { %1728 = vst [vmem:[%s5169_s5 + $0x1790] sm:$0xff] %v1727_v50  ;;  %1730 = vst [vmem:[%s5169_s5 + $0x1798] sm:$0xff] %v1729_v51  ;;  %v1733_v53 = vld [vmem:[%s5164_s29 + $0x2f48] sm:$0xff]  ;;  %v1735_v54 = vld [vmem:[%s5164_s29 + $0x2f50] sm:$0xff] }
 0x19b   : > { %1732 = vst [vmem:[%s5169_s5 + $0x17a0] sm:$0xff] %v1731_v52  ;;  %1734 = vst [vmem:[%s5169_s5 + $0x17a8] sm:$0xff] %v1733_v53  ;;  %v1737_v55 = vld [vmem:[%s5164_s29 + $0x2f58] sm:$0xff]  ;;  %v1739_v56 = vld [vmem:[%s5164_s29 + $0x2f80] sm:$0xff] }
 0x19c   : > { %1736 = vst [vmem:[%s5169_s5 + $0x17b0] sm:$0xff] %v1735_v54  ;;  %v1741_v57 = vld [vmem:[%s5164_s29 + $0x2f88] sm:$0xff]  ;;  %1738 = vst [vmem:[%s5169_s5 + $0x17b8] sm:$0xff] %v1737_v55  ;;  %v1743_v58 = vld [vmem:[%s5164_s29 + $0x2f90] sm:$0xff] }
 0x19d   : > { %1740 = vst [vmem:[%s5169_s5 + $0x17c0] sm:$0xff] %v1739_v56  ;;  %1742 = vst [vmem:[%s5169_s5 + $0x17c8] sm:$0xff] %v1741_v57  ;;  %v1745_v59 = vld [vmem:[%s5164_s29 + $0x2f98] sm:$0xff]  ;;  %v1747_v60 = vld [vmem:[%s5164_s29 + $0x2fc0] sm:$0xff] }
 0x19e   : > { %1744 = vst [vmem:[%s5169_s5 + $0x17d0] sm:$0xff] %v1743_v58  ;;  %1746 = vst [vmem:[%s5169_s5 + $0x17d8] sm:$0xff] %v1745_v59  ;;  %v1749_v61 = vld [vmem:[%s5164_s29 + $0x2fc8] sm:$0xff]  ;;  %v1751_v62 = vld [vmem:[%s5164_s29 + $0x2fd0] sm:$0xff] }
 0x19f   : > { %1748 = vst [vmem:[%s5169_s5 + $0x17e0] sm:$0xff] %v1747_v60  ;;  %v1753_v63 = vld [vmem:[%s5164_s29 + $0x2fd8] sm:$0xff]  ;;  %1750 = vst [vmem:[%s5169_s5 + $0x17e8] sm:$0xff] %v1749_v61  ;;  %v1755_v0 = vld [vmem:[%s5164_s29 + $0x3000] sm:$0xff] }
 0x1a0   : > { %1752 = vst [vmem:[%s5169_s5 + $0x17f0] sm:$0xff] %v1751_v62  ;;  %1754 = vst [vmem:[%s5169_s5 + $0x17f8] sm:$0xff] %v1753_v63  ;;  %v1757_v1 = vld [vmem:[%s5164_s29 + $0x3008] sm:$0xff]  ;;  %v1759_v2 = vld [vmem:[%s5164_s29 + $0x3010] sm:$0xff] }
 0x1a1   : > { %1756 = vst [vmem:[%s5169_s5 + $0x1800] sm:$0xff] %v1755_v0  ;;  %1758 = vst [vmem:[%s5169_s5 + $0x1808] sm:$0xff] %v1757_v1  ;;  %v1761_v3 = vld [vmem:[%s5164_s29 + $0x3018] sm:$0xff]  ;;  %v1763_v4 = vld [vmem:[%s5164_s29 + $0x3040] sm:$0xff] }
 0x1a2   : > { %1760 = vst [vmem:[%s5169_s5 + $0x1810] sm:$0xff] %v1759_v2  ;;  %v1765_v5 = vld [vmem:[%s5164_s29 + $0x3048] sm:$0xff]  ;;  %1762 = vst [vmem:[%s5169_s5 + $0x1818] sm:$0xff] %v1761_v3  ;;  %v1767_v6 = vld [vmem:[%s5164_s29 + $0x3050] sm:$0xff] }
 0x1a3   : > { %1764 = vst [vmem:[%s5169_s5 + $0x1820] sm:$0xff] %v1763_v4  ;;  %1766 = vst [vmem:[%s5169_s5 + $0x1828] sm:$0xff] %v1765_v5  ;;  %v1769_v7 = vld [vmem:[%s5164_s29 + $0x3058] sm:$0xff]  ;;  %v1771_v8 = vld [vmem:[%s5164_s29 + $0x3080] sm:$0xff] }
 0x1a4   : > { %1768 = vst [vmem:[%s5169_s5 + $0x1830] sm:$0xff] %v1767_v6  ;;  %1770 = vst [vmem:[%s5169_s5 + $0x1838] sm:$0xff] %v1769_v7  ;;  %v1773_v9 = vld [vmem:[%s5164_s29 + $0x3088] sm:$0xff]  ;;  %v1775_v10 = vld [vmem:[%s5164_s29 + $0x3090] sm:$0xff] }
 0x1a5   : > { %1772 = vst [vmem:[%s5169_s5 + $0x1840] sm:$0xff] %v1771_v8  ;;  %v1777_v11 = vld [vmem:[%s5164_s29 + $0x3098] sm:$0xff]  ;;  %1774 = vst [vmem:[%s5169_s5 + $0x1848] sm:$0xff] %v1773_v9  ;;  %v1779_v12 = vld [vmem:[%s5164_s29 + $0x30c0] sm:$0xff] }
 0x1a6   : > { %1776 = vst [vmem:[%s5169_s5 + $0x1850] sm:$0xff] %v1775_v10  ;;  %1778 = vst [vmem:[%s5169_s5 + $0x1858] sm:$0xff] %v1777_v11  ;;  %v1781_v13 = vld [vmem:[%s5164_s29 + $0x30c8] sm:$0xff]  ;;  %v1783_v14 = vld [vmem:[%s5164_s29 + $0x30d0] sm:$0xff] }
 0x1a7   : > { %1780 = vst [vmem:[%s5169_s5 + $0x1860] sm:$0xff] %v1779_v12  ;;  %1782 = vst [vmem:[%s5169_s5 + $0x1868] sm:$0xff] %v1781_v13  ;;  %v1785_v15 = vld [vmem:[%s5164_s29 + $0x30d8] sm:$0xff]  ;;  %v1787_v16 = vld [vmem:[%s5164_s29 + $0x3100] sm:$0xff] }
 0x1a8   : > { %1784 = vst [vmem:[%s5169_s5 + $0x1870] sm:$0xff] %v1783_v14  ;;  %v1789_v17 = vld [vmem:[%s5164_s29 + $0x3108] sm:$0xff]  ;;  %1786 = vst [vmem:[%s5169_s5 + $0x1878] sm:$0xff] %v1785_v15  ;;  %v1791_v18 = vld [vmem:[%s5164_s29 + $0x3110] sm:$0xff] }
 0x1a9   : > { %1788 = vst [vmem:[%s5169_s5 + $0x1880] sm:$0xff] %v1787_v16  ;;  %1790 = vst [vmem:[%s5169_s5 + $0x1888] sm:$0xff] %v1789_v17  ;;  %v1793_v19 = vld [vmem:[%s5164_s29 + $0x3118] sm:$0xff]  ;;  %v1795_v20 = vld [vmem:[%s5164_s29 + $0x3140] sm:$0xff] }
 0x1aa   : > { %1792 = vst [vmem:[%s5169_s5 + $0x1890] sm:$0xff] %v1791_v18  ;;  %1794 = vst [vmem:[%s5169_s5 + $0x1898] sm:$0xff] %v1793_v19  ;;  %v1797_v21 = vld [vmem:[%s5164_s29 + $0x3148] sm:$0xff]  ;;  %v1799_v22 = vld [vmem:[%s5164_s29 + $0x3150] sm:$0xff] }
 0x1ab   : > { %1796 = vst [vmem:[%s5169_s5 + $0x18a0] sm:$0xff] %v1795_v20  ;;  %v1801_v23 = vld [vmem:[%s5164_s29 + $0x3158] sm:$0xff]  ;;  %1798 = vst [vmem:[%s5169_s5 + $0x18a8] sm:$0xff] %v1797_v21  ;;  %v1803_v24 = vld [vmem:[%s5164_s29 + $0x3180] sm:$0xff] }
 0x1ac   : > { %1800 = vst [vmem:[%s5169_s5 + $0x18b0] sm:$0xff] %v1799_v22  ;;  %1802 = vst [vmem:[%s5169_s5 + $0x18b8] sm:$0xff] %v1801_v23  ;;  %v1805_v25 = vld [vmem:[%s5164_s29 + $0x3188] sm:$0xff]  ;;  %v1807_v26 = vld [vmem:[%s5164_s29 + $0x3190] sm:$0xff] }
 0x1ad   : > { %1804 = vst [vmem:[%s5169_s5 + $0x18c0] sm:$0xff] %v1803_v24  ;;  %1806 = vst [vmem:[%s5169_s5 + $0x18c8] sm:$0xff] %v1805_v25  ;;  %v1809_v27 = vld [vmem:[%s5164_s29 + $0x3198] sm:$0xff]  ;;  %v1811_v28 = vld [vmem:[%s5164_s29 + $0x31c0] sm:$0xff] }
 0x1ae   : > { %1808 = vst [vmem:[%s5169_s5 + $0x18d0] sm:$0xff] %v1807_v26  ;;  %v1813_v29 = vld [vmem:[%s5164_s29 + $0x31c8] sm:$0xff]  ;;  %1810 = vst [vmem:[%s5169_s5 + $0x18d8] sm:$0xff] %v1809_v27  ;;  %v1815_v30 = vld [vmem:[%s5164_s29 + $0x31d0] sm:$0xff] }
 0x1af   : > { %1812 = vst [vmem:[%s5169_s5 + $0x18e0] sm:$0xff] %v1811_v28  ;;  %1814 = vst [vmem:[%s5169_s5 + $0x18e8] sm:$0xff] %v1813_v29  ;;  %v1817_v31 = vld [vmem:[%s5164_s29 + $0x31d8] sm:$0xff]  ;;  %v1819_v32 = vld [vmem:[%s5164_s29 + $0x3200] sm:$0xff] }
 0x1b0   : > { %1816 = vst [vmem:[%s5169_s5 + $0x18f0] sm:$0xff] %v1815_v30  ;;  %1818 = vst [vmem:[%s5169_s5 + $0x18f8] sm:$0xff] %v1817_v31  ;;  %v1821_v33 = vld [vmem:[%s5164_s29 + $0x3208] sm:$0xff]  ;;  %v1823_v34 = vld [vmem:[%s5164_s29 + $0x3210] sm:$0xff] }
 0x1b1   : > { %1820 = vst [vmem:[%s5169_s5 + $0x1900] sm:$0xff] %v1819_v32  ;;  %v1825_v35 = vld [vmem:[%s5164_s29 + $0x3218] sm:$0xff]  ;;  %1822 = vst [vmem:[%s5169_s5 + $0x1908] sm:$0xff] %v1821_v33  ;;  %v1827_v36 = vld [vmem:[%s5164_s29 + $0x3240] sm:$0xff] }
 0x1b2   : > { %1824 = vst [vmem:[%s5169_s5 + $0x1910] sm:$0xff] %v1823_v34  ;;  %1826 = vst [vmem:[%s5169_s5 + $0x1918] sm:$0xff] %v1825_v35  ;;  %v1829_v37 = vld [vmem:[%s5164_s29 + $0x3248] sm:$0xff]  ;;  %v1831_v38 = vld [vmem:[%s5164_s29 + $0x3250] sm:$0xff] }
 0x1b3   : > { %1828 = vst [vmem:[%s5169_s5 + $0x1920] sm:$0xff] %v1827_v36  ;;  %1830 = vst [vmem:[%s5169_s5 + $0x1928] sm:$0xff] %v1829_v37  ;;  %v1833_v39 = vld [vmem:[%s5164_s29 + $0x3258] sm:$0xff]  ;;  %v1835_v40 = vld [vmem:[%s5164_s29 + $0x3280] sm:$0xff] }
 0x1b4   : > { %1832 = vst [vmem:[%s5169_s5 + $0x1930] sm:$0xff] %v1831_v38  ;;  %v1837_v41 = vld [vmem:[%s5164_s29 + $0x3288] sm:$0xff]  ;;  %1834 = vst [vmem:[%s5169_s5 + $0x1938] sm:$0xff] %v1833_v39  ;;  %v1839_v42 = vld [vmem:[%s5164_s29 + $0x3290] sm:$0xff] }
 0x1b5   : > { %1836 = vst [vmem:[%s5169_s5 + $0x1940] sm:$0xff] %v1835_v40  ;;  %1838 = vst [vmem:[%s5169_s5 + $0x1948] sm:$0xff] %v1837_v41  ;;  %v1841_v43 = vld [vmem:[%s5164_s29 + $0x3298] sm:$0xff]  ;;  %v1843_v44 = vld [vmem:[%s5164_s29 + $0x32c0] sm:$0xff] }
 0x1b6   : > { %1840 = vst [vmem:[%s5169_s5 + $0x1950] sm:$0xff] %v1839_v42  ;;  %1842 = vst [vmem:[%s5169_s5 + $0x1958] sm:$0xff] %v1841_v43  ;;  %v1845_v45 = vld [vmem:[%s5164_s29 + $0x32c8] sm:$0xff]  ;;  %v1847_v46 = vld [vmem:[%s5164_s29 + $0x32d0] sm:$0xff] }
 0x1b7   : > { %1844 = vst [vmem:[%s5169_s5 + $0x1960] sm:$0xff] %v1843_v44  ;;  %v1849_v47 = vld [vmem:[%s5164_s29 + $0x32d8] sm:$0xff]  ;;  %1846 = vst [vmem:[%s5169_s5 + $0x1968] sm:$0xff] %v1845_v45  ;;  %v1851_v48 = vld [vmem:[%s5164_s29 + $0x3300] sm:$0xff] }
 0x1b8   : > { %1848 = vst [vmem:[%s5169_s5 + $0x1970] sm:$0xff] %v1847_v46  ;;  %1850 = vst [vmem:[%s5169_s5 + $0x1978] sm:$0xff] %v1849_v47  ;;  %v1853_v49 = vld [vmem:[%s5164_s29 + $0x3308] sm:$0xff]  ;;  %v1855_v50 = vld [vmem:[%s5164_s29 + $0x3310] sm:$0xff] }
 0x1b9   : > { %1852 = vst [vmem:[%s5169_s5 + $0x1980] sm:$0xff] %v1851_v48  ;;  %1854 = vst [vmem:[%s5169_s5 + $0x1988] sm:$0xff] %v1853_v49  ;;  %v1857_v51 = vld [vmem:[%s5164_s29 + $0x3318] sm:$0xff]  ;;  %v1859_v52 = vld [vmem:[%s5164_s29 + $0x3340] sm:$0xff] }
 0x1ba   : > { %1856 = vst [vmem:[%s5169_s5 + $0x1990] sm:$0xff] %v1855_v50  ;;  %v1861_v53 = vld [vmem:[%s5164_s29 + $0x3348] sm:$0xff]  ;;  %1858 = vst [vmem:[%s5169_s5 + $0x1998] sm:$0xff] %v1857_v51  ;;  %v1863_v54 = vld [vmem:[%s5164_s29 + $0x3350] sm:$0xff] }
 0x1bb   : > { %1860 = vst [vmem:[%s5169_s5 + $0x19a0] sm:$0xff] %v1859_v52  ;;  %1862 = vst [vmem:[%s5169_s5 + $0x19a8] sm:$0xff] %v1861_v53  ;;  %v1865_v55 = vld [vmem:[%s5164_s29 + $0x3358] sm:$0xff]  ;;  %v1867_v56 = vld [vmem:[%s5164_s29 + $0x3380] sm:$0xff] }
 0x1bc   : > { %1864 = vst [vmem:[%s5169_s5 + $0x19b0] sm:$0xff] %v1863_v54  ;;  %1866 = vst [vmem:[%s5169_s5 + $0x19b8] sm:$0xff] %v1865_v55  ;;  %v1869_v57 = vld [vmem:[%s5164_s29 + $0x3388] sm:$0xff]  ;;  %v1871_v58 = vld [vmem:[%s5164_s29 + $0x3390] sm:$0xff] }
 0x1bd   : > { %1868 = vst [vmem:[%s5169_s5 + $0x19c0] sm:$0xff] %v1867_v56  ;;  %v1873_v59 = vld [vmem:[%s5164_s29 + $0x3398] sm:$0xff]  ;;  %1870 = vst [vmem:[%s5169_s5 + $0x19c8] sm:$0xff] %v1869_v57  ;;  %v1875_v60 = vld [vmem:[%s5164_s29 + $0x33c0] sm:$0xff] }
 0x1be   : > { %1872 = vst [vmem:[%s5169_s5 + $0x19d0] sm:$0xff] %v1871_v58  ;;  %1874 = vst [vmem:[%s5169_s5 + $0x19d8] sm:$0xff] %v1873_v59  ;;  %v1877_v61 = vld [vmem:[%s5164_s29 + $0x33c8] sm:$0xff]  ;;  %v1879_v62 = vld [vmem:[%s5164_s29 + $0x33d0] sm:$0xff] }
 0x1bf   : > { %1876 = vst [vmem:[%s5169_s5 + $0x19e0] sm:$0xff] %v1875_v60  ;;  %1878 = vst [vmem:[%s5169_s5 + $0x19e8] sm:$0xff] %v1877_v61  ;;  %v1881_v63 = vld [vmem:[%s5164_s29 + $0x33d8] sm:$0xff]  ;;  %v1883_v0 = vld [vmem:[%s5164_s29 + $0x3400] sm:$0xff] }
 0x1c0   : > { %1880 = vst [vmem:[%s5169_s5 + $0x19f0] sm:$0xff] %v1879_v62  ;;  %v1885_v1 = vld [vmem:[%s5164_s29 + $0x3408] sm:$0xff]  ;;  %1882 = vst [vmem:[%s5169_s5 + $0x19f8] sm:$0xff] %v1881_v63  ;;  %v1887_v2 = vld [vmem:[%s5164_s29 + $0x3410] sm:$0xff] }
 0x1c1   : > { %1884 = vst [vmem:[%s5169_s5 + $0x1a00] sm:$0xff] %v1883_v0  ;;  %1886 = vst [vmem:[%s5169_s5 + $0x1a08] sm:$0xff] %v1885_v1  ;;  %v1889_v3 = vld [vmem:[%s5164_s29 + $0x3418] sm:$0xff]  ;;  %v1891_v4 = vld [vmem:[%s5164_s29 + $0x3440] sm:$0xff] }
 0x1c2   : > { %1888 = vst [vmem:[%s5169_s5 + $0x1a10] sm:$0xff] %v1887_v2  ;;  %1890 = vst [vmem:[%s5169_s5 + $0x1a18] sm:$0xff] %v1889_v3  ;;  %v1893_v5 = vld [vmem:[%s5164_s29 + $0x3448] sm:$0xff]  ;;  %v1895_v6 = vld [vmem:[%s5164_s29 + $0x3450] sm:$0xff] }
 0x1c3   : > { %1892 = vst [vmem:[%s5169_s5 + $0x1a20] sm:$0xff] %v1891_v4  ;;  %v1897_v7 = vld [vmem:[%s5164_s29 + $0x3458] sm:$0xff]  ;;  %1894 = vst [vmem:[%s5169_s5 + $0x1a28] sm:$0xff] %v1893_v5  ;;  %v1899_v8 = vld [vmem:[%s5164_s29 + $0x3480] sm:$0xff] }
 0x1c4   : > { %1896 = vst [vmem:[%s5169_s5 + $0x1a30] sm:$0xff] %v1895_v6  ;;  %1898 = vst [vmem:[%s5169_s5 + $0x1a38] sm:$0xff] %v1897_v7  ;;  %v1901_v9 = vld [vmem:[%s5164_s29 + $0x3488] sm:$0xff]  ;;  %v1903_v10 = vld [vmem:[%s5164_s29 + $0x3490] sm:$0xff] }
 0x1c5   : > { %1900 = vst [vmem:[%s5169_s5 + $0x1a40] sm:$0xff] %v1899_v8  ;;  %1902 = vst [vmem:[%s5169_s5 + $0x1a48] sm:$0xff] %v1901_v9  ;;  %v1905_v11 = vld [vmem:[%s5164_s29 + $0x3498] sm:$0xff]  ;;  %v1907_v12 = vld [vmem:[%s5164_s29 + $0x34c0] sm:$0xff] }
 0x1c6   : > { %1904 = vst [vmem:[%s5169_s5 + $0x1a50] sm:$0xff] %v1903_v10  ;;  %v1909_v13 = vld [vmem:[%s5164_s29 + $0x34c8] sm:$0xff]  ;;  %1906 = vst [vmem:[%s5169_s5 + $0x1a58] sm:$0xff] %v1905_v11  ;;  %v1911_v14 = vld [vmem:[%s5164_s29 + $0x34d0] sm:$0xff] }
 0x1c7   : > { %1908 = vst [vmem:[%s5169_s5 + $0x1a60] sm:$0xff] %v1907_v12  ;;  %1910 = vst [vmem:[%s5169_s5 + $0x1a68] sm:$0xff] %v1909_v13  ;;  %v1913_v15 = vld [vmem:[%s5164_s29 + $0x34d8] sm:$0xff]  ;;  %v1915_v16 = vld [vmem:[%s5164_s29 + $0x3500] sm:$0xff] }
 0x1c8   : > { %1912 = vst [vmem:[%s5169_s5 + $0x1a70] sm:$0xff] %v1911_v14  ;;  %1914 = vst [vmem:[%s5169_s5 + $0x1a78] sm:$0xff] %v1913_v15  ;;  %v1917_v17 = vld [vmem:[%s5164_s29 + $0x3508] sm:$0xff]  ;;  %v1919_v18 = vld [vmem:[%s5164_s29 + $0x3510] sm:$0xff] }
 0x1c9   : > { %1916 = vst [vmem:[%s5169_s5 + $0x1a80] sm:$0xff] %v1915_v16  ;;  %v1921_v19 = vld [vmem:[%s5164_s29 + $0x3518] sm:$0xff]  ;;  %1918 = vst [vmem:[%s5169_s5 + $0x1a88] sm:$0xff] %v1917_v17  ;;  %v1923_v20 = vld [vmem:[%s5164_s29 + $0x3540] sm:$0xff] }
 0x1ca   : > { %1920 = vst [vmem:[%s5169_s5 + $0x1a90] sm:$0xff] %v1919_v18  ;;  %1922 = vst [vmem:[%s5169_s5 + $0x1a98] sm:$0xff] %v1921_v19  ;;  %v1925_v21 = vld [vmem:[%s5164_s29 + $0x3548] sm:$0xff]  ;;  %v1927_v22 = vld [vmem:[%s5164_s29 + $0x3550] sm:$0xff] }
 0x1cb   : > { %1924 = vst [vmem:[%s5169_s5 + $0x1aa0] sm:$0xff] %v1923_v20  ;;  %1926 = vst [vmem:[%s5169_s5 + $0x1aa8] sm:$0xff] %v1925_v21  ;;  %v1929_v23 = vld [vmem:[%s5164_s29 + $0x3558] sm:$0xff]  ;;  %v1931_v24 = vld [vmem:[%s5164_s29 + $0x3580] sm:$0xff] }
 0x1cc   : > { %1928 = vst [vmem:[%s5169_s5 + $0x1ab0] sm:$0xff] %v1927_v22  ;;  %v1933_v25 = vld [vmem:[%s5164_s29 + $0x3588] sm:$0xff]  ;;  %1930 = vst [vmem:[%s5169_s5 + $0x1ab8] sm:$0xff] %v1929_v23  ;;  %v1935_v26 = vld [vmem:[%s5164_s29 + $0x3590] sm:$0xff] }
 0x1cd   : > { %1932 = vst [vmem:[%s5169_s5 + $0x1ac0] sm:$0xff] %v1931_v24  ;;  %1934 = vst [vmem:[%s5169_s5 + $0x1ac8] sm:$0xff] %v1933_v25  ;;  %v1937_v27 = vld [vmem:[%s5164_s29 + $0x3598] sm:$0xff]  ;;  %v1939_v28 = vld [vmem:[%s5164_s29 + $0x35c0] sm:$0xff] }
 0x1ce   : > { %1936 = vst [vmem:[%s5169_s5 + $0x1ad0] sm:$0xff] %v1935_v26  ;;  %1938 = vst [vmem:[%s5169_s5 + $0x1ad8] sm:$0xff] %v1937_v27  ;;  %v1941_v29 = vld [vmem:[%s5164_s29 + $0x35c8] sm:$0xff]  ;;  %v1943_v30 = vld [vmem:[%s5164_s29 + $0x35d0] sm:$0xff] }
 0x1cf   : > { %1940 = vst [vmem:[%s5169_s5 + $0x1ae0] sm:$0xff] %v1939_v28  ;;  %v1945_v31 = vld [vmem:[%s5164_s29 + $0x35d8] sm:$0xff]  ;;  %1942 = vst [vmem:[%s5169_s5 + $0x1ae8] sm:$0xff] %v1941_v29  ;;  %v1947_v32 = vld [vmem:[%s5164_s29 + $0x3600] sm:$0xff] }
 0x1d0   : > { %1944 = vst [vmem:[%s5169_s5 + $0x1af0] sm:$0xff] %v1943_v30  ;;  %1946 = vst [vmem:[%s5169_s5 + $0x1af8] sm:$0xff] %v1945_v31  ;;  %v1949_v33 = vld [vmem:[%s5164_s29 + $0x3608] sm:$0xff]  ;;  %v1951_v34 = vld [vmem:[%s5164_s29 + $0x3610] sm:$0xff] }
 0x1d1   : > { %1948 = vst [vmem:[%s5169_s5 + $0x1b00] sm:$0xff] %v1947_v32  ;;  %1950 = vst [vmem:[%s5169_s5 + $0x1b08] sm:$0xff] %v1949_v33  ;;  %v1953_v35 = vld [vmem:[%s5164_s29 + $0x3618] sm:$0xff]  ;;  %v1955_v36 = vld [vmem:[%s5164_s29 + $0x3640] sm:$0xff] }
 0x1d2   : > { %1952 = vst [vmem:[%s5169_s5 + $0x1b10] sm:$0xff] %v1951_v34  ;;  %v1957_v37 = vld [vmem:[%s5164_s29 + $0x3648] sm:$0xff]  ;;  %1954 = vst [vmem:[%s5169_s5 + $0x1b18] sm:$0xff] %v1953_v35  ;;  %v1959_v38 = vld [vmem:[%s5164_s29 + $0x3650] sm:$0xff] }
 0x1d3   : > { %1956 = vst [vmem:[%s5169_s5 + $0x1b20] sm:$0xff] %v1955_v36  ;;  %1958 = vst [vmem:[%s5169_s5 + $0x1b28] sm:$0xff] %v1957_v37  ;;  %v1961_v39 = vld [vmem:[%s5164_s29 + $0x3658] sm:$0xff]  ;;  %v1963_v40 = vld [vmem:[%s5164_s29 + $0x3680] sm:$0xff] }
 0x1d4   : > { %1960 = vst [vmem:[%s5169_s5 + $0x1b30] sm:$0xff] %v1959_v38  ;;  %1962 = vst [vmem:[%s5169_s5 + $0x1b38] sm:$0xff] %v1961_v39  ;;  %v1965_v41 = vld [vmem:[%s5164_s29 + $0x3688] sm:$0xff]  ;;  %v1967_v42 = vld [vmem:[%s5164_s29 + $0x3690] sm:$0xff] }
 0x1d5   : > { %1964 = vst [vmem:[%s5169_s5 + $0x1b40] sm:$0xff] %v1963_v40  ;;  %v1969_v43 = vld [vmem:[%s5164_s29 + $0x3698] sm:$0xff]  ;;  %1966 = vst [vmem:[%s5169_s5 + $0x1b48] sm:$0xff] %v1965_v41  ;;  %v1971_v44 = vld [vmem:[%s5164_s29 + $0x36c0] sm:$0xff] }
 0x1d6   : > { %1968 = vst [vmem:[%s5169_s5 + $0x1b50] sm:$0xff] %v1967_v42  ;;  %1970 = vst [vmem:[%s5169_s5 + $0x1b58] sm:$0xff] %v1969_v43  ;;  %v1973_v45 = vld [vmem:[%s5164_s29 + $0x36c8] sm:$0xff]  ;;  %v1975_v46 = vld [vmem:[%s5164_s29 + $0x36d0] sm:$0xff] }
 0x1d7   : > { %1972 = vst [vmem:[%s5169_s5 + $0x1b60] sm:$0xff] %v1971_v44  ;;  %1974 = vst [vmem:[%s5169_s5 + $0x1b68] sm:$0xff] %v1973_v45  ;;  %v1977_v47 = vld [vmem:[%s5164_s29 + $0x36d8] sm:$0xff]  ;;  %v1979_v48 = vld [vmem:[%s5164_s29 + $0x3700] sm:$0xff] }
 0x1d8   : > { %1976 = vst [vmem:[%s5169_s5 + $0x1b70] sm:$0xff] %v1975_v46  ;;  %v1981_v49 = vld [vmem:[%s5164_s29 + $0x3708] sm:$0xff]  ;;  %1978 = vst [vmem:[%s5169_s5 + $0x1b78] sm:$0xff] %v1977_v47  ;;  %v1983_v50 = vld [vmem:[%s5164_s29 + $0x3710] sm:$0xff] }
 0x1d9   : > { %1980 = vst [vmem:[%s5169_s5 + $0x1b80] sm:$0xff] %v1979_v48  ;;  %1982 = vst [vmem:[%s5169_s5 + $0x1b88] sm:$0xff] %v1981_v49  ;;  %v1985_v51 = vld [vmem:[%s5164_s29 + $0x3718] sm:$0xff]  ;;  %v1987_v52 = vld [vmem:[%s5164_s29 + $0x3740] sm:$0xff] }
 0x1da   : > { %1984 = vst [vmem:[%s5169_s5 + $0x1b90] sm:$0xff] %v1983_v50  ;;  %1986 = vst [vmem:[%s5169_s5 + $0x1b98] sm:$0xff] %v1985_v51  ;;  %v1989_v53 = vld [vmem:[%s5164_s29 + $0x3748] sm:$0xff]  ;;  %v1991_v54 = vld [vmem:[%s5164_s29 + $0x3750] sm:$0xff] }
 0x1db   : > { %1988 = vst [vmem:[%s5169_s5 + $0x1ba0] sm:$0xff] %v1987_v52  ;;  %v1993_v55 = vld [vmem:[%s5164_s29 + $0x3758] sm:$0xff]  ;;  %1990 = vst [vmem:[%s5169_s5 + $0x1ba8] sm:$0xff] %v1989_v53  ;;  %v1995_v56 = vld [vmem:[%s5164_s29 + $0x3780] sm:$0xff] }
 0x1dc   : > { %1992 = vst [vmem:[%s5169_s5 + $0x1bb0] sm:$0xff] %v1991_v54  ;;  %1994 = vst [vmem:[%s5169_s5 + $0x1bb8] sm:$0xff] %v1993_v55  ;;  %v1997_v57 = vld [vmem:[%s5164_s29 + $0x3788] sm:$0xff]  ;;  %v1999_v58 = vld [vmem:[%s5164_s29 + $0x3790] sm:$0xff] }
 0x1dd   : > { %1996 = vst [vmem:[%s5169_s5 + $0x1bc0] sm:$0xff] %v1995_v56  ;;  %1998 = vst [vmem:[%s5169_s5 + $0x1bc8] sm:$0xff] %v1997_v57  ;;  %v2001_v59 = vld [vmem:[%s5164_s29 + $0x3798] sm:$0xff]  ;;  %v2003_v60 = vld [vmem:[%s5164_s29 + $0x37c0] sm:$0xff] }
 0x1de   : > { %2000 = vst [vmem:[%s5169_s5 + $0x1bd0] sm:$0xff] %v1999_v58  ;;  %v2005_v61 = vld [vmem:[%s5164_s29 + $0x37c8] sm:$0xff]  ;;  %2002 = vst [vmem:[%s5169_s5 + $0x1bd8] sm:$0xff] %v2001_v59  ;;  %v2007_v62 = vld [vmem:[%s5164_s29 + $0x37d0] sm:$0xff] }
 0x1df   : > { %2004 = vst [vmem:[%s5169_s5 + $0x1be0] sm:$0xff] %v2003_v60  ;;  %2006 = vst [vmem:[%s5169_s5 + $0x1be8] sm:$0xff] %v2005_v61  ;;  %v2009_v63 = vld [vmem:[%s5164_s29 + $0x37d8] sm:$0xff]  ;;  %v2011_v0 = vld [vmem:[%s5164_s29 + $0x3800] sm:$0xff] }
 0x1e0   : > { %2008 = vst [vmem:[%s5169_s5 + $0x1bf0] sm:$0xff] %v2007_v62  ;;  %2010 = vst [vmem:[%s5169_s5 + $0x1bf8] sm:$0xff] %v2009_v63  ;;  %v2013_v1 = vld [vmem:[%s5164_s29 + $0x3808] sm:$0xff]  ;;  %v2015_v2 = vld [vmem:[%s5164_s29 + $0x3810] sm:$0xff] }
 0x1e1   : > { %2012 = vst [vmem:[%s5169_s5 + $0x1c00] sm:$0xff] %v2011_v0  ;;  %v2017_v3 = vld [vmem:[%s5164_s29 + $0x3818] sm:$0xff]  ;;  %2014 = vst [vmem:[%s5169_s5 + $0x1c08] sm:$0xff] %v2013_v1  ;;  %v2019_v4 = vld [vmem:[%s5164_s29 + $0x3840] sm:$0xff] }
 0x1e2   : > { %2016 = vst [vmem:[%s5169_s5 + $0x1c10] sm:$0xff] %v2015_v2  ;;  %2018 = vst [vmem:[%s5169_s5 + $0x1c18] sm:$0xff] %v2017_v3  ;;  %v2021_v5 = vld [vmem:[%s5164_s29 + $0x3848] sm:$0xff]  ;;  %v2023_v6 = vld [vmem:[%s5164_s29 + $0x3850] sm:$0xff] }
 0x1e3   : > { %2020 = vst [vmem:[%s5169_s5 + $0x1c20] sm:$0xff] %v2019_v4  ;;  %2022 = vst [vmem:[%s5169_s5 + $0x1c28] sm:$0xff] %v2021_v5  ;;  %v2025_v7 = vld [vmem:[%s5164_s29 + $0x3858] sm:$0xff]  ;;  %v2027_v8 = vld [vmem:[%s5164_s29 + $0x3880] sm:$0xff] }
 0x1e4   : > { %2024 = vst [vmem:[%s5169_s5 + $0x1c30] sm:$0xff] %v2023_v6  ;;  %v2029_v9 = vld [vmem:[%s5164_s29 + $0x3888] sm:$0xff]  ;;  %2026 = vst [vmem:[%s5169_s5 + $0x1c38] sm:$0xff] %v2025_v7  ;;  %v2031_v10 = vld [vmem:[%s5164_s29 + $0x3890] sm:$0xff] }
 0x1e5   : > { %2028 = vst [vmem:[%s5169_s5 + $0x1c40] sm:$0xff] %v2027_v8  ;;  %2030 = vst [vmem:[%s5169_s5 + $0x1c48] sm:$0xff] %v2029_v9  ;;  %v2033_v11 = vld [vmem:[%s5164_s29 + $0x3898] sm:$0xff]  ;;  %v2035_v12 = vld [vmem:[%s5164_s29 + $0x38c0] sm:$0xff] }
 0x1e6   : > { %2032 = vst [vmem:[%s5169_s5 + $0x1c50] sm:$0xff] %v2031_v10  ;;  %2034 = vst [vmem:[%s5169_s5 + $0x1c58] sm:$0xff] %v2033_v11  ;;  %v2037_v13 = vld [vmem:[%s5164_s29 + $0x38c8] sm:$0xff]  ;;  %v2039_v14 = vld [vmem:[%s5164_s29 + $0x38d0] sm:$0xff] }
 0x1e7   : > { %2036 = vst [vmem:[%s5169_s5 + $0x1c60] sm:$0xff] %v2035_v12  ;;  %v2041_v15 = vld [vmem:[%s5164_s29 + $0x38d8] sm:$0xff]  ;;  %2038 = vst [vmem:[%s5169_s5 + $0x1c68] sm:$0xff] %v2037_v13  ;;  %v2043_v16 = vld [vmem:[%s5164_s29 + $0x3900] sm:$0xff] }
 0x1e8   : > { %2040 = vst [vmem:[%s5169_s5 + $0x1c70] sm:$0xff] %v2039_v14  ;;  %2042 = vst [vmem:[%s5169_s5 + $0x1c78] sm:$0xff] %v2041_v15  ;;  %v2045_v17 = vld [vmem:[%s5164_s29 + $0x3908] sm:$0xff]  ;;  %v2047_v18 = vld [vmem:[%s5164_s29 + $0x3910] sm:$0xff] }
 0x1e9   : > { %2044 = vst [vmem:[%s5169_s5 + $0x1c80] sm:$0xff] %v2043_v16  ;;  %2046 = vst [vmem:[%s5169_s5 + $0x1c88] sm:$0xff] %v2045_v17  ;;  %v2049_v19 = vld [vmem:[%s5164_s29 + $0x3918] sm:$0xff]  ;;  %v2051_v20 = vld [vmem:[%s5164_s29 + $0x3940] sm:$0xff] }
 0x1ea   : > { %2048 = vst [vmem:[%s5169_s5 + $0x1c90] sm:$0xff] %v2047_v18  ;;  %v2053_v21 = vld [vmem:[%s5164_s29 + $0x3948] sm:$0xff]  ;;  %2050 = vst [vmem:[%s5169_s5 + $0x1c98] sm:$0xff] %v2049_v19  ;;  %v2055_v22 = vld [vmem:[%s5164_s29 + $0x3950] sm:$0xff] }
 0x1eb   : > { %2052 = vst [vmem:[%s5169_s5 + $0x1ca0] sm:$0xff] %v2051_v20  ;;  %2054 = vst [vmem:[%s5169_s5 + $0x1ca8] sm:$0xff] %v2053_v21  ;;  %v2057_v23 = vld [vmem:[%s5164_s29 + $0x3958] sm:$0xff]  ;;  %v2059_v24 = vld [vmem:[%s5164_s29 + $0x3980] sm:$0xff] }
 0x1ec   : > { %2056 = vst [vmem:[%s5169_s5 + $0x1cb0] sm:$0xff] %v2055_v22  ;;  %2058 = vst [vmem:[%s5169_s5 + $0x1cb8] sm:$0xff] %v2057_v23  ;;  %v2061_v25 = vld [vmem:[%s5164_s29 + $0x3988] sm:$0xff]  ;;  %v2063_v26 = vld [vmem:[%s5164_s29 + $0x3990] sm:$0xff] }
 0x1ed   : > { %2060 = vst [vmem:[%s5169_s5 + $0x1cc0] sm:$0xff] %v2059_v24  ;;  %v2065_v27 = vld [vmem:[%s5164_s29 + $0x3998] sm:$0xff]  ;;  %2062 = vst [vmem:[%s5169_s5 + $0x1cc8] sm:$0xff] %v2061_v25  ;;  %v2067_v28 = vld [vmem:[%s5164_s29 + $0x39c0] sm:$0xff] }
 0x1ee   : > { %2064 = vst [vmem:[%s5169_s5 + $0x1cd0] sm:$0xff] %v2063_v26  ;;  %2066 = vst [vmem:[%s5169_s5 + $0x1cd8] sm:$0xff] %v2065_v27  ;;  %v2069_v29 = vld [vmem:[%s5164_s29 + $0x39c8] sm:$0xff]  ;;  %v2071_v30 = vld [vmem:[%s5164_s29 + $0x39d0] sm:$0xff] }
 0x1ef   : > { %2068 = vst [vmem:[%s5169_s5 + $0x1ce0] sm:$0xff] %v2067_v28  ;;  %2070 = vst [vmem:[%s5169_s5 + $0x1ce8] sm:$0xff] %v2069_v29  ;;  %v2073_v31 = vld [vmem:[%s5164_s29 + $0x39d8] sm:$0xff]  ;;  %v2075_v32 = vld [vmem:[%s5164_s29 + $0x3a00] sm:$0xff] }
 0x1f0   : > { %2072 = vst [vmem:[%s5169_s5 + $0x1cf0] sm:$0xff] %v2071_v30  ;;  %v2077_v33 = vld [vmem:[%s5164_s29 + $0x3a08] sm:$0xff]  ;;  %2074 = vst [vmem:[%s5169_s5 + $0x1cf8] sm:$0xff] %v2073_v31  ;;  %v2079_v34 = vld [vmem:[%s5164_s29 + $0x3a10] sm:$0xff] }
 0x1f1   : > { %2076 = vst [vmem:[%s5169_s5 + $0x1d00] sm:$0xff] %v2075_v32  ;;  %2078 = vst [vmem:[%s5169_s5 + $0x1d08] sm:$0xff] %v2077_v33  ;;  %v2081_v35 = vld [vmem:[%s5164_s29 + $0x3a18] sm:$0xff]  ;;  %v2083_v36 = vld [vmem:[%s5164_s29 + $0x3a40] sm:$0xff] }
 0x1f2   : > { %2080 = vst [vmem:[%s5169_s5 + $0x1d10] sm:$0xff] %v2079_v34  ;;  %2082 = vst [vmem:[%s5169_s5 + $0x1d18] sm:$0xff] %v2081_v35  ;;  %v2085_v37 = vld [vmem:[%s5164_s29 + $0x3a48] sm:$0xff]  ;;  %v2087_v38 = vld [vmem:[%s5164_s29 + $0x3a50] sm:$0xff] }
 0x1f3   : > { %2084 = vst [vmem:[%s5169_s5 + $0x1d20] sm:$0xff] %v2083_v36  ;;  %v2089_v39 = vld [vmem:[%s5164_s29 + $0x3a58] sm:$0xff]  ;;  %2086 = vst [vmem:[%s5169_s5 + $0x1d28] sm:$0xff] %v2085_v37  ;;  %v2091_v40 = vld [vmem:[%s5164_s29 + $0x3a80] sm:$0xff] }
 0x1f4   : > { %2088 = vst [vmem:[%s5169_s5 + $0x1d30] sm:$0xff] %v2087_v38  ;;  %2090 = vst [vmem:[%s5169_s5 + $0x1d38] sm:$0xff] %v2089_v39  ;;  %v2093_v41 = vld [vmem:[%s5164_s29 + $0x3a88] sm:$0xff]  ;;  %v2095_v42 = vld [vmem:[%s5164_s29 + $0x3a90] sm:$0xff] }
 0x1f5   : > { %2092 = vst [vmem:[%s5169_s5 + $0x1d40] sm:$0xff] %v2091_v40  ;;  %2094 = vst [vmem:[%s5169_s5 + $0x1d48] sm:$0xff] %v2093_v41  ;;  %v2097_v43 = vld [vmem:[%s5164_s29 + $0x3a98] sm:$0xff]  ;;  %v2099_v44 = vld [vmem:[%s5164_s29 + $0x3ac0] sm:$0xff] }
 0x1f6   : > { %2096 = vst [vmem:[%s5169_s5 + $0x1d50] sm:$0xff] %v2095_v42  ;;  %v2101_v45 = vld [vmem:[%s5164_s29 + $0x3ac8] sm:$0xff]  ;;  %2098 = vst [vmem:[%s5169_s5 + $0x1d58] sm:$0xff] %v2097_v43  ;;  %v2103_v46 = vld [vmem:[%s5164_s29 + $0x3ad0] sm:$0xff] }
 0x1f7   : > { %2100 = vst [vmem:[%s5169_s5 + $0x1d60] sm:$0xff] %v2099_v44  ;;  %2102 = vst [vmem:[%s5169_s5 + $0x1d68] sm:$0xff] %v2101_v45  ;;  %v2105_v47 = vld [vmem:[%s5164_s29 + $0x3ad8] sm:$0xff]  ;;  %v2107_v48 = vld [vmem:[%s5164_s29 + $0x3b00] sm:$0xff] }
 0x1f8   : > { %2104 = vst [vmem:[%s5169_s5 + $0x1d70] sm:$0xff] %v2103_v46  ;;  %2106 = vst [vmem:[%s5169_s5 + $0x1d78] sm:$0xff] %v2105_v47  ;;  %v2109_v49 = vld [vmem:[%s5164_s29 + $0x3b08] sm:$0xff]  ;;  %v2111_v50 = vld [vmem:[%s5164_s29 + $0x3b10] sm:$0xff] }
 0x1f9   : > { %2108 = vst [vmem:[%s5169_s5 + $0x1d80] sm:$0xff] %v2107_v48  ;;  %v2113_v51 = vld [vmem:[%s5164_s29 + $0x3b18] sm:$0xff]  ;;  %2110 = vst [vmem:[%s5169_s5 + $0x1d88] sm:$0xff] %v2109_v49  ;;  %v2115_v52 = vld [vmem:[%s5164_s29 + $0x3b40] sm:$0xff] }
 0x1fa   : > { %2112 = vst [vmem:[%s5169_s5 + $0x1d90] sm:$0xff] %v2111_v50  ;;  %2114 = vst [vmem:[%s5169_s5 + $0x1d98] sm:$0xff] %v2113_v51  ;;  %v2117_v53 = vld [vmem:[%s5164_s29 + $0x3b48] sm:$0xff]  ;;  %v2119_v54 = vld [vmem:[%s5164_s29 + $0x3b50] sm:$0xff] }
 0x1fb   : > { %2116 = vst [vmem:[%s5169_s5 + $0x1da0] sm:$0xff] %v2115_v52  ;;  %2118 = vst [vmem:[%s5169_s5 + $0x1da8] sm:$0xff] %v2117_v53  ;;  %v2121_v55 = vld [vmem:[%s5164_s29 + $0x3b58] sm:$0xff]  ;;  %v2123_v56 = vld [vmem:[%s5164_s29 + $0x3b80] sm:$0xff] }
 0x1fc   : > { %2120 = vst [vmem:[%s5169_s5 + $0x1db0] sm:$0xff] %v2119_v54  ;;  %v2125_v57 = vld [vmem:[%s5164_s29 + $0x3b88] sm:$0xff]  ;;  %2122 = vst [vmem:[%s5169_s5 + $0x1db8] sm:$0xff] %v2121_v55  ;;  %v2127_v58 = vld [vmem:[%s5164_s29 + $0x3b90] sm:$0xff] }
 0x1fd   : > { %2124 = vst [vmem:[%s5169_s5 + $0x1dc0] sm:$0xff] %v2123_v56  ;;  %2126 = vst [vmem:[%s5169_s5 + $0x1dc8] sm:$0xff] %v2125_v57  ;;  %v2129_v59 = vld [vmem:[%s5164_s29 + $0x3b98] sm:$0xff]  ;;  %v2131_v60 = vld [vmem:[%s5164_s29 + $0x3bc0] sm:$0xff] }
 0x1fe   : > { %2128 = vst [vmem:[%s5169_s5 + $0x1dd0] sm:$0xff] %v2127_v58  ;;  %2130 = vst [vmem:[%s5169_s5 + $0x1dd8] sm:$0xff] %v2129_v59  ;;  %v2133_v61 = vld [vmem:[%s5164_s29 + $0x3bc8] sm:$0xff]  ;;  %v2135_v62 = vld [vmem:[%s5164_s29 + $0x3bd0] sm:$0xff] }
 0x1ff   : > { %2132 = vst [vmem:[%s5169_s5 + $0x1de0] sm:$0xff] %v2131_v60  ;;  %v2137_v63 = vld [vmem:[%s5164_s29 + $0x3bd8] sm:$0xff]  ;;  %2134 = vst [vmem:[%s5169_s5 + $0x1de8] sm:$0xff] %v2133_v61  ;;  %v2139_v0 = vld [vmem:[%s5164_s29 + $0x3c00] sm:$0xff] }
 0x200   : > { %2136 = vst [vmem:[%s5169_s5 + $0x1df0] sm:$0xff] %v2135_v62  ;;  %2138 = vst [vmem:[%s5169_s5 + $0x1df8] sm:$0xff] %v2137_v63  ;;  %v2141_v1 = vld [vmem:[%s5164_s29 + $0x3c08] sm:$0xff]  ;;  %v2143_v2 = vld [vmem:[%s5164_s29 + $0x3c10] sm:$0xff] }
 0x201   : > { %2140 = vst [vmem:[%s5169_s5 + $0x1e00] sm:$0xff] %v2139_v0  ;;  %2142 = vst [vmem:[%s5169_s5 + $0x1e08] sm:$0xff] %v2141_v1  ;;  %v2145_v3 = vld [vmem:[%s5164_s29 + $0x3c18] sm:$0xff]  ;;  %v2147_v4 = vld [vmem:[%s5164_s29 + $0x3c40] sm:$0xff] }
 0x202   : > { %2144 = vst [vmem:[%s5169_s5 + $0x1e10] sm:$0xff] %v2143_v2  ;;  %v2149_v5 = vld [vmem:[%s5164_s29 + $0x3c48] sm:$0xff]  ;;  %2146 = vst [vmem:[%s5169_s5 + $0x1e18] sm:$0xff] %v2145_v3  ;;  %v2151_v6 = vld [vmem:[%s5164_s29 + $0x3c50] sm:$0xff] }
 0x203   : > { %2148 = vst [vmem:[%s5169_s5 + $0x1e20] sm:$0xff] %v2147_v4  ;;  %2150 = vst [vmem:[%s5169_s5 + $0x1e28] sm:$0xff] %v2149_v5  ;;  %v2153_v7 = vld [vmem:[%s5164_s29 + $0x3c58] sm:$0xff]  ;;  %v2155_v8 = vld [vmem:[%s5164_s29 + $0x3c80] sm:$0xff] }
 0x204   : > { %2152 = vst [vmem:[%s5169_s5 + $0x1e30] sm:$0xff] %v2151_v6  ;;  %2154 = vst [vmem:[%s5169_s5 + $0x1e38] sm:$0xff] %v2153_v7  ;;  %v2157_v9 = vld [vmem:[%s5164_s29 + $0x3c88] sm:$0xff]  ;;  %v2159_v10 = vld [vmem:[%s5164_s29 + $0x3c90] sm:$0xff] }
 0x205   : > { %2156 = vst [vmem:[%s5169_s5 + $0x1e40] sm:$0xff] %v2155_v8  ;;  %v2161_v11 = vld [vmem:[%s5164_s29 + $0x3c98] sm:$0xff]  ;;  %2158 = vst [vmem:[%s5169_s5 + $0x1e48] sm:$0xff] %v2157_v9  ;;  %v2163_v12 = vld [vmem:[%s5164_s29 + $0x3cc0] sm:$0xff] }
 0x206   : > { %2160 = vst [vmem:[%s5169_s5 + $0x1e50] sm:$0xff] %v2159_v10  ;;  %2162 = vst [vmem:[%s5169_s5 + $0x1e58] sm:$0xff] %v2161_v11  ;;  %v2165_v13 = vld [vmem:[%s5164_s29 + $0x3cc8] sm:$0xff]  ;;  %v2167_v14 = vld [vmem:[%s5164_s29 + $0x3cd0] sm:$0xff] }
 0x207   : > { %2164 = vst [vmem:[%s5169_s5 + $0x1e60] sm:$0xff] %v2163_v12  ;;  %2166 = vst [vmem:[%s5169_s5 + $0x1e68] sm:$0xff] %v2165_v13  ;;  %v2169_v15 = vld [vmem:[%s5164_s29 + $0x3cd8] sm:$0xff]  ;;  %v2171_v16 = vld [vmem:[%s5164_s29 + $0x3d00] sm:$0xff] }
 0x208   : > { %2168 = vst [vmem:[%s5169_s5 + $0x1e70] sm:$0xff] %v2167_v14  ;;  %v2173_v17 = vld [vmem:[%s5164_s29 + $0x3d08] sm:$0xff]  ;;  %2170 = vst [vmem:[%s5169_s5 + $0x1e78] sm:$0xff] %v2169_v15  ;;  %v2175_v18 = vld [vmem:[%s5164_s29 + $0x3d10] sm:$0xff] }
 0x209   : > { %2172 = vst [vmem:[%s5169_s5 + $0x1e80] sm:$0xff] %v2171_v16  ;;  %2174 = vst [vmem:[%s5169_s5 + $0x1e88] sm:$0xff] %v2173_v17  ;;  %v2177_v19 = vld [vmem:[%s5164_s29 + $0x3d18] sm:$0xff]  ;;  %v2179_v20 = vld [vmem:[%s5164_s29 + $0x3d40] sm:$0xff] }
 0x20a   : > { %2176 = vst [vmem:[%s5169_s5 + $0x1e90] sm:$0xff] %v2175_v18  ;;  %2178 = vst [vmem:[%s5169_s5 + $0x1e98] sm:$0xff] %v2177_v19  ;;  %v2181_v21 = vld [vmem:[%s5164_s29 + $0x3d48] sm:$0xff]  ;;  %v2183_v22 = vld [vmem:[%s5164_s29 + $0x3d50] sm:$0xff] }
 0x20b   : > { %2180 = vst [vmem:[%s5169_s5 + $0x1ea0] sm:$0xff] %v2179_v20  ;;  %v2185_v23 = vld [vmem:[%s5164_s29 + $0x3d58] sm:$0xff]  ;;  %2182 = vst [vmem:[%s5169_s5 + $0x1ea8] sm:$0xff] %v2181_v21  ;;  %v2187_v24 = vld [vmem:[%s5164_s29 + $0x3d80] sm:$0xff] }
 0x20c   : > { %2184 = vst [vmem:[%s5169_s5 + $0x1eb0] sm:$0xff] %v2183_v22  ;;  %2186 = vst [vmem:[%s5169_s5 + $0x1eb8] sm:$0xff] %v2185_v23  ;;  %v2189_v25 = vld [vmem:[%s5164_s29 + $0x3d88] sm:$0xff]  ;;  %v2191_v26 = vld [vmem:[%s5164_s29 + $0x3d90] sm:$0xff] }
 0x20d   : > { %2188 = vst [vmem:[%s5169_s5 + $0x1ec0] sm:$0xff] %v2187_v24  ;;  %2190 = vst [vmem:[%s5169_s5 + $0x1ec8] sm:$0xff] %v2189_v25  ;;  %v2193_v27 = vld [vmem:[%s5164_s29 + $0x3d98] sm:$0xff]  ;;  %v2195_v28 = vld [vmem:[%s5164_s29 + $0x3dc0] sm:$0xff] }
 0x20e   : > { %2192 = vst [vmem:[%s5169_s5 + $0x1ed0] sm:$0xff] %v2191_v26  ;;  %v2197_v29 = vld [vmem:[%s5164_s29 + $0x3dc8] sm:$0xff]  ;;  %2194 = vst [vmem:[%s5169_s5 + $0x1ed8] sm:$0xff] %v2193_v27  ;;  %v2199_v30 = vld [vmem:[%s5164_s29 + $0x3dd0] sm:$0xff] }
 0x20f   : > { %2196 = vst [vmem:[%s5169_s5 + $0x1ee0] sm:$0xff] %v2195_v28  ;;  %2198 = vst [vmem:[%s5169_s5 + $0x1ee8] sm:$0xff] %v2197_v29  ;;  %v2201_v31 = vld [vmem:[%s5164_s29 + $0x3dd8] sm:$0xff]  ;;  %v2203_v32 = vld [vmem:[%s5164_s29 + $0x3e00] sm:$0xff] }
 0x210   : > { %2200 = vst [vmem:[%s5169_s5 + $0x1ef0] sm:$0xff] %v2199_v30  ;;  %2202 = vst [vmem:[%s5169_s5 + $0x1ef8] sm:$0xff] %v2201_v31  ;;  %v2205_v33 = vld [vmem:[%s5164_s29 + $0x3e08] sm:$0xff]  ;;  %v2207_v34 = vld [vmem:[%s5164_s29 + $0x3e10] sm:$0xff] }
 0x211   : > { %2204 = vst [vmem:[%s5169_s5 + $0x1f00] sm:$0xff] %v2203_v32  ;;  %v2209_v35 = vld [vmem:[%s5164_s29 + $0x3e18] sm:$0xff]  ;;  %2206 = vst [vmem:[%s5169_s5 + $0x1f08] sm:$0xff] %v2205_v33  ;;  %v2211_v36 = vld [vmem:[%s5164_s29 + $0x3e40] sm:$0xff] }
 0x212   : > { %2208 = vst [vmem:[%s5169_s5 + $0x1f10] sm:$0xff] %v2207_v34  ;;  %2210 = vst [vmem:[%s5169_s5 + $0x1f18] sm:$0xff] %v2209_v35  ;;  %v2213_v37 = vld [vmem:[%s5164_s29 + $0x3e48] sm:$0xff]  ;;  %v2215_v38 = vld [vmem:[%s5164_s29 + $0x3e50] sm:$0xff] }
 0x213   : > { %2212 = vst [vmem:[%s5169_s5 + $0x1f20] sm:$0xff] %v2211_v36  ;;  %2214 = vst [vmem:[%s5169_s5 + $0x1f28] sm:$0xff] %v2213_v37  ;;  %v2217_v39 = vld [vmem:[%s5164_s29 + $0x3e58] sm:$0xff]  ;;  %v2219_v40 = vld [vmem:[%s5164_s29 + $0x3e80] sm:$0xff] }
 0x214   : > { %2216 = vst [vmem:[%s5169_s5 + $0x1f30] sm:$0xff] %v2215_v38  ;;  %v2221_v41 = vld [vmem:[%s5164_s29 + $0x3e88] sm:$0xff]  ;;  %2218 = vst [vmem:[%s5169_s5 + $0x1f38] sm:$0xff] %v2217_v39  ;;  %v2223_v42 = vld [vmem:[%s5164_s29 + $0x3e90] sm:$0xff] }
 0x215   : > { %2220 = vst [vmem:[%s5169_s5 + $0x1f40] sm:$0xff] %v2219_v40  ;;  %2222 = vst [vmem:[%s5169_s5 + $0x1f48] sm:$0xff] %v2221_v41  ;;  %v2225_v43 = vld [vmem:[%s5164_s29 + $0x3e98] sm:$0xff]  ;;  %v2227_v44 = vld [vmem:[%s5164_s29 + $0x3ec0] sm:$0xff] }
 0x216   : > { %2224 = vst [vmem:[%s5169_s5 + $0x1f50] sm:$0xff] %v2223_v42  ;;  %2226 = vst [vmem:[%s5169_s5 + $0x1f58] sm:$0xff] %v2225_v43  ;;  %v2229_v45 = vld [vmem:[%s5164_s29 + $0x3ec8] sm:$0xff]  ;;  %v2231_v46 = vld [vmem:[%s5164_s29 + $0x3ed0] sm:$0xff] }
 0x217   : > { %2228 = vst [vmem:[%s5169_s5 + $0x1f60] sm:$0xff] %v2227_v44  ;;  %v2233_v47 = vld [vmem:[%s5164_s29 + $0x3ed8] sm:$0xff]  ;;  %2230 = vst [vmem:[%s5169_s5 + $0x1f68] sm:$0xff] %v2229_v45  ;;  %v2235_v48 = vld [vmem:[%s5164_s29 + $0x3f00] sm:$0xff] }
 0x218   : > { %2232 = vst [vmem:[%s5169_s5 + $0x1f70] sm:$0xff] %v2231_v46  ;;  %2234 = vst [vmem:[%s5169_s5 + $0x1f78] sm:$0xff] %v2233_v47  ;;  %v2237_v49 = vld [vmem:[%s5164_s29 + $0x3f08] sm:$0xff]  ;;  %v2239_v50 = vld [vmem:[%s5164_s29 + $0x3f10] sm:$0xff] }
 0x219   : > { %2236 = vst [vmem:[%s5169_s5 + $0x1f80] sm:$0xff] %v2235_v48  ;;  %2238 = vst [vmem:[%s5169_s5 + $0x1f88] sm:$0xff] %v2237_v49  ;;  %v2241_v51 = vld [vmem:[%s5164_s29 + $0x3f18] sm:$0xff]  ;;  %v2243_v52 = vld [vmem:[%s5164_s29 + $0x3f40] sm:$0xff] }
 0x21a   : > { %2240 = vst [vmem:[%s5169_s5 + $0x1f90] sm:$0xff] %v2239_v50  ;;  %v2245_v53 = vld [vmem:[%s5164_s29 + $0x3f48] sm:$0xff]  ;;  %2242 = vst [vmem:[%s5169_s5 + $0x1f98] sm:$0xff] %v2241_v51  ;;  %v2247_v54 = vld [vmem:[%s5164_s29 + $0x3f50] sm:$0xff] }
 0x21b   : > { %2244 = vst [vmem:[%s5169_s5 + $0x1fa0] sm:$0xff] %v2243_v52  ;;  %2246 = vst [vmem:[%s5169_s5 + $0x1fa8] sm:$0xff] %v2245_v53  ;;  %v2249_v55 = vld [vmem:[%s5164_s29 + $0x3f58] sm:$0xff]  ;;  %v2251_v56 = vld [vmem:[%s5164_s29 + $0x3f80] sm:$0xff] }
 0x21c   : > { %2248 = vst [vmem:[%s5169_s5 + $0x1fb0] sm:$0xff] %v2247_v54  ;;  %2250 = vst [vmem:[%s5169_s5 + $0x1fb8] sm:$0xff] %v2249_v55  ;;  %v2253_v57 = vld [vmem:[%s5164_s29 + $0x3f88] sm:$0xff]  ;;  %v2255_v58 = vld [vmem:[%s5164_s29 + $0x3f90] sm:$0xff] }
 0x21d   : > { %2252 = vst [vmem:[%s5169_s5 + $0x1fc0] sm:$0xff] %v2251_v56  ;;  %v2257_v59 = vld [vmem:[%s5164_s29 + $0x3f98] sm:$0xff]  ;;  %2254 = vst [vmem:[%s5169_s5 + $0x1fc8] sm:$0xff] %v2253_v57  ;;  %v2259_v60 = vld [vmem:[%s5164_s29 + $0x3fc0] sm:$0xff] }
 0x21e   : > { %2256 = vst [vmem:[%s5169_s5 + $0x1fd0] sm:$0xff] %v2255_v58  ;;  %2258 = vst [vmem:[%s5169_s5 + $0x1fd8] sm:$0xff] %v2257_v59  ;;  %v2261_v61 = vld [vmem:[%s5164_s29 + $0x3fc8] sm:$0xff]  ;;  %v2263_v62 = vld [vmem:[%s5164_s29 + $0x3fd0] sm:$0xff] }
 0x21f   : > { %2260 = vst [vmem:[%s5169_s5 + $0x1fe0] sm:$0xff] %v2259_v60  ;;  %2262 = vst [vmem:[%s5169_s5 + $0x1fe8] sm:$0xff] %v2261_v61  ;;  %v2265_v63 = vld [vmem:[%s5164_s29 + $0x3fd8] sm:$0xff] }
 0x220   : > { %2264 = vst [vmem:[%s5169_s5 + $0x1ff0] sm:$0xff] %v2263_v62  ;;  %2266 = vst [vmem:[%s5169_s5 + $0x1ff8] sm:$0xff] %v2265_v63 }
 0x221 PF: > { %p4823_p0 = scmp.ge.s32.totalorder %s5036_s24, 1  ;;  %p2279_p1 = scmp.lt.s32.totalorder %s5036_s24, 5 }
 0x223   : > { %p2280_p2 = pnand %p4823_p0, %p2279_p1 }
 0x224   : > { %s2286_s13 = sand.u32 (!%p2280_p2), 1, %s5012_s18   ;;  %s8469_s14 = sand.u32 (!%p2280_p2), 1, %s5004_s16  }
 0x225   : > { %2283 = sbr.rel (%p2280_p2) target bundleno = 1334 (0x536), region = 55  ;;  %s4824_s25 = sshll.u32 (!%p2280_p2), %s2286_s13, 13 }
 0x226   : > { %s7222_s26 = sshll.u32 (!%p2280_p2), %s8469_s14, 3  ;;  %s4830_s30 = sshll.u32 (!%p2280_p2), %s5024_s21, 2 }
 0x227   : > { %s7225_s8 = scalar_lea.vmem (!%p2280_p2), [#allocation2], %s4824_s25  ;;  %p2340_p3 = scmp.lt.s32.totalorder (!%p2280_p2), %s4830_s30, 7 }
 0x228   : > { %s4826_s29 = sshll.u32 (!%p2280_p2), %s5020_s20, 4  ;;  %p4831_p5 = scmp.ne.s32.totalorder (!%p2280_p2), %s5020_s20, 0 }
 0x229   : > { %p7306_p4 = scmp.lt.s32.totalorder (!%p2280_p2), %s4826_s29, 31 }
 0x22a   : > { %v2418_v0 = vld [vmem:[%s7225_s8 + $0x1e8] sm:$0xff]  ;;  %v2417_v2 = vld [vmem:[%s7225_s8 + $0x1e0] sm:$0xff]  ;;  %s8491_s30 = smov (!%p2340_p3, %s4830_s30), 7 }
 0x22b   : > { %v2546_v1 = vld [vmem:[%s7225_s8 + $0x5e8] sm:$0xff]  ;;  %3469 = vmatprep.subr.mxu0 %v2418_v0  ;;  %v2545_v3 = vld [vmem:[%s7225_s8 + $0x5e0] sm:$0xff]  ;;  %s2342_s6 = scalar_lea.vmem %s8467_s3, %s8491_s30  ;;  %s8493_s29 = smov (!%p7306_p4, %s4826_s29), 31 }
 0x22c   : > { %3540 = vmatprep.subr.mxu1 %v2546_v1  ;;  %v2414_v4 = vld [vmem:[%s7225_s8 + $0x1c8] sm:$0xff]  ;;  %3470 = vmatpush1.msra.mxu0 %v2417_v2  ;;  %v2413_v6 = vld [vmem:[%s7225_s8 + $0x1c0] sm:$0xff]  ;;  %s4827_s13 = sshll.u32 %s8493_s29, 1 }
 0x22d   : > { %v2542_v5 = vld [vmem:[%s7225_s8 + $0x5c8] sm:$0xff]  ;;  %3541 = vmatpush1.msra.mxu1 %v2545_v3  ;;  %v2541_v7 = vld [vmem:[%s7225_s8 + $0x5c0] sm:$0xff]  ;;  %3471 = vmatprep.subr.mxu0 %v2414_v4  ;;  %s7342_s9 = scalar_lea.vmem %s8464_s0, %s4827_s13  ;;  %s7347_s14 = scalar_lea.vmem %s8465_s1, %s4827_s13 }
 0x22e   : > { %v2410_v8 = vld [vmem:[%s7225_s8 + $0x1a8] sm:$0xff]  ;;  %3542 = vmatprep.subr.mxu1 %v2542_v5  ;;  %v2409_v10 = vld [vmem:[%s7225_s8 + $0x1a0] sm:$0xff]  ;;  %3472 = vmatpush1.msra.mxu0 %v2413_v6 }
 0x22f   : > { %v2538_v9 = vld [vmem:[%s7225_s8 + $0x5a8] sm:$0xff]  ;;  %v2537_v11 = vld [vmem:[%s7225_s8 + $0x5a0] sm:$0xff]  ;;  %3543 = vmatpush1.msra.mxu1 %v2541_v7  ;;  %3473 = vmatprep.subr.mxu0 %v2410_v8 }
 0x230   : > { %v2406_v12 = vld [vmem:[%s7225_s8 + $0x188] sm:$0xff]  ;;  %3544 = vmatprep.subr.mxu1 %v2538_v9  ;;  %v2405_v14 = vld [vmem:[%s7225_s8 + $0x180] sm:$0xff]  ;;  %3474 = vmatpush1.msra.mxu0 %v2409_v10 }
 0x231   : > { %v2534_v13 = vld [vmem:[%s7225_s8 + $0x588] sm:$0xff]  ;;  %v2533_v15 = vld [vmem:[%s7225_s8 + $0x580] sm:$0xff]  ;;  %3545 = vmatpush1.msra.mxu1 %v2537_v11  ;;  %3475 = vmatprep.subr.mxu0 %v2406_v12 }
 0x232   : > { %v2402_v16 = vld [vmem:[%s7225_s8 + $0x168] sm:$0xff]  ;;  %3546 = vmatprep.subr.mxu1 %v2534_v13  ;;  %v2401_v18 = vld [vmem:[%s7225_s8 + $0x160] sm:$0xff]  ;;  %3476 = vmatpush1.msra.mxu0 %v2405_v14 }
 0x233   : > { %v2530_v17 = vld [vmem:[%s7225_s8 + $0x568] sm:$0xff]  ;;  %v2529_v19 = vld [vmem:[%s7225_s8 + $0x560] sm:$0xff]  ;;  %3547 = vmatpush1.msra.mxu1 %v2533_v15  ;;  %3477 = vmatprep.subr.mxu0 %v2402_v16 }
 0x234   : > { %v2398_v20 = vld [vmem:[%s7225_s8 + $0x148] sm:$0xff]  ;;  %3548 = vmatprep.subr.mxu1 %v2530_v17  ;;  %v2397_v22 = vld [vmem:[%s7225_s8 + $0x140] sm:$0xff]  ;;  %3478 = vmatpush1.msra.mxu0 %v2401_v18 }
 0x235   : > { %v2526_v21 = vld [vmem:[%s7225_s8 + $0x548] sm:$0xff]  ;;  %v2525_v23 = vld [vmem:[%s7225_s8 + $0x540] sm:$0xff]  ;;  %3549 = vmatpush1.msra.mxu1 %v2529_v19  ;;  %3479 = vmatprep.subr.mxu0 %v2398_v20 }
 0x236   : > { %v2394_v24 = vld [vmem:[%s7225_s8 + $0x128] sm:$0xff]  ;;  %3550 = vmatprep.subr.mxu1 %v2526_v21  ;;  %v2393_v26 = vld [vmem:[%s7225_s8 + $0x120] sm:$0xff]  ;;  %3480 = vmatpush1.msra.mxu0 %v2397_v22 }
 0x237   : > { %v2522_v25 = vld [vmem:[%s7225_s8 + $0x528] sm:$0xff]  ;;  %v2521_v27 = vld [vmem:[%s7225_s8 + $0x520] sm:$0xff]  ;;  %3551 = vmatpush1.msra.mxu1 %v2525_v23  ;;  %3481 = vmatprep.subr.mxu0 %v2394_v24 }
 0x238   : > { %v2390_v28 = vld [vmem:[%s7225_s8 + $0x108] sm:$0xff]  ;;  %3552 = vmatprep.subr.mxu1 %v2522_v25  ;;  %v2389_v30 = vld [vmem:[%s7225_s8 + $0x100] sm:$0xff]  ;;  %3482 = vmatpush1.msra.mxu0 %v2393_v26 }
 0x239   : > { %v2518_v29 = vld [vmem:[%s7225_s8 + $0x508] sm:$0xff]  ;;  %v2517_v31 = vld [vmem:[%s7225_s8 + $0x500] sm:$0xff]  ;;  %3553 = vmatpush1.msra.mxu1 %v2521_v27  ;;  %3483 = vmatprep.subr.mxu0 %v2390_v28 }
 0x23a   : > { %v2386_v32 = vld [vmem:[%s7225_s8 + $0xe8] sm:$0xff]  ;;  %3554 = vmatprep.subr.mxu1 %v2518_v29  ;;  %v2385_v34 = vld [vmem:[%s7225_s8 + $0xe0] sm:$0xff]  ;;  %3484 = vmatpush1.msra.mxu0 %v2389_v30  ;;  %v5038_v30 = vmov 1983009808  }
 0x23b   : > { %v2514_v33 = vld [vmem:[%s7225_s8 + $0x4e8] sm:$0xff]  ;;  %v2513_v35 = vld [vmem:[%s7225_s8 + $0x4e0] sm:$0xff]  ;;  %3555 = vmatpush1.msra.mxu1 %v2517_v31  ;;  %3485 = vmatprep.subr.mxu0 %v2386_v32  ;;  %v3387_v31 = vunpack.c.l.s4 %v5038_v30  ;;  %v3389_v32 = vlaneseq }
 0x23c   : > { %v2382_v36 = vld [vmem:[%s7225_s8 + $0xc8] sm:$0xff]  ;;  %3556 = vmatprep.subr.mxu1 %v2514_v33  ;;  %v2381_v38 = vld [vmem:[%s7225_s8 + $0xc0] sm:$0xff]  ;;  %3486 = vmatpush1.msra.mxu0 %v2385_v34 }
 0x23d   : > { %v2510_v37 = vld [vmem:[%s7225_s8 + $0x4c8] sm:$0xff]  ;;  %v2509_v39 = vld [vmem:[%s7225_s8 + $0x4c0] sm:$0xff]  ;;  %3557 = vmatpush1.msra.mxu1 %v2513_v35  ;;  %3487 = vmatprep.subr.mxu0 %v2382_v36 }
 0x23e   : > { %v2378_v40 = vld [vmem:[%s7225_s8 + $0xa8] sm:$0xff]  ;;  %3558 = vmatprep.subr.mxu1 %v2510_v37  ;;  %v2377_v42 = vld [vmem:[%s7225_s8 + $0xa0] sm:$0xff]  ;;  %3488 = vmatpush1.msra.mxu0 %v2381_v38 }
 0x23f   : > { %v2506_v41 = vld [vmem:[%s7225_s8 + $0x4a8] sm:$0xff]  ;;  %v2505_v43 = vld [vmem:[%s7225_s8 + $0x4a0] sm:$0xff]  ;;  %3559 = vmatpush1.msra.mxu1 %v2509_v39  ;;  %3489 = vmatprep.subr.mxu0 %v2378_v40 }
 0x240   : > { %v2374_v44 = vld [vmem:[%s7225_s8 + $0x88] sm:$0xff]  ;;  %3560 = vmatprep.subr.mxu1 %v2506_v41  ;;  %v2373_v46 = vld [vmem:[%s7225_s8 + $0x80] sm:$0xff]  ;;  %3490 = vmatpush1.msra.mxu0 %v2377_v42 }
 0x241   : > { %v2502_v45 = vld [vmem:[%s7225_s8 + $0x488] sm:$0xff]  ;;  %v2501_v47 = vld [vmem:[%s7225_s8 + $0x480] sm:$0xff]  ;;  %3561 = vmatpush1.msra.mxu1 %v2505_v43  ;;  %3491 = vmatprep.subr.mxu0 %v2374_v44  ;;  %v3388_v43 = vunpack.c.0.s8 %v3387_v31  ;;  %v7361_v44 = vshrl.u32 %v3389_v32, 7 }
 0x242   : > { %v2370_v48 = vld [vmem:[%s7225_s8 + $0x68] sm:$0xff]  ;;  %3562 = vmatprep.subr.mxu1 %v2502_v45  ;;  %v2369_v50 = vld [vmem:[%s7225_s8 + $0x60] sm:$0xff]  ;;  %3492 = vmatpush1.msra.mxu0 %v2373_v46 }
 0x243   : > { %v2498_v49 = vld [vmem:[%s7225_s8 + $0x468] sm:$0xff]  ;;  %v2497_v51 = vld [vmem:[%s7225_s8 + $0x460] sm:$0xff]  ;;  %3563 = vmatpush1.msra.mxu1 %v2501_v47  ;;  %3493 = vmatprep.subr.mxu0 %v2370_v48 }
 0x244   : > { %v2366_v52 = vld [vmem:[%s7225_s8 + $0x48] sm:$0xff]  ;;  %3564 = vmatprep.subr.mxu1 %v2498_v49  ;;  %v2365_v54 = vld [vmem:[%s7225_s8 + $0x40] sm:$0xff]  ;;  %3494 = vmatpush1.msra.mxu0 %v2369_v50 }
 0x245   : > { %v2494_v53 = vld [vmem:[%s7225_s8 + $0x448] sm:$0xff]  ;;  %v2493_v55 = vld [vmem:[%s7225_s8 + $0x440] sm:$0xff]  ;;  %3565 = vmatpush1.msra.mxu1 %v2497_v51  ;;  %3495 = vmatprep.subr.mxu0 %v2366_v52 }
 0x246   : > { %v2362_v56 = vld [vmem:[%s7225_s8 + $0x28] sm:$0xff]  ;;  %3566 = vmatprep.subr.mxu1 %v2494_v53  ;;  %v2361_v58 = vld [vmem:[%s7225_s8 + $0x20] sm:$0xff]  ;;  %3496 = vmatpush1.msra.mxu0 %v2365_v54  ;;  %v7372_v54 = vsub.s32 %v3388_v43, %v7361_v44 }
 0x247   : > { %v2490_v57 = vld [vmem:[%s7225_s8 + $0x428] sm:$0xff]  ;;  %v2489_v59 = vld [vmem:[%s7225_s8 + $0x420] sm:$0xff]  ;;  %3567 = vmatpush1.msra.mxu1 %v2493_v55  ;;  %3497 = vmatprep.subr.mxu0 %v2362_v56 }
 0x248   : > { %v2358_v60 = vld [vmem:[%s7225_s8 + $0x8] sm:$0xff]  ;;  %3568 = vmatprep.subr.mxu1 %v2490_v57  ;;  %v2357_v62 = vld [vmem:[%s7225_s8] sm:$0xff]  ;;  %3498 = vmatpush1.msra.mxu0 %v2361_v58 }
 0x249   : > { %v2486_v61 = vld [vmem:[%s7225_s8 + $0x408] sm:$0xff]  ;;  %v2485_v63 = vld [vmem:[%s7225_s8 + $0x400] sm:$0xff]  ;;  %3569 = vmatpush1.msra.mxu1 %v2489_v59  ;;  %3499 = vmatprep.subr.mxu0 %v2358_v60 }
 0x24a   : > { %v2482_v0 = vld [vmem:[%s7225_s8 + $0x3e8] sm:$0xff]  ;;  %3570 = vmatprep.subr.mxu1 %v2486_v61  ;;  %v2481_v2 = vld [vmem:[%s7225_s8 + $0x3e0] sm:$0xff]  ;;  %3500 = vmatpush1.msra.mxu0 %v2357_v62 }
 0x24b   : > { %v2610_v1 = vld [vmem:[%s7225_s8 + $0x7e8] sm:$0xff]  ;;  %v2609_v3 = vld [vmem:[%s7225_s8 + $0x7e0] sm:$0xff]  ;;  %3571 = vmatpush1.msra.mxu1 %v2485_v63  ;;  %3501 = vmatprep.subr.mxu0 %v2482_v0 }
 0x24c   : > { %v2478_v4 = vld [vmem:[%s7225_s8 + $0x3c8] sm:$0xff]  ;;  %3572 = vmatprep.subr.mxu1 %v2610_v1  ;;  %v2477_v6 = vld [vmem:[%s7225_s8 + $0x3c0] sm:$0xff]  ;;  %3502 = vmatpush2.msra.mxu0 %v2481_v2 }
 0x24d   : > { %v2606_v5 = vld [vmem:[%s7225_s8 + $0x7c8] sm:$0xff]  ;;  %v2605_v7 = vld [vmem:[%s7225_s8 + $0x7c0] sm:$0xff]  ;;  %3573 = vmatpush2.msra.mxu1 %v2609_v3  ;;  %3503 = vmatprep.subr.mxu0 %v2478_v4 }
 0x24e   : > { %v2474_v8 = vld [vmem:[%s7225_s8 + $0x3a8] sm:$0xff]  ;;  %3574 = vmatprep.subr.mxu1 %v2606_v5  ;;  %v2473_v10 = vld [vmem:[%s7225_s8 + $0x3a0] sm:$0xff]  ;;  %3504 = vmatpush2.msra.mxu0 %v2477_v6 }
 0x24f   : > { %v2602_v9 = vld [vmem:[%s7225_s8 + $0x7a8] sm:$0xff]  ;;  %v2601_v11 = vld [vmem:[%s7225_s8 + $0x7a0] sm:$0xff]  ;;  %3575 = vmatpush2.msra.mxu1 %v2605_v7  ;;  %3505 = vmatprep.subr.mxu0 %v2474_v8 }
 0x250   : > { %v2470_v12 = vld [vmem:[%s7225_s8 + $0x388] sm:$0xff]  ;;  %3576 = vmatprep.subr.mxu1 %v2602_v9  ;;  %v2469_v14 = vld [vmem:[%s7225_s8 + $0x380] sm:$0xff]  ;;  %3506 = vmatpush2.msra.mxu0 %v2473_v10 }
 0x251   : > { %v2598_v13 = vld [vmem:[%s7225_s8 + $0x788] sm:$0xff]  ;;  %v2597_v15 = vld [vmem:[%s7225_s8 + $0x780] sm:$0xff]  ;;  %3577 = vmatpush2.msra.mxu1 %v2601_v11  ;;  %3507 = vmatprep.subr.mxu0 %v2470_v12 }
 0x252   : > { %v2466_v16 = vld [vmem:[%s7225_s8 + $0x368] sm:$0xff]  ;;  %3578 = vmatprep.subr.mxu1 %v2598_v13  ;;  %v2465_v18 = vld [vmem:[%s7225_s8 + $0x360] sm:$0xff]  ;;  %3508 = vmatpush2.msra.mxu0 %v2469_v14 }
 0x253   : > { %v2594_v17 = vld [vmem:[%s7225_s8 + $0x768] sm:$0xff]  ;;  %v2593_v19 = vld [vmem:[%s7225_s8 + $0x760] sm:$0xff]  ;;  %3579 = vmatpush2.msra.mxu1 %v2597_v15  ;;  %3509 = vmatprep.subr.mxu0 %v2466_v16 }
 0x254   : > { %v2462_v20 = vld [vmem:[%s7225_s8 + $0x348] sm:$0xff]  ;;  %3580 = vmatprep.subr.mxu1 %v2594_v17  ;;  %v2461_v22 = vld [vmem:[%s7225_s8 + $0x340] sm:$0xff]  ;;  %3510 = vmatpush2.msra.mxu0 %v2465_v18 }
 0x255   : > { %v2590_v21 = vld [vmem:[%s7225_s8 + $0x748] sm:$0xff]  ;;  %v2589_v23 = vld [vmem:[%s7225_s8 + $0x740] sm:$0xff]  ;;  %3581 = vmatpush2.msra.mxu1 %v2593_v19  ;;  %3511 = vmatprep.subr.mxu0 %v2462_v20 }
 0x256   : > { %v2458_v24 = vld [vmem:[%s7225_s8 + $0x328] sm:$0xff]  ;;  %3582 = vmatprep.subr.mxu1 %v2590_v21  ;;  %v2457_v26 = vld [vmem:[%s7225_s8 + $0x320] sm:$0xff]  ;;  %3512 = vmatpush2.msra.mxu0 %v2461_v22 }
 0x257   : > { %v2586_v25 = vld [vmem:[%s7225_s8 + $0x728] sm:$0xff]  ;;  %v2585_v27 = vld [vmem:[%s7225_s8 + $0x720] sm:$0xff]  ;;  %3583 = vmatpush2.msra.mxu1 %v2589_v23  ;;  %3513 = vmatprep.subr.mxu0 %v2458_v24 }
 0x258   : > { %v2454_v28 = vld [vmem:[%s7225_s8 + $0x308] sm:$0xff]  ;;  %3584 = vmatprep.subr.mxu1 %v2586_v25  ;;  %v2453_v33 = vld [vmem:[%s7225_s8 + $0x300] sm:$0xff]  ;;  %3514 = vmatpush2.msra.mxu0 %v2457_v26 }
 0x259   : > { %v2582_v29 = vld [vmem:[%s7225_s8 + $0x708] sm:$0xff]  ;;  %v2581_v34 = vld [vmem:[%s7225_s8 + $0x700] sm:$0xff]  ;;  %3585 = vmatpush2.msra.mxu1 %v2585_v27  ;;  %3515 = vmatprep.subr.mxu0 %v2454_v28 }
 0x25a   : > { %v2450_v35 = vld [vmem:[%s7225_s8 + $0x2e8] sm:$0xff]  ;;  %v2345_v37 = vld [vmem:[%s7342_s9] sm:$0xff]  ;;  %3586 = vmatprep.subr.mxu1 %v2582_v29  ;;  %3516 = vmatpush2.msra.mxu0 %v2453_v33 }
 0x25b   : > { %v2578_v36 = vld [vmem:[%s7225_s8 + $0x6e8] sm:$0xff]  ;;  %v2349_v38 = vld [vmem:[%s7347_s14] sm:$0xff]  ;;  %3587 = vmatpush2.msra.mxu1 %v2581_v34  ;;  %3517 = vmatprep.subr.mxu0 %v2450_v35 }
 0x25c   : > { %v2449_v39 = vld [vmem:[%s7225_s8 + $0x2e0] sm:$0xff]  ;;  %v2446_v41 = vld [vmem:[%s7225_s8 + $0x2c8] sm:$0xff]  ;;  %3588 = vmatprep.subr.mxu1 %v2578_v36  ;;  %v2353_v47 = vmul.f32 %v2349_v38, %v2345_v37 }
 0x25d   : > { %v2577_v40 = vld [vmem:[%s7225_s8 + $0x6e0] sm:$0xff]  ;;  %v2574_v42 = vld [vmem:[%s7225_s8 + $0x6c8] sm:$0xff]  ;;  %3518 = vmatpush2.msra.mxu0 %v2449_v39 }
 0x25e   : > { %v2445_v45 = vld [vmem:[%s7225_s8 + $0x2c0] sm:$0xff]  ;;  %3589 = vmatpush2.msra.mxu1 %v2577_v40  ;;  %v2442_v48 = vld [vmem:[%s7225_s8 + $0x2a8] sm:$0xff]  ;;  %3519 = vmatprep.subr.mxu0 %v2446_v41  ;;  %v3385_v57 = vcombine.high %v2353_v47, %v2353_v47  ;;  %v7383_v0 = vrot.slane %v2353_v47, %v7372_v54 }
 0x25f   : > { %v2573_v46 = vld [vmem:[%s7225_s8 + $0x6c0] sm:$0xff]  ;;  %v2570_v49 = vld [vmem:[%s7225_s8 + $0x6a8] sm:$0xff]  ;;  %3590 = vmatprep.subr.mxu1 %v2574_v42  ;;  %3520 = vmatpush2.msra.mxu0 %v2445_v45 }
 0x260   : > { %v2441_v50 = vld [vmem:[%s7225_s8 + $0x2a0] sm:$0xff]  ;;  %3591 = vmatpush2.msra.mxu1 %v2573_v46  ;;  %v2438_v52 = vld [vmem:[%s7225_s8 + $0x288] sm:$0xff]  ;;  %3521 = vmatprep.subr.mxu0 %v2442_v48  ;;  %v7388_v3 = vrot.slane %v3385_v57, %v7372_v54  ;;  %v7398_v10 = vcombine.high %v7383_v0, %v7383_v0 }
 0x261   : > { %v2569_v51 = vld [vmem:[%s7225_s8 + $0x6a0] sm:$0xff]  ;;  %v2566_v53 = vld [vmem:[%s7225_s8 + $0x688] sm:$0xff]  ;;  %3592 = vmatprep.subr.mxu1 %v2570_v49  ;;  %3522 = vmatpush2.msra.mxu0 %v2441_v50 }
 0x262   : > { %v2437_v55 = vld [vmem:[%s7225_s8 + $0x280] sm:$0xff]  ;;  %3593 = vmatpush2.msra.mxu1 %v2569_v51  ;;  %v2434_v58 = vld [vmem:[%s7225_s8 + $0x268] sm:$0xff]  ;;  %3523 = vmatprep.subr.mxu0 %v2438_v52  ;;  %v7403_v12 = vcombine.high %v7388_v3, %v7388_v3 }
 0x263   : > { %v2565_v56 = vld [vmem:[%s7225_s8 + $0x680] sm:$0xff]  ;;  %v2562_v59 = vld [vmem:[%s7225_s8 + $0x668] sm:$0xff]  ;;  %3594 = vmatprep.subr.mxu1 %v2566_v53  ;;  %3524 = vmatpush2.msra.mxu0 %v2437_v55 }
 0x264   : > { %v2433_v60 = vld [vmem:[%s7225_s8 + $0x260] sm:$0xff]  ;;  %3595 = vmatpush2.msra.mxu1 %v2565_v56  ;;  %v2430_v62 = vld [vmem:[%s7225_s8 + $0x248] sm:$0xff]  ;;  %3525 = vmatprep.subr.mxu0 %v2434_v58 }
 0x265   : > { %v2561_v61 = vld [vmem:[%s7225_s8 + $0x660] sm:$0xff]  ;;  %v2558_v63 = vld [vmem:[%s7225_s8 + $0x648] sm:$0xff]  ;;  %3596 = vmatprep.subr.mxu1 %v2562_v59  ;;  %3526 = vmatpush2.msra.mxu0 %v2433_v60 }
 0x266   : > { %v2429_v1 = vld [vmem:[%s7225_s8 + $0x240] sm:$0xff]  ;;  %3597 = vmatpush2.msra.mxu1 %v2561_v61  ;;  %v2426_v4 = vld [vmem:[%s7225_s8 + $0x228] sm:$0xff]  ;;  %3527 = vmatprep.subr.mxu0 %v2430_v62 }
 0x267   : > { %v2557_v2 = vld [vmem:[%s7225_s8 + $0x640] sm:$0xff]  ;;  %v2554_v5 = vld [vmem:[%s7225_s8 + $0x628] sm:$0xff]  ;;  %3598 = vmatprep.subr.mxu1 %v2558_v63  ;;  %3528 = vmatpush2.msra.mxu0 %v2429_v1 }
 0x268   : > { %v2425_v6 = vld [vmem:[%s7225_s8 + $0x220] sm:$0xff]  ;;  %3599 = vmatpush2.msra.mxu1 %v2557_v2  ;;  %v2422_v8 = vld [vmem:[%s7225_s8 + $0x208] sm:$0xff]  ;;  %3529 = vmatprep.subr.mxu0 %v2426_v4 }
 0x269   : > { %v2553_v7 = vld [vmem:[%s7225_s8 + $0x620] sm:$0xff]  ;;  %v2550_v9 = vld [vmem:[%s7225_s8 + $0x608] sm:$0xff]  ;;  %3600 = vmatprep.subr.mxu1 %v2554_v5  ;;  %3530 = vmatpush2.msra.mxu0 %v2425_v6 }
 0x26a   : > { %v2421_v11 = vld [vmem:[%s7225_s8 + $0x200] sm:$0xff]  ;;  %3601 = vmatpush2.msra.mxu1 %v2553_v7  ;;  %3531 = vmatprep.subr.mxu0 %v2422_v8  ;;  %v2674_v14 = vld [vmem:[%s7225_s8 + $0x9e8] sm:$0xff] }
 0x26b   : > { %v2549_v13 = vld [vmem:[%s7225_s8 + $0x600] sm:$0xff]  ;;  %3602 = vmatprep.subr.mxu1 %v2550_v9  ;;  %3532 = vmatpush2.msra.mxu0 %v2421_v11  ;;  %v2802_v15 = vld [vmem:[%s7225_s8 + $0xde8] sm:$0xff] }
 0x26c   : > { %3533 = vmatprep.mubr.f32.mxu0 %v7398_v10  ;;  %3603 = vmatpush2.msra.mxu1 %v2549_v13  ;;  %v2673_v16 = vld [vmem:[%s7225_s8 + $0x9e0] sm:$0xff]  ;;  %v2670_v18 = vld [vmem:[%s7225_s8 + $0x9c8] sm:$0xff] }
 0x26d   : > { %3604 = vmatprep.mubr.f32.mxu1 %v7403_v12  ;;  %v2801_v17 = vld [vmem:[%s7225_s8 + $0xde0] sm:$0xff]  ;;  %3534 = vmatmul.mubr.f32.vlgmr.msra.gmra.mxu0 %v7383_v0  ;;  %v2798_v19 = vld [vmem:[%s7225_s8 + $0xdc8] sm:$0xff] }
 0x26e   : > { %3605 = vmatmul.mubr.f32.vlgmr.msra.gmra.mxu1 %v7388_v3  ;;  %3611 = vmatprep.subr.mxu0 %v2674_v14  ;;  %v2669_v20 = vld [vmem:[%s7225_s8 + $0x9c0] sm:$0xff]  ;;  %v2666_v22 = vld [vmem:[%s7225_s8 + $0x9a8] sm:$0xff] }
 0x26f   : > { %3682 = vmatprep.subr.mxu1 %v2802_v15  ;;  %v2797_v21 = vld [vmem:[%s7225_s8 + $0xdc0] sm:$0xff]  ;;  %3612 = vmatpush1.msra.mxu0 %v2673_v16  ;;  %v2794_v23 = vld [vmem:[%s7225_s8 + $0xda8] sm:$0xff] }
 0x270   : > { %3683 = vmatpush1.msra.mxu1 %v2801_v17  ;;  %3613 = vmatprep.subr.mxu0 %v2670_v18  ;;  %v2665_v24 = vld [vmem:[%s7225_s8 + $0x9a0] sm:$0xff]  ;;  %v2662_v26 = vld [vmem:[%s7225_s8 + $0x988] sm:$0xff] }
 0x271   : > { %3684 = vmatprep.subr.mxu1 %v2798_v19  ;;  %v2793_v25 = vld [vmem:[%s7225_s8 + $0xda0] sm:$0xff]  ;;  %3614 = vmatpush1.msra.mxu0 %v2669_v20  ;;  %v2790_v27 = vld [vmem:[%s7225_s8 + $0xd88] sm:$0xff] }
 0x272   : > { %3685 = vmatpush1.msra.mxu1 %v2797_v21  ;;  %3615 = vmatprep.subr.mxu0 %v2666_v22  ;;  %v2661_v28 = vld [vmem:[%s7225_s8 + $0x980] sm:$0xff]  ;;  %v2658_v30 = vld [vmem:[%s7225_s8 + $0x968] sm:$0xff] }
 0x273   : > { %3686 = vmatprep.subr.mxu1 %v2794_v23  ;;  %v2789_v29 = vld [vmem:[%s7225_s8 + $0xd80] sm:$0xff]  ;;  %3616 = vmatpush1.msra.mxu0 %v2665_v24  ;;  %v2786_v31 = vld [vmem:[%s7225_s8 + $0xd68] sm:$0xff] }
 0x274   : > { %3687 = vmatpush1.msra.mxu1 %v2793_v25  ;;  %3617 = vmatprep.subr.mxu0 %v2662_v26  ;;  %v2657_v32 = vld [vmem:[%s7225_s8 + $0x960] sm:$0xff]  ;;  %v2654_v34 = vld [vmem:[%s7225_s8 + $0x948] sm:$0xff] }
 0x275   : > { %3688 = vmatprep.subr.mxu1 %v2790_v27  ;;  %v2785_v33 = vld [vmem:[%s7225_s8 + $0xd60] sm:$0xff]  ;;  %3618 = vmatpush1.msra.mxu0 %v2661_v28  ;;  %v2782_v35 = vld [vmem:[%s7225_s8 + $0xd48] sm:$0xff] }
 0x276   : > { %3689 = vmatpush1.msra.mxu1 %v2789_v29  ;;  %3619 = vmatprep.subr.mxu0 %v2658_v30  ;;  %v2653_v36 = vld [vmem:[%s7225_s8 + $0x940] sm:$0xff]  ;;  %v2650_v38 = vld [vmem:[%s7225_s8 + $0x928] sm:$0xff] }
 0x277   : > { %3690 = vmatprep.subr.mxu1 %v2786_v31  ;;  %v2781_v37 = vld [vmem:[%s7225_s8 + $0xd40] sm:$0xff]  ;;  %3620 = vmatpush1.msra.mxu0 %v2657_v32  ;;  %v2778_v39 = vld [vmem:[%s7225_s8 + $0xd28] sm:$0xff] }
 0x278   : > { %3691 = vmatpush1.msra.mxu1 %v2785_v33  ;;  %3621 = vmatprep.subr.mxu0 %v2654_v34  ;;  %v2649_v40 = vld [vmem:[%s7225_s8 + $0x920] sm:$0xff]  ;;  %v2646_v42 = vld [vmem:[%s7225_s8 + $0x908] sm:$0xff] }
 0x279   : > { %3692 = vmatprep.subr.mxu1 %v2782_v35  ;;  %v2777_v41 = vld [vmem:[%s7225_s8 + $0xd20] sm:$0xff]  ;;  %3622 = vmatpush1.msra.mxu0 %v2653_v36  ;;  %v2774_v43 = vld [vmem:[%s7225_s8 + $0xd08] sm:$0xff] }
 0x27a   : > { %3693 = vmatpush1.msra.mxu1 %v2781_v37  ;;  %3623 = vmatprep.subr.mxu0 %v2650_v38  ;;  %v2645_v45 = vld [vmem:[%s7225_s8 + $0x900] sm:$0xff]  ;;  %v2642_v47 = vld [vmem:[%s7225_s8 + $0x8e8] sm:$0xff] }
 0x27b   : > { %3694 = vmatprep.subr.mxu1 %v2778_v39  ;;  %v2773_v46 = vld [vmem:[%s7225_s8 + $0xd00] sm:$0xff]  ;;  %3624 = vmatpush1.msra.mxu0 %v2649_v40  ;;  %v2770_v48 = vld [vmem:[%s7225_s8 + $0xce8] sm:$0xff] }
 0x27c   : > { %3695 = vmatpush1.msra.mxu1 %v2777_v41  ;;  %3625 = vmatprep.subr.mxu0 %v2646_v42  ;;  %v2641_v49 = vld [vmem:[%s7225_s8 + $0x8e0] sm:$0xff]  ;;  %v2638_v51 = vld [vmem:[%s7225_s8 + $0x8c8] sm:$0xff] }
 0x27d   : > { %3696 = vmatprep.subr.mxu1 %v2774_v43  ;;  %v2769_v50 = vld [vmem:[%s7225_s8 + $0xce0] sm:$0xff]  ;;  %3626 = vmatpush1.msra.mxu0 %v2645_v45  ;;  %v2766_v52 = vld [vmem:[%s7225_s8 + $0xcc8] sm:$0xff] }
 0x27e   : > { %3697 = vmatpush1.msra.mxu1 %v2773_v46  ;;  %3627 = vmatprep.subr.mxu0 %v2642_v47  ;;  %v2637_v53 = vld [vmem:[%s7225_s8 + $0x8c0] sm:$0xff]  ;;  %v2634_v56 = vld [vmem:[%s7225_s8 + $0x8a8] sm:$0xff] }
 0x27f   : > { %3698 = vmatprep.subr.mxu1 %v2770_v48  ;;  %v2765_v55 = vld [vmem:[%s7225_s8 + $0xcc0] sm:$0xff]  ;;  %3628 = vmatpush1.msra.mxu0 %v2641_v49  ;;  %v2762_v57 = vld [vmem:[%s7225_s8 + $0xca8] sm:$0xff] }
 0x280   : > { %3699 = vmatpush1.msra.mxu1 %v2769_v50  ;;  %3629 = vmatprep.subr.mxu0 %v2638_v51  ;;  %v2633_v58 = vld [vmem:[%s7225_s8 + $0x8a0] sm:$0xff]  ;;  %v2630_v60 = vld [vmem:[%s7225_s8 + $0x888] sm:$0xff] }
 0x281   : > { %3700 = vmatprep.subr.mxu1 %v2766_v52  ;;  %v2761_v59 = vld [vmem:[%s7225_s8 + $0xca0] sm:$0xff]  ;;  %3630 = vmatpush1.msra.mxu0 %v2637_v53  ;;  %v2758_v61 = vld [vmem:[%s7225_s8 + $0xc88] sm:$0xff] }
 0x282   : > { %3701 = vmatpush1.msra.mxu1 %v2765_v55  ;;  %3631 = vmatprep.subr.mxu0 %v2634_v56  ;;  %v2629_v62 = vld [vmem:[%s7225_s8 + $0x880] sm:$0xff]  ;;  %v2626_v1 = vld [vmem:[%s7225_s8 + $0x868] sm:$0xff] }
 0x283   : > { %3702 = vmatprep.subr.mxu1 %v2762_v57  ;;  %v2757_v63 = vld [vmem:[%s7225_s8 + $0xc80] sm:$0xff]  ;;  %3632 = vmatpush1.msra.mxu0 %v2633_v58  ;;  %v2754_v2 = vld [vmem:[%s7225_s8 + $0xc68] sm:$0xff] }
 0x284   : > { %3703 = vmatpush1.msra.mxu1 %v2761_v59  ;;  %3633 = vmatprep.subr.mxu0 %v2630_v60  ;;  %v2625_v4 = vld [vmem:[%s7225_s8 + $0x860] sm:$0xff]  ;;  %v2622_v6 = vld [vmem:[%s7225_s8 + $0x848] sm:$0xff] }
 0x285   : > { %3704 = vmatprep.subr.mxu1 %v2758_v61  ;;  %v2753_v5 = vld [vmem:[%s7225_s8 + $0xc60] sm:$0xff]  ;;  %3634 = vmatpush1.msra.mxu0 %v2629_v62  ;;  %v2750_v7 = vld [vmem:[%s7225_s8 + $0xc48] sm:$0xff] }
 0x286   : > { %3705 = vmatpush1.msra.mxu1 %v2757_v63  ;;  %3635 = vmatprep.subr.mxu0 %v2626_v1  ;;  %v2621_v8 = vld [vmem:[%s7225_s8 + $0x840] sm:$0xff]  ;;  %v2618_v11 = vld [vmem:[%s7225_s8 + $0x828] sm:$0xff] }
 0x287   : > { %3706 = vmatprep.subr.mxu1 %v2754_v2  ;;  %v2749_v9 = vld [vmem:[%s7225_s8 + $0xc40] sm:$0xff]  ;;  %3636 = vmatpush1.msra.mxu0 %v2625_v4  ;;  %v2746_v13 = vld [vmem:[%s7225_s8 + $0xc28] sm:$0xff] }
 0x288   : > { %3707 = vmatpush1.msra.mxu1 %v2753_v5  ;;  %3637 = vmatprep.subr.mxu0 %v2622_v6  ;;  %v2617_v14 = vld [vmem:[%s7225_s8 + $0x820] sm:$0xff]  ;;  %v2614_v16 = vld [vmem:[%s7225_s8 + $0x808] sm:$0xff] }
 0x289   : > { %3708 = vmatprep.subr.mxu1 %v2750_v7  ;;  %v2745_v15 = vld [vmem:[%s7225_s8 + $0xc20] sm:$0xff]  ;;  %3638 = vmatpush1.msra.mxu0 %v2621_v8  ;;  %v2742_v17 = vld [vmem:[%s7225_s8 + $0xc08] sm:$0xff] }
 0x28a   : > { %3709 = vmatpush1.msra.mxu1 %v2749_v9  ;;  %3639 = vmatprep.subr.mxu0 %v2618_v11  ;;  %v2613_v18 = vld [vmem:[%s7225_s8 + $0x800] sm:$0xff]  ;;  %v2738_v20 = vld [vmem:[%s7225_s8 + $0xbe8] sm:$0xff] }
 0x28b   : > { %3710 = vmatprep.subr.mxu1 %v2746_v13  ;;  %v2741_v19 = vld [vmem:[%s7225_s8 + $0xc00] sm:$0xff]  ;;  %3640 = vmatpush1.msra.mxu0 %v2617_v14  ;;  %v2866_v21 = vld [vmem:[%s7225_s8 + $0xfe8] sm:$0xff] }
 0x28c   : > { %3711 = vmatpush1.msra.mxu1 %v2745_v15  ;;  %3641 = vmatprep.subr.mxu0 %v2614_v16  ;;  %v2737_v22 = vld [vmem:[%s7225_s8 + $0xbe0] sm:$0xff]  ;;  %v2734_v24 = vld [vmem:[%s7225_s8 + $0xbc8] sm:$0xff] }
 0x28d   : > { %3712 = vmatprep.subr.mxu1 %v2742_v17  ;;  %v2865_v23 = vld [vmem:[%s7225_s8 + $0xfe0] sm:$0xff]  ;;  %3642 = vmatpush1.msra.mxu0 %v2613_v18  ;;  %v2862_v25 = vld [vmem:[%s7225_s8 + $0xfc8] sm:$0xff] }
 0x28e   : > { %3713 = vmatpush1.msra.mxu1 %v2741_v19  ;;  %3643 = vmatprep.subr.mxu0 %v2738_v20  ;;  %v2733_v26 = vld [vmem:[%s7225_s8 + $0xbc0] sm:$0xff]  ;;  %v2730_v28 = vld [vmem:[%s7225_s8 + $0xba8] sm:$0xff] }
 0x28f   : > { %3714 = vmatprep.subr.mxu1 %v2866_v21  ;;  %v2861_v27 = vld [vmem:[%s7225_s8 + $0xfc0] sm:$0xff]  ;;  %3644 = vmatpush2.msra.mxu0 %v2737_v22  ;;  %v2858_v29 = vld [vmem:[%s7225_s8 + $0xfa8] sm:$0xff] }
 0x290   : > { %3715 = vmatpush2.msra.mxu1 %v2865_v23  ;;  %3645 = vmatprep.subr.mxu0 %v2734_v24  ;;  %v2729_v30 = vld [vmem:[%s7225_s8 + $0xba0] sm:$0xff]  ;;  %v2726_v32 = vld [vmem:[%s7225_s8 + $0xb88] sm:$0xff] }
 0x291   : > { %3716 = vmatprep.subr.mxu1 %v2862_v25  ;;  %v2857_v31 = vld [vmem:[%s7225_s8 + $0xfa0] sm:$0xff]  ;;  %3646 = vmatpush2.msra.mxu0 %v2733_v26  ;;  %v2854_v33 = vld [vmem:[%s7225_s8 + $0xf88] sm:$0xff] }
 0x292   : > { %3717 = vmatpush2.msra.mxu1 %v2861_v27  ;;  %3647 = vmatprep.subr.mxu0 %v2730_v28  ;;  %v2725_v34 = vld [vmem:[%s7225_s8 + $0xb80] sm:$0xff]  ;;  %v2722_v36 = vld [vmem:[%s7225_s8 + $0xb68] sm:$0xff] }
 0x293   : > { %3718 = vmatprep.subr.mxu1 %v2858_v29  ;;  %v2853_v35 = vld [vmem:[%s7225_s8 + $0xf80] sm:$0xff]  ;;  %3648 = vmatpush2.msra.mxu0 %v2729_v30  ;;  %v2850_v37 = vld [vmem:[%s7225_s8 + $0xf68] sm:$0xff] }
 0x294   : > { %3719 = vmatpush2.msra.mxu1 %v2857_v31  ;;  %3649 = vmatprep.subr.mxu0 %v2726_v32  ;;  %v2721_v38 = vld [vmem:[%s7225_s8 + $0xb60] sm:$0xff]  ;;  %v2718_v40 = vld [vmem:[%s7225_s8 + $0xb48] sm:$0xff] }
 0x295   : > { %3720 = vmatprep.subr.mxu1 %v2854_v33  ;;  %v2849_v39 = vld [vmem:[%s7225_s8 + $0xf60] sm:$0xff]  ;;  %3650 = vmatpush2.msra.mxu0 %v2725_v34  ;;  %v2846_v41 = vld [vmem:[%s7225_s8 + $0xf48] sm:$0xff] }
 0x296   : > { %3721 = vmatpush2.msra.mxu1 %v2853_v35  ;;  %3651 = vmatprep.subr.mxu0 %v2722_v36  ;;  %v2717_v42 = vld [vmem:[%s7225_s8 + $0xb40] sm:$0xff]  ;;  %v2714_v45 = vld [vmem:[%s7225_s8 + $0xb28] sm:$0xff] }
 0x297   : > { %3722 = vmatprep.subr.mxu1 %v2850_v37  ;;  %v2845_v43 = vld [vmem:[%s7225_s8 + $0xf40] sm:$0xff]  ;;  %3652 = vmatpush2.msra.mxu0 %v2721_v38  ;;  %v2842_v46 = vld [vmem:[%s7225_s8 + $0xf28] sm:$0xff] }
 0x298   : > { %3723 = vmatpush2.msra.mxu1 %v2849_v39  ;;  %3653 = vmatprep.subr.mxu0 %v2718_v40  ;;  %v2713_v47 = vld [vmem:[%s7225_s8 + $0xb20] sm:$0xff]  ;;  %v2710_v49 = vld [vmem:[%s7225_s8 + $0xb08] sm:$0xff] }
 0x299   : > { %3724 = vmatprep.subr.mxu1 %v2846_v41  ;;  %v2841_v48 = vld [vmem:[%s7225_s8 + $0xf20] sm:$0xff]  ;;  %3654 = vmatpush2.msra.mxu0 %v2717_v42  ;;  %v2838_v50 = vld [vmem:[%s7225_s8 + $0xf08] sm:$0xff] }
 0x29a   : > { %3725 = vmatpush2.msra.mxu1 %v2845_v43  ;;  %3655 = vmatprep.subr.mxu0 %v2714_v45  ;;  %v2709_v51 = vld [vmem:[%s7225_s8 + $0xb00] sm:$0xff]  ;;  %v2706_v53 = vld [vmem:[%s7225_s8 + $0xae8] sm:$0xff] }
 0x29b   : > { %3726 = vmatprep.subr.mxu1 %v2842_v46  ;;  %v2837_v52 = vld [vmem:[%s7225_s8 + $0xf00] sm:$0xff]  ;;  %3656 = vmatpush2.msra.mxu0 %v2713_v47  ;;  %v2834_v55 = vld [vmem:[%s7225_s8 + $0xee8] sm:$0xff] }
 0x29c   : > { %3727 = vmatpush2.msra.mxu1 %v2841_v48  ;;  %v2705_v56 = vld [vmem:[%s7225_s8 + $0xae0] sm:$0xff]  ;;  %3657 = vmatprep.subr.mxu0 %v2710_v49  ;;  %v2346_v58 = vld [vmem:[%s7342_s9 + $0x8] sm:$0xff] }
 0x29d   : > { %3728 = vmatprep.subr.mxu1 %v2838_v50  ;;  %v2833_v57 = vld [vmem:[%s7225_s8 + $0xee0] sm:$0xff]  ;;  %v2350_v59 = vld [vmem:[%s7347_s14 + $0x8] sm:$0xff]  ;;  %3658 = vmatpush2.msra.mxu0 %v2709_v51 }
 0x29e   : > { %3729 = vmatpush2.msra.mxu1 %v2837_v52  ;;  %v2702_v60 = vld [vmem:[%s7225_s8 + $0xac8] sm:$0xff]  ;;  %3659 = vmatprep.subr.mxu0 %v2706_v53  ;;  %v2701_v62 = vld [vmem:[%s7225_s8 + $0xac0] sm:$0xff]  ;;  %v2354_v4 = vmul.f32 %v2350_v59, %v2346_v58 }
 0x29f   : > { %v2830_v61 = vld [vmem:[%s7225_s8 + $0xec8] sm:$0xff]  ;;  %3730 = vmatprep.subr.mxu1 %v2834_v55  ;;  %v2829_v63 = vld [vmem:[%s7225_s8 + $0xec0] sm:$0xff]  ;;  %3660 = vmatpush2.msra.mxu0 %v2705_v56 }
 0x2a0   : > { %3731 = vmatpush2.msra.mxu1 %v2833_v57  ;;  %v2698_v1 = vld [vmem:[%s7225_s8 + $0xaa8] sm:$0xff]  ;;  %3661 = vmatprep.subr.mxu0 %v2702_v60  ;;  %v2697_v5 = vld [vmem:[%s7225_s8 + $0xaa0] sm:$0xff]  ;;  %v3402_v15 = vcombine.high %v2354_v4, %v2354_v4  ;;  %v7531_v20 = vrot.slane %v2354_v4, %v7372_v54 }
 0x2a1   : > { %v2826_v2 = vld [vmem:[%s7225_s8 + $0xea8] sm:$0xff]  ;;  %3732 = vmatprep.subr.mxu1 %v2830_v61  ;;  %v2825_v6 = vld [vmem:[%s7225_s8 + $0xea0] sm:$0xff]  ;;  %3662 = vmatpush2.msra.mxu0 %v2701_v62 }
 0x2a2   : > { %3733 = vmatpush2.msra.mxu1 %v2829_v63  ;;  %v2694_v7 = vld [vmem:[%s7225_s8 + $0xa88] sm:$0xff]  ;;  %3663 = vmatprep.subr.mxu0 %v2698_v1  ;;  %v2693_v9 = vld [vmem:[%s7225_s8 + $0xa80] sm:$0xff]  ;;  %v7538_v25 = vrot.slane %v3402_v15, %v7372_v54  ;;  %v7546_v30 = vcombine.high %v7531_v20, %v7531_v20 }
 0x2a3   : > { %v2822_v8 = vld [vmem:[%s7225_s8 + $0xe88] sm:$0xff]  ;;  %3734 = vmatprep.subr.mxu1 %v2826_v2  ;;  %v2821_v11 = vld [vmem:[%s7225_s8 + $0xe80] sm:$0xff]  ;;  %3664 = vmatpush2.msra.mxu0 %v2697_v5 }
 0x2a4   : > { %3735 = vmatpush2.msra.mxu1 %v2825_v6  ;;  %v2690_v13 = vld [vmem:[%s7225_s8 + $0xa68] sm:$0xff]  ;;  %3665 = vmatprep.subr.mxu0 %v2694_v7  ;;  %v2689_v16 = vld [vmem:[%s7225_s8 + $0xa60] sm:$0xff]  ;;  %v7552_v33 = vcombine.high %v7538_v25, %v7538_v25 }
 0x2a5   : > { %v2818_v14 = vld [vmem:[%s7225_s8 + $0xe68] sm:$0xff]  ;;  %3736 = vmatprep.subr.mxu1 %v2822_v8  ;;  %v2817_v17 = vld [vmem:[%s7225_s8 + $0xe60] sm:$0xff]  ;;  %3666 = vmatpush2.msra.mxu0 %v2693_v9 }
 0x2a6   : > { %3737 = vmatpush2.msra.mxu1 %v2821_v11  ;;  %v2686_v18 = vld [vmem:[%s7225_s8 + $0xa48] sm:$0xff]  ;;  %3667 = vmatprep.subr.mxu0 %v2690_v13  ;;  %v2685_v21 = vld [vmem:[%s7225_s8 + $0xa40] sm:$0xff] }
 0x2a7   : > { %v2814_v19 = vld [vmem:[%s7225_s8 + $0xe48] sm:$0xff]  ;;  %3738 = vmatprep.subr.mxu1 %v2818_v14  ;;  %v2813_v22 = vld [vmem:[%s7225_s8 + $0xe40] sm:$0xff]  ;;  %3668 = vmatpush2.msra.mxu0 %v2689_v16 }
 0x2a8   : > { %3739 = vmatpush2.msra.mxu1 %v2817_v17  ;;  %v2682_v23 = vld [vmem:[%s7225_s8 + $0xa28] sm:$0xff]  ;;  %3669 = vmatprep.subr.mxu0 %v2686_v18  ;;  %v2681_v26 = vld [vmem:[%s7225_s8 + $0xa20] sm:$0xff] }
 0x2a9   : > { %v2810_v24 = vld [vmem:[%s7225_s8 + $0xe28] sm:$0xff]  ;;  %3740 = vmatprep.subr.mxu1 %v2814_v19  ;;  %v2809_v27 = vld [vmem:[%s7225_s8 + $0xe20] sm:$0xff]  ;;  %3670 = vmatpush2.msra.mxu0 %v2685_v21 }
 0x2aa   : > { %3741 = vmatpush2.msra.mxu1 %v2813_v22  ;;  %v2678_v28 = vld [vmem:[%s7225_s8 + $0xa08] sm:$0xff]  ;;  %3671 = vmatprep.subr.mxu0 %v2682_v23  ;;  %v2677_v31 = vld [vmem:[%s7225_s8 + $0xa00] sm:$0xff] }
 0x2ab   : > { %v2806_v29 = vld [vmem:[%s7225_s8 + $0xe08] sm:$0xff]  ;;  %3742 = vmatprep.subr.mxu1 %v2810_v24  ;;  %3672 = vmatpush2.msra.mxu0 %v2681_v26  ;;  %v2805_v32 = vld [vmem:[%s7225_s8 + $0xe00] sm:$0xff] }
 0x2ac   : > { %3743 = vmatpush2.msra.mxu1 %v2809_v27  ;;  %3673 = vmatprep.subr.mxu0 %v2678_v28  ;;  %v2930_v34 = vld [vmem:[%s7225_s8 + $0x11e8] sm:$0xff]  ;;  %v2929_v36 = vld [vmem:[%s7225_s8 + $0x11e0] sm:$0xff] }
 0x2ad   : > { %3744 = vmatprep.subr.mxu1 %v2806_v29  ;;  %3674 = vmatpush2.msra.mxu0 %v2677_v31  ;;  %v3058_v35 = vld [vmem:[%s7225_s8 + $0x15e8] sm:$0xff]  ;;  %v3057_v37 = vld [vmem:[%s7225_s8 + $0x15e0] sm:$0xff] }
 0x2ae   : > { %3675 = vmatprep.mubr.f32.mxu0 %v7546_v30  ;;  %3745 = vmatpush2.msra.mxu1 %v2805_v32  ;;  %v2926_v38 = vld [vmem:[%s7225_s8 + $0x11c8] sm:$0xff]  ;;  %v2925_v40 = vld [vmem:[%s7225_s8 + $0x11c0] sm:$0xff] }
 0x2af   : > { %3676 = vmatmul.mubr.f32.vlgmr.msra.gmra.mxu0 %v7531_v20  ;;  %3746 = vmatprep.mubr.f32.mxu1 %v7552_v33  ;;  %v3054_v39 = vld [vmem:[%s7225_s8 + $0x15c8] sm:$0xff]  ;;  %v3053_v41 = vld [vmem:[%s7225_s8 + $0x15c0] sm:$0xff] }
 0x2b0   : > { %3753 = vmatprep.subr.mxu0 %v2930_v34  ;;  %3824 = vmatprep.subr.mxu1 %v3058_v35  ;;  %v2922_v42 = vld [vmem:[%s7225_s8 + $0x11a8] sm:$0xff]  ;;  %v2921_v45 = vld [vmem:[%s7225_s8 + $0x11a0] sm:$0xff] }
 0x2b1   : > { %3747 = vmatmul.mubr.f32.vlgmr.msra.gmra.mxu1 %v7538_v25  ;;  %3754 = vmatpush1.msra.mxu0 %v2929_v36  ;;  %v3050_v43 = vld [vmem:[%s7225_s8 + $0x15a8] sm:$0xff]  ;;  %v3049_v46 = vld [vmem:[%s7225_s8 + $0x15a0] sm:$0xff] }
 0x2b2   : > { %3825 = vmatpush1.msra.mxu1 %v3057_v37  ;;  %3755 = vmatprep.subr.mxu0 %v2926_v38  ;;  %v2918_v47 = vld [vmem:[%s7225_s8 + $0x1188] sm:$0xff]  ;;  %v2917_v49 = vld [vmem:[%s7225_s8 + $0x1180] sm:$0xff] }
 0x2b3   : > { %3826 = vmatprep.subr.mxu1 %v3054_v39  ;;  %3756 = vmatpush1.msra.mxu0 %v2925_v40  ;;  %v3046_v48 = vld [vmem:[%s7225_s8 + $0x1588] sm:$0xff]  ;;  %v3045_v50 = vld [vmem:[%s7225_s8 + $0x1580] sm:$0xff] }
 0x2b4   : > { %3827 = vmatpush1.msra.mxu1 %v3053_v41  ;;  %3757 = vmatprep.subr.mxu0 %v2922_v42  ;;  %v2914_v51 = vld [vmem:[%s7225_s8 + $0x1168] sm:$0xff]  ;;  %v2913_v53 = vld [vmem:[%s7225_s8 + $0x1160] sm:$0xff] }
 0x2b5   : > { %3828 = vmatprep.subr.mxu1 %v3050_v43  ;;  %3758 = vmatpush1.msra.mxu0 %v2921_v45  ;;  %v3042_v52 = vld [vmem:[%s7225_s8 + $0x1568] sm:$0xff]  ;;  %v3041_v55 = vld [vmem:[%s7225_s8 + $0x1560] sm:$0xff] }
 0x2b6   : > { %3829 = vmatpush1.msra.mxu1 %v3049_v46  ;;  %3759 = vmatprep.subr.mxu0 %v2918_v47  ;;  %v2910_v56 = vld [vmem:[%s7225_s8 + $0x1148] sm:$0xff]  ;;  %v2909_v58 = vld [vmem:[%s7225_s8 + $0x1140] sm:$0xff] }
 0x2b7   : > { %3830 = vmatprep.subr.mxu1 %v3046_v48  ;;  %3760 = vmatpush1.msra.mxu0 %v2917_v49  ;;  %v3038_v57 = vld [vmem:[%s7225_s8 + $0x1548] sm:$0xff]  ;;  %v3037_v59 = vld [vmem:[%s7225_s8 + $0x1540] sm:$0xff] }
 0x2b8   : > { %3831 = vmatpush1.msra.mxu1 %v3045_v50  ;;  %3761 = vmatprep.subr.mxu0 %v2914_v51  ;;  %v2906_v60 = vld [vmem:[%s7225_s8 + $0x1128] sm:$0xff]  ;;  %v2905_v62 = vld [vmem:[%s7225_s8 + $0x1120] sm:$0xff] }
 0x2b9   : > { %3832 = vmatprep.subr.mxu1 %v3042_v52  ;;  %3762 = vmatpush1.msra.mxu0 %v2913_v53  ;;  %v3034_v61 = vld [vmem:[%s7225_s8 + $0x1528] sm:$0xff]  ;;  %v3033_v63 = vld [vmem:[%s7225_s8 + $0x1520] sm:$0xff] }
 0x2ba   : > { %3833 = vmatpush1.msra.mxu1 %v3041_v55  ;;  %3763 = vmatprep.subr.mxu0 %v2910_v56  ;;  %v2902_v1 = vld [vmem:[%s7225_s8 + $0x1108] sm:$0xff]  ;;  %v2901_v4 = vld [vmem:[%s7225_s8 + $0x1100] sm:$0xff] }
 0x2bb   : > { %3834 = vmatprep.subr.mxu1 %v3038_v57  ;;  %3764 = vmatpush1.msra.mxu0 %v2909_v58  ;;  %v3030_v2 = vld [vmem:[%s7225_s8 + $0x1508] sm:$0xff]  ;;  %v3029_v5 = vld [vmem:[%s7225_s8 + $0x1500] sm:$0xff] }
 0x2bc   : > { %3835 = vmatpush1.msra.mxu1 %v3037_v59  ;;  %3765 = vmatprep.subr.mxu0 %v2906_v60  ;;  %v2898_v6 = vld [vmem:[%s7225_s8 + $0x10e8] sm:$0xff]  ;;  %v2897_v8 = vld [vmem:[%s7225_s8 + $0x10e0] sm:$0xff] }
 0x2bd   : > { %3836 = vmatprep.subr.mxu1 %v3034_v61  ;;  %3766 = vmatpush1.msra.mxu0 %v2905_v62  ;;  %v3026_v7 = vld [vmem:[%s7225_s8 + $0x14e8] sm:$0xff]  ;;  %v3025_v9 = vld [vmem:[%s7225_s8 + $0x14e0] sm:$0xff] }
 0x2be   : > { %3837 = vmatpush1.msra.mxu1 %v3033_v63  ;;  %3767 = vmatprep.subr.mxu0 %v2902_v1  ;;  %v2894_v11 = vld [vmem:[%s7225_s8 + $0x10c8] sm:$0xff]  ;;  %v2893_v14 = vld [vmem:[%s7225_s8 + $0x10c0] sm:$0xff] }
 0x2bf   : > { %3838 = vmatprep.subr.mxu1 %v3030_v2  ;;  %3768 = vmatpush1.msra.mxu0 %v2901_v4  ;;  %v3022_v13 = vld [vmem:[%s7225_s8 + $0x14c8] sm:$0xff]  ;;  %v3021_v15 = vld [vmem:[%s7225_s8 + $0x14c0] sm:$0xff] }
 0x2c0   : > { %3839 = vmatpush1.msra.mxu1 %v3029_v5  ;;  %3769 = vmatprep.subr.mxu0 %v2898_v6  ;;  %v2890_v16 = vld [vmem:[%s7225_s8 + $0x10a8] sm:$0xff]  ;;  %v2889_v18 = vld [vmem:[%s7225_s8 + $0x10a0] sm:$0xff] }
 0x2c1   : > { %3840 = vmatprep.subr.mxu1 %v3026_v7  ;;  %3770 = vmatpush1.msra.mxu0 %v2897_v8  ;;  %v3018_v17 = vld [vmem:[%s7225_s8 + $0x14a8] sm:$0xff]  ;;  %v3017_v19 = vld [vmem:[%s7225_s8 + $0x14a0] sm:$0xff] }
 0x2c2   : > { %3841 = vmatpush1.msra.mxu1 %v3025_v9  ;;  %3771 = vmatprep.subr.mxu0 %v2894_v11  ;;  %v2886_v21 = vld [vmem:[%s7225_s8 + $0x1088] sm:$0xff]  ;;  %v2885_v23 = vld [vmem:[%s7225_s8 + $0x1080] sm:$0xff] }
 0x2c3   : > { %3842 = vmatprep.subr.mxu1 %v3022_v13  ;;  %3772 = vmatpush1.msra.mxu0 %v2893_v14  ;;  %v3014_v22 = vld [vmem:[%s7225_s8 + $0x1488] sm:$0xff]  ;;  %v3013_v24 = vld [vmem:[%s7225_s8 + $0x1480] sm:$0xff] }
 0x2c4   : > { %3843 = vmatpush1.msra.mxu1 %v3021_v15  ;;  %3773 = vmatprep.subr.mxu0 %v2890_v16  ;;  %v2882_v26 = vld [vmem:[%s7225_s8 + $0x1068] sm:$0xff]  ;;  %v2881_v28 = vld [vmem:[%s7225_s8 + $0x1060] sm:$0xff] }
 0x2c5   : > { %3844 = vmatprep.subr.mxu1 %v3018_v17  ;;  %3774 = vmatpush1.msra.mxu0 %v2889_v18  ;;  %v3010_v27 = vld [vmem:[%s7225_s8 + $0x1468] sm:$0xff]  ;;  %v3009_v29 = vld [vmem:[%s7225_s8 + $0x1460] sm:$0xff] }
 0x2c6   : > { %3845 = vmatpush1.msra.mxu1 %v3017_v19  ;;  %3775 = vmatprep.subr.mxu0 %v2886_v21  ;;  %v2878_v31 = vld [vmem:[%s7225_s8 + $0x1048] sm:$0xff]  ;;  %v2877_v34 = vld [vmem:[%s7225_s8 + $0x1040] sm:$0xff] }
 0x2c7   : > { %3846 = vmatprep.subr.mxu1 %v3014_v22  ;;  %3776 = vmatpush1.msra.mxu0 %v2885_v23  ;;  %v3006_v32 = vld [vmem:[%s7225_s8 + $0x1448] sm:$0xff]  ;;  %v3005_v35 = vld [vmem:[%s7225_s8 + $0x1440] sm:$0xff]  ;;  %v2347_v23 = vld [vmem:[%s7342_s9 + $0x10] sm:$0xff] }
 0x2c8   : > { %3847 = vmatpush1.msra.mxu1 %v3013_v24  ;;  %3777 = vmatprep.subr.mxu0 %v2882_v26  ;;  %v2874_v36 = vld [vmem:[%s7225_s8 + $0x1028] sm:$0xff]  ;;  %v2873_v38 = vld [vmem:[%s7225_s8 + $0x1020] sm:$0xff]  ;;  %v2351_v24 = vld [vmem:[%s7347_s14 + $0x10] sm:$0xff] }
 0x2c9   : > { %3848 = vmatprep.subr.mxu1 %v3010_v27  ;;  %3778 = vmatpush1.msra.mxu0 %v2881_v28  ;;  %v3002_v37 = vld [vmem:[%s7225_s8 + $0x1428] sm:$0xff]  ;;  %v3001_v39 = vld [vmem:[%s7225_s8 + $0x1420] sm:$0xff] }
 0x2ca   : > { %3849 = vmatpush1.msra.mxu1 %v3009_v29  ;;  %3779 = vmatprep.subr.mxu0 %v2878_v31  ;;  %v2870_v40 = vld [vmem:[%s7225_s8 + $0x1008] sm:$0xff]  ;;  %v2869_v42 = vld [vmem:[%s7225_s8 + $0x1000] sm:$0xff] }
 0x2cb   : > { %3850 = vmatprep.subr.mxu1 %v3006_v32  ;;  %3780 = vmatpush1.msra.mxu0 %v2877_v34  ;;  %v2998_v41 = vld [vmem:[%s7225_s8 + $0x1408] sm:$0xff]  ;;  %v2997_v43 = vld [vmem:[%s7225_s8 + $0x1400] sm:$0xff]  ;;  %v2355_v34 = vmul.f32 %v2351_v24, %v2347_v23 }
 0x2cc   : > { %3851 = vmatpush1.msra.mxu1 %v3005_v35  ;;  %3781 = vmatprep.subr.mxu0 %v2874_v36  ;;  %v2994_v45 = vld [vmem:[%s7225_s8 + $0x13e8] sm:$0xff]  ;;  %v2993_v47 = vld [vmem:[%s7225_s8 + $0x13e0] sm:$0xff] }
 0x2cd   : > { %3852 = vmatprep.subr.mxu1 %v3002_v37  ;;  %3782 = vmatpush1.msra.mxu0 %v2873_v38  ;;  %v3122_v46 = vld [vmem:[%s7225_s8 + $0x17e8] sm:$0xff]  ;;  %v3121_v48 = vld [vmem:[%s7225_s8 + $0x17e0] sm:$0xff] }
 0x2ce   : > { %3853 = vmatpush1.msra.mxu1 %v3001_v39  ;;  %3783 = vmatprep.subr.mxu0 %v2870_v40  ;;  %v2990_v49 = vld [vmem:[%s7225_s8 + $0x13c8] sm:$0xff]  ;;  %v2989_v51 = vld [vmem:[%s7225_s8 + $0x13c0] sm:$0xff] }
 0x2cf   : > { %3854 = vmatprep.subr.mxu1 %v2998_v41  ;;  %3784 = vmatpush1.msra.mxu0 %v2869_v42  ;;  %v3118_v50 = vld [vmem:[%s7225_s8 + $0x17c8] sm:$0xff]  ;;  %v3117_v52 = vld [vmem:[%s7225_s8 + $0x17c0] sm:$0xff] }
 0x2d0   : > { %3855 = vmatpush1.msra.mxu1 %v2997_v43  ;;  %3785 = vmatprep.subr.mxu0 %v2994_v45  ;;  %v2986_v53 = vld [vmem:[%s7225_s8 + $0x13a8] sm:$0xff]  ;;  %v2985_v56 = vld [vmem:[%s7225_s8 + $0x13a0] sm:$0xff]  ;;  %v3419_v43 = vcombine.high %v2355_v34, %v2355_v34 }
 0x2d1   : > { %3856 = vmatprep.subr.mxu1 %v3122_v46  ;;  %3786 = vmatpush2.msra.mxu0 %v2993_v47  ;;  %v3114_v55 = vld [vmem:[%s7225_s8 + $0x17a8] sm:$0xff]  ;;  %v3113_v57 = vld [vmem:[%s7225_s8 + $0x17a0] sm:$0xff] }
 0x2d2   : > { %3857 = vmatpush2.msra.mxu1 %v3121_v48  ;;  %3787 = vmatprep.subr.mxu0 %v2990_v49  ;;  %v2982_v58 = vld [vmem:[%s7225_s8 + $0x1388] sm:$0xff]  ;;  %v2981_v60 = vld [vmem:[%s7225_s8 + $0x1380] sm:$0xff]  ;;  %v7679_v49 = vrot.slane %v2355_v34, %v7372_v54 }
 0x2d3   : > { %3858 = vmatprep.subr.mxu1 %v3118_v50  ;;  %3788 = vmatpush2.msra.mxu0 %v2989_v51  ;;  %v3110_v59 = vld [vmem:[%s7225_s8 + $0x1788] sm:$0xff]  ;;  %v3109_v61 = vld [vmem:[%s7225_s8 + $0x1780] sm:$0xff] }
 0x2d4   : > { %3859 = vmatpush2.msra.mxu1 %v3117_v52  ;;  %3789 = vmatprep.subr.mxu0 %v2986_v53  ;;  %v2978_v62 = vld [vmem:[%s7225_s8 + $0x1368] sm:$0xff]  ;;  %v2977_v1 = vld [vmem:[%s7225_s8 + $0x1360] sm:$0xff] }
 0x2d5   : > { %3860 = vmatprep.subr.mxu1 %v3114_v55  ;;  %3790 = vmatpush2.msra.mxu0 %v2985_v56  ;;  %v3106_v63 = vld [vmem:[%s7225_s8 + $0x1768] sm:$0xff]  ;;  %v3105_v2 = vld [vmem:[%s7225_s8 + $0x1760] sm:$0xff]  ;;  %v7686_v55 = vrot.slane %v3419_v43, %v7372_v54 }
 0x2d6   : > { %3861 = vmatpush2.msra.mxu1 %v3113_v57  ;;  %3791 = vmatprep.subr.mxu0 %v2982_v58  ;;  %v2974_v4 = vld [vmem:[%s7225_s8 + $0x1348] sm:$0xff]  ;;  %v2973_v6 = vld [vmem:[%s7225_s8 + $0x1340] sm:$0xff] }
 0x2d7   : > { %3862 = vmatprep.subr.mxu1 %v3110_v59  ;;  %3792 = vmatpush2.msra.mxu0 %v2981_v60  ;;  %v3102_v5 = vld [vmem:[%s7225_s8 + $0x1748] sm:$0xff]  ;;  %v3101_v7 = vld [vmem:[%s7225_s8 + $0x1740] sm:$0xff]  ;;  %v7694_v60 = vcombine.high %v7679_v49, %v7679_v49 }
 0x2d8   : > { %3863 = vmatpush2.msra.mxu1 %v3109_v61  ;;  %3793 = vmatprep.subr.mxu0 %v2978_v62  ;;  %v2970_v8 = vld [vmem:[%s7225_s8 + $0x1328] sm:$0xff]  ;;  %v2969_v11 = vld [vmem:[%s7225_s8 + $0x1320] sm:$0xff] }
 0x2d9   : > { %3864 = vmatprep.subr.mxu1 %v3106_v63  ;;  %3794 = vmatpush2.msra.mxu0 %v2977_v1  ;;  %v3098_v9 = vld [vmem:[%s7225_s8 + $0x1728] sm:$0xff]  ;;  %v3097_v13 = vld [vmem:[%s7225_s8 + $0x1720] sm:$0xff]  ;;  %v7700_v63 = vcombine.high %v7686_v55, %v7686_v55 }
 0x2da   : > { %3865 = vmatpush2.msra.mxu1 %v3105_v2  ;;  %3795 = vmatprep.subr.mxu0 %v2974_v4  ;;  %v2966_v14 = vld [vmem:[%s7225_s8 + $0x1308] sm:$0xff]  ;;  %v2965_v16 = vld [vmem:[%s7225_s8 + $0x1300] sm:$0xff] }
 0x2db   : > { %3866 = vmatprep.subr.mxu1 %v3102_v5  ;;  %3796 = vmatpush2.msra.mxu0 %v2973_v6  ;;  %v3094_v15 = vld [vmem:[%s7225_s8 + $0x1708] sm:$0xff]  ;;  %v3093_v17 = vld [vmem:[%s7225_s8 + $0x1700] sm:$0xff] }
 0x2dc   : > { %3867 = vmatpush2.msra.mxu1 %v3101_v7  ;;  %3797 = vmatprep.subr.mxu0 %v2970_v8  ;;  %v2962_v18 = vld [vmem:[%s7225_s8 + $0x12e8] sm:$0xff]  ;;  %v2961_v21 = vld [vmem:[%s7225_s8 + $0x12e0] sm:$0xff] }
 0x2dd   : > { %3868 = vmatprep.subr.mxu1 %v3098_v9  ;;  %3798 = vmatpush2.msra.mxu0 %v2969_v11  ;;  %v3090_v19 = vld [vmem:[%s7225_s8 + $0x16e8] sm:$0xff]  ;;  %v3089_v22 = vld [vmem:[%s7225_s8 + $0x16e0] sm:$0xff] }
 0x2de   : > { %3869 = vmatpush2.msra.mxu1 %v3097_v13  ;;  %3799 = vmatprep.subr.mxu0 %v2966_v14  ;;  %v2958_v26 = vld [vmem:[%s7225_s8 + $0x12c8] sm:$0xff]  ;;  %v2957_v28 = vld [vmem:[%s7225_s8 + $0x12c0] sm:$0xff] }
 0x2df   : > { %3870 = vmatprep.subr.mxu1 %v3094_v15  ;;  %3800 = vmatpush2.msra.mxu0 %v2965_v16  ;;  %v3086_v27 = vld [vmem:[%s7225_s8 + $0x16c8] sm:$0xff]  ;;  %v3085_v29 = vld [vmem:[%s7225_s8 + $0x16c0] sm:$0xff] }
 0x2e0   : > { %3871 = vmatpush2.msra.mxu1 %v3093_v17  ;;  %3801 = vmatprep.subr.mxu0 %v2962_v18  ;;  %v2954_v31 = vld [vmem:[%s7225_s8 + $0x12a8] sm:$0xff]  ;;  %v2953_v35 = vld [vmem:[%s7225_s8 + $0x12a0] sm:$0xff] }
 0x2e1   : > { %3872 = vmatprep.subr.mxu1 %v3090_v19  ;;  %3802 = vmatpush2.msra.mxu0 %v2961_v21  ;;  %v3082_v32 = vld [vmem:[%s7225_s8 + $0x16a8] sm:$0xff]  ;;  %v3081_v36 = vld [vmem:[%s7225_s8 + $0x16a0] sm:$0xff] }
 0x2e2   : > { %3873 = vmatpush2.msra.mxu1 %v3089_v22  ;;  %3803 = vmatprep.subr.mxu0 %v2958_v26  ;;  %v2950_v37 = vld [vmem:[%s7225_s8 + $0x1288] sm:$0xff]  ;;  %v2949_v39 = vld [vmem:[%s7225_s8 + $0x1280] sm:$0xff] }
 0x2e3   : > { %3874 = vmatprep.subr.mxu1 %v3086_v27  ;;  %3804 = vmatpush2.msra.mxu0 %v2957_v28  ;;  %v3078_v38 = vld [vmem:[%s7225_s8 + $0x1688] sm:$0xff]  ;;  %v3077_v40 = vld [vmem:[%s7225_s8 + $0x1680] sm:$0xff] }
 0x2e4   : > { %3875 = vmatpush2.msra.mxu1 %v3085_v29  ;;  %3805 = vmatprep.subr.mxu0 %v2954_v31  ;;  %v2946_v41 = vld [vmem:[%s7225_s8 + $0x1268] sm:$0xff]  ;;  %v2945_v45 = vld [vmem:[%s7225_s8 + $0x1260] sm:$0xff] }
 0x2e5   : > { %3876 = vmatprep.subr.mxu1 %v3082_v32  ;;  %3806 = vmatpush2.msra.mxu0 %v2953_v35  ;;  %v3074_v42 = vld [vmem:[%s7225_s8 + $0x1668] sm:$0xff]  ;;  %v3073_v46 = vld [vmem:[%s7225_s8 + $0x1660] sm:$0xff] }
 0x2e6   : > { %3877 = vmatpush2.msra.mxu1 %v3081_v36  ;;  %3807 = vmatprep.subr.mxu0 %v2950_v37  ;;  %v2942_v47 = vld [vmem:[%s7225_s8 + $0x1248] sm:$0xff]  ;;  %v2941_v50 = vld [vmem:[%s7225_s8 + $0x1240] sm:$0xff] }
 0x2e7   : > { %3878 = vmatprep.subr.mxu1 %v3078_v38  ;;  %3808 = vmatpush2.msra.mxu0 %v2949_v39  ;;  %v3070_v48 = vld [vmem:[%s7225_s8 + $0x1648] sm:$0xff]  ;;  %v3069_v51 = vld [vmem:[%s7225_s8 + $0x1640] sm:$0xff] }
 0x2e8   : > { %3879 = vmatpush2.msra.mxu1 %v3077_v40  ;;  %3809 = vmatprep.subr.mxu0 %v2946_v41  ;;  %v2938_v52 = vld [vmem:[%s7225_s8 + $0x1228] sm:$0xff]  ;;  %v2937_v56 = vld [vmem:[%s7225_s8 + $0x1220] sm:$0xff] }
 0x2e9   : > { %3880 = vmatprep.subr.mxu1 %v3074_v42  ;;  %3810 = vmatpush2.msra.mxu0 %v2945_v45  ;;  %v3066_v53 = vld [vmem:[%s7225_s8 + $0x1628] sm:$0xff]  ;;  %v3065_v57 = vld [vmem:[%s7225_s8 + $0x1620] sm:$0xff] }
 0x2ea   : > { %3881 = vmatpush2.msra.mxu1 %v3073_v46  ;;  %3811 = vmatprep.subr.mxu0 %v2942_v47  ;;  %v2934_v58 = vld [vmem:[%s7225_s8 + $0x1208] sm:$0xff]  ;;  %v2933_v61 = vld [vmem:[%s7225_s8 + $0x1200] sm:$0xff] }
 0x2eb   : > { %3882 = vmatprep.subr.mxu1 %v3070_v48  ;;  %3812 = vmatpush2.msra.mxu0 %v2941_v50  ;;  %v3062_v59 = vld [vmem:[%s7225_s8 + $0x1608] sm:$0xff]  ;;  %v3061_v62 = vld [vmem:[%s7225_s8 + $0x1600] sm:$0xff] }
 0x2ec   : > { %3883 = vmatpush2.msra.mxu1 %v3069_v51  ;;  %3813 = vmatprep.subr.mxu0 %v2938_v52  ;;  %v3186_v1 = vld [vmem:[%s7225_s8 + $0x19e8] sm:$0xff]  ;;  %v3185_v4 = vld [vmem:[%s7225_s8 + $0x19e0] sm:$0xff] }
 0x2ed   : > { %3884 = vmatprep.subr.mxu1 %v3066_v53  ;;  %3814 = vmatpush2.msra.mxu0 %v2937_v56  ;;  %v3314_v2 = vld [vmem:[%s7225_s8 + $0x1de8] sm:$0xff]  ;;  %v3313_v5 = vld [vmem:[%s7225_s8 + $0x1de0] sm:$0xff] }
 0x2ee   : > { %3885 = vmatpush2.msra.mxu1 %v3065_v57  ;;  %3815 = vmatprep.subr.mxu0 %v2934_v58  ;;  %v3182_v6 = vld [vmem:[%s7225_s8 + $0x19c8] sm:$0xff]  ;;  %v3181_v8 = vld [vmem:[%s7225_s8 + $0x19c0] sm:$0xff] }
 0x2ef   : > { %3886 = vmatprep.subr.mxu1 %v3062_v59  ;;  %3816 = vmatpush2.msra.mxu0 %v2933_v61  ;;  %v3310_v7 = vld [vmem:[%s7225_s8 + $0x1dc8] sm:$0xff]  ;;  %v3309_v9 = vld [vmem:[%s7225_s8 + $0x1dc0] sm:$0xff] }
 0x2f0   : > { %3817 = vmatprep.mubr.f32.mxu0 %v7694_v60  ;;  %3887 = vmatpush2.msra.mxu1 %v3061_v62  ;;  %v3178_v11 = vld [vmem:[%s7225_s8 + $0x19a8] sm:$0xff]  ;;  %v3177_v14 = vld [vmem:[%s7225_s8 + $0x19a0] sm:$0xff] }
 0x2f1   : > { %3818 = vmatmul.mubr.f32.vlgmr.msra.gmra.mxu0 %v7679_v49  ;;  %3888 = vmatprep.mubr.f32.mxu1 %v7700_v63  ;;  %v3306_v13 = vld [vmem:[%s7225_s8 + $0x1da8] sm:$0xff]  ;;  %v3305_v15 = vld [vmem:[%s7225_s8 + $0x1da0] sm:$0xff] }
 0x2f2   : > { %3895 = vmatprep.subr.mxu0 %v3186_v1  ;;  %3966 = vmatprep.subr.mxu1 %v3314_v2  ;;  %v3174_v16 = vld [vmem:[%s7225_s8 + $0x1988] sm:$0xff]  ;;  %v3173_v18 = vld [vmem:[%s7225_s8 + $0x1980] sm:$0xff] }
 0x2f3   : > { %3889 = vmatmul.mubr.f32.vlgmr.msra.gmra.mxu1 %v7686_v55  ;;  %3896 = vmatpush1.msra.mxu0 %v3185_v4  ;;  %v3302_v17 = vld [vmem:[%s7225_s8 + $0x1d88] sm:$0xff]  ;;  %v3301_v19 = vld [vmem:[%s7225_s8 + $0x1d80] sm:$0xff] }
 0x2f4   : > { %3967 = vmatpush1.msra.mxu1 %v3313_v5  ;;  %3897 = vmatprep.subr.mxu0 %v3182_v6  ;;  %v3170_v21 = vld [vmem:[%s7225_s8 + $0x1968] sm:$0xff]  ;;  %v3169_v23 = vld [vmem:[%s7225_s8 + $0x1960] sm:$0xff] }
 0x2f5   : > { %3968 = vmatprep.subr.mxu1 %v3310_v7  ;;  %3898 = vmatpush1.msra.mxu0 %v3181_v8  ;;  %v3298_v22 = vld [vmem:[%s7225_s8 + $0x1d68] sm:$0xff]  ;;  %v3297_v24 = vld [vmem:[%s7225_s8 + $0x1d60] sm:$0xff] }
 0x2f6   : > { %3969 = vmatpush1.msra.mxu1 %v3309_v9  ;;  %3899 = vmatprep.subr.mxu0 %v3178_v11  ;;  %v3166_v26 = vld [vmem:[%s7225_s8 + $0x1948] sm:$0xff]  ;;  %v3165_v28 = vld [vmem:[%s7225_s8 + $0x1940] sm:$0xff] }
 0x2f7   : > { %3970 = vmatprep.subr.mxu1 %v3306_v13  ;;  %3900 = vmatpush1.msra.mxu0 %v3177_v14  ;;  %v3294_v27 = vld [vmem:[%s7225_s8 + $0x1d48] sm:$0xff]  ;;  %v3293_v29 = vld [vmem:[%s7225_s8 + $0x1d40] sm:$0xff] }
 0x2f8   : > { %3971 = vmatpush1.msra.mxu1 %v3305_v15  ;;  %3901 = vmatprep.subr.mxu0 %v3174_v16  ;;  %v3162_v31 = vld [vmem:[%s7225_s8 + $0x1928] sm:$0xff]  ;;  %v3161_v34 = vld [vmem:[%s7225_s8 + $0x1920] sm:$0xff] }
 0x2f9   : > { %3972 = vmatprep.subr.mxu1 %v3302_v17  ;;  %3902 = vmatpush1.msra.mxu0 %v3173_v18  ;;  %v3290_v32 = vld [vmem:[%s7225_s8 + $0x1d28] sm:$0xff]  ;;  %v3289_v35 = vld [vmem:[%s7225_s8 + $0x1d20] sm:$0xff] }
 0x2fa   : > { %3973 = vmatpush1.msra.mxu1 %v3301_v19  ;;  %3903 = vmatprep.subr.mxu0 %v3170_v21  ;;  %v3158_v36 = vld [vmem:[%s7225_s8 + $0x1908] sm:$0xff]  ;;  %v3157_v38 = vld [vmem:[%s7225_s8 + $0x1900] sm:$0xff] }
 0x2fb   : > { %3974 = vmatprep.subr.mxu1 %v3298_v22  ;;  %3904 = vmatpush1.msra.mxu0 %v3169_v23  ;;  %v3286_v37 = vld [vmem:[%s7225_s8 + $0x1d08] sm:$0xff]  ;;  %v3285_v39 = vld [vmem:[%s7225_s8 + $0x1d00] sm:$0xff] }
 0x2fc   : > { %3975 = vmatpush1.msra.mxu1 %v3297_v24  ;;  %3905 = vmatprep.subr.mxu0 %v3166_v26  ;;  %v3154_v40 = vld [vmem:[%s7225_s8 + $0x18e8] sm:$0xff]  ;;  %v3153_v42 = vld [vmem:[%s7225_s8 + $0x18e0] sm:$0xff] }
 0x2fd   : > { %3976 = vmatprep.subr.mxu1 %v3294_v27  ;;  %3906 = vmatpush1.msra.mxu0 %v3165_v28  ;;  %v3282_v41 = vld [vmem:[%s7225_s8 + $0x1ce8] sm:$0xff]  ;;  %v3281_v43 = vld [vmem:[%s7225_s8 + $0x1ce0] sm:$0xff] }
 0x2fe   : > { %3977 = vmatpush1.msra.mxu1 %v3293_v29  ;;  %3907 = vmatprep.subr.mxu0 %v3162_v31  ;;  %v3150_v45 = vld [vmem:[%s7225_s8 + $0x18c8] sm:$0xff]  ;;  %v3149_v47 = vld [vmem:[%s7225_s8 + $0x18c0] sm:$0xff] }
 0x2ff   : > { %3978 = vmatprep.subr.mxu1 %v3290_v32  ;;  %3908 = vmatpush1.msra.mxu0 %v3161_v34  ;;  %v3278_v46 = vld [vmem:[%s7225_s8 + $0x1cc8] sm:$0xff]  ;;  %v3277_v48 = vld [vmem:[%s7225_s8 + $0x1cc0] sm:$0xff] }
 0x300   : > { %3979 = vmatpush1.msra.mxu1 %v3289_v35  ;;  %3909 = vmatprep.subr.mxu0 %v3158_v36  ;;  %v3146_v50 = vld [vmem:[%s7225_s8 + $0x18a8] sm:$0xff]  ;;  %v3145_v52 = vld [vmem:[%s7225_s8 + $0x18a0] sm:$0xff] }
 0x301   : > { %3980 = vmatprep.subr.mxu1 %v3286_v37  ;;  %3910 = vmatpush1.msra.mxu0 %v3157_v38  ;;  %v3274_v51 = vld [vmem:[%s7225_s8 + $0x1ca8] sm:$0xff]  ;;  %v3273_v53 = vld [vmem:[%s7225_s8 + $0x1ca0] sm:$0xff] }
 0x302   : > { %3981 = vmatpush1.msra.mxu1 %v3285_v39  ;;  %3911 = vmatprep.subr.mxu0 %v3154_v40  ;;  %v3142_v56 = vld [vmem:[%s7225_s8 + $0x1888] sm:$0xff]  ;;  %v3141_v58 = vld [vmem:[%s7225_s8 + $0x1880] sm:$0xff] }
 0x303   : > { %3982 = vmatprep.subr.mxu1 %v3282_v41  ;;  %3912 = vmatpush1.msra.mxu0 %v3153_v42  ;;  %v3270_v57 = vld [vmem:[%s7225_s8 + $0x1c88] sm:$0xff]  ;;  %v3269_v59 = vld [vmem:[%s7225_s8 + $0x1c80] sm:$0xff] }
 0x304   : > { %3983 = vmatpush1.msra.mxu1 %v3281_v43  ;;  %3913 = vmatprep.subr.mxu0 %v3150_v45  ;;  %v3138_v61 = vld [vmem:[%s7225_s8 + $0x1868] sm:$0xff]  ;;  %v3137_v1 = vld [vmem:[%s7225_s8 + $0x1860] sm:$0xff] }
 0x305   : > { %3984 = vmatprep.subr.mxu1 %v3278_v46  ;;  %3914 = vmatpush1.msra.mxu0 %v3149_v47  ;;  %v3266_v62 = vld [vmem:[%s7225_s8 + $0x1c68] sm:$0xff]  ;;  %v3265_v2 = vld [vmem:[%s7225_s8 + $0x1c60] sm:$0xff] }
 0x306   : > { %3985 = vmatpush1.msra.mxu1 %v3277_v48  ;;  %3915 = vmatprep.subr.mxu0 %v3146_v50  ;;  %v3134_v4 = vld [vmem:[%s7225_s8 + $0x1848] sm:$0xff]  ;;  %v3133_v6 = vld [vmem:[%s7225_s8 + $0x1840] sm:$0xff] }
 0x307   : > { %3986 = vmatprep.subr.mxu1 %v3274_v51  ;;  %3916 = vmatpush1.msra.mxu0 %v3145_v52  ;;  %v3262_v5 = vld [vmem:[%s7225_s8 + $0x1c48] sm:$0xff]  ;;  %v3261_v7 = vld [vmem:[%s7225_s8 + $0x1c40] sm:$0xff] }
 0x308   : > { %3987 = vmatpush1.msra.mxu1 %v3273_v53  ;;  %3917 = vmatprep.subr.mxu0 %v3142_v56  ;;  %v3130_v8 = vld [vmem:[%s7225_s8 + $0x1828] sm:$0xff]  ;;  %v3129_v11 = vld [vmem:[%s7225_s8 + $0x1820] sm:$0xff] }
 0x309   : > { %3988 = vmatprep.subr.mxu1 %v3270_v57  ;;  %3918 = vmatpush1.msra.mxu0 %v3141_v58  ;;  %v3258_v9 = vld [vmem:[%s7225_s8 + $0x1c28] sm:$0xff]  ;;  %v3257_v13 = vld [vmem:[%s7225_s8 + $0x1c20] sm:$0xff] }
 0x30a   : > { %3989 = vmatpush1.msra.mxu1 %v3269_v59  ;;  %3919 = vmatprep.subr.mxu0 %v3138_v61  ;;  %v3126_v14 = vld [vmem:[%s7225_s8 + $0x1808] sm:$0xff]  ;;  %v3125_v16 = vld [vmem:[%s7225_s8 + $0x1800] sm:$0xff] }
 0x30b   : > { %3990 = vmatprep.subr.mxu1 %v3266_v62  ;;  %3920 = vmatpush1.msra.mxu0 %v3137_v1  ;;  %v3254_v15 = vld [vmem:[%s7225_s8 + $0x1c08] sm:$0xff]  ;;  %v3253_v17 = vld [vmem:[%s7225_s8 + $0x1c00] sm:$0xff]  ;;  %v2348_v1 = vld [vmem:[%s7342_s9 + $0x18] sm:$0xff] }
 0x30c   : > { %3991 = vmatpush1.msra.mxu1 %v3265_v2  ;;  %3921 = vmatprep.subr.mxu0 %v3134_v4  ;;  %v3250_v18 = vld [vmem:[%s7225_s8 + $0x1be8] sm:$0xff]  ;;  %v3249_v21 = vld [vmem:[%s7225_s8 + $0x1be0] sm:$0xff]  ;;  %v2352_v2 = vld [vmem:[%s7347_s14 + $0x18] sm:$0xff]  ;;  %s8387_s14 = scalar_lea.vmem [#allocation3], %s7222_s26 }
 0x30d   : > { %3992 = vmatprep.subr.mxu1 %v3262_v5  ;;  %3922 = vmatpush1.msra.mxu0 %v3133_v6  ;;  %v3378_v19 = vld [vmem:[%s7225_s8 + $0x1fe8] sm:$0xff]  ;;  %v3377_v22 = vld [vmem:[%s7225_s8 + $0x1fe0] sm:$0xff] }
 0x30e   : > { %3993 = vmatpush1.msra.mxu1 %v3261_v7  ;;  %3923 = vmatprep.subr.mxu0 %v3130_v8  ;;  %v3246_v23 = vld [vmem:[%s7225_s8 + $0x1bc8] sm:$0xff]  ;;  %v3245_v26 = vld [vmem:[%s7225_s8 + $0x1bc0] sm:$0xff] }
 0x30f   : > { %3994 = vmatprep.subr.mxu1 %v3258_v9  ;;  %3924 = vmatpush1.msra.mxu0 %v3129_v11  ;;  %v3374_v24 = vld [vmem:[%s7225_s8 + $0x1fc8] sm:$0xff]  ;;  %v3373_v27 = vld [vmem:[%s7225_s8 + $0x1fc0] sm:$0xff]  ;;  %v2356_v11 = vmul.f32 %v2352_v2, %v2348_v1  ;;  %v2407_v1 = vld [vmem:[%s7225_s8 + $0x190] sm:$0xff] }
 0x310   : > { %3995 = vmatpush1.msra.mxu1 %v3257_v13  ;;  %3925 = vmatprep.subr.mxu0 %v3126_v14  ;;  %v3242_v28 = vld [vmem:[%s7225_s8 + $0x1ba8] sm:$0xff]  ;;  %v3241_v31 = vld [vmem:[%s7225_s8 + $0x1ba0] sm:$0xff]  ;;  %v2535_v2 = vld [vmem:[%s7225_s8 + $0x590] sm:$0xff] }
 0x311   : > { %3996 = vmatprep.subr.mxu1 %v3254_v15  ;;  %3926 = vmatpush1.msra.mxu0 %v3125_v16  ;;  %v3370_v29 = vld [vmem:[%s7225_s8 + $0x1fa8] sm:$0xff]  ;;  %v3369_v32 = vld [vmem:[%s7225_s8 + $0x1fa0] sm:$0xff] }
 0x312   : > { %3997 = vmatpush1.msra.mxu1 %v3253_v17  ;;  %3927 = vmatprep.subr.mxu0 %v3250_v18  ;;  %v3238_v34 = vld [vmem:[%s7225_s8 + $0x1b88] sm:$0xff]  ;;  %v3237_v36 = vld [vmem:[%s7225_s8 + $0x1b80] sm:$0xff] }
 0x313   : > { %3998 = vmatprep.subr.mxu1 %v3378_v19  ;;  %3928 = vmatpush2.msra.mxu0 %v3249_v21  ;;  %v3366_v35 = vld [vmem:[%s7225_s8 + $0x1f88] sm:$0xff]  ;;  %v3365_v37 = vld [vmem:[%s7225_s8 + $0x1f80] sm:$0xff] }
 0x314   : > { %3999 = vmatpush2.msra.mxu1 %v3377_v22  ;;  %3929 = vmatprep.subr.mxu0 %v3246_v23  ;;  %v3234_v38 = vld [vmem:[%s7225_s8 + $0x1b68] sm:$0xff]  ;;  %v3233_v40 = vld [vmem:[%s7225_s8 + $0x1b60] sm:$0xff]  ;;  %v3436_v22 = vcombine.high %v2356_v11, %v2356_v11 }
 0x315   : > { %4000 = vmatprep.subr.mxu1 %v3374_v24  ;;  %3930 = vmatpush2.msra.mxu0 %v3245_v26  ;;  %v3362_v39 = vld [vmem:[%s7225_s8 + $0x1f68] sm:$0xff]  ;;  %v3361_v41 = vld [vmem:[%s7225_s8 + $0x1f60] sm:$0xff] }
 0x316   : > { %4001 = vmatpush2.msra.mxu1 %v3373_v27  ;;  %3931 = vmatprep.subr.mxu0 %v3242_v28  ;;  %v3230_v42 = vld [vmem:[%s7225_s8 + $0x1b48] sm:$0xff]  ;;  %v3229_v45 = vld [vmem:[%s7225_s8 + $0x1b40] sm:$0xff]  ;;  %v7827_v28 = vrot.slane %v2356_v11, %v7372_v54  ;;  %v2399_v11 = vld [vmem:[%s7225_s8 + $0x150] sm:$0xff] }
 0x317   : > { %4002 = vmatprep.subr.mxu1 %v3370_v29  ;;  %3932 = vmatpush2.msra.mxu0 %v3241_v31  ;;  %v3358_v43 = vld [vmem:[%s7225_s8 + $0x1f48] sm:$0xff]  ;;  %v3357_v46 = vld [vmem:[%s7225_s8 + $0x1f40] sm:$0xff] }
 0x318   : > { %4003 = vmatpush2.msra.mxu1 %v3369_v32  ;;  %3933 = vmatprep.subr.mxu0 %v3238_v34  ;;  %v3226_v47 = vld [vmem:[%s7225_s8 + $0x1b28] sm:$0xff]  ;;  %v3225_v50 = vld [vmem:[%s7225_s8 + $0x1b20] sm:$0xff] }
 0x319   : > { %4004 = vmatprep.subr.mxu1 %v3366_v35  ;;  %3934 = vmatpush2.msra.mxu0 %v3237_v36  ;;  %v3354_v48 = vld [vmem:[%s7225_s8 + $0x1f28] sm:$0xff]  ;;  %v3353_v51 = vld [vmem:[%s7225_s8 + $0x1f20] sm:$0xff]  ;;  %v7834_v35 = vrot.slane %v3436_v22, %v7372_v54  ;;  %v2519_v22 = vld [vmem:[%s7225_s8 + $0x510] sm:$0xff] }
 0x31a   : > { %4005 = vmatpush2.msra.mxu1 %v3365_v37  ;;  %3935 = vmatprep.subr.mxu0 %v3234_v38  ;;  %v3222_v52 = vld [vmem:[%s7225_s8 + $0x1b08] sm:$0xff]  ;;  %v3221_v56 = vld [vmem:[%s7225_s8 + $0x1b00] sm:$0xff] }
 0x31b   : > { %4006 = vmatprep.subr.mxu1 %v3362_v39  ;;  %3936 = vmatpush2.msra.mxu0 %v3233_v40  ;;  %v3350_v53 = vld [vmem:[%s7225_s8 + $0x1f08] sm:$0xff]  ;;  %v3349_v57 = vld [vmem:[%s7225_s8 + $0x1f00] sm:$0xff]  ;;  %v7842_v40 = vcombine.high %v7827_v28, %v7827_v28 }
 0x31c   : > { %4007 = vmatpush2.msra.mxu1 %v3361_v41  ;;  %3937 = vmatprep.subr.mxu0 %v3230_v42  ;;  %v3218_v58 = vld [vmem:[%s7225_s8 + $0x1ae8] sm:$0xff]  ;;  %v3217_v61 = vld [vmem:[%s7225_s8 + $0x1ae0] sm:$0xff] }
 0x31d   : > { %4008 = vmatprep.subr.mxu1 %v3358_v43  ;;  %3938 = vmatpush2.msra.mxu0 %v3229_v45  ;;  %v3346_v59 = vld [vmem:[%s7225_s8 + $0x1ee8] sm:$0xff]  ;;  %v3345_v62 = vld [vmem:[%s7225_s8 + $0x1ee0] sm:$0xff]  ;;  %v7848_v43 = vcombine.high %v7834_v35, %v7834_v35  ;;  %v2420_v45 = vld [vmem:[%s7225_s8 + $0x1f8] sm:$0xff] }
 0x31e   : > { %4009 = vmatpush2.msra.mxu1 %v3357_v46  ;;  %3939 = vmatprep.subr.mxu0 %v3226_v47  ;;  %v3214_v4 = vld [vmem:[%s7225_s8 + $0x1ac8] sm:$0xff]  ;;  %v3213_v6 = vld [vmem:[%s7225_s8 + $0x1ac0] sm:$0xff]  ;;  %v2548_v46 = vld [vmem:[%s7225_s8 + $0x5f8] sm:$0xff] }
 0x31f   : > { %4010 = vmatprep.subr.mxu1 %v3354_v48  ;;  %3940 = vmatpush2.msra.mxu0 %v3225_v50  ;;  %v3342_v5 = vld [vmem:[%s7225_s8 + $0x1ec8] sm:$0xff]  ;;  %v3341_v7 = vld [vmem:[%s7225_s8 + $0x1ec0] sm:$0xff]  ;;  %v2419_v47 = vld [vmem:[%s7225_s8 + $0x1f0] sm:$0xff] }
 0x320   : > { %4011 = vmatpush2.msra.mxu1 %v3353_v51  ;;  %3941 = vmatprep.subr.mxu0 %v3222_v52  ;;  %v3210_v8 = vld [vmem:[%s7225_s8 + $0x1aa8] sm:$0xff]  ;;  %v3209_v13 = vld [vmem:[%s7225_s8 + $0x1aa0] sm:$0xff]  ;;  %v2547_v48 = vld [vmem:[%s7225_s8 + $0x5f0] sm:$0xff] }
 0x321   : > { %4012 = vmatprep.subr.mxu1 %v3350_v53  ;;  %3942 = vmatpush2.msra.mxu0 %v3221_v56  ;;  %v3338_v9 = vld [vmem:[%s7225_s8 + $0x1ea8] sm:$0xff]  ;;  %v3337_v14 = vld [vmem:[%s7225_s8 + $0x1ea0] sm:$0xff]  ;;  %v2416_v50 = vld [vmem:[%s7225_s8 + $0x1d8] sm:$0xff] }
 0x322   : > { %4013 = vmatpush2.msra.mxu1 %v3349_v57  ;;  %3943 = vmatprep.subr.mxu0 %v3218_v58  ;;  %v3206_v15 = vld [vmem:[%s7225_s8 + $0x1a88] sm:$0xff]  ;;  %v3205_v17 = vld [vmem:[%s7225_s8 + $0x1a80] sm:$0xff]  ;;  %v2544_v51 = vld [vmem:[%s7225_s8 + $0x5d8] sm:$0xff] }
 0x323   : > { %4014 = vmatprep.subr.mxu1 %v3346_v59  ;;  %3944 = vmatpush2.msra.mxu0 %v3217_v61  ;;  %v3334_v16 = vld [vmem:[%s7225_s8 + $0x1e88] sm:$0xff]  ;;  %v3333_v18 = vld [vmem:[%s7225_s8 + $0x1e80] sm:$0xff]  ;;  %v2415_v52 = vld [vmem:[%s7225_s8 + $0x1d0] sm:$0xff] }
 0x324   : > { %4015 = vmatpush2.msra.mxu1 %v3345_v62  ;;  %3945 = vmatprep.subr.mxu0 %v3214_v4  ;;  %v3202_v19 = vld [vmem:[%s7225_s8 + $0x1a68] sm:$0xff]  ;;  %v3201_v23 = vld [vmem:[%s7225_s8 + $0x1a60] sm:$0xff]  ;;  %v2543_v53 = vld [vmem:[%s7225_s8 + $0x5d0] sm:$0xff] }
 0x325   : > { %4016 = vmatprep.subr.mxu1 %v3342_v5  ;;  %3946 = vmatpush2.msra.mxu0 %v3213_v6  ;;  %v3330_v21 = vld [vmem:[%s7225_s8 + $0x1e68] sm:$0xff]  ;;  %v3329_v24 = vld [vmem:[%s7225_s8 + $0x1e60] sm:$0xff]  ;;  %v2412_v56 = vld [vmem:[%s7225_s8 + $0x1b8] sm:$0xff] }
 0x326   : > { %4017 = vmatpush2.msra.mxu1 %v3341_v7  ;;  %3947 = vmatprep.subr.mxu0 %v3210_v8  ;;  %v3198_v26 = vld [vmem:[%s7225_s8 + $0x1a48] sm:$0xff]  ;;  %v3197_v29 = vld [vmem:[%s7225_s8 + $0x1a40] sm:$0xff]  ;;  %v2540_v57 = vld [vmem:[%s7225_s8 + $0x5b8] sm:$0xff] }
 0x327   : > { %4018 = vmatprep.subr.mxu1 %v3338_v9  ;;  %3948 = vmatpush2.msra.mxu0 %v3209_v13  ;;  %v3326_v27 = vld [vmem:[%s7225_s8 + $0x1e48] sm:$0xff]  ;;  %v3325_v31 = vld [vmem:[%s7225_s8 + $0x1e40] sm:$0xff]  ;;  %v2411_v58 = vld [vmem:[%s7225_s8 + $0x1b0] sm:$0xff] }
 0x328   : > { %4019 = vmatpush2.msra.mxu1 %v3337_v14  ;;  %3949 = vmatprep.subr.mxu0 %v3206_v15  ;;  %v3194_v32 = vld [vmem:[%s7225_s8 + $0x1a28] sm:$0xff]  ;;  %v3193_v36 = vld [vmem:[%s7225_s8 + $0x1a20] sm:$0xff]  ;;  %v2539_v59 = vld [vmem:[%s7225_s8 + $0x5b0] sm:$0xff] }
 0x329   : > { %4020 = vmatprep.subr.mxu1 %v3334_v16  ;;  %3950 = vmatpush2.msra.mxu0 %v3205_v17  ;;  %v3322_v34 = vld [vmem:[%s7225_s8 + $0x1e28] sm:$0xff]  ;;  %v3321_v37 = vld [vmem:[%s7225_s8 + $0x1e20] sm:$0xff]  ;;  %v2408_v61 = vld [vmem:[%s7225_s8 + $0x198] sm:$0xff] }
 0x32a   : > { %4021 = vmatpush2.msra.mxu1 %v3333_v18  ;;  %3951 = vmatprep.subr.mxu0 %v3202_v19  ;;  %v3190_v38 = vld [vmem:[%s7225_s8 + $0x1a08] sm:$0xff]  ;;  %v3189_v41 = vld [vmem:[%s7225_s8 + $0x1a00] sm:$0xff]  ;;  %v2536_v62 = vld [vmem:[%s7225_s8 + $0x598] sm:$0xff] }
 0x32b   : > { %4022 = vmatprep.subr.mxu1 %v3330_v21  ;;  %3952 = vmatpush2.msra.mxu0 %v3201_v23  ;;  %v3318_v39 = vld [vmem:[%s7225_s8 + $0x1e08] sm:$0xff]  ;;  %v3317_v42 = vld [vmem:[%s7225_s8 + $0x1e00] sm:$0xff]  ;;  %v2404_v4 = vld [vmem:[%s7225_s8 + $0x178] sm:$0xff] }
 0x32c   : > { %4023 = vmatpush2.msra.mxu1 %v3329_v24  ;;  %3953 = vmatprep.subr.mxu0 %v3198_v26  ;;  %v2532_v5 = vld [vmem:[%s7225_s8 + $0x578] sm:$0xff]  ;;  %v2403_v6 = vld [vmem:[%s7225_s8 + $0x170] sm:$0xff] }
 0x32d   : > { %4024 = vmatprep.subr.mxu1 %v3326_v27  ;;  %3954 = vmatpush2.msra.mxu0 %v3197_v29  ;;  %v2531_v7 = vld [vmem:[%s7225_s8 + $0x570] sm:$0xff]  ;;  %v2400_v8 = vld [vmem:[%s7225_s8 + $0x158] sm:$0xff] }
 0x32e   : > { %4025 = vmatpush2.msra.mxu1 %v3325_v31  ;;  %3955 = vmatprep.subr.mxu0 %v3194_v32  ;;  %v2528_v9 = vld [vmem:[%s7225_s8 + $0x558] sm:$0xff]  ;;  %v2527_v13 = vld [vmem:[%s7225_s8 + $0x550] sm:$0xff] }
 0x32f   : > { %4026 = vmatprep.subr.mxu1 %v3322_v34  ;;  %3956 = vmatpush2.msra.mxu0 %v3193_v36  ;;  %v2396_v14 = vld [vmem:[%s7225_s8 + $0x138] sm:$0xff]  ;;  %v2395_v16 = vld [vmem:[%s7225_s8 + $0x130] sm:$0xff] }
 0x330   : > { %4027 = vmatpush2.msra.mxu1 %v3321_v37  ;;  %3957 = vmatprep.subr.mxu0 %v3190_v38  ;;  %v2524_v15 = vld [vmem:[%s7225_s8 + $0x538] sm:$0xff]  ;;  %v2523_v17 = vld [vmem:[%s7225_s8 + $0x530] sm:$0xff] }
 0x331   : > { %4028 = vmatprep.subr.mxu1 %v3318_v39  ;;  %3958 = vmatpush2.msra.mxu0 %v3189_v41  ;;  %v2392_v18 = vld [vmem:[%s7225_s8 + $0x118] sm:$0xff]  ;;  %v2391_v21 = vld [vmem:[%s7225_s8 + $0x110] sm:$0xff] }
 0x332   : > { %3959 = vmatprep.mubr.f32.mxu0 %v7842_v40  ;;  %4029 = vmatpush2.msra.mxu1 %v3317_v42  ;;  %v2520_v19 = vld [vmem:[%s7225_s8 + $0x518] sm:$0xff]  ;;  %v2387_v26 = vld [vmem:[%s7225_s8 + $0xf0] sm:$0xff] }
 0x333   : > { %3960 = vmatmul.mubr.f32.vlgmr.msra.gmra.mxu0 %v7827_v28  ;;  %4030 = vmatprep.mubr.f32.mxu1 %v7848_v43  ;;  %v2388_v23 = vld [vmem:[%s7225_s8 + $0xf8] sm:$0xff]  ;;  %v2515_v27 = vld [vmem:[%s7225_s8 + $0x4f0] sm:$0xff] }
 0x334   : > { %4037 = vmatprep.subr.mxu0 %v2420_v45  ;;  %4108 = vmatprep.subr.mxu1 %v2548_v46  ;;  %v2516_v24 = vld [vmem:[%s7225_s8 + $0x4f8] sm:$0xff]  ;;  %v2383_v32 = vld [vmem:[%s7225_s8 + $0xd0] sm:$0xff] }
 0x335   : > { %4031 = vmatmul.mubr.f32.vlgmr.msra.gmra.mxu1 %v7834_v35  ;;  %4038 = vmatpush1.msra.mxu0 %v2419_v47  ;;  %v2384_v29 = vld [vmem:[%s7225_s8 + $0xd8] sm:$0xff]  ;;  %v2511_v34 = vld [vmem:[%s7225_s8 + $0x4d0] sm:$0xff] }
 0x336   : > { %4109 = vmatpush1.msra.mxu1 %v2547_v48  ;;  %4039 = vmatprep.subr.mxu0 %v2416_v50  ;;  %v2512_v31 = vld [vmem:[%s7225_s8 + $0x4d8] sm:$0xff]  ;;  %v2379_v38 = vld [vmem:[%s7225_s8 + $0xb0] sm:$0xff] }
 0x337   : > { %4110 = vmatprep.subr.mxu1 %v2544_v51  ;;  %4040 = vmatpush1.msra.mxu0 %v2415_v52  ;;  %v2380_v36 = vld [vmem:[%s7225_s8 + $0xb8] sm:$0xff]  ;;  %v2507_v39 = vld [vmem:[%s7225_s8 + $0x4b0] sm:$0xff] }
 0x338   : > { %4111 = vmatpush1.msra.mxu1 %v2543_v53  ;;  %4041 = vmatprep.subr.mxu0 %v2412_v56  ;;  %v2508_v37 = vld [vmem:[%s7225_s8 + $0x4b8] sm:$0xff]  ;;  %v2375_v45 = vld [vmem:[%s7225_s8 + $0x90] sm:$0xff] }
 0x339   : > { %4112 = vmatprep.subr.mxu1 %v2540_v57  ;;  %4042 = vmatpush1.msra.mxu0 %v2411_v58  ;;  %v2376_v41 = vld [vmem:[%s7225_s8 + $0x98] sm:$0xff]  ;;  %v2503_v46 = vld [vmem:[%s7225_s8 + $0x490] sm:$0xff] }
 0x33a   : > { %4113 = vmatpush1.msra.mxu1 %v2539_v59  ;;  %4043 = vmatprep.subr.mxu0 %v2408_v61  ;;  %v2504_v42 = vld [vmem:[%s7225_s8 + $0x498] sm:$0xff]  ;;  %v2371_v50 = vld [vmem:[%s7225_s8 + $0x70] sm:$0xff] }
 0x33b   : > { %4114 = vmatprep.subr.mxu1 %v2536_v62  ;;  %4044 = vmatpush1.msra.mxu0 %v2407_v1  ;;  %v2372_v47 = vld [vmem:[%s7225_s8 + $0x78] sm:$0xff]  ;;  %v2499_v51 = vld [vmem:[%s7225_s8 + $0x470] sm:$0xff] }
 0x33c   : > { %4115 = vmatpush1.msra.mxu1 %v2535_v2  ;;  %4045 = vmatprep.subr.mxu0 %v2404_v4  ;;  %v2500_v48 = vld [vmem:[%s7225_s8 + $0x478] sm:$0xff]  ;;  %v2367_v56 = vld [vmem:[%s7225_s8 + $0x50] sm:$0xff] }
 0x33d   : > { %4116 = vmatprep.subr.mxu1 %v2532_v5  ;;  %4046 = vmatpush1.msra.mxu0 %v2403_v6  ;;  %v2368_v52 = vld [vmem:[%s7225_s8 + $0x58] sm:$0xff]  ;;  %v2495_v57 = vld [vmem:[%s7225_s8 + $0x450] sm:$0xff] }
 0x33e   : > { %4117 = vmatpush1.msra.mxu1 %v2531_v7  ;;  %4047 = vmatprep.subr.mxu0 %v2400_v8  ;;  %v2496_v53 = vld [vmem:[%s7225_s8 + $0x458] sm:$0xff]  ;;  %v2363_v61 = vld [vmem:[%s7225_s8 + $0x30] sm:$0xff] }
 0x33f   : > { %4118 = vmatprep.subr.mxu1 %v2528_v9  ;;  %4048 = vmatpush1.msra.mxu0 %v2399_v11  ;;  %v2364_v58 = vld [vmem:[%s7225_s8 + $0x38] sm:$0xff]  ;;  %v2491_v62 = vld [vmem:[%s7225_s8 + $0x430] sm:$0xff] }
 0x340   : > { %4119 = vmatpush1.msra.mxu1 %v2527_v13  ;;  %4049 = vmatprep.subr.mxu0 %v2396_v14  ;;  %v2492_v59 = vld [vmem:[%s7225_s8 + $0x438] sm:$0xff]  ;;  %v2359_v4 = vld [vmem:[%s7225_s8 + $0x10] sm:$0xff] }
 0x341   : > { %4120 = vmatprep.subr.mxu1 %v2524_v15  ;;  %4050 = vmatpush1.msra.mxu0 %v2395_v16  ;;  %v2360_v1 = vld [vmem:[%s7225_s8 + $0x18] sm:$0xff]  ;;  %v2487_v5 = vld [vmem:[%s7225_s8 + $0x410] sm:$0xff] }
 0x342   : > { %4121 = vmatpush1.msra.mxu1 %v2523_v17  ;;  %4051 = vmatprep.subr.mxu0 %v2392_v18  ;;  %v2488_v2 = vld [vmem:[%s7225_s8 + $0x418] sm:$0xff]  ;;  %v2483_v8 = vld [vmem:[%s7225_s8 + $0x3f0] sm:$0xff] }
 0x343   : > { %4122 = vmatprep.subr.mxu1 %v2520_v19  ;;  %4052 = vmatpush1.msra.mxu0 %v2391_v21  ;;  %v2484_v6 = vld [vmem:[%s7225_s8 + $0x3f8] sm:$0xff]  ;;  %v2611_v9 = vld [vmem:[%s7225_s8 + $0x7f0] sm:$0xff] }
 0x344   : > { %4123 = vmatpush1.msra.mxu1 %v2519_v22  ;;  %4053 = vmatprep.subr.mxu0 %v2388_v23  ;;  %v2612_v7 = vld [vmem:[%s7225_s8 + $0x7f8] sm:$0xff]  ;;  %v2479_v14 = vld [vmem:[%s7225_s8 + $0x3d0] sm:$0xff] }
 0x345   : > { %4124 = vmatprep.subr.mxu1 %v2516_v24  ;;  %4054 = vmatpush1.msra.mxu0 %v2387_v26  ;;  %v2480_v11 = vld [vmem:[%s7225_s8 + $0x3d8] sm:$0xff]  ;;  %v2607_v15 = vld [vmem:[%s7225_s8 + $0x7d0] sm:$0xff] }
 0x346   : > { %4125 = vmatpush1.msra.mxu1 %v2515_v27  ;;  %4055 = vmatprep.subr.mxu0 %v2384_v29  ;;  %v2608_v13 = vld [vmem:[%s7225_s8 + $0x7d8] sm:$0xff]  ;;  %v2475_v18 = vld [vmem:[%s7225_s8 + $0x3b0] sm:$0xff] }
 0x347   : > { %4126 = vmatprep.subr.mxu1 %v2512_v31  ;;  %4056 = vmatpush1.msra.mxu0 %v2383_v32  ;;  %v2476_v16 = vld [vmem:[%s7225_s8 + $0x3b8] sm:$0xff]  ;;  %v2603_v19 = vld [vmem:[%s7225_s8 + $0x7b0] sm:$0xff] }
 0x348   : > { %4127 = vmatpush1.msra.mxu1 %v2511_v34  ;;  %4057 = vmatprep.subr.mxu0 %v2380_v36  ;;  %v2604_v17 = vld [vmem:[%s7225_s8 + $0x7b8] sm:$0xff]  ;;  %v2471_v23 = vld [vmem:[%s7225_s8 + $0x390] sm:$0xff] }
 0x349   : > { %4128 = vmatprep.subr.mxu1 %v2508_v37  ;;  %4058 = vmatpush1.msra.mxu0 %v2379_v38  ;;  %v2472_v21 = vld [vmem:[%s7225_s8 + $0x398] sm:$0xff]  ;;  %v2599_v24 = vld [vmem:[%s7225_s8 + $0x790] sm:$0xff] }
 0x34a   : > { %4129 = vmatpush1.msra.mxu1 %v2507_v39  ;;  %4059 = vmatprep.subr.mxu0 %v2376_v41  ;;  %v2600_v22 = vld [vmem:[%s7225_s8 + $0x798] sm:$0xff]  ;;  %v2467_v29 = vld [vmem:[%s7225_s8 + $0x370] sm:$0xff] }
 0x34b   : > { %4130 = vmatprep.subr.mxu1 %v2504_v42  ;;  %4060 = vmatpush1.msra.mxu0 %v2375_v45  ;;  %v2468_v26 = vld [vmem:[%s7225_s8 + $0x378] sm:$0xff]  ;;  %v2595_v31 = vld [vmem:[%s7225_s8 + $0x770] sm:$0xff] }
 0x34c   : > { %4131 = vmatpush1.msra.mxu1 %v2503_v46  ;;  %4061 = vmatprep.subr.mxu0 %v2372_v47  ;;  %v2596_v27 = vld [vmem:[%s7225_s8 + $0x778] sm:$0xff]  ;;  %v2463_v36 = vld [vmem:[%s7225_s8 + $0x350] sm:$0xff] }
 0x34d   : > { %4132 = vmatprep.subr.mxu1 %v2500_v48  ;;  %4062 = vmatpush1.msra.mxu0 %v2371_v50  ;;  %v2464_v32 = vld [vmem:[%s7225_s8 + $0x358] sm:$0xff]  ;;  %v2591_v37 = vld [vmem:[%s7225_s8 + $0x750] sm:$0xff] }
 0x34e   : > { %4133 = vmatpush1.msra.mxu1 %v2499_v51  ;;  %4063 = vmatprep.subr.mxu0 %v2368_v52  ;;  %v2592_v34 = vld [vmem:[%s7225_s8 + $0x758] sm:$0xff]  ;;  %v2459_v41 = vld [vmem:[%s7225_s8 + $0x330] sm:$0xff] }
 0x34f   : > { %4134 = vmatprep.subr.mxu1 %v2496_v53  ;;  %4064 = vmatpush1.msra.mxu0 %v2367_v56  ;;  %v2460_v38 = vld [vmem:[%s7225_s8 + $0x338] sm:$0xff]  ;;  %v2587_v42 = vld [vmem:[%s7225_s8 + $0x730] sm:$0xff] }
 0x350   : > { %4135 = vmatpush1.msra.mxu1 %v2495_v57  ;;  %4065 = vmatprep.subr.mxu0 %v2364_v58  ;;  %v2588_v39 = vld [vmem:[%s7225_s8 + $0x738] sm:$0xff]  ;;  %v2455_v47 = vld [vmem:[%s7225_s8 + $0x310] sm:$0xff] }
 0x351   : > { %4136 = vmatprep.subr.mxu1 %v2492_v59  ;;  %4066 = vmatpush1.msra.mxu0 %v2363_v61  ;;  %v2456_v45 = vld [vmem:[%s7225_s8 + $0x318] sm:$0xff]  ;;  %v2583_v48 = vld [vmem:[%s7225_s8 + $0x710] sm:$0xff] }
 0x352   : > { %4137 = vmatpush1.msra.mxu1 %v2491_v62  ;;  %4067 = vmatprep.subr.mxu0 %v2360_v1  ;;  %v2584_v46 = vld [vmem:[%s7225_s8 + $0x718] sm:$0xff]  ;;  %v2451_v52 = vld [vmem:[%s7225_s8 + $0x2f0] sm:$0xff] }
 0x353   : > { %4138 = vmatprep.subr.mxu1 %v2488_v2  ;;  %4068 = vmatpush1.msra.mxu0 %v2359_v4  ;;  %v2452_v50 = vld [vmem:[%s7225_s8 + $0x2f8] sm:$0xff]  ;;  %v2579_v53 = vld [vmem:[%s7225_s8 + $0x6f0] sm:$0xff] }
 0x354   : > { %4139 = vmatpush1.msra.mxu1 %v2487_v5  ;;  %4069 = vmatprep.subr.mxu0 %v2484_v6  ;;  %v2580_v51 = vld [vmem:[%s7225_s8 + $0x6f8] sm:$0xff]  ;;  %v2447_v58 = vld [vmem:[%s7225_s8 + $0x2d0] sm:$0xff] }
 0x355   : > { %4140 = vmatprep.subr.mxu1 %v2612_v7  ;;  %4070 = vmatpush2.msra.mxu0 %v2483_v8  ;;  %v2448_v56 = vld [vmem:[%s7225_s8 + $0x2d8] sm:$0xff]  ;;  %v2575_v59 = vld [vmem:[%s7225_s8 + $0x6d0] sm:$0xff] }
 0x356   : > { %4141 = vmatpush2.msra.mxu1 %v2611_v9  ;;  %4071 = vmatprep.subr.mxu0 %v2480_v11  ;;  %v2576_v57 = vld [vmem:[%s7225_s8 + $0x6d8] sm:$0xff]  ;;  %v2443_v1 = vld [vmem:[%s7225_s8 + $0x2b0] sm:$0xff] }
 0x357   : > { %4142 = vmatprep.subr.mxu1 %v2608_v13  ;;  %4072 = vmatpush2.msra.mxu0 %v2479_v14  ;;  %v2444_v61 = vld [vmem:[%s7225_s8 + $0x2b8] sm:$0xff]  ;;  %v2571_v2 = vld [vmem:[%s7225_s8 + $0x6b0] sm:$0xff] }
 0x358   : > { %4143 = vmatpush2.msra.mxu1 %v2607_v15  ;;  %4073 = vmatprep.subr.mxu0 %v2476_v16  ;;  %v2572_v62 = vld [vmem:[%s7225_s8 + $0x6b8] sm:$0xff]  ;;  %v2439_v6 = vld [vmem:[%s7225_s8 + $0x290] sm:$0xff] }
 0x359   : > { %4144 = vmatprep.subr.mxu1 %v2604_v17  ;;  %4074 = vmatpush2.msra.mxu0 %v2475_v18  ;;  %v2440_v4 = vld [vmem:[%s7225_s8 + $0x298] sm:$0xff]  ;;  %v2567_v7 = vld [vmem:[%s7225_s8 + $0x690] sm:$0xff] }
 0x35a   : > { %4145 = vmatpush2.msra.mxu1 %v2603_v19  ;;  %4075 = vmatprep.subr.mxu0 %v2472_v21  ;;  %v2568_v5 = vld [vmem:[%s7225_s8 + $0x698] sm:$0xff]  ;;  %v2435_v11 = vld [vmem:[%s7225_s8 + $0x270] sm:$0xff] }
 0x35b   : > { %4146 = vmatprep.subr.mxu1 %v2600_v22  ;;  %4076 = vmatpush2.msra.mxu0 %v2471_v23  ;;  %v2436_v8 = vld [vmem:[%s7225_s8 + $0x278] sm:$0xff]  ;;  %v2563_v13 = vld [vmem:[%s7225_s8 + $0x670] sm:$0xff] }
 0x35c   : > { %4147 = vmatpush2.msra.mxu1 %v2599_v24  ;;  %4077 = vmatprep.subr.mxu0 %v2468_v26  ;;  %v2564_v9 = vld [vmem:[%s7225_s8 + $0x678] sm:$0xff]  ;;  %v2431_v16 = vld [vmem:[%s7225_s8 + $0x250] sm:$0xff] }
 0x35d   : > { %4148 = vmatprep.subr.mxu1 %v2596_v27  ;;  %4078 = vmatpush2.msra.mxu0 %v2467_v29  ;;  %v2432_v14 = vld [vmem:[%s7225_s8 + $0x258] sm:$0xff]  ;;  %v2559_v17 = vld [vmem:[%s7225_s8 + $0x650] sm:$0xff] }
 0x35e   : > { %4149 = vmatpush2.msra.mxu1 %v2595_v31  ;;  %4079 = vmatprep.subr.mxu0 %v2464_v32  ;;  %v2560_v15 = vld [vmem:[%s7225_s8 + $0x658] sm:$0xff]  ;;  %v2427_v21 = vld [vmem:[%s7225_s8 + $0x230] sm:$0xff] }
 0x35f   : > { %4150 = vmatprep.subr.mxu1 %v2592_v34  ;;  %4080 = vmatpush2.msra.mxu0 %v2463_v36  ;;  %v2428_v18 = vld [vmem:[%s7225_s8 + $0x238] sm:$0xff]  ;;  %v2555_v22 = vld [vmem:[%s7225_s8 + $0x630] sm:$0xff] }
 0x360   : > { %4151 = vmatpush2.msra.mxu1 %v2591_v37  ;;  %4081 = vmatprep.subr.mxu0 %v2460_v38  ;;  %v2556_v19 = vld [vmem:[%s7225_s8 + $0x638] sm:$0xff]  ;;  %v2423_v26 = vld [vmem:[%s7225_s8 + $0x210] sm:$0xff] }
 0x361   : > { %4152 = vmatprep.subr.mxu1 %v2588_v39  ;;  %4082 = vmatpush2.msra.mxu0 %v2459_v41  ;;  %v2424_v23 = vld [vmem:[%s7225_s8 + $0x218] sm:$0xff]  ;;  %v2551_v27 = vld [vmem:[%s7225_s8 + $0x610] sm:$0xff] }
 0x362   : > { %4153 = vmatpush2.msra.mxu1 %v2587_v42  ;;  %4083 = vmatprep.subr.mxu0 %v2456_v45  ;;  %v2552_v24 = vld [vmem:[%s7225_s8 + $0x618] sm:$0xff]  ;;  %v2675_v32 = vld [vmem:[%s7225_s8 + $0x9f0] sm:$0xff] }
 0x363   : > { %4154 = vmatprep.subr.mxu1 %v2584_v46  ;;  %4084 = vmatpush2.msra.mxu0 %v2455_v47  ;;  %v2676_v29 = vld [vmem:[%s7225_s8 + $0x9f8] sm:$0xff]  ;;  %v2803_v34 = vld [vmem:[%s7225_s8 + $0xdf0] sm:$0xff] }
 0x364   : > { %4155 = vmatpush2.msra.mxu1 %v2583_v48  ;;  %4085 = vmatprep.subr.mxu0 %v2452_v50  ;;  %v2804_v31 = vld [vmem:[%s7225_s8 + $0xdf8] sm:$0xff]  ;;  %v2799_v38 = vld [vmem:[%s7225_s8 + $0xdd0] sm:$0xff] }
 0x365   : > { %4156 = vmatprep.subr.mxu1 %v2580_v51  ;;  %4086 = vmatpush2.msra.mxu0 %v2451_v52  ;;  %v2672_v36 = vld [vmem:[%s7225_s8 + $0x9d8] sm:$0xff]  ;;  %v2663_v45 = vld [vmem:[%s7225_s8 + $0x990] sm:$0xff] }
 0x366   : > { %4157 = vmatpush2.msra.mxu1 %v2579_v53  ;;  %4087 = vmatprep.subr.mxu0 %v2448_v56  ;;  %v2800_v37 = vld [vmem:[%s7225_s8 + $0xdd8] sm:$0xff]  ;;  %v2791_v46 = vld [vmem:[%s7225_s8 + $0xd90] sm:$0xff] }
 0x367   : > { %4158 = vmatprep.subr.mxu1 %v2576_v57  ;;  %4088 = vmatpush2.msra.mxu0 %v2447_v58  ;;  %v2796_v39 = vld [vmem:[%s7225_s8 + $0xdb8] sm:$0xff]  ;;  %v2659_v50 = vld [vmem:[%s7225_s8 + $0x970] sm:$0xff] }
 0x368   : > { %4159 = vmatpush2.msra.mxu1 %v2575_v59  ;;  %4089 = vmatprep.subr.mxu0 %v2444_v61  ;;  %v2664_v41 = vld [vmem:[%s7225_s8 + $0x998] sm:$0xff]  ;;  %v2787_v51 = vld [vmem:[%s7225_s8 + $0xd70] sm:$0xff] }
 0x369   : > { %4160 = vmatprep.subr.mxu1 %v2572_v62  ;;  %4090 = vmatpush2.msra.mxu0 %v2443_v1  ;;  %v2792_v42 = vld [vmem:[%s7225_s8 + $0xd98] sm:$0xff]  ;;  %v2655_v56 = vld [vmem:[%s7225_s8 + $0x950] sm:$0xff] }
 0x36a   : > { %4161 = vmatpush2.msra.mxu1 %v2571_v2  ;;  %4091 = vmatprep.subr.mxu0 %v2440_v4  ;;  %v2660_v47 = vld [vmem:[%s7225_s8 + $0x978] sm:$0xff]  ;;  %v2783_v57 = vld [vmem:[%s7225_s8 + $0xd50] sm:$0xff] }
 0x36b   : > { %4162 = vmatprep.subr.mxu1 %v2568_v5  ;;  %4092 = vmatpush2.msra.mxu0 %v2439_v6  ;;  %v2788_v48 = vld [vmem:[%s7225_s8 + $0xd78] sm:$0xff]  ;;  %v2651_v61 = vld [vmem:[%s7225_s8 + $0x930] sm:$0xff] }
 0x36c   : > { %4163 = vmatpush2.msra.mxu1 %v2567_v7  ;;  %4093 = vmatprep.subr.mxu0 %v2436_v8  ;;  %v2656_v52 = vld [vmem:[%s7225_s8 + $0x958] sm:$0xff]  ;;  %v2779_v62 = vld [vmem:[%s7225_s8 + $0xd30] sm:$0xff] }
 0x36d   : > { %4164 = vmatprep.subr.mxu1 %v2564_v9  ;;  %4094 = vmatpush2.msra.mxu0 %v2435_v11  ;;  %v2784_v53 = vld [vmem:[%s7225_s8 + $0xd58] sm:$0xff]  ;;  %v2647_v4 = vld [vmem:[%s7225_s8 + $0x910] sm:$0xff] }
 0x36e   : > { %4165 = vmatpush2.msra.mxu1 %v2563_v13  ;;  %4095 = vmatprep.subr.mxu0 %v2432_v14  ;;  %v2652_v58 = vld [vmem:[%s7225_s8 + $0x938] sm:$0xff]  ;;  %v2775_v5 = vld [vmem:[%s7225_s8 + $0xd10] sm:$0xff] }
 0x36f   : > { %4166 = vmatprep.subr.mxu1 %v2560_v15  ;;  %4096 = vmatpush2.msra.mxu0 %v2431_v16  ;;  %v2780_v59 = vld [vmem:[%s7225_s8 + $0xd38] sm:$0xff]  ;;  %v2643_v8 = vld [vmem:[%s7225_s8 + $0x8f0] sm:$0xff] }
 0x370   : > { %4167 = vmatpush2.msra.mxu1 %v2559_v17  ;;  %4097 = vmatprep.subr.mxu0 %v2428_v18  ;;  %v2648_v1 = vld [vmem:[%s7225_s8 + $0x918] sm:$0xff]  ;;  %v2771_v9 = vld [vmem:[%s7225_s8 + $0xcf0] sm:$0xff] }
 0x371   : > { %4168 = vmatprep.subr.mxu1 %v2556_v19  ;;  %4098 = vmatpush2.msra.mxu0 %v2427_v21  ;;  %v2776_v2 = vld [vmem:[%s7225_s8 + $0xd18] sm:$0xff]  ;;  %v2639_v14 = vld [vmem:[%s7225_s8 + $0x8d0] sm:$0xff] }
 0x372   : > { %4169 = vmatpush2.msra.mxu1 %v2555_v22  ;;  %4099 = vmatprep.subr.mxu0 %v2424_v23  ;;  %v2644_v6 = vld [vmem:[%s7225_s8 + $0x8f8] sm:$0xff]  ;;  %v2767_v15 = vld [vmem:[%s7225_s8 + $0xcd0] sm:$0xff] }
 0x373   : > { %4170 = vmatprep.subr.mxu1 %v2552_v24  ;;  %4100 = vmatpush2.msra.mxu0 %v2423_v26  ;;  %v2772_v7 = vld [vmem:[%s7225_s8 + $0xcf8] sm:$0xff]  ;;  %v2635_v18 = vld [vmem:[%s7225_s8 + $0x8b0] sm:$0xff] }
 0x374   : > { %4101 = vmatprep.mubr.f32.mxu0 %v7398_v10  ;;  %4171 = vmatpush2.msra.mxu1 %v2551_v27  ;;  %v2671_v10 = vld [vmem:[%s7225_s8 + $0x9d0] sm:$0xff]  ;;  %v2640_v11 = vld [vmem:[%s7225_s8 + $0x8d8] sm:$0xff] }
 0x375   : > { %4172 = vmatprep.mubr.f32.mxu1 %v7403_v12  ;;  %4102 = vmatmul.mubr.f32.vlgmr.msra.gmra.mxu0 %v7383_v0  ;;  %v2668_v12 = vld [vmem:[%s7225_s8 + $0x9b8] sm:$0xff]  ;;  %v2667_v0 = vld [vmem:[%s7225_s8 + $0x9b0] sm:$0xff] }
 0x376   : > { %4173 = vmatmul.mubr.f32.vlgmr.msra.gmra.mxu1 %v7388_v3  ;;  %4179 = vmatprep.subr.mxu0 %v2676_v29  ;;  %v2795_v3 = vld [vmem:[%s7225_s8 + $0xdb0] sm:$0xff]  ;;  %v2768_v13 = vld [vmem:[%s7225_s8 + $0xcd8] sm:$0xff] }
 0x377   : > { %4250 = vmatprep.subr.mxu1 %v2804_v31  ;;  %4180 = vmatpush1.msra.mxu0 %v2675_v32  ;;  %v2636_v16 = vld [vmem:[%s7225_s8 + $0x8b8] sm:$0xff]  ;;  %v2763_v19 = vld [vmem:[%s7225_s8 + $0xcb0] sm:$0xff] }
 0x378   : > { %4251 = vmatpush1.msra.mxu1 %v2803_v34  ;;  %4181 = vmatprep.subr.mxu0 %v2672_v36  ;;  %v2764_v17 = vld [vmem:[%s7225_s8 + $0xcb8] sm:$0xff]  ;;  %v2631_v23 = vld [vmem:[%s7225_s8 + $0x890] sm:$0xff] }
 0x379   : > { %4252 = vmatprep.subr.mxu1 %v2800_v37  ;;  %4182 = vmatpush1.msra.mxu0 %v2671_v10  ;;  %v2632_v21 = vld [vmem:[%s7225_s8 + $0x898] sm:$0xff]  ;;  %v2759_v24 = vld [vmem:[%s7225_s8 + $0xc90] sm:$0xff] }
 0x37a   : > { %4253 = vmatpush1.msra.mxu1 %v2799_v38  ;;  %4183 = vmatprep.subr.mxu0 %v2668_v12  ;;  %v2760_v22 = vld [vmem:[%s7225_s8 + $0xc98] sm:$0xff]  ;;  %v2627_v29 = vld [vmem:[%s7225_s8 + $0x870] sm:$0xff] }
 0x37b   : > { %4254 = vmatprep.subr.mxu1 %v2796_v39  ;;  %4184 = vmatpush1.msra.mxu0 %v2667_v0  ;;  %v2628_v26 = vld [vmem:[%s7225_s8 + $0x878] sm:$0xff]  ;;  %v2755_v31 = vld [vmem:[%s7225_s8 + $0xc70] sm:$0xff] }
 0x37c   : > { %4255 = vmatpush1.msra.mxu1 %v2795_v3  ;;  %4185 = vmatprep.subr.mxu0 %v2664_v41  ;;  %v2756_v27 = vld [vmem:[%s7225_s8 + $0xc78] sm:$0xff]  ;;  %v2623_v36 = vld [vmem:[%s7225_s8 + $0x850] sm:$0xff] }
 0x37d   : > { %4256 = vmatprep.subr.mxu1 %v2792_v42  ;;  %4186 = vmatpush1.msra.mxu0 %v2663_v45  ;;  %v2624_v32 = vld [vmem:[%s7225_s8 + $0x858] sm:$0xff]  ;;  %v2751_v37 = vld [vmem:[%s7225_s8 + $0xc50] sm:$0xff] }
 0x37e   : > { %4257 = vmatpush1.msra.mxu1 %v2791_v46  ;;  %4187 = vmatprep.subr.mxu0 %v2660_v47  ;;  %v2752_v34 = vld [vmem:[%s7225_s8 + $0xc58] sm:$0xff]  ;;  %v2619_v12 = vld [vmem:[%s7225_s8 + $0x830] sm:$0xff] }
 0x37f   : > { %4258 = vmatprep.subr.mxu1 %v2788_v48  ;;  %4188 = vmatpush1.msra.mxu0 %v2659_v50  ;;  %v2620_v10 = vld [vmem:[%s7225_s8 + $0x838] sm:$0xff]  ;;  %v2747_v39 = vld [vmem:[%s7225_s8 + $0xc30] sm:$0xff] }
 0x380   : > { %4259 = vmatpush1.msra.mxu1 %v2787_v51  ;;  %4189 = vmatprep.subr.mxu0 %v2656_v52  ;;  %v2748_v38 = vld [vmem:[%s7225_s8 + $0xc38] sm:$0xff]  ;;  %v2615_v41 = vld [vmem:[%s7225_s8 + $0x810] sm:$0xff] }
 0x381   : > { %4260 = vmatprep.subr.mxu1 %v2784_v53  ;;  %4190 = vmatpush1.msra.mxu0 %v2655_v56  ;;  %v2616_v0 = vld [vmem:[%s7225_s8 + $0x818] sm:$0xff]  ;;  %v2743_v42 = vld [vmem:[%s7225_s8 + $0xc10] sm:$0xff] }
 0x382   : > { %4261 = vmatpush1.msra.mxu1 %v2783_v57  ;;  %4191 = vmatprep.subr.mxu0 %v2652_v58  ;;  %v2744_v3 = vld [vmem:[%s7225_s8 + $0xc18] sm:$0xff]  ;;  %v2739_v47 = vld [vmem:[%s7225_s8 + $0xbf0] sm:$0xff] }
 0x383   : > { %4262 = vmatprep.subr.mxu1 %v2780_v59  ;;  %4192 = vmatpush1.msra.mxu0 %v2651_v61  ;;  %v2740_v45 = vld [vmem:[%s7225_s8 + $0xbf8] sm:$0xff]  ;;  %v2867_v48 = vld [vmem:[%s7225_s8 + $0xff0] sm:$0xff] }
 0x384   : > { %4263 = vmatpush1.msra.mxu1 %v2779_v62  ;;  %4193 = vmatprep.subr.mxu0 %v2648_v1  ;;  %v2868_v46 = vld [vmem:[%s7225_s8 + $0xff8] sm:$0xff]  ;;  %v2735_v52 = vld [vmem:[%s7225_s8 + $0xbd0] sm:$0xff] }
 0x385   : > { %4264 = vmatprep.subr.mxu1 %v2776_v2  ;;  %4194 = vmatpush1.msra.mxu0 %v2647_v4  ;;  %v2736_v50 = vld [vmem:[%s7225_s8 + $0xbd8] sm:$0xff]  ;;  %v2863_v53 = vld [vmem:[%s7225_s8 + $0xfd0] sm:$0xff] }
 0x386   : > { %4265 = vmatpush1.msra.mxu1 %v2775_v5  ;;  %4195 = vmatprep.subr.mxu0 %v2644_v6  ;;  %v2864_v51 = vld [vmem:[%s7225_s8 + $0xfd8] sm:$0xff]  ;;  %v2731_v58 = vld [vmem:[%s7225_s8 + $0xbb0] sm:$0xff] }
 0x387   : > { %4266 = vmatprep.subr.mxu1 %v2772_v7  ;;  %4196 = vmatpush1.msra.mxu0 %v2643_v8  ;;  %v2732_v56 = vld [vmem:[%s7225_s8 + $0xbb8] sm:$0xff]  ;;  %v2859_v59 = vld [vmem:[%s7225_s8 + $0xfb0] sm:$0xff] }
 0x388   : > { %4267 = vmatpush1.msra.mxu1 %v2771_v9  ;;  %4197 = vmatprep.subr.mxu0 %v2640_v11  ;;  %v2860_v57 = vld [vmem:[%s7225_s8 + $0xfb8] sm:$0xff]  ;;  %v2727_v1 = vld [vmem:[%s7225_s8 + $0xb90] sm:$0xff] }
 0x389   : > { %4268 = vmatprep.subr.mxu1 %v2768_v13  ;;  %4198 = vmatpush1.msra.mxu0 %v2639_v14  ;;  %v2728_v61 = vld [vmem:[%s7225_s8 + $0xb98] sm:$0xff]  ;;  %v2855_v2 = vld [vmem:[%s7225_s8 + $0xf90] sm:$0xff] }
 0x38a   : > { %4269 = vmatpush1.msra.mxu1 %v2767_v15  ;;  %4199 = vmatprep.subr.mxu0 %v2636_v16  ;;  %v2856_v62 = vld [vmem:[%s7225_s8 + $0xf98] sm:$0xff]  ;;  %v2723_v6 = vld [vmem:[%s7225_s8 + $0xb70] sm:$0xff] }
 0x38b   : > { %4270 = vmatprep.subr.mxu1 %v2764_v17  ;;  %4200 = vmatpush1.msra.mxu0 %v2635_v18  ;;  %v2724_v4 = vld [vmem:[%s7225_s8 + $0xb78] sm:$0xff]  ;;  %v2851_v7 = vld [vmem:[%s7225_s8 + $0xf70] sm:$0xff] }
 0x38c   : > { %4271 = vmatpush1.msra.mxu1 %v2763_v19  ;;  %4201 = vmatprep.subr.mxu0 %v2632_v21  ;;  %v2852_v5 = vld [vmem:[%s7225_s8 + $0xf78] sm:$0xff]  ;;  %v2719_v11 = vld [vmem:[%s7225_s8 + $0xb50] sm:$0xff] }
 0x38d   : > { %4272 = vmatprep.subr.mxu1 %v2760_v22  ;;  %4202 = vmatpush1.msra.mxu0 %v2631_v23  ;;  %v2720_v8 = vld [vmem:[%s7225_s8 + $0xb58] sm:$0xff]  ;;  %v2847_v13 = vld [vmem:[%s7225_s8 + $0xf50] sm:$0xff] }
 0x38e   : > { %4273 = vmatpush1.msra.mxu1 %v2759_v24  ;;  %4203 = vmatprep.subr.mxu0 %v2628_v26  ;;  %v2848_v9 = vld [vmem:[%s7225_s8 + $0xf58] sm:$0xff]  ;;  %v2715_v16 = vld [vmem:[%s7225_s8 + $0xb30] sm:$0xff] }
 0x38f   : > { %4274 = vmatprep.subr.mxu1 %v2756_v27  ;;  %4204 = vmatpush1.msra.mxu0 %v2627_v29  ;;  %v2716_v14 = vld [vmem:[%s7225_s8 + $0xb38] sm:$0xff]  ;;  %v2843_v17 = vld [vmem:[%s7225_s8 + $0xf30] sm:$0xff] }
 0x390   : > { %4275 = vmatpush1.msra.mxu1 %v2755_v31  ;;  %4205 = vmatprep.subr.mxu0 %v2624_v32  ;;  %v2844_v15 = vld [vmem:[%s7225_s8 + $0xf38] sm:$0xff]  ;;  %v2711_v21 = vld [vmem:[%s7225_s8 + $0xb10] sm:$0xff] }
 0x391   : > { %4276 = vmatprep.subr.mxu1 %v2752_v34  ;;  %4206 = vmatpush1.msra.mxu0 %v2623_v36  ;;  %v2712_v18 = vld [vmem:[%s7225_s8 + $0xb18] sm:$0xff]  ;;  %v2839_v22 = vld [vmem:[%s7225_s8 + $0xf10] sm:$0xff] }
 0x392   : > { %4277 = vmatpush1.msra.mxu1 %v2751_v37  ;;  %4207 = vmatprep.subr.mxu0 %v2620_v10  ;;  %v2840_v19 = vld [vmem:[%s7225_s8 + $0xf18] sm:$0xff]  ;;  %v2707_v26 = vld [vmem:[%s7225_s8 + $0xaf0] sm:$0xff] }
 0x393   : > { %4278 = vmatprep.subr.mxu1 %v2748_v38  ;;  %4208 = vmatpush1.msra.mxu0 %v2619_v12  ;;  %v2708_v23 = vld [vmem:[%s7225_s8 + $0xaf8] sm:$0xff]  ;;  %v2835_v27 = vld [vmem:[%s7225_s8 + $0xef0] sm:$0xff] }
 0x394   : > { %4279 = vmatpush1.msra.mxu1 %v2747_v39  ;;  %4209 = vmatprep.subr.mxu0 %v2616_v0  ;;  %v2836_v24 = vld [vmem:[%s7225_s8 + $0xef8] sm:$0xff]  ;;  %v2703_v32 = vld [vmem:[%s7225_s8 + $0xad0] sm:$0xff] }
 0x395   : > { %4280 = vmatprep.subr.mxu1 %v2744_v3  ;;  %4210 = vmatpush1.msra.mxu0 %v2615_v41  ;;  %v2704_v29 = vld [vmem:[%s7225_s8 + $0xad8] sm:$0xff]  ;;  %v2831_v34 = vld [vmem:[%s7225_s8 + $0xed0] sm:$0xff] }
 0x396   : > { %4281 = vmatpush1.msra.mxu1 %v2743_v42  ;;  %4211 = vmatprep.subr.mxu0 %v2740_v45  ;;  %v2832_v31 = vld [vmem:[%s7225_s8 + $0xed8] sm:$0xff]  ;;  %v2699_v10 = vld [vmem:[%s7225_s8 + $0xab0] sm:$0xff] }
 0x397   : > { %4282 = vmatprep.subr.mxu1 %v2868_v46  ;;  %4212 = vmatpush2.msra.mxu0 %v2739_v47  ;;  %v2700_v36 = vld [vmem:[%s7225_s8 + $0xab8] sm:$0xff]  ;;  %v2827_v38 = vld [vmem:[%s7225_s8 + $0xeb0] sm:$0xff] }
 0x398   : > { %4283 = vmatpush2.msra.mxu1 %v2867_v48  ;;  %4213 = vmatprep.subr.mxu0 %v2736_v50  ;;  %v2828_v37 = vld [vmem:[%s7225_s8 + $0xeb8] sm:$0xff]  ;;  %v2695_v0 = vld [vmem:[%s7225_s8 + $0xa90] sm:$0xff] }
 0x399   : > { %4284 = vmatprep.subr.mxu1 %v2864_v51  ;;  %4214 = vmatpush2.msra.mxu0 %v2735_v52  ;;  %v2696_v12 = vld [vmem:[%s7225_s8 + $0xa98] sm:$0xff]  ;;  %v2823_v3 = vld [vmem:[%s7225_s8 + $0xe90] sm:$0xff] }
 0x39a   : > { %4285 = vmatpush2.msra.mxu1 %v2863_v53  ;;  %4215 = vmatprep.subr.mxu0 %v2732_v56  ;;  %v2824_v39 = vld [vmem:[%s7225_s8 + $0xe98] sm:$0xff]  ;;  %v2691_v45 = vld [vmem:[%s7225_s8 + $0xa70] sm:$0xff] }
 0x39b   : > { %4286 = vmatprep.subr.mxu1 %v2860_v57  ;;  %4216 = vmatpush2.msra.mxu0 %v2731_v58  ;;  %v2692_v41 = vld [vmem:[%s7225_s8 + $0xa78] sm:$0xff]  ;;  %v2819_v46 = vld [vmem:[%s7225_s8 + $0xe70] sm:$0xff] }
 0x39c   : > { %4287 = vmatpush2.msra.mxu1 %v2859_v59  ;;  %4217 = vmatprep.subr.mxu0 %v2728_v61  ;;  %v2820_v42 = vld [vmem:[%s7225_s8 + $0xe78] sm:$0xff]  ;;  %v2687_v50 = vld [vmem:[%s7225_s8 + $0xa50] sm:$0xff] }
 0x39d   : > { %4288 = vmatprep.subr.mxu1 %v2856_v62  ;;  %4218 = vmatpush2.msra.mxu0 %v2727_v1  ;;  %v2688_v47 = vld [vmem:[%s7225_s8 + $0xa58] sm:$0xff]  ;;  %v2815_v51 = vld [vmem:[%s7225_s8 + $0xe50] sm:$0xff] }
 0x39e   : > { %4289 = vmatpush2.msra.mxu1 %v2855_v2  ;;  %4219 = vmatprep.subr.mxu0 %v2724_v4  ;;  %v2816_v48 = vld [vmem:[%s7225_s8 + $0xe58] sm:$0xff]  ;;  %v2683_v56 = vld [vmem:[%s7225_s8 + $0xa30] sm:$0xff] }
 0x39f   : > { %4290 = vmatprep.subr.mxu1 %v2852_v5  ;;  %4220 = vmatpush2.msra.mxu0 %v2723_v6  ;;  %v2684_v52 = vld [vmem:[%s7225_s8 + $0xa38] sm:$0xff]  ;;  %v2811_v57 = vld [vmem:[%s7225_s8 + $0xe30] sm:$0xff] }
 0x3a0   : > { %4291 = vmatpush2.msra.mxu1 %v2851_v7  ;;  %4221 = vmatprep.subr.mxu0 %v2720_v8  ;;  %v2812_v53 = vld [vmem:[%s7225_s8 + $0xe38] sm:$0xff]  ;;  %v2679_v61 = vld [vmem:[%s7225_s8 + $0xa10] sm:$0xff] }
 0x3a1   : > { %4292 = vmatprep.subr.mxu1 %v2848_v9  ;;  %4222 = vmatpush2.msra.mxu0 %v2719_v11  ;;  %v2680_v58 = vld [vmem:[%s7225_s8 + $0xa18] sm:$0xff]  ;;  %v2807_v62 = vld [vmem:[%s7225_s8 + $0xe10] sm:$0xff] }
 0x3a2   : > { %4293 = vmatpush2.msra.mxu1 %v2847_v13  ;;  %4223 = vmatprep.subr.mxu0 %v2716_v14  ;;  %v2808_v59 = vld [vmem:[%s7225_s8 + $0xe18] sm:$0xff]  ;;  %v2931_v4 = vld [vmem:[%s7225_s8 + $0x11f0] sm:$0xff] }
 0x3a3   : > { %4294 = vmatprep.subr.mxu1 %v2844_v15  ;;  %4224 = vmatpush2.msra.mxu0 %v2715_v16  ;;  %v2932_v1 = vld [vmem:[%s7225_s8 + $0x11f8] sm:$0xff]  ;;  %v3059_v5 = vld [vmem:[%s7225_s8 + $0x15f0] sm:$0xff] }
 0x3a4   : > { %4295 = vmatpush2.msra.mxu1 %v2843_v17  ;;  %4225 = vmatprep.subr.mxu0 %v2712_v18  ;;  %v3060_v2 = vld [vmem:[%s7225_s8 + $0x15f8] sm:$0xff]  ;;  %v3055_v8 = vld [vmem:[%s7225_s8 + $0x15d0] sm:$0xff] }
 0x3a5   : > { %4296 = vmatprep.subr.mxu1 %v2840_v19  ;;  %4226 = vmatpush2.msra.mxu0 %v2711_v21  ;;  %v2928_v6 = vld [vmem:[%s7225_s8 + $0x11d8] sm:$0xff]  ;;  %v3051_v11 = vld [vmem:[%s7225_s8 + $0x15b0] sm:$0xff] }
 0x3a6   : > { %4297 = vmatpush2.msra.mxu1 %v2839_v22  ;;  %4227 = vmatprep.subr.mxu0 %v2708_v23  ;;  %v3056_v7 = vld [vmem:[%s7225_s8 + $0x15d8] sm:$0xff]  ;;  %v2919_v14 = vld [vmem:[%s7225_s8 + $0x1190] sm:$0xff] }
 0x3a7   : > { %4298 = vmatprep.subr.mxu1 %v2836_v24  ;;  %4228 = vmatpush2.msra.mxu0 %v2707_v26  ;;  %v3052_v9 = vld [vmem:[%s7225_s8 + $0x15b8] sm:$0xff]  ;;  %v3047_v15 = vld [vmem:[%s7225_s8 + $0x1590] sm:$0xff] }
 0x3a8   : > { %4299 = vmatpush2.msra.mxu1 %v2835_v27  ;;  %4229 = vmatprep.subr.mxu0 %v2704_v29  ;;  %v2920_v13 = vld [vmem:[%s7225_s8 + $0x1198] sm:$0xff]  ;;  %v2915_v18 = vld [vmem:[%s7225_s8 + $0x1170] sm:$0xff] }
 0x3a9   : > { %4300 = vmatprep.subr.mxu1 %v2832_v31  ;;  %4230 = vmatpush2.msra.mxu0 %v2703_v32  ;;  %v2916_v16 = vld [vmem:[%s7225_s8 + $0x1178] sm:$0xff]  ;;  %v3043_v19 = vld [vmem:[%s7225_s8 + $0x1570] sm:$0xff] }
 0x3aa   : > { %4301 = vmatpush2.msra.mxu1 %v2831_v34  ;;  %4231 = vmatprep.subr.mxu0 %v2700_v36  ;;  %v3044_v17 = vld [vmem:[%s7225_s8 + $0x1578] sm:$0xff]  ;;  %v2911_v23 = vld [vmem:[%s7225_s8 + $0x1150] sm:$0xff] }
 0x3ab   : > { %4302 = vmatprep.subr.mxu1 %v2828_v37  ;;  %4232 = vmatpush2.msra.mxu0 %v2699_v10  ;;  %v2912_v21 = vld [vmem:[%s7225_s8 + $0x1158] sm:$0xff]  ;;  %v3039_v24 = vld [vmem:[%s7225_s8 + $0x1550] sm:$0xff] }
 0x3ac   : > { %4303 = vmatpush2.msra.mxu1 %v2827_v38  ;;  %4233 = vmatprep.subr.mxu0 %v2696_v12  ;;  %v3040_v22 = vld [vmem:[%s7225_s8 + $0x1558] sm:$0xff]  ;;  %v2907_v29 = vld [vmem:[%s7225_s8 + $0x1130] sm:$0xff] }
 0x3ad   : > { %4304 = vmatprep.subr.mxu1 %v2824_v39  ;;  %4234 = vmatpush2.msra.mxu0 %v2695_v0  ;;  %v2908_v26 = vld [vmem:[%s7225_s8 + $0x1138] sm:$0xff]  ;;  %v3035_v31 = vld [vmem:[%s7225_s8 + $0x1530] sm:$0xff] }
 0x3ae   : > { %4305 = vmatpush2.msra.mxu1 %v2823_v3  ;;  %4235 = vmatprep.subr.mxu0 %v2692_v41  ;;  %v3036_v27 = vld [vmem:[%s7225_s8 + $0x1538] sm:$0xff]  ;;  %v2903_v36 = vld [vmem:[%s7225_s8 + $0x1110] sm:$0xff] }
 0x3af   : > { %4306 = vmatprep.subr.mxu1 %v2820_v42  ;;  %4236 = vmatpush2.msra.mxu0 %v2691_v45  ;;  %v2904_v32 = vld [vmem:[%s7225_s8 + $0x1118] sm:$0xff]  ;;  %v3031_v37 = vld [vmem:[%s7225_s8 + $0x1510] sm:$0xff] }
 0x3b0   : > { %4307 = vmatpush2.msra.mxu1 %v2819_v46  ;;  %4237 = vmatprep.subr.mxu0 %v2688_v47  ;;  %v3032_v34 = vld [vmem:[%s7225_s8 + $0x1518] sm:$0xff]  ;;  %v2899_v12 = vld [vmem:[%s7225_s8 + $0x10f0] sm:$0xff] }
 0x3b1   : > { %4308 = vmatprep.subr.mxu1 %v2816_v48  ;;  %4238 = vmatpush2.msra.mxu0 %v2687_v50  ;;  %v2900_v10 = vld [vmem:[%s7225_s8 + $0x10f8] sm:$0xff]  ;;  %v3027_v39 = vld [vmem:[%s7225_s8 + $0x14f0] sm:$0xff] }
 0x3b2   : > { %4309 = vmatpush2.msra.mxu1 %v2815_v51  ;;  %4239 = vmatprep.subr.mxu0 %v2684_v52  ;;  %v3028_v38 = vld [vmem:[%s7225_s8 + $0x14f8] sm:$0xff]  ;;  %v2895_v41 = vld [vmem:[%s7225_s8 + $0x10d0] sm:$0xff] }
 0x3b3   : > { %4310 = vmatprep.subr.mxu1 %v2812_v53  ;;  %4240 = vmatpush2.msra.mxu0 %v2683_v56  ;;  %v2896_v0 = vld [vmem:[%s7225_s8 + $0x10d8] sm:$0xff]  ;;  %v3023_v42 = vld [vmem:[%s7225_s8 + $0x14d0] sm:$0xff] }
 0x3b4   : > { %4311 = vmatpush2.msra.mxu1 %v2811_v57  ;;  %4241 = vmatprep.subr.mxu0 %v2680_v58  ;;  %v3024_v3 = vld [vmem:[%s7225_s8 + $0x14d8] sm:$0xff]  ;;  %v2891_v47 = vld [vmem:[%s7225_s8 + $0x10b0] sm:$0xff] }
 0x3b5   : > { %4312 = vmatprep.subr.mxu1 %v2808_v59  ;;  %4242 = vmatpush2.msra.mxu0 %v2679_v61  ;;  %v2892_v45 = vld [vmem:[%s7225_s8 + $0x10b8] sm:$0xff]  ;;  %v3019_v48 = vld [vmem:[%s7225_s8 + $0x14b0] sm:$0xff] }
 0x3b6   : > { %4243 = vmatprep.mubr.f32.mxu0 %v7546_v30  ;;  %4313 = vmatpush2.msra.mxu1 %v2807_v62  ;;  %v2927_v30 = vld [vmem:[%s7225_s8 + $0x11d0] sm:$0xff]  ;;  %v3020_v46 = vld [vmem:[%s7225_s8 + $0x14b8] sm:$0xff] }
 0x3b7   : > { %4244 = vmatmul.mubr.f32.vlgmr.msra.gmra.mxu0 %v7531_v20  ;;  %4314 = vmatprep.mubr.f32.mxu1 %v7552_v33  ;;  %v2924_v20 = vld [vmem:[%s7225_s8 + $0x11b8] sm:$0xff]  ;;  %v2923_v33 = vld [vmem:[%s7225_s8 + $0x11b0] sm:$0xff] }
 0x3b8   : > { %4321 = vmatprep.subr.mxu0 %v2932_v1  ;;  %4392 = vmatprep.subr.mxu1 %v3060_v2  ;;  %v2888_v50 = vld [vmem:[%s7225_s8 + $0x1098] sm:$0xff]  ;;  %v2887_v52 = vld [vmem:[%s7225_s8 + $0x1090] sm:$0xff] }
 0x3b9   : > { %4315 = vmatmul.mubr.f32.vlgmr.msra.gmra.mxu1 %v7538_v25  ;;  %4322 = vmatpush1.msra.mxu0 %v2931_v4  ;;  %v3048_v25 = vld [vmem:[%s7225_s8 + $0x1598] sm:$0xff]  ;;  %v3015_v53 = vld [vmem:[%s7225_s8 + $0x1490] sm:$0xff] }
 0x3ba   : > { %4393 = vmatpush1.msra.mxu1 %v3059_v5  ;;  %4323 = vmatprep.subr.mxu0 %v2928_v6  ;;  %v3016_v51 = vld [vmem:[%s7225_s8 + $0x1498] sm:$0xff]  ;;  %v2883_v58 = vld [vmem:[%s7225_s8 + $0x1070] sm:$0xff] }
 0x3bb   : > { %4394 = vmatprep.subr.mxu1 %v3056_v7  ;;  %4324 = vmatpush1.msra.mxu0 %v2927_v30  ;;  %v2884_v56 = vld [vmem:[%s7225_s8 + $0x1078] sm:$0xff]  ;;  %v3011_v59 = vld [vmem:[%s7225_s8 + $0x1470] sm:$0xff] }
 0x3bc   : > { %4395 = vmatpush1.msra.mxu1 %v3055_v8  ;;  %4325 = vmatprep.subr.mxu0 %v2924_v20  ;;  %v3012_v57 = vld [vmem:[%s7225_s8 + $0x1478] sm:$0xff]  ;;  %v2879_v1 = vld [vmem:[%s7225_s8 + $0x1050] sm:$0xff] }
 0x3bd   : > { %4396 = vmatprep.subr.mxu1 %v3052_v9  ;;  %4326 = vmatpush1.msra.mxu0 %v2923_v33  ;;  %v2880_v61 = vld [vmem:[%s7225_s8 + $0x1058] sm:$0xff]  ;;  %v3007_v2 = vld [vmem:[%s7225_s8 + $0x1450] sm:$0xff] }
 0x3be   : > { %4397 = vmatpush1.msra.mxu1 %v3051_v11  ;;  %4327 = vmatprep.subr.mxu0 %v2920_v13  ;;  %v3008_v62 = vld [vmem:[%s7225_s8 + $0x1458] sm:$0xff]  ;;  %v2875_v6 = vld [vmem:[%s7225_s8 + $0x1030] sm:$0xff] }
 0x3bf   : > { %4398 = vmatprep.subr.mxu1 %v3048_v25  ;;  %4328 = vmatpush1.msra.mxu0 %v2919_v14  ;;  %v2876_v4 = vld [vmem:[%s7225_s8 + $0x1038] sm:$0xff]  ;;  %v3003_v7 = vld [vmem:[%s7225_s8 + $0x1430] sm:$0xff] }
 0x3c0   : > { %4399 = vmatpush1.msra.mxu1 %v3047_v15  ;;  %4329 = vmatprep.subr.mxu0 %v2916_v16  ;;  %v3004_v5 = vld [vmem:[%s7225_s8 + $0x1438] sm:$0xff]  ;;  %v2871_v20 = vld [vmem:[%s7225_s8 + $0x1010] sm:$0xff] }
 0x3c1   : > { %4400 = vmatprep.subr.mxu1 %v3044_v17  ;;  %4330 = vmatpush1.msra.mxu0 %v2915_v18  ;;  %v2872_v30 = vld [vmem:[%s7225_s8 + $0x1018] sm:$0xff]  ;;  %v2999_v9 = vld [vmem:[%s7225_s8 + $0x1410] sm:$0xff] }
 0x3c2   : > { %4401 = vmatpush1.msra.mxu1 %v3043_v19  ;;  %4331 = vmatprep.subr.mxu0 %v2912_v21  ;;  %v3000_v8 = vld [vmem:[%s7225_s8 + $0x1418] sm:$0xff]  ;;  %v2995_v13 = vld [vmem:[%s7225_s8 + $0x13f0] sm:$0xff] }
 0x3c3   : > { %4402 = vmatprep.subr.mxu1 %v3040_v22  ;;  %4332 = vmatpush1.msra.mxu0 %v2911_v23  ;;  %v2996_v33 = vld [vmem:[%s7225_s8 + $0x13f8] sm:$0xff]  ;;  %v3123_v25 = vld [vmem:[%s7225_s8 + $0x17f0] sm:$0xff] }
 0x3c4   : > { %4403 = vmatpush1.msra.mxu1 %v3039_v24  ;;  %4333 = vmatprep.subr.mxu0 %v2908_v26  ;;  %v3124_v11 = vld [vmem:[%s7225_s8 + $0x17f8] sm:$0xff]  ;;  %v2991_v16 = vld [vmem:[%s7225_s8 + $0x13d0] sm:$0xff]  ;;  %v3535_v26 = vpop.f32.mrf.mxu0 }
 0x3c5   : > { %4404 = vmatprep.subr.mxu1 %v3036_v27  ;;  %4334 = vmatpush1.msra.mxu0 %v2907_v29  ;;  %v2992_v14 = vld [vmem:[%s7225_s8 + $0x13d8] sm:$0xff]  ;;  %v3119_v17 = vld [vmem:[%s7225_s8 + $0x17d0] sm:$0xff] }
 0x3c6   : > { %4405 = vmatpush1.msra.mxu1 %v3035_v31  ;;  %4335 = vmatprep.subr.mxu0 %v2904_v32  ;;  %v3120_v15 = vld [vmem:[%s7225_s8 + $0x17d8] sm:$0xff]  ;;  %v2987_v21 = vld [vmem:[%s7225_s8 + $0x13b0] sm:$0xff] }
 0x3c7   : > { %4406 = vmatprep.subr.mxu1 %v3032_v34  ;;  %4336 = vmatpush1.msra.mxu0 %v2903_v36  ;;  %v2988_v18 = vld [vmem:[%s7225_s8 + $0x13b8] sm:$0xff]  ;;  %v3115_v22 = vld [vmem:[%s7225_s8 + $0x17b0] sm:$0xff] }
 0x3c8   : > { %4407 = vmatpush1.msra.mxu1 %v3031_v37  ;;  %4337 = vmatprep.subr.mxu0 %v2900_v10  ;;  %v3116_v19 = vld [vmem:[%s7225_s8 + $0x17b8] sm:$0xff]  ;;  %v2983_v27 = vld [vmem:[%s7225_s8 + $0x1390] sm:$0xff] }
 0x3c9   : > { %4408 = vmatprep.subr.mxu1 %v3028_v38  ;;  %4338 = vmatpush1.msra.mxu0 %v2899_v12  ;;  %v2984_v23 = vld [vmem:[%s7225_s8 + $0x1398] sm:$0xff]  ;;  %v3111_v29 = vld [vmem:[%s7225_s8 + $0x1790] sm:$0xff]  ;;  %v3606_v38 = vpop.f32.mrf.mxu1  ;;  %v3537_v12 = vpop.f32.mrf.mxu0 }
 0x3ca   : > { %4409 = vmatpush1.msra.mxu1 %v3027_v39  ;;  %4339 = vmatprep.subr.mxu0 %v2896_v0  ;;  %v3112_v24 = vld [vmem:[%s7225_s8 + $0x1798] sm:$0xff]  ;;  %v2979_v34 = vld [vmem:[%s7225_s8 + $0x1370] sm:$0xff] }
 0x3cb   : > { %4410 = vmatprep.subr.mxu1 %v3024_v3  ;;  %4340 = vmatpush1.msra.mxu0 %v2895_v41  ;;  %v2980_v31 = vld [vmem:[%s7225_s8 + $0x1378] sm:$0xff]  ;;  %v3107_v36 = vld [vmem:[%s7225_s8 + $0x1770] sm:$0xff] }
 0x3cc   : > { %4411 = vmatpush1.msra.mxu1 %v3023_v42  ;;  %4341 = vmatprep.subr.mxu0 %v2892_v45  ;;  %v3108_v32 = vld [vmem:[%s7225_s8 + $0x1778] sm:$0xff]  ;;  %v2975_v39 = vld [vmem:[%s7225_s8 + $0x1350] sm:$0xff]  ;;  %v3677_v42 = vpop.f32.mrf.mxu0 }
 0x3cd   : > { %4412 = vmatprep.subr.mxu1 %v3020_v46  ;;  %4342 = vmatpush1.msra.mxu0 %v2891_v47  ;;  %v2976_v37 = vld [vmem:[%s7225_s8 + $0x1358] sm:$0xff]  ;;  %v3103_v0 = vld [vmem:[%s7225_s8 + $0x1750] sm:$0xff] }
 0x3ce   : > { %4413 = vmatpush1.msra.mxu1 %v3019_v48  ;;  %4343 = vmatprep.subr.mxu0 %v2888_v50  ;;  %v3104_v10 = vld [vmem:[%s7225_s8 + $0x1758] sm:$0xff]  ;;  %v2971_v45 = vld [vmem:[%s7225_s8 + $0x1330] sm:$0xff]  ;;  %v3608_v50 = vpop.f32.mrf.mxu1 }
 0x3cf   : > { %4414 = vmatprep.subr.mxu1 %v3016_v51  ;;  %4344 = vmatpush1.msra.mxu0 %v2887_v52  ;;  %v2972_v3 = vld [vmem:[%s7225_s8 + $0x1338] sm:$0xff]  ;;  %v3099_v46 = vld [vmem:[%s7225_s8 + $0x1730] sm:$0xff] }
 0x3d0   : > { %4415 = vmatpush1.msra.mxu1 %v3015_v53  ;;  %4345 = vmatprep.subr.mxu0 %v2884_v56  ;;  %v3100_v41 = vld [vmem:[%s7225_s8 + $0x1738] sm:$0xff]  ;;  %v2967_v51 = vld [vmem:[%s7225_s8 + $0x1310] sm:$0xff]  ;;  %v3607_v53 = vadd.f32 %v3606_v38, %v3535_v26 }
 0x3d1   : > { %4416 = vmatprep.subr.mxu1 %v3012_v57  ;;  %4346 = vmatpush1.msra.mxu0 %v2883_v58  ;;  %v2968_v47 = vld [vmem:[%s7225_s8 + $0x1318] sm:$0xff]  ;;  %v3095_v52 = vld [vmem:[%s7225_s8 + $0x1710] sm:$0xff]  ;;  %v3748_v58 = vpop.f32.mrf.mxu1 }
 0x3d2   : > { %4417 = vmatpush1.msra.mxu1 %v3011_v59  ;;  %4347 = vmatprep.subr.mxu0 %v2880_v61  ;;  %v3096_v48 = vld [vmem:[%s7225_s8 + $0x1718] sm:$0xff]  ;;  %v3679_v59 = vpop.f32.mrf.mxu0  ;;  %v2963_v61 = vld [vmem:[%s7225_s8 + $0x12f0] sm:$0xff] }
 0x3d3   : > { %4418 = vmatprep.subr.mxu1 %v3008_v62  ;;  %4348 = vmatpush1.msra.mxu0 %v2879_v1  ;;  %v2964_v56 = vld [vmem:[%s7225_s8 + $0x12f8] sm:$0xff]  ;;  %v3091_v62 = vld [vmem:[%s7225_s8 + $0x16f0] sm:$0xff]  ;;  %v3609_v1 = vadd.f32 %v3608_v50, %v3537_v12 }
 0x3d4   : > { %4419 = vmatpush1.msra.mxu1 %v3007_v2  ;;  %4349 = vmatprep.subr.mxu0 %v2876_v4  ;;  %v3092_v57 = vld [vmem:[%s7225_s8 + $0x16f8] sm:$0xff]  ;;  %v3678_v2 = vadd.f32 %v3677_v42, %v3607_v53  ;;  %v2947_v26 = vld [vmem:[%s7225_s8 + $0x1270] sm:$0xff] }
 0x3d5   : > { %4420 = vmatprep.subr.mxu1 %v3004_v5  ;;  %4350 = vmatpush1.msra.mxu0 %v2875_v6  ;;  %v2960_v4 = vld [vmem:[%s7225_s8 + $0x12d8] sm:$0xff]  ;;  %v3819_v6 = vpop.f32.mrf.mxu0 }
 0x3d6   : > { %4421 = vmatpush1.msra.mxu1 %v3003_v7  ;;  %4351 = vmatprep.subr.mxu0 %v2872_v30  ;;  %v3088_v5 = vld [vmem:[%s7225_s8 + $0x16d8] sm:$0xff]  ;;  %v2959_v7 = vld [vmem:[%s7225_s8 + $0x12d0] sm:$0xff] }
 0x3d7   : > { %4422 = vmatprep.subr.mxu1 %v3000_v8  ;;  %4352 = vmatpush1.msra.mxu0 %v2871_v20  ;;  %v3087_v30 = vld [vmem:[%s7225_s8 + $0x16d0] sm:$0xff]  ;;  %v3680_v8 = vadd.f32 %v3679_v59, %v3609_v1  ;;  %v2956_v20 = vld [vmem:[%s7225_s8 + $0x12b8] sm:$0xff] }
 0x3d8   : > { %4423 = vmatpush1.msra.mxu1 %v2999_v9  ;;  %4353 = vmatprep.subr.mxu0 %v2996_v33  ;;  %v3084_v9 = vld [vmem:[%s7225_s8 + $0x16b8] sm:$0xff]  ;;  %v3750_v33 = vpop.f32.mrf.mxu1 }
 0x3d9   : > { %4424 = vmatprep.subr.mxu1 %v3124_v11  ;;  %4354 = vmatpush2.msra.mxu0 %v2995_v13  ;;  %v2955_v11 = vld [vmem:[%s7225_s8 + $0x12b0] sm:$0xff]  ;;  %v2940_v38 = vld [vmem:[%s7225_s8 + $0x1238] sm:$0xff] }
 0x3da   : > { %4425 = vmatpush2.msra.mxu1 %v3123_v25  ;;  %4355 = vmatprep.subr.mxu0 %v2992_v14  ;;  %v3083_v13 = vld [vmem:[%s7225_s8 + $0x16b0] sm:$0xff]  ;;  %v3749_v25 = vadd.f32 %v3748_v58, %v3678_v2  ;;  %v2952_v14 = vld [vmem:[%s7225_s8 + $0x1298] sm:$0xff] }
 0x3db   : > { %4426 = vmatprep.subr.mxu1 %v3120_v15  ;;  %4356 = vmatpush2.msra.mxu0 %v2991_v16  ;;  %v3080_v15 = vld [vmem:[%s7225_s8 + $0x1698] sm:$0xff]  ;;  %v3890_v16 = vpop.f32.mrf.mxu1 }
 0x3dc   : > { %4427 = vmatpush2.msra.mxu1 %v3119_v17  ;;  %4357 = vmatprep.subr.mxu0 %v2988_v18  ;;  %v3821_v17 = vpop.f32.mrf.mxu0  ;;  %v2951_v18 = vld [vmem:[%s7225_s8 + $0x1290] sm:$0xff]  ;;  %v3068_v12 = vld [vmem:[%s7225_s8 + $0x1638] sm:$0xff] }
 0x3dd   : > { %4428 = vmatprep.subr.mxu1 %v3116_v19  ;;  %4358 = vmatpush2.msra.mxu0 %v2987_v21  ;;  %v3079_v19 = vld [vmem:[%s7225_s8 + $0x1690] sm:$0xff]  ;;  %v3751_v21 = vadd.f32 %v3750_v33, %v3680_v8  ;;  %v2936_v42 = vld [vmem:[%s7225_s8 + $0x1218] sm:$0xff] }
 0x3de   : > { %4429 = vmatpush2.msra.mxu1 %v3115_v22  ;;  %4359 = vmatprep.subr.mxu0 %v2984_v23  ;;  %v3820_v22 = vadd.f32 %v3819_v6, %v3749_v25  ;;  %v2948_v23 = vld [vmem:[%s7225_s8 + $0x1278] sm:$0xff]  ;;  %v3307_v6 = vld [vmem:[%s7225_s8 + $0x1db0] sm:$0xff] }
 0x3df   : > { %4430 = vmatprep.subr.mxu1 %v3112_v24  ;;  %4360 = vmatpush2.msra.mxu0 %v2983_v27  ;;  %v3076_v24 = vld [vmem:[%s7225_s8 + $0x1678] sm:$0xff]  ;;  %v3075_v27 = vld [vmem:[%s7225_s8 + $0x1670] sm:$0xff] }
 0x3e0   : > { %4431 = vmatpush2.msra.mxu1 %v3111_v29  ;;  %4361 = vmatprep.subr.mxu0 %v2980_v31  ;;  %v3822_v29 = vadd.f32 %v3821_v17, %v3751_v21  ;;  %v2944_v31 = vld [vmem:[%s7225_s8 + $0x1258] sm:$0xff]  ;;  %v3303_v8 = vld [vmem:[%s7225_s8 + $0x1d90] sm:$0xff] }
 0x3e1   : > { %4432 = vmatprep.subr.mxu1 %v3108_v32  ;;  %4362 = vmatpush2.msra.mxu0 %v2979_v34  ;;  %v3072_v32 = vld [vmem:[%s7225_s8 + $0x1658] sm:$0xff]  ;;  %v3892_v34 = vpop.f32.mrf.mxu1  ;;  %v3171_v33 = vld [vmem:[%s7225_s8 + $0x1970] sm:$0xff] }
 0x3e2   : > { %4433 = vmatpush2.msra.mxu1 %v3107_v36  ;;  %4363 = vmatprep.subr.mxu0 %v2976_v37  ;;  %v2943_v36 = vld [vmem:[%s7225_s8 + $0x1250] sm:$0xff]  ;;  %v3316_v58 = vld [vmem:[%s7225_s8 + $0x1df8] sm:$0xff] }
 0x3e3   : > { %4434 = vmatprep.subr.mxu1 %v3104_v10  ;;  %4364 = vmatpush2.msra.mxu0 %v2975_v39  ;;  %v3071_v37 = vld [vmem:[%s7225_s8 + $0x1650] sm:$0xff]  ;;  %v3891_v10 = vadd.f32 %v3890_v16, %v3820_v22  ;;  %v3184_v1 = vld [vmem:[%s7225_s8 + $0x19d8] sm:$0xff] }
 0x3e4   : > { %4435 = vmatpush2.msra.mxu1 %v3103_v0  ;;  %4365 = vmatprep.subr.mxu0 %v2972_v3  ;;  %v2939_v39 = vld [vmem:[%s7225_s8 + $0x1230] sm:$0xff]  ;;  %v3312_v2 = vld [vmem:[%s7225_s8 + $0x1dd8] sm:$0xff] }
 0x3e5   : > { %4436 = vmatprep.subr.mxu1 %v3100_v41  ;;  %4366 = vmatpush2.msra.mxu0 %v2971_v45  ;;  %v3067_v0 = vld [vmem:[%s7225_s8 + $0x1630] sm:$0xff]  ;;  %v3893_v41 = vadd.f32 %v3892_v34, %v3822_v29  ;;  %v3064_v45 = vld [vmem:[%s7225_s8 + $0x1618] sm:$0xff] }
 0x3e6   : > { %4437 = vmatpush2.msra.mxu1 %v3099_v46  ;;  %4367 = vmatprep.subr.mxu0 %v2968_v47  ;;  %v2935_v47 = vld [vmem:[%s7225_s8 + $0x1210] sm:$0xff]  ;;  %v3296_v25 = vld [vmem:[%s7225_s8 + $0x1d58] sm:$0xff] }
 0x3e7   : > { %4438 = vmatprep.subr.mxu1 %v3096_v48  ;;  %4368 = vmatpush2.msra.mxu0 %v2967_v51  ;;  %v3063_v51 = vld [vmem:[%s7225_s8 + $0x1610] sm:$0xff]  ;;  %v3164_v16 = vld [vmem:[%s7225_s8 + $0x1938] sm:$0xff] }
 0x3e8   : > { %4439 = vmatpush2.msra.mxu1 %v3095_v52  ;;  %4369 = vmatprep.subr.mxu0 %v2964_v56  ;;  %v3188_v56 = vld [vmem:[%s7225_s8 + $0x19f8] sm:$0xff]  ;;  %v3155_v29 = vld [vmem:[%s7225_s8 + $0x18f0] sm:$0xff] }
 0x3e9   : > { %4440 = vmatprep.subr.mxu1 %v3092_v57  ;;  %4370 = vmatpush2.msra.mxu0 %v2963_v61  ;;  %v3187_v61 = vld [vmem:[%s7225_s8 + $0x19f0] sm:$0xff]  ;;  %v3292_v17 = vld [vmem:[%s7225_s8 + $0x1d38] sm:$0xff] }
 0x3ea   : > { %4441 = vmatpush2.msra.mxu1 %v3091_v62  ;;  %4371 = vmatprep.subr.mxu0 %v2960_v4  ;;  %v3315_v62 = vld [vmem:[%s7225_s8 + $0x1df0] sm:$0xff]  ;;  %v3160_v21 = vld [vmem:[%s7225_s8 + $0x1918] sm:$0xff] }
 0x3eb   : > { %4442 = vmatprep.subr.mxu1 %v3088_v5  ;;  %4372 = vmatpush2.msra.mxu0 %v2959_v7  ;;  %v3311_v4 = vld [vmem:[%s7225_s8 + $0x1dd0] sm:$0xff]  ;;  %v3308_v5 = vld [vmem:[%s7225_s8 + $0x1db8] sm:$0xff] }
 0x3ec   : > { %4443 = vmatpush2.msra.mxu1 %v3087_v30  ;;  %4373 = vmatprep.subr.mxu0 %v2956_v20  ;;  %v3176_v7 = vld [vmem:[%s7225_s8 + $0x1998] sm:$0xff]  ;;  %v3175_v30 = vld [vmem:[%s7225_s8 + $0x1990] sm:$0xff] }
 0x3ed   : > { %4444 = vmatprep.subr.mxu1 %v3084_v9  ;;  %4374 = vmatpush2.msra.mxu0 %v2955_v11  ;;  %v3172_v20 = vld [vmem:[%s7225_s8 + $0x1978] sm:$0xff]  ;;  %v3299_v11 = vld [vmem:[%s7225_s8 + $0x1d70] sm:$0xff] }
 0x3ee   : > { %4445 = vmatpush2.msra.mxu1 %v3083_v13  ;;  %4375 = vmatprep.subr.mxu0 %v2952_v14  ;;  %v3300_v9 = vld [vmem:[%s7225_s8 + $0x1d78] sm:$0xff]  ;;  %v3167_v14 = vld [vmem:[%s7225_s8 + $0x1950] sm:$0xff] }
 0x3ef   : > { %4446 = vmatprep.subr.mxu1 %v3080_v15  ;;  %4376 = vmatpush2.msra.mxu0 %v2951_v18  ;;  %v3168_v13 = vld [vmem:[%s7225_s8 + $0x1958] sm:$0xff]  ;;  %v3295_v15 = vld [vmem:[%s7225_s8 + $0x1d50] sm:$0xff] }
 0x3f0   : > { %4447 = vmatpush2.msra.mxu1 %v3079_v19  ;;  %4377 = vmatprep.subr.mxu0 %v2948_v23  ;;  %v3163_v18 = vld [vmem:[%s7225_s8 + $0x1930] sm:$0xff]  ;;  %v3288_v22 = vld [vmem:[%s7225_s8 + $0x1d18] sm:$0xff] }
 0x3f1   : > { %4448 = vmatprep.subr.mxu1 %v3076_v24  ;;  %4378 = vmatpush2.msra.mxu0 %v2947_v26  ;;  %v3291_v19 = vld [vmem:[%s7225_s8 + $0x1d30] sm:$0xff]  ;;  %v3156_v26 = vld [vmem:[%s7225_s8 + $0x18f8] sm:$0xff] }
 0x3f2   : > { %4449 = vmatpush2.msra.mxu1 %v3075_v27  ;;  %4379 = vmatprep.subr.mxu0 %v2944_v31  ;;  %v3159_v23 = vld [vmem:[%s7225_s8 + $0x1910] sm:$0xff]  ;;  %v3284_v27 = vld [vmem:[%s7225_s8 + $0x1cf8] sm:$0xff] }
 0x3f3   : > { %4450 = vmatprep.subr.mxu1 %v3072_v32  ;;  %v3961_v3 = vpop.f32.mrf.mxu0  ;;  %4380 = vmatpush2.msra.mxu0 %v2943_v36  ;;  %v3287_v24 = vld [vmem:[%s7225_s8 + $0x1d10] sm:$0xff]  ;;  %v3152_v32 = vld [vmem:[%s7225_s8 + $0x18d8] sm:$0xff] }
 0x3f4   : > { %4451 = vmatpush2.msra.mxu1 %v3071_v37  ;;  %v3962_v46 = vadd.f32 %v3961_v3, %v3891_v10  ;;  %4381 = vmatprep.subr.mxu0 %v2940_v38  ;;  %v3283_v31 = vld [vmem:[%s7225_s8 + $0x1cf0] sm:$0xff]  ;;  %v3280_v34 = vld [vmem:[%s7225_s8 + $0x1cd8] sm:$0xff] }
 0x3f5   : > { %4452 = vmatprep.subr.mxu1 %v3068_v12  ;;  %v4032_v48 = vpop.f32.mrf.mxu1  ;;  %v3963_v50 = vpop.f32.mrf.mxu0  ;;  %4382 = vmatpush2.msra.mxu0 %v2939_v39  ;;  %v3151_v36 = vld [vmem:[%s7225_s8 + $0x18d0] sm:$0xff]  ;;  %v3148_v10 = vld [vmem:[%s7225_s8 + $0x18b8] sm:$0xff] }
 0x3f6   : > { %4453 = vmatpush2.msra.mxu1 %v3067_v0  ;;  %v8246_v52 = vadd.f32 %v4032_v48, %v3962_v46  ;;  %v3964_v53 = vadd.f32 %v3963_v50, %v3893_v41  ;;  %4383 = vmatprep.subr.mxu0 %v2936_v42  ;;  %v3279_v37 = vld [vmem:[%s7225_s8 + $0x1cd0] sm:$0xff]  ;;  %v3276_v38 = vld [vmem:[%s7225_s8 + $0x1cb8] sm:$0xff] }
 0x3f7   : > { %4454 = vmatprep.subr.mxu1 %v3064_v45  ;;  %v4034_v57 = vpop.f32.mrf.mxu1  ;;  %4384 = vmatpush2.msra.mxu0 %v2935_v47  ;;  %v3147_v12 = vld [vmem:[%s7225_s8 + $0x18b0] sm:$0xff]  ;;  %v3144_v0 = vld [vmem:[%s7225_s8 + $0x1898] sm:$0xff] }
 0x3f8   : > { %4385 = vmatprep.mubr.f32.mxu0 %v7694_v60  ;;  %v8251_v59 = vadd.f32 %v4034_v57, %v3964_v53  ;;  %4455 = vmatpush2.msra.mxu1 %v3063_v51  ;;  %v3183_v60 = vld [vmem:[%s7225_s8 + $0x19d0] sm:$0xff]  ;;  %v3272_v3 = vld [vmem:[%s7225_s8 + $0x1c98] sm:$0xff] }
 0x3f9   : > { %4386 = vmatmul.mubr.f32.vlgmr.msra.gmra.mxu0 %v7679_v49  ;;  %4456 = vmatprep.mubr.f32.mxu1 %v7700_v63  ;;  %v3180_v49 = vld [vmem:[%s7225_s8 + $0x19b8] sm:$0xff]  ;;  %v3179_v63 = vld [vmem:[%s7225_s8 + $0x19b0] sm:$0xff] }
 0x3fa   : > { %4463 = vmatprep.subr.mxu0 %v3188_v56  ;;  %4534 = vmatprep.subr.mxu1 %v3316_v58  ;;  %v3275_v39 = vld [vmem:[%s7225_s8 + $0x1cb0] sm:$0xff]  ;;  %v3140_v45 = vld [vmem:[%s7225_s8 + $0x1878] sm:$0xff] }
 0x3fb   : > { %4457 = vmatmul.mubr.f32.vlgmr.msra.gmra.mxu1 %v7686_v55  ;;  %4464 = vmatpush1.msra.mxu0 %v3187_v61  ;;  %v3304_v55 = vld [vmem:[%s7225_s8 + $0x1d98] sm:$0xff]  ;;  %v3143_v41 = vld [vmem:[%s7225_s8 + $0x1890] sm:$0xff] }
 0x3fc   : > { %4535 = vmatpush1.msra.mxu1 %v3315_v62  ;;  %4465 = vmatprep.subr.mxu0 %v3184_v1  ;;  %v3271_v42 = vld [vmem:[%s7225_s8 + $0x1c90] sm:$0xff]  ;;  %v3268_v46 = vld [vmem:[%s7225_s8 + $0x1c78] sm:$0xff] }
 0x3fd   : > { %4536 = vmatprep.subr.mxu1 %v3312_v2  ;;  %4466 = vmatpush1.msra.mxu0 %v3183_v60  ;;  %v3139_v47 = vld [vmem:[%s7225_s8 + $0x1870] sm:$0xff]  ;;  %v3136_v50 = vld [vmem:[%s7225_s8 + $0x1858] sm:$0xff] }
 0x3fe   : > { %4537 = vmatpush1.msra.mxu1 %v3311_v4  ;;  %4467 = vmatprep.subr.mxu0 %v3180_v49  ;;  %v3267_v48 = vld [vmem:[%s7225_s8 + $0x1c70] sm:$0xff]  ;;  %v3264_v51 = vld [vmem:[%s7225_s8 + $0x1c58] sm:$0xff] }
 0x3ff   : > { %4538 = vmatprep.subr.mxu1 %v3308_v5  ;;  %4468 = vmatpush1.msra.mxu0 %v3179_v63  ;;  %v3135_v53 = vld [vmem:[%s7225_s8 + $0x1850] sm:$0xff]  ;;  %v3132_v57 = vld [vmem:[%s7225_s8 + $0x1838] sm:$0xff] }
 0x400   : > { %4539 = vmatpush1.msra.mxu1 %v3307_v6  ;;  %4469 = vmatprep.subr.mxu0 %v3176_v7  ;;  %v3263_v56 = vld [vmem:[%s7225_s8 + $0x1c50] sm:$0xff]  ;;  %v3260_v58 = vld [vmem:[%s7225_s8 + $0x1c38] sm:$0xff] }
 0x401   : > { %4540 = vmatprep.subr.mxu1 %v3304_v55  ;;  %4470 = vmatpush1.msra.mxu0 %v3175_v30  ;;  %v3131_v61 = vld [vmem:[%s7225_s8 + $0x1830] sm:$0xff]  ;;  %v3128_v1 = vld [vmem:[%s7225_s8 + $0x1818] sm:$0xff] }
 0x402   : > { %4541 = vmatpush1.msra.mxu1 %v3303_v8  ;;  %4471 = vmatprep.subr.mxu0 %v3172_v20  ;;  %v3259_v62 = vld [vmem:[%s7225_s8 + $0x1c30] sm:$0xff]  ;;  %v3256_v2 = vld [vmem:[%s7225_s8 + $0x1c18] sm:$0xff] }
 0x403   : > { %4542 = vmatprep.subr.mxu1 %v3300_v9  ;;  %4472 = vmatpush1.msra.mxu0 %v3171_v33  ;;  %v3127_v60 = vld [vmem:[%s7225_s8 + $0x1810] sm:$0xff]  ;;  %v3252_v49 = vld [vmem:[%s7225_s8 + $0x1bf8] sm:$0xff] }
 0x404   : > { %4543 = vmatpush1.msra.mxu1 %v3299_v11  ;;  %4473 = vmatprep.subr.mxu0 %v3168_v13  ;;  %v3255_v4 = vld [vmem:[%s7225_s8 + $0x1c10] sm:$0xff]  ;;  %v3380_v5 = vld [vmem:[%s7225_s8 + $0x1ff8] sm:$0xff] }
 0x405   : > { %4544 = vmatprep.subr.mxu1 %v3296_v25  ;;  %4474 = vmatpush1.msra.mxu0 %v3167_v14  ;;  %v3251_v63 = vld [vmem:[%s7225_s8 + $0x1bf0] sm:$0xff]  ;;  %v3248_v7 = vld [vmem:[%s7225_s8 + $0x1bd8] sm:$0xff] }
 0x406   : > { %4545 = vmatpush1.msra.mxu1 %v3295_v15  ;;  %4475 = vmatprep.subr.mxu0 %v3164_v16  ;;  %v3379_v6 = vld [vmem:[%s7225_s8 + $0x1ff0] sm:$0xff]  ;;  %v3376_v55 = vld [vmem:[%s7225_s8 + $0x1fd8] sm:$0xff] }
 0x407   : > { %4546 = vmatprep.subr.mxu1 %v3292_v17  ;;  %4476 = vmatpush1.msra.mxu0 %v3163_v18  ;;  %v3247_v30 = vld [vmem:[%s7225_s8 + $0x1bd0] sm:$0xff]  ;;  %v3244_v20 = vld [vmem:[%s7225_s8 + $0x1bb8] sm:$0xff] }
 0x408   : > { %4547 = vmatpush1.msra.mxu1 %v3291_v19  ;;  %4477 = vmatprep.subr.mxu0 %v3160_v21  ;;  %v3375_v8 = vld [vmem:[%s7225_s8 + $0x1fd0] sm:$0xff]  ;;  %v3372_v9 = vld [vmem:[%s7225_s8 + $0x1fb8] sm:$0xff] }
 0x409   : > { %4548 = vmatprep.subr.mxu1 %v3288_v22  ;;  %4478 = vmatpush1.msra.mxu0 %v3159_v23  ;;  %v3243_v33 = vld [vmem:[%s7225_s8 + $0x1bb0] sm:$0xff]  ;;  %v3240_v13 = vld [vmem:[%s7225_s8 + $0x1b98] sm:$0xff] }
 0x40a   : > { %4549 = vmatpush1.msra.mxu1 %v3287_v24  ;;  %4479 = vmatprep.subr.mxu0 %v3156_v26  ;;  %v3371_v11 = vld [vmem:[%s7225_s8 + $0x1fb0] sm:$0xff]  ;;  %v3368_v25 = vld [vmem:[%s7225_s8 + $0x1f98] sm:$0xff] }
 0x40b   : > { %4550 = vmatprep.subr.mxu1 %v3284_v27  ;;  %4480 = vmatpush1.msra.mxu0 %v3155_v29  ;;  %v3239_v14 = vld [vmem:[%s7225_s8 + $0x1b90] sm:$0xff]  ;;  %v3236_v16 = vld [vmem:[%s7225_s8 + $0x1b78] sm:$0xff] }
 0x40c   : > { %4551 = vmatpush1.msra.mxu1 %v3283_v31  ;;  %4481 = vmatprep.subr.mxu0 %v3152_v32  ;;  %v3367_v15 = vld [vmem:[%s7225_s8 + $0x1f90] sm:$0xff]  ;;  %v3364_v17 = vld [vmem:[%s7225_s8 + $0x1f78] sm:$0xff] }
 0x40d   : > { %4552 = vmatprep.subr.mxu1 %v3280_v34  ;;  %4482 = vmatpush1.msra.mxu0 %v3151_v36  ;;  %v3235_v18 = vld [vmem:[%s7225_s8 + $0x1b70] sm:$0xff]  ;;  %v3232_v21 = vld [vmem:[%s7225_s8 + $0x1b58] sm:$0xff] }
 0x40e   : > { %4553 = vmatpush1.msra.mxu1 %v3279_v37  ;;  %4483 = vmatprep.subr.mxu0 %v3148_v10  ;;  %v3363_v19 = vld [vmem:[%s7225_s8 + $0x1f70] sm:$0xff]  ;;  %v3360_v22 = vld [vmem:[%s7225_s8 + $0x1f58] sm:$0xff] }
 0x40f   : > { %4554 = vmatprep.subr.mxu1 %v3276_v38  ;;  %4484 = vmatpush1.msra.mxu0 %v3147_v12  ;;  %v3231_v23 = vld [vmem:[%s7225_s8 + $0x1b50] sm:$0xff]  ;;  %v3228_v26 = vld [vmem:[%s7225_s8 + $0x1b38] sm:$0xff] }
 0x410   : > { %4555 = vmatpush1.msra.mxu1 %v3275_v39  ;;  %4485 = vmatprep.subr.mxu0 %v3144_v0  ;;  %v3359_v24 = vld [vmem:[%s7225_s8 + $0x1f50] sm:$0xff]  ;;  %v3356_v27 = vld [vmem:[%s7225_s8 + $0x1f38] sm:$0xff] }
 0x411   : > { %4556 = vmatprep.subr.mxu1 %v3272_v3  ;;  %4486 = vmatpush1.msra.mxu0 %v3143_v41  ;;  %v3227_v29 = vld [vmem:[%s7225_s8 + $0x1b30] sm:$0xff]  ;;  %v3224_v32 = vld [vmem:[%s7225_s8 + $0x1b18] sm:$0xff] }
 0x412   : > { %4557 = vmatpush1.msra.mxu1 %v3271_v42  ;;  %4487 = vmatprep.subr.mxu0 %v3140_v45  ;;  %v3355_v31 = vld [vmem:[%s7225_s8 + $0x1f30] sm:$0xff]  ;;  %v3352_v34 = vld [vmem:[%s7225_s8 + $0x1f18] sm:$0xff] }
 0x413   : > { %4558 = vmatprep.subr.mxu1 %v3268_v46  ;;  %4488 = vmatpush1.msra.mxu0 %v3139_v47  ;;  %v3223_v36 = vld [vmem:[%s7225_s8 + $0x1b10] sm:$0xff]  ;;  %v3220_v10 = vld [vmem:[%s7225_s8 + $0x1af8] sm:$0xff] }
 0x414   : > { %4559 = vmatpush1.msra.mxu1 %v3267_v48  ;;  %4489 = vmatprep.subr.mxu0 %v3136_v50  ;;  %v3351_v37 = vld [vmem:[%s7225_s8 + $0x1f10] sm:$0xff]  ;;  %v3348_v38 = vld [vmem:[%s7225_s8 + $0x1ef8] sm:$0xff] }
 0x415   : > { %4560 = vmatprep.subr.mxu1 %v3264_v51  ;;  %4490 = vmatpush1.msra.mxu0 %v3135_v53  ;;  %v3219_v12 = vld [vmem:[%s7225_s8 + $0x1af0] sm:$0xff]  ;;  %v3216_v0 = vld [vmem:[%s7225_s8 + $0x1ad8] sm:$0xff] }
 0x416   : > { %4561 = vmatpush1.msra.mxu1 %v3263_v56  ;;  %4491 = vmatprep.subr.mxu0 %v3132_v57  ;;  %v3347_v39 = vld [vmem:[%s7225_s8 + $0x1ef0] sm:$0xff]  ;;  %v3344_v3 = vld [vmem:[%s7225_s8 + $0x1ed8] sm:$0xff] }
 0x417   : > { %4562 = vmatprep.subr.mxu1 %v3260_v58  ;;  %4492 = vmatpush1.msra.mxu0 %v3131_v61  ;;  %v3215_v41 = vld [vmem:[%s7225_s8 + $0x1ad0] sm:$0xff]  ;;  %v3212_v45 = vld [vmem:[%s7225_s8 + $0x1ab8] sm:$0xff] }
 0x418   : > { %4563 = vmatpush1.msra.mxu1 %v3259_v62  ;;  %4493 = vmatprep.subr.mxu0 %v3128_v1  ;;  %v3343_v42 = vld [vmem:[%s7225_s8 + $0x1ed0] sm:$0xff]  ;;  %v3340_v46 = vld [vmem:[%s7225_s8 + $0x1eb8] sm:$0xff] }
 0x419   : > { %4564 = vmatprep.subr.mxu1 %v3256_v2  ;;  %4494 = vmatpush1.msra.mxu0 %v3127_v60  ;;  %v3211_v47 = vld [vmem:[%s7225_s8 + $0x1ab0] sm:$0xff]  ;;  %v3208_v50 = vld [vmem:[%s7225_s8 + $0x1a98] sm:$0xff] }
 0x41a   : > { %4565 = vmatpush1.msra.mxu1 %v3255_v4  ;;  %4495 = vmatprep.subr.mxu0 %v3252_v49  ;;  %v3339_v48 = vld [vmem:[%s7225_s8 + $0x1eb0] sm:$0xff]  ;;  %v3336_v51 = vld [vmem:[%s7225_s8 + $0x1e98] sm:$0xff] }
 0x41b   : > { %4566 = vmatprep.subr.mxu1 %v3380_v5  ;;  %4496 = vmatpush2.msra.mxu0 %v3251_v63  ;;  %v3207_v53 = vld [vmem:[%s7225_s8 + $0x1a90] sm:$0xff]  ;;  %v3204_v57 = vld [vmem:[%s7225_s8 + $0x1a78] sm:$0xff] }
 0x41c   : > { %4567 = vmatpush2.msra.mxu1 %v3379_v6  ;;  %4497 = vmatprep.subr.mxu0 %v3248_v7  ;;  %v3335_v56 = vld [vmem:[%s7225_s8 + $0x1e90] sm:$0xff]  ;;  %v3332_v58 = vld [vmem:[%s7225_s8 + $0x1e78] sm:$0xff] }
 0x41d   : > { %4568 = vmatprep.subr.mxu1 %v3376_v55  ;;  %4498 = vmatpush2.msra.mxu0 %v3247_v30  ;;  %v3203_v61 = vld [vmem:[%s7225_s8 + $0x1a70] sm:$0xff]  ;;  %v3200_v1 = vld [vmem:[%s7225_s8 + $0x1a58] sm:$0xff] }
 0x41e   : > { %4569 = vmatpush2.msra.mxu1 %v3375_v8  ;;  %4499 = vmatprep.subr.mxu0 %v3244_v20  ;;  %v3331_v62 = vld [vmem:[%s7225_s8 + $0x1e70] sm:$0xff]  ;;  %v3328_v2 = vld [vmem:[%s7225_s8 + $0x1e58] sm:$0xff] }
 0x41f   : > { %4570 = vmatprep.subr.mxu1 %v3372_v9  ;;  %4500 = vmatpush2.msra.mxu0 %v3243_v33  ;;  %v3199_v60 = vld [vmem:[%s7225_s8 + $0x1a50] sm:$0xff]  ;;  %v3196_v49 = vld [vmem:[%s7225_s8 + $0x1a38] sm:$0xff] }
 0x420   : > { %4571 = vmatpush2.msra.mxu1 %v3371_v11  ;;  %4501 = vmatprep.subr.mxu0 %v3240_v13  ;;  %v3327_v4 = vld [vmem:[%s7225_s8 + $0x1e50] sm:$0xff]  ;;  %v3324_v5 = vld [vmem:[%s7225_s8 + $0x1e38] sm:$0xff] }
 0x421   : > { %4572 = vmatprep.subr.mxu1 %v3368_v25  ;;  %4502 = vmatpush2.msra.mxu0 %v3239_v14  ;;  %v3195_v63 = vld [vmem:[%s7225_s8 + $0x1a30] sm:$0xff]  ;;  %v3192_v7 = vld [vmem:[%s7225_s8 + $0x1a18] sm:$0xff] }
 0x422   : > { %4573 = vmatpush2.msra.mxu1 %v3367_v15  ;;  %4503 = vmatprep.subr.mxu0 %v3236_v16  ;;  %v3323_v6 = vld [vmem:[%s7225_s8 + $0x1e30] sm:$0xff]  ;;  %v3320_v55 = vld [vmem:[%s7225_s8 + $0x1e18] sm:$0xff] }
 0x423   : > { %4574 = vmatprep.subr.mxu1 %v3364_v17  ;;  %4504 = vmatpush2.msra.mxu0 %v3235_v18  ;;  %v3191_v30 = vld [vmem:[%s7225_s8 + $0x1a10] sm:$0xff] }
 0x424   : > { %4575 = vmatpush2.msra.mxu1 %v3363_v19  ;;  %4505 = vmatprep.subr.mxu0 %v3232_v21  ;;  %v3319_v8 = vld [vmem:[%s7225_s8 + $0x1e10] sm:$0xff] }
 0x425   : > { %4576 = vmatprep.subr.mxu1 %v3360_v22  ;;  %4506 = vmatpush2.msra.mxu0 %v3231_v23 }
 0x426   : > { %4577 = vmatpush2.msra.mxu1 %v3359_v24  ;;  %4507 = vmatprep.subr.mxu0 %v3228_v26 }
 0x427   : > { %4578 = vmatprep.subr.mxu1 %v3356_v27  ;;  %4508 = vmatpush2.msra.mxu0 %v3227_v29 }
 0x428   : > { %4579 = vmatpush2.msra.mxu1 %v3355_v31  ;;  %4509 = vmatprep.subr.mxu0 %v3224_v32 }
 0x429   : > { %4580 = vmatprep.subr.mxu1 %v3352_v34  ;;  %4510 = vmatpush2.msra.mxu0 %v3223_v36 }
 0x42a   : > { %4581 = vmatpush2.msra.mxu1 %v3351_v37  ;;  %4511 = vmatprep.subr.mxu0 %v3220_v10 }
 0x42b   : > { %4582 = vmatprep.subr.mxu1 %v3348_v38  ;;  %4512 = vmatpush2.msra.mxu0 %v3219_v12 }
 0x42c   : > { %4583 = vmatpush2.msra.mxu1 %v3347_v39  ;;  %4513 = vmatprep.subr.mxu0 %v3216_v0 }
 0x42d   : > { %4584 = vmatprep.subr.mxu1 %v3344_v3  ;;  %4514 = vmatpush2.msra.mxu0 %v3215_v41 }
 0x42e   : > { %4585 = vmatpush2.msra.mxu1 %v3343_v42  ;;  %4515 = vmatprep.subr.mxu0 %v3212_v45 }
 0x42f   : > { %4586 = vmatprep.subr.mxu1 %v3340_v46  ;;  %4516 = vmatpush2.msra.mxu0 %v3211_v47 }
 0x430   : > { %4587 = vmatpush2.msra.mxu1 %v3339_v48  ;;  %4517 = vmatprep.subr.mxu0 %v3208_v50 }
 0x431   : > { %4588 = vmatprep.subr.mxu1 %v3336_v51  ;;  %4518 = vmatpush2.msra.mxu0 %v3207_v53 }
 0x432   : > { %4589 = vmatpush2.msra.mxu1 %v3335_v56  ;;  %4519 = vmatprep.subr.mxu0 %v3204_v57 }
 0x433   : > { %4590 = vmatprep.subr.mxu1 %v3332_v58  ;;  %4520 = vmatpush2.msra.mxu0 %v3203_v61 }
 0x434   : > { %4591 = vmatpush2.msra.mxu1 %v3331_v62  ;;  %4521 = vmatprep.subr.mxu0 %v3200_v1 }
 0x435   : > { %4592 = vmatprep.subr.mxu1 %v3328_v2  ;;  %4522 = vmatpush2.msra.mxu0 %v3199_v60  ;;  %v4103_v20 = vpop.f32.mrf.mxu0 }
 0x436   : > { %4593 = vmatpush2.msra.mxu1 %v3327_v4  ;;  %4523 = vmatprep.subr.mxu0 %v3196_v49  ;;  %v4174_v9 = vpop.f32.mrf.mxu1 }
 0x437   : > { %4594 = vmatprep.subr.mxu1 %v3324_v5  ;;  %4524 = vmatpush2.msra.mxu0 %v3195_v63  ;;  %v4105_v33 = vpop.f32.mrf.mxu0  ;;  %v4175_v25 = vadd.f32 %v4174_v9, %v4103_v20 }
 0x438   : > { %4595 = vmatpush2.msra.mxu1 %v3323_v6  ;;  %4525 = vmatprep.subr.mxu0 %v3192_v7  ;;  %v4176_v13 = vpop.f32.mrf.mxu1 }
 0x439   : > { %4596 = vmatprep.subr.mxu1 %v3320_v55  ;;  %4526 = vmatpush2.msra.mxu0 %v3191_v30  ;;  %v4177_v16 = vadd.f32 %v4176_v13, %v4105_v33 }
 0x43a   : > { %4527 = vmatprep.mubr.f32.mxu0 %v7842_v40  ;;  %4597 = vmatpush2.msra.mxu1 %v3319_v8 }
 0x43b   : > { %4598 = vmatprep.mubr.f32.mxu1 %v7848_v43  ;;  %4528 = vmatmul.mubr.f32.vlgmr.msra.gmra.mxu0 %v7827_v28 }
 0x43c   : > { %4599 = vmatmul.mubr.f32.vlgmr.msra.gmra.mxu1 %v7834_v35 }
 0x477   : > { %v4245_v11 = vpop.f32.mrf.mxu0 }
 0x478   : > { %v4246_v17 = vadd.f32 %v4245_v11, %v4175_v25 }
 0x479   : > { %v4316_v14 = vpop.f32.mrf.mxu1  ;;  %v4247_v15 = vpop.f32.mrf.mxu0 }
 0x47a   : > { %v4248_v19 = vadd.f32 %v4247_v15, %v4177_v16  ;;  %v4317_v21 = vadd.f32 %v4316_v14, %v4246_v17 }
 0x47b   : > { %v4318_v40 = vpop.f32.mrf.mxu1 }
 0x47c   : > { %v4319_v28 = vadd.f32 %v4318_v40, %v4248_v19 }
 0x4b9   : > { %v4387_v18 = vpop.f32.mrf.mxu0 }
 0x4ba   : > { %v4388_v23 = vadd.f32 %v4387_v18, %v4317_v21 }
 0x4bb   : > { %v4458_v22 = vpop.f32.mrf.mxu1  ;;  %v4389_v43 = vpop.f32.mrf.mxu0 }
 0x4bc   : > { %v4390_v35 = vadd.f32 %v4389_v43, %v4319_v28  ;;  %v4459_v26 = vadd.f32 %v4458_v22, %v4388_v23 }
 0x4bd   : > { %v4460_v24 = vpop.f32.mrf.mxu1 }
 0x4be   : > { %v4461_v31 = vadd.f32 %v4460_v24, %v4390_v35 }
 0x4fb   : > { %v4529_v27 = vpop.f32.mrf.mxu0 }
 0x4fc   : > { %v4600_v29 = vpop.f32.mrf.mxu1  ;;  %v4530_v32 = vadd.f32 %v4529_v27, %v4459_v26  ;;  %4608 = sbr.rel (%p4831_p5) target bundleno = 1294 (0x50e), region = 63 }
 0x4fd   : > { %v4531_v34 = vpop.f32.mrf.mxu0 }
 0x4fe   : > { %v4601_v36 = vadd.f32 %v4600_v29, %v4530_v32  ;;  %v4532_v37 = vadd.f32 %v4531_v34, %v4461_v31  ;;  %v4602_v10 = vpop.f32.mrf.mxu1 }
 0x500   : > { %v4603_v38 = vadd.f32 %v4602_v10, %v4532_v37 }
 0x501   : > { %v4609_v12 = vld [vmem:[%s2342_s6] sm:$0xf]  ;;  %v4613_v39 = vsub.s32 0, %v7361_v44  ;;  %v4617_v0 = vsub.s32 1, %v7361_v44  ;;  %v4621_v3 = vsub.s32 2, %v7361_v44  ;;  %v4625_v41 = vsub.s32 3, %v7361_v44 }
 0x503   : > { %v4614_v42 = vrot.slane %v4609_v12, %v4613_v39  ;;  %v4618_v45 = vrot.slane %v4609_v12, %v4617_v0  ;;  %v4622_v46 = vrot.slane %v4609_v12, %v4621_v3  ;;  %v4626_v47 = vrot.slane %v4609_v12, %v4625_v41 }
 0x505   : > { %v4631_v48 = vadd.f32 %v4614_v42, %v8246_v52  ;;  %v4632_v50 = vadd.f32 %v4618_v45, %v8251_v59  ;;  %v4633_v51 = vadd.f32 %v4622_v46, %v4601_v36  ;;  %v4634_v53 = vadd.f32 %v4626_v47, %v4603_v38 }
 0x507   : > { %v4639_v56 = vcombine.low %v4631_v48, %v4632_v50  ;;  %v4640_v57 = vcombine.low %v4633_v51, %v4634_v53 }
 0x509   : > { %v4647_v58 = vrot.slane %v4639_v56, %v7372_v54  ;;  %v4654_v61 = vrot.slane %v4640_v57, %v7372_v54 }
 0x50b   : > { %v4655_v62 = vcombine.low %v4647_v58, %v4654_v61 }
 0x50d   : > { %4657 = vst [vmem:[%s8387_s14] sm:$0xff] %v4655_v62 }
 0x50e PF: > { %p4832_p6 = scmp.eq.s32.totalorder %s5020_s20, 0 }
 0x510   : > { %4661 = sbr.rel (%p4832_p6) target bundleno = 1310 (0x51e), region = 67 }
 0x515   : > { %v4667_v44 = vcombine.low %v8246_v52, %v8251_v59  ;;  %v4668_v1 = vcombine.low %v4601_v36, %v4603_v38  ;;  %v4662_v4 = vld [vmem:[%s8387_s14] sm:$0xff] }
 0x517   : > { %v4675_v2 = vrot.slane %v4667_v44, %v7372_v54  ;;  %v4682_v60 = vrot.slane %v4668_v1, %v7372_v54 }
 0x519   : > { %v4683_v49 = vcombine.low %v4675_v2, %v4682_v60 }
 0x51b   : > { %v4685_v5 = vadd.f32 %v4683_v49, %v4662_v4 }
 0x51d   : > { %4686 = vst [vmem:[%s8387_s14] sm:$0xff] %v4685_v5 }
 0x51e PF: > { %s4839_s20 = sshll.u32 %s5024_s21, 7  ;;  %s4702_s25 = sshll.u32 %s8387_s14, 4  ;;  %s4703_s25 = int_to_ptr.vmem [resolvable:$true] %s4702_s25 }
 0x51f   : > { %s4700_s6 = scalar_lea.hbm %s8468_s4, %s4839_s20  ;;  %s8474_s18 = sand.u32 1, %s5004_s16  }
 0x520   : > { %s4688_s9 = scalar_lea.sflag [#allocation4], %s8474_s18  ;;  %s4928_s29 = scalar_lea.vmem %s4703_s25, 128 }
 0x521   : > { %p4929_p8 = scmp.ne.s32.totalorder %s4703_s25, %s4928_s29  ;;  %s5039_s5 = smov [#allocation3]  }
 0x522   : > { %s4932_s8 = sshll.u32 %s5039_s5, 4  ;;  %s4933_s8 = int_to_ptr.vmem [resolvable:$false] %s4932_s8 }
 0x523   : > { %p4930_p9 = pnand %p4929_p8, %p5137_p7  ;;  %s4934_s13 = scalar_lea.vmem %s4933_s8, 256 }
 0x524   : > { %p4935_p11 = scmp.lt.s32.totalorder %s4703_s25, %s4933_s8  ;;  %p4936_p13 = scmp.lt.s32.totalorder %s4934_s13, %s4928_s29 }
 0x525   : > { %p4931_p10 = pneg %p4930_p9 }
 0x526   : > { %p4937_p0 = por %p4936_p13, %p4935_p11 }
 0x528   : > { %p4938_p1 = pnand %p4937_p0, %p4931_p10 }
 0x52a   : > { %4941 = shalt.err (!%p4938_p1)
}
 0x52b   : > { %s4942_s21 = scalar_lea.hbm %s4700_s6, 128  ;;  %s4946_s26 = scalar_lea.hbm %s8468_s4, 256 }
 0x52c   : > { %p4943_p2 = scmp.ne.s32.totalorder %s4700_s6, %s4942_s21  ;;  %p4947_p5 = scmp.lt.s32.totalorder %s4700_s6, %s8468_s4 }
 0x52d   : > { %p4948_p6 = scmp.lt.s32.totalorder %s4946_s26, %s4942_s21 }
 0x52e   : > { %p4944_p3 = pnand %p4943_p2, %p5137_p7 }
 0x52f   : > { %p4949_p8 = por %p4948_p6, %p4947_p5 }
 0x530   : > { %p4945_p4 = pneg %p4944_p3 }
 0x532   : > { %p4950_p9 = pnand %p4949_p8, %p4945_p4 }
 0x534   : > { %4953 = shalt.err (!%p4950_p9)
}
 0x535   : > { %4840 = dma.vmem_to_hbm [thread:$0]  (%p5137_p7), %s4703_s25, 128, %s4700_s6, %s4688_s9  }
 0x536 PF: > { %p4846_p10 = scmp.ge.s32.totalorder %s5036_s24, 2  ;;  %s4714_s29 = sand.u32 1, %s5000_s15  }
 0x537   : > { %s4715_s5 = scalar_lea.sflag [#allocation4], %s4714_s29 }
 0x538   : > { %p4843_p11 = pnand %p4846_p10, %p5145_p12 }
 0x53a   : > { %p4844_p13 = pneg %p4843_p11 }
 0x53c   : > { %4995 = dma.done.wait (%p4844_p13), %s4715_s5, 128  }
 0x53d   : > { %4997 = vsyncadd (%p4844_p13), %s4715_s5, 4294967168  ;;  %s17_s24 = sadd.s32 1, %s5036_s24   ;;  %s8475_s15 = smov %s5004_s16 }
 0x53e   : > { %p14_p0 = scmp.ge.s32.totalorder %s17_s24, 6   ;;  %s8476_s16 = smov %s5008_s17 }
 0x53f   : > { %s8477_s17 = smov %s5150_s11  ;;  %s8478_s18 = smov %s5016_s19 }
 0x540   : > { %s8479_s19 = smov %s5153_s12  ;;  %s8480_s20 = smov %s5028_s22 }
 0x541   : > { %s8481_s21 = smov %s5032_s23  ;;  %s8482_s22 = smov %s8485_s27 }
 0x542   : > { %s8483_s23 = smov %s8489_s28  ;;  %16 = sbr.rel (!%p14_p0) target bundleno = 6 (0x6), region = 116 }
 0x547   :  { %4720 = vsyncpa [#allocation4], 1 }
 0x548   :  { %4722 = vsyncpa [#allocation4 + $0x1], 1 }

</bundles_post_ra>
